<compile_context>
chip_gen: v6e
topology: v6e:2x2x1
jax: 0.10.0
libtpu: 0.0.40
codegen_flags: <defaults>
</compile_context>

<pallas_src>
import functools

import jax
import jax.numpy as jnp
from jax.experimental import pallas as pl
from jax.experimental.pallas import tpu as pltpu

STATE_LEN = 4   # input frames (channels)
N_ACTIONS = 6   # e.g. Pong action space


# ------------------------------ tiling helpers ----------------------------- #
def _round_up(x, m):
    return (x + m - 1) // m * m


def _pick_tiling(m, cap=512):
    """Return (padded_M, tile_m) with tile_m a multiple of 8 dividing padded_M."""
    m8 = _round_up(m, 8)
    if m8 <= cap:
        return m8, m8
    for tm in range(cap, 127, -8):          # largest divisor of m8 in [128, cap]
        if m8 % tm == 0:
            return m8, tm
    return _round_up(m, 256), 256           # fall back: pad to multiple of 256


# ----------------------------- Pallas kernels ------------------------------ #
def _matmul_bias_kernel(x_ref, w_ref, b_ref, o_ref, *, relu):
    """One (TM, K) x (K, N) tile: y = relu?(x @ w + b)."""
    acc = jnp.dot(x_ref[...], w_ref[...], preferred_element_type=jnp.float32)
    acc = acc + b_ref[...]                   # (1, N) broadcasts over rows
    if relu:
        acc = jnp.maximum(acc, 0.0)
    o_ref[...] = acc


def _fc_head_kernel(x_ref, wfc_ref, bfc_ref, wq_ref, bq_ref, o_ref):
    """Fused: q = (relu(x @ wfc + bfc)) @ wq + bq.  Hidden stays in VMEM."""
    h = jnp.dot(x_ref[...], wfc_ref[...], preferred_element_type=jnp.float32)
    h = jnp.maximum(h + bfc_ref[...], 0.0)
    q = jnp.dot(h, wq_ref[...], preferred_element_type=jnp.float32) + bq_ref[...]
    o_ref[...] = q


_COMPILER_PARAMS = pltpu.CompilerParams(
    dimension_semantics=("parallel",),
    vmem_limit_bytes=32 << 20,
)


def matmul_bias(x, w, b, *, relu):
    """y = relu?(x @ w + b).  x: (M, K) tiled over M; w: (K, N), b: (N,) resident."""
    m, k = x.shape
    k2, n = w.shape
    assert k == k2
    mp, tm = _pick_tiling(m)
    if mp != m:
        x = jnp.pad(x, ((0, mp - m), (0, 0)))
    kern = functools.partial(_matmul_bias_kernel, relu=relu)
    out = pl.pallas_call(
        kern,
        out_shape=jax.ShapeDtypeStruct((mp, n), jnp.float32),
        grid=(mp // tm,),
        in_specs=[
            pl.BlockSpec((tm, k), lambda i: (i, 0)),   # activations: tiled over M
            pl.BlockSpec((k, n), lambda i: (0, 0)),    # weights: resident
            pl.BlockSpec((1, n), lambda i: (0, 0)),    # bias: resident
        ],
        out_specs=pl.BlockSpec((tm, n), lambda i: (i, 0)),
        compiler_params=_COMPILER_PARAMS,
    )(x, w, b.reshape(1, n))
    return out if mp == m else out[:m]


def fc_head(x, wfc, bfc, wq, bq):
    """q = (relu(x @ wfc + bfc)) @ wq + bq in one fused Pallas call (tiled over M)."""
    m, k = x.shape
    k2, h = wfc.shape
    h2, a = wq.shape
    assert k == k2 and h == h2
    mp, tm = _pick_tiling(m)
    if mp != m:
        x = jnp.pad(x, ((0, mp - m), (0, 0)))
    out = pl.pallas_call(
        _fc_head_kernel,
        out_shape=jax.ShapeDtypeStruct((mp, a), jnp.float32),
        grid=(mp // tm,),
        in_specs=[
            pl.BlockSpec((tm, k), lambda i: (i, 0)),   # flattened features, tiled
            pl.BlockSpec((k, h), lambda i: (0, 0)),    # wfc resident (6.4 MB f32)
            pl.BlockSpec((1, h), lambda i: (0, 0)),
            pl.BlockSpec((h, a), lambda i: (0, 0)),    # wq resident
            pl.BlockSpec((1, a), lambda i: (0, 0)),
        ],
        out_specs=pl.BlockSpec((tm, a), lambda i: (i, 0)),
        compiler_params=_COMPILER_PARAMS,
    )(x, wfc, bfc.reshape(1, h), wq, bq.reshape(1, a))
    return out if mp == m else out[:m]


# ------------------------------- JAX glue ---------------------------------- #
def im2col_nhwc(x, kh, kw, stride):
    """x: (N, H, W, C) -> (N*OH*OW, KH*KW*C), column order (kh, kw, c)."""
    n, h, w, c = x.shape
    oh = (h - kh) // stride + 1
    ow = (w - kw) // stride + 1
    cols = []
    for i in range(kh):
        for j in range(kw):
            cols.append(x[:, i:i + stride * oh:stride, j:j + stride * ow:stride, :])
    p = jnp.stack(cols, axis=3)                      # (n, oh, ow, kh*kw, c)
    return p.reshape(n * oh * ow, kh * kw * c), oh, ow


def conv2d_relu_nhwc(x, wmat, b, *, kh, kw, stride):
    """NHWC valid conv + bias + ReLU via im2col + Pallas matmul.  Output NHWC."""
    n = x.shape[0]
    patches, oh, ow = im2col_nhwc(x, kh, kw, stride)
    y = matmul_bias(patches, wmat, b, relu=True)     # (n*oh*ow, cout)
    return y.reshape(n, oh, ow, wmat.shape[1])       # stays NHWC, no transpose


# --------------------------- parameters (init) ------------------------------ #
def init_params(key):
    """PyTorch-layout parameters, matching the nn.Module's initializers."""
    ks = jax.random.split(key, 5)

    def xavier_normal(k, shape):   # conv weight (Cout, Cin, KH, KW)
        fan_in = shape[1] * shape[2] * shape[3]
        fan_out = shape[0] * shape[2] * shape[3]
        std = (2.0 / (fan_in + fan_out)) ** 0.5
        return std * jax.random.normal(k, shape, jnp.float32)

    def kaiming_normal(k, shape):  # linear weight (out, in), fan_in mode, relu gain
        std = (2.0 / shape[1]) ** 0.5
        return std * jax.random.normal(k, shape, jnp.float32)

    return {
        "w1": xavier_normal(ks[0], (32, STATE_LEN, 8, 8)),
        "b1": jnp.zeros((32,), jnp.float32),
        "w2": xavier_normal(ks[1], (64, 32, 4, 4)),
        "b2": jnp.zeros((64,), jnp.float32),
        "w3": xavier_normal(ks[2], (64, 64, 3, 3)),
        "b3": jnp.zeros((64,), jnp.float32),
        "wfc": kaiming_normal(ks[3], (512, 7 * 7 * 64)),
        "bfc": jnp.zeros((512,), jnp.float32),
        "wq": kaiming_normal(ks[4], (N_ACTIONS, 512)),
        "bq": jnp.zeros((N_ACTIONS,), jnp.float32),
    }


def _conv_w_to_mat(w):
    """(Cout, Cin, KH, KW) -> (KH*KW*Cin, Cout) matching im2col_nhwc column order."""
    cout, cin, kh, kw = w.shape
    return w.transpose(2, 3, 1, 0).reshape(kh * kw * cin, cout)


def prepare_params(p):
    """One-time layout conversion: matmul-ready weights, NHWC-ordered FC columns,
    1/255 folded into conv1, FC weights pre-transposed to (in, out)."""
    # wfc columns are laid out for an NCHW (c, h, w) flatten; permute to (h, w, c)
    # so they match our NHWC flatten, then transpose to (in, out).
    wfc_nhwc = (p["wfc"].reshape(512, 64, 7, 7)
                .transpose(0, 2, 3, 1)
                .reshape(512, 7 * 7 * 64).T)                      # (3136, 512)
    return {
        "w1m": _conv_w_to_mat(p["w1"]) * (1.0 / 255.0),           # fold x/255
        "b1": p["b1"],
        "w2m": _conv_w_to_mat(p["w2"]),
        "b2": p["b2"],
        "w3m": _conv_w_to_mat(p["w3"]),
        "b3": p["b3"],
        "wfcm": wfc_nhwc,
        "bfc": p["bfc"],
        "wqm": p["wq"].T,                                         # (512, N_ACTIONS)
        "bq": p["bq"],
    }


# ------------------------------ forward pass -------------------------------- #
def convnet_forward(prep, x):
    """x: (N, 4, 84, 84) float32, raw [0, 255] pixel values, NCHW (like torch)."""
    x = x.transpose(0, 2, 3, 1)                                   # -> NHWC, once
    h = conv2d_relu_nhwc(x, prep["w1m"], prep["b1"], kh=8, kw=8, stride=4)  # (N,20,20,32)
    h = conv2d_relu_nhwc(h, prep["w2m"], prep["b2"], kh=4, kw=4, stride=2)  # (N, 9, 9,64)
    h = conv2d_relu_nhwc(h, prep["w3m"], prep["b3"], kh=3, kw=3, stride=1)  # (N, 7, 7,64)
    h = h.reshape(h.shape[0], -1)                                 # NHWC flatten (wfc permuted to match)
    return fc_head(h, prep["wfcm"], prep["bfc"], prep["wqm"], prep["bq"])   # (N, N_ACTIONS)


if __name__ == "__main__":
    key = jax.random.PRNGKey(0)
    pkey, xkey = jax.random.split(key)
    params = init_params(pkey)
    prep = prepare_params(params)                                 # one-time layout prep

    # Small batch; 84x84 spatial is required by the 7*7*64 flatten in the module.
    x = jax.random.uniform(xkey, (2, STATE_LEN, 84, 84), jnp.float32, 0.0, 255.0)

    q_values = jax.jit(convnet_forward)(prep, x)
    jax.block_until_ready(q_values)
    assert q_values.shape == (2, N_ACTIONS)
    assert q_values.dtype == jnp.float32
    assert bool(jnp.all(jnp.isfinite(q_values)))
    print("KERNEL_OK")
</pallas_src>

<mosaic_0001>
module attributes {stable_mosaic.version = 11 : i64} {
  func.func @_matmul_bias_kernel(%arg0: i32, %arg1: memref<400x256xf32, #tpu.memory_space<vmem>>, %arg2: memref<256x32xf32, #tpu.memory_space<vmem>>, %arg3: memref<1x32xf32, #tpu.memory_space<vmem>>, %arg4: memref<400x32xf32, #tpu.memory_space<vmem>>) attributes {dimension_semantics = [#tpu.dimension_semantics<parallel>], iteration_bounds = array<i64: 2>, scalar_prefetch = 0 : i64, scratch_operands = 0 : i64, tpu.core_type = #tpu.core_type<tc>, window_params = [{transform_indices = @transform_0, window_bounds = array<i64: 400, 256>}, {pipeline_mode = #tpu.pipeline_mode<synchronous>, transform_indices = @transform_1, window_bounds = array<i64: 256, 32>}, {pipeline_mode = #tpu.pipeline_mode<synchronous>, transform_indices = @transform_2, window_bounds = array<i64: 1, 32>}, {transform_indices = @transform_3, window_bounds = array<i64: 400, 32>}]} {
    %c0 = arith.constant 0 : index
    %c0_0 = arith.constant 0 : index
    %0 = vector.load %arg1[%c0, %c0_0] : memref<400x256xf32, #tpu.memory_space<vmem>>, vector<400x256xf32>
    %c0_1 = arith.constant 0 : index
    %c0_2 = arith.constant 0 : index
    %1 = vector.load %arg2[%c0_1, %c0_2] : memref<256x32xf32, #tpu.memory_space<vmem>>, vector<256x32xf32>
    %cst = arith.constant dense<0.000000e+00> : vector<400x32xf32>
    %2 = tpu.matmul %0, %1, %cst {dimension_numbers = #tpu.dot_dimension_numbers<[1], [0], [0], [1], [0, 0, 1, 1], [], []>} : vector<400x256xf32>, vector<256x32xf32>, vector<400x32xf32> -> vector<400x32xf32>
    %c0_3 = arith.constant 0 : index
    %c0_4 = arith.constant 0 : index
    %3 = vector.load %arg3[%c0_3, %c0_4] : memref<1x32xf32, #tpu.memory_space<vmem>>, vector<1x32xf32>
    %4 = vector.broadcast %3 : vector<1x32xf32> to vector<400x32xf32>
    %5 = arith.addf %2, %4 : vector<400x32xf32>
    %cst_5 = arith.constant 0.000000e+00 : f32
    %6 = vector.broadcast %cst_5 : f32 to vector<400x32xf32>
    %7 = arith.maximumf %5, %6 : vector<400x32xf32>
    %c0_6 = arith.constant 0 : index
    %c0_7 = arith.constant 0 : index
    %8 = vector.load %arg4[%c0_6, %c0_7] : memref<400x32xf32, #tpu.memory_space<vmem>>, vector<400x32xf32>
    tpu.vector_store %arg4[%c0_6, %c0_7], %7 {strides = array<i32>} : memref<400x32xf32, #tpu.memory_space<vmem>>, vector<400x32xf32>,
    return
  }
  func.func @transform_0(%arg0: i32) -> (i32, i32) {
    %c0_i32 = arith.constant 0 : i32
    %c0_i32_0 = arith.constant 0 : i32
    return %arg0, %c0_i32 : i32, i32
  }
  func.func @transform_1(%arg0: i32) -> (i32, i32) {
    %c0_i32 = arith.constant 0 : i32
    %c0_i32_0 = arith.constant 0 : i32
    %c0_i32_1 = arith.constant 0 : i32
    return %c0_i32, %c0_i32_0 : i32, i32
  }
  func.func @transform_2(%arg0: i32) -> (i32, i32) {
    %c0_i32 = arith.constant 0 : i32
    %c0_i32_0 = arith.constant 0 : i32
    %c0_i32_1 = arith.constant 0 : i32
    return %c0_i32, %c0_i32_0 : i32, i32
  }
  func.func @transform_3(%arg0: i32) -> (i32, i32) {
    %c0_i32 = arith.constant 0 : i32
    %c0_i32_0 = arith.constant 0 : i32
    return %arg0, %c0_i32 : i32, i32
  }
}

module attributes {stable_mosaic.version = 11 : i64} {
  func.func @_matmul_bias_kernel(%arg0: i32, %arg1: memref<168x512xf32, #tpu.memory_space<vmem>>, %arg2: memref<512x64xf32, #tpu.memory_space<vmem>>, %arg3: memref<1x64xf32, #tpu.memory_space<vmem>>, %arg4: memref<168x64xf32, #tpu.memory_space<vmem>>) attributes {dimension_semantics = [#tpu.dimension_semantics<parallel>], iteration_bounds = array<i64: 1>, scalar_prefetch = 0 : i64, scratch_operands = 0 : i64, tpu.core_type = #tpu.core_type<tc>, window_params = [{transform_indices = @transform_0, window_bounds = array<i64: 168, 512>}, {pipeline_mode = #tpu.pipeline_mode<synchronous>, transform_indices = @transform_1, window_bounds = array<i64: 512, 64>}, {pipeline_mode = #tpu.pipeline_mode<synchronous>, transform_indices = @transform_2, window_bounds = array<i64: 1, 64>}, {transform_indices = @transform_3, window_bounds = array<i64: 168, 64>}]} {
    %c0 = arith.constant 0 : index
    %c0_0 = arith.constant 0 : index
    %0 = vector.load %arg1[%c0, %c0_0] : memref<168x512xf32, #tpu.memory_space<vmem>>, vector<168x512xf32>
    %c0_1 = arith.constant 0 : index
    %c0_2 = arith.constant 0 : index
    %1 = vector.load %arg2[%c0_1, %c0_2] : memref<512x64xf32, #tpu.memory_space<vmem>>, vector<512x64xf32>
    %cst = arith.constant dense<0.000000e+00> : vector<168x64xf32>
    %2 = tpu.matmul %0, %1, %cst {dimension_numbers = #tpu.dot_dimension_numbers<[1], [0], [0], [1], [0, 0, 1, 1], [], []>} : vector<168x512xf32>, vector<512x64xf32>, vector<168x64xf32> -> vector<168x64xf32>
    %c0_3 = arith.constant 0 : index
    %c0_4 = arith.constant 0 : index
    %3 = vector.load %arg3[%c0_3, %c0_4] : memref<1x64xf32, #tpu.memory_space<vmem>>, vector<1x64xf32>
    %4 = vector.broadcast %3 : vector<1x64xf32> to vector<168x64xf32>
    %5 = arith.addf %2, %4 : vector<168x64xf32>
    %cst_5 = arith.constant 0.000000e+00 : f32
    %6 = vector.broadcast %cst_5 : f32 to vector<168x64xf32>
    %7 = arith.maximumf %5, %6 : vector<168x64xf32>
    %c0_6 = arith.constant 0 : index
    %c0_7 = arith.constant 0 : index
    %8 = vector.load %arg4[%c0_6, %c0_7] : memref<168x64xf32, #tpu.memory_space<vmem>>, vector<168x64xf32>
    tpu.vector_store %arg4[%c0_6, %c0_7], %7 {strides = array<i32>} : memref<168x64xf32, #tpu.memory_space<vmem>>, vector<168x64xf32>,
    return
  }
  func.func @transform_0(%arg0: i32) -> (i32, i32) {
    %c0_i32 = arith.constant 0 : i32
    %c0_i32_0 = arith.constant 0 : i32
    return %arg0, %c0_i32 : i32, i32
  }
  func.func @transform_1(%arg0: i32) -> (i32, i32) {
    %c0_i32 = arith.constant 0 : i32
    %c0_i32_0 = arith.constant 0 : i32
    %c0_i32_1 = arith.constant 0 : i32
    return %c0_i32, %c0_i32_0 : i32, i32
  }
  func.func @transform_2(%arg0: i32) -> (i32, i32) {
    %c0_i32 = arith.constant 0 : i32
    %c0_i32_0 = arith.constant 0 : i32
    %c0_i32_1 = arith.constant 0 : i32
    return %c0_i32, %c0_i32_0 : i32, i32
  }
  func.func @transform_3(%arg0: i32) -> (i32, i32) {
    %c0_i32 = arith.constant 0 : i32
    %c0_i32_0 = arith.constant 0 : i32
    return %arg0, %c0_i32 : i32, i32
  }
}

module attributes {stable_mosaic.version = 11 : i64} {
  func.func @_matmul_bias_kernel(%arg0: i32, %arg1: memref<104x576xf32, #tpu.memory_space<vmem>>, %arg2: memref<576x64xf32, #tpu.memory_space<vmem>>, %arg3: memref<1x64xf32, #tpu.memory_space<vmem>>, %arg4: memref<104x64xf32, #tpu.memory_space<vmem>>) attributes {dimension_semantics = [#tpu.dimension_semantics<parallel>], iteration_bounds = array<i64: 1>, scalar_prefetch = 0 : i64, scratch_operands = 0 : i64, tpu.core_type = #tpu.core_type<tc>, window_params = [{transform_indices = @transform_0, window_bounds = array<i64: 104, 576>}, {pipeline_mode = #tpu.pipeline_mode<synchronous>, transform_indices = @transform_1, window_bounds = array<i64: 576, 64>}, {pipeline_mode = #tpu.pipeline_mode<synchronous>, transform_indices = @transform_2, window_bounds = array<i64: 1, 64>}, {transform_indices = @transform_3, window_bounds = array<i64: 104, 64>}]} {
    %c0 = arith.constant 0 : index
    %c0_0 = arith.constant 0 : index
    %0 = vector.load %arg1[%c0, %c0_0] : memref<104x576xf32, #tpu.memory_space<vmem>>, vector<104x576xf32>
    %c0_1 = arith.constant 0 : index
    %c0_2 = arith.constant 0 : index
    %1 = vector.load %arg2[%c0_1, %c0_2] : memref<576x64xf32, #tpu.memory_space<vmem>>, vector<576x64xf32>
    %cst = arith.constant dense<0.000000e+00> : vector<104x64xf32>
    %2 = tpu.matmul %0, %1, %cst {dimension_numbers = #tpu.dot_dimension_numbers<[1], [0], [0], [1], [0, 0, 1, 1], [], []>} : vector<104x576xf32>, vector<576x64xf32>, vector<104x64xf32> -> vector<104x64xf32>
    %c0_3 = arith.constant 0 : index
    %c0_4 = arith.constant 0 : index
    %3 = vector.load %arg3[%c0_3, %c0_4] : memref<1x64xf32, #tpu.memory_space<vmem>>, vector<1x64xf32>
    %4 = vector.broadcast %3 : vector<1x64xf32> to vector<104x64xf32>
    %5 = arith.addf %2, %4 : vector<104x64xf32>
    %cst_5 = arith.constant 0.000000e+00 : f32
    %6 = vector.broadcast %cst_5 : f32 to vector<104x64xf32>
    %7 = arith.maximumf %5, %6 : vector<104x64xf32>
    %c0_6 = arith.constant 0 : index
    %c0_7 = arith.constant 0 : index
    %8 = vector.load %arg4[%c0_6, %c0_7] : memref<104x64xf32, #tpu.memory_space<vmem>>, vector<104x64xf32>
    tpu.vector_store %arg4[%c0_6, %c0_7], %7 {strides = array<i32>} : memref<104x64xf32, #tpu.memory_space<vmem>>, vector<104x64xf32>,
    return
  }
  func.func @transform_0(%arg0: i32) -> (i32, i32) {
    %c0_i32 = arith.constant 0 : i32
    %c0_i32_0 = arith.constant 0 : i32
    return %arg0, %c0_i32 : i32, i32
  }
  func.func @transform_1(%arg0: i32) -> (i32, i32) {
    %c0_i32 = arith.constant 0 : i32
    %c0_i32_0 = arith.constant 0 : i32
    %c0_i32_1 = arith.constant 0 : i32
    return %c0_i32, %c0_i32_0 : i32, i32
  }
  func.func @transform_2(%arg0: i32) -> (i32, i32) {
    %c0_i32 = arith.constant 0 : i32
    %c0_i32_0 = arith.constant 0 : i32
    %c0_i32_1 = arith.constant 0 : i32
    return %c0_i32, %c0_i32_0 : i32, i32
  }
  func.func @transform_3(%arg0: i32) -> (i32, i32) {
    %c0_i32 = arith.constant 0 : i32
    %c0_i32_0 = arith.constant 0 : i32
    return %arg0, %c0_i32 : i32, i32
  }
}

module attributes {stable_mosaic.version = 11 : i64} {
  func.func @_fc_head_kernel(%arg0: i32, %arg1: memref<8x3136xf32, #tpu.memory_space<vmem>>, %arg2: memref<3136x512xf32, #tpu.memory_space<vmem>>, %arg3: memref<1x512xf32, #tpu.memory_space<vmem>>, %arg4: memref<512x6xf32, #tpu.memory_space<vmem>>, %arg5: memref<1x6xf32, #tpu.memory_space<vmem>>, %arg6: memref<8x6xf32, #tpu.memory_space<vmem>>) attributes {dimension_semantics = [#tpu.dimension_semantics<parallel>], iteration_bounds = array<i64: 1>, scalar_prefetch = 0 : i64, scratch_operands = 0 : i64, tpu.core_type = #tpu.core_type<tc>, window_params = [{transform_indices = @transform_0, window_bounds = array<i64: 8, 3136>}, {pipeline_mode = #tpu.pipeline_mode<synchronous>, transform_indices = @transform_1, window_bounds = array<i64: 3136, 512>}, {pipeline_mode = #tpu.pipeline_mode<synchronous>, transform_indices = @transform_2, window_bounds = array<i64: 1, 512>}, {pipeline_mode = #tpu.pipeline_mode<synchronous>, transform_indices = @transform_3, window_bounds = array<i64: 512, 6>}, {pipeline_mode = #tpu.pipeline_mode<synchronous>, transform_indices = @transform_4, window_bounds = array<i64: 1, 6>}, {transform_indices = @transform_5, window_bounds = array<i64: 8, 6>}]} {
    %c0 = arith.constant 0 : index
    %c0_0 = arith.constant 0 : index
    %0 = vector.load %arg1[%c0, %c0_0] : memref<8x3136xf32, #tpu.memory_space<vmem>>, vector<8x3136xf32>
    %c0_1 = arith.constant 0 : index
    %c0_2 = arith.constant 0 : index
    %1 = vector.load %arg2[%c0_1, %c0_2] : memref<3136x512xf32, #tpu.memory_space<vmem>>, vector<3136x512xf32>
    %cst = arith.constant dense<0.000000e+00> : vector<8x512xf32>
    %2 = tpu.matmul %0, %1, %cst {dimension_numbers = #tpu.dot_dimension_numbers<[1], [0], [0], [1], [0, 0, 1, 1], [], []>} : vector<8x3136xf32>, vector<3136x512xf32>, vector<8x512xf32> -> vector<8x512xf32>
    %c0_3 = arith.constant 0 : index
    %c0_4 = arith.constant 0 : index
    %3 = vector.load %arg3[%c0_3, %c0_4] : memref<1x512xf32, #tpu.memory_space<vmem>>, vector<1x512xf32>
    %4 = vector.broadcast %3 : vector<1x512xf32> to vector<8x512xf32>
    %5 = arith.addf %2, %4 : vector<8x512xf32>
    %cst_5 = arith.constant 0.000000e+00 : f32
    %6 = vector.broadcast %cst_5 : f32 to vector<8x512xf32>
    %7 = arith.maximumf %5, %6 : vector<8x512xf32>
    %c0_6 = arith.constant 0 : index
    %c0_7 = arith.constant 0 : index
    %8 = vector.load %arg4[%c0_6, %c0_7] : memref<512x6xf32, #tpu.memory_space<vmem>>, vector<512x6xf32>
    %cst_8 = arith.constant dense<0.000000e+00> : vector<8x6xf32>
    %9 = tpu.matmul %7, %8, %cst_8 {dimension_numbers = #tpu.dot_dimension_numbers<[1], [0], [0], [1], [0, 0, 1, 1], [], []>} : vector<8x512xf32>, vector<512x6xf32>, vector<8x6xf32> -> vector<8x6xf32>
    %c0_9 = arith.constant 0 : index
    %c0_10 = arith.constant 0 : index
    %10 = vector.load %arg5[%c0_9, %c0_10] : memref<1x6xf32, #tpu.memory_space<vmem>>, vector<1x6xf32>
    %11 = vector.broadcast %10 : vector<1x6xf32> to vector<8x6xf32>
    %12 = arith.addf %9, %11 : vector<8x6xf32>
    %c0_11 = arith.constant 0 : index
    %c0_12 = arith.constant 0 : index
    %13 = vector.load %arg6[%c0_11, %c0_12] : memref<8x6xf32, #tpu.memory_space<vmem>>, vector<8x6xf32>
    tpu.vector_store %arg6[%c0_11, %c0_12], %12 {strides = array<i32>} : memref<8x6xf32, #tpu.memory_space<vmem>>, vector<8x6xf32>,
    return
  }
  func.func @transform_0(%arg0: i32) -> (i32, i32) {
    %c0_i32 = arith.constant 0 : i32
    %c0_i32_0 = arith.constant 0 : i32
    return %arg0, %c0_i32 : i32, i32
  }
  func.func @transform_1(%arg0: i32) -> (i32, i32) {
    %c0_i32 = arith.constant 0 : i32
    %c0_i32_0 = arith.constant 0 : i32
    %c0_i32_1 = arith.constant 0 : i32
    return %c0_i32, %c0_i32_0 : i32, i32
  }
  func.func @transform_2(%arg0: i32) -> (i32, i32) {
    %c0_i32 = arith.constant 0 : i32
    %c0_i32_0 = arith.constant 0 : i32
    %c0_i32_1 = arith.constant 0 : i32
    return %c0_i32, %c0_i32_0 : i32, i32
  }
  func.func @transform_3(%arg0: i32) -> (i32, i32) {
    %c0_i32 = arith.constant 0 : i32
    %c0_i32_0 = arith.constant 0 : i32
    %c0_i32_1 = arith.constant 0 : i32
    return %c0_i32, %c0_i32_0 : i32, i32
  }
  func.func @transform_4(%arg0: i32) -> (i32, i32) {
    %c0_i32 = arith.constant 0 : i32
    %c0_i32_0 = arith.constant 0 : i32
    %c0_i32_1 = arith.constant 0 : i32
    return %c0_i32, %c0_i32_0 : i32, i32
  }
  func.func @transform_5(%arg0: i32) -> (i32, i32) {
    %c0_i32 = arith.constant 0 : i32
    %c0_i32_0 = arith.constant 0 : i32
    return %arg0, %c0_i32 : i32, i32
  }
}

</mosaic_0001>

<bundles_post_ra>
// kernel: convnet_forward.4
= control target key start
LH: loop header
LB: loop body
LE: loop exit
PB: predicated region body
PF: predicated region fallthrough
CT: control target
= control target key end

     0   :  { %s902_s12 = smov 0   ;;  %s1344_s0 = inlined_call_operand.vmem [shape: f32[800,256], index: 0, kind: input, shape index: {}]   ;;  %s1345_s1 = inlined_call_operand.vmem [shape: f32[256,32], index: 1, kind: input, shape index: {}]   ;;  %s1346_s2 = inlined_call_operand.vmem [shape: f32[1,32], index: 2, kind: input, shape index: {}]   ;;  %s1347_s3 = inlined_call_operand.vmem [shape: f32[800,32], index: 3, kind: output, shape index: {}]  }
   0x1 LB: > { %s788_s13 = sadd.s32 4294967295, %s879_s12   ;;  %p792_p0 = scmp.ge.s32.totalorder %s879_s12, 1  ;;  %s879_s12 = sphi %s902_s12, %s13_s12  }
   0x2   : > { %p139_p1 = scmp.lt.s32.totalorder %s879_s12, 3 }
   0x4   : > { %p140_p2 = pnand %p792_p0, %p139_p1 }
   0x5   : > { %s164_s8 = smul.u32 (!%p140_p2), 50, %s788_s13 }
   0x6   : > { %143 = sbr.rel (%p140_p2) target bundleno = 371 (0x173), region = 32 }
   0x7   : > { %p165_p3 = scmp.lt.s32.totalorder (!%p140_p2), %s164_s8, 99 }
   0xb   : > { %v292_v0 = vld [vmem:[%s1345_s1 + $0x78] sm:$0xff]  ;;  %v881_v1 = vmov 0.0   ;;  %v291_v2 = vld [vmem:[%s1345_s1 + $0x70] sm:$0xff]  ;;  %v290_v3 = vld [vmem:[%s1345_s1 + $0x68] sm:$0xff]  ;;  %s1349_s8 = smov (!%p165_p3, %s164_s8), 99  ;;  %vm681_vm0 = vcmask 261120  }
   0xc   : > { %316 = vmatprep.subr.mxu0 %v881_v1  ;;  %800 = vmatprep.subr.mxu1 %v881_v1  ;;  %v289_v4 = vld [vmem:[%s1345_s1 + $0x60] sm:$0xff]  ;;  %v288_v5 = vld [vmem:[%s1345_s1 + $0x58] sm:$0xff]  ;;  %v287_v6 = vld [vmem:[%s1345_s1 + $0x50] sm:$0xff]  ;;  %s799_s22 = sshll.u32 %s1349_s8, 4  ;;  %s795_s7 = sshll.u32 %s1349_s8, 3 }
   0xd   : > { %317 = vmatpush1.msra.mxu0 %v292_v0  ;;  %832 = vmatpush1.msra.mxu1 %v292_v0  ;;  %v286_v7 = vld [vmem:[%s1345_s1 + $0x48] sm:$0xff]  ;;  %v285_v8 = vld [vmem:[%s1345_s1 + $0x40] sm:$0xff]  ;;  %v284_v9 = vld [vmem:[%s1345_s1 + $0x38] sm:$0xff]  ;;  %s1071_s29 = scalar_lea.vmem %s1344_s0, %s799_s22  ;;  %s1191_s11 = scalar_lea.vmem %s1347_s3, %s795_s7 }
   0xe   : > { %318 = vmatprep.subr.mxu0 %v881_v1  ;;  %801 = vmatprep.subr.mxu1 %v881_v1  ;;  %v283_v10 = vld [vmem:[%s1345_s1 + $0x30] sm:$0xff]  ;;  %v282_v11 = vld [vmem:[%s1345_s1 + $0x28] sm:$0xff]  ;;  %v281_v12 = vld [vmem:[%s1345_s1 + $0x20] sm:$0xff] }
   0xf   : > { %319 = vmatpush1.msra.mxu0 %v291_v2  ;;  %833 = vmatpush1.msra.mxu1 %v291_v2  ;;  %v280_v13 = vld [vmem:[%s1345_s1 + $0x18] sm:$0xff]  ;;  %v279_v14 = vld [vmem:[%s1345_s1 + $0x10] sm:$0xff]  ;;  %v278_v15 = vld [vmem:[%s1345_s1 + $0x8] sm:$0xff] }
  0x10   : > { %320 = vmatprep.subr.mxu0 %v881_v1  ;;  %802 = vmatprep.subr.mxu1 %v881_v1  ;;  %v277_v16 = vld [vmem:[%s1345_s1] sm:$0xff]  ;;  %v308_v17 = vld [vmem:[%s1345_s1 + $0xf8] sm:$0xff]  ;;  %v307_v18 = vld [vmem:[%s1345_s1 + $0xf0] sm:$0xff] }
  0x11   : > { %321 = vmatpush1.msra.mxu0 %v290_v3  ;;  %834 = vmatpush1.msra.mxu1 %v290_v3  ;;  %v306_v19 = vld [vmem:[%s1345_s1 + $0xe8] sm:$0xff]  ;;  %v305_v20 = vld [vmem:[%s1345_s1 + $0xe0] sm:$0xff]  ;;  %v304_v21 = vld [vmem:[%s1345_s1 + $0xd8] sm:$0xff] }
  0x12   : > { %322 = vmatprep.subr.mxu0 %v881_v1  ;;  %803 = vmatprep.subr.mxu1 %v881_v1  ;;  %v303_v22 = vld [vmem:[%s1345_s1 + $0xd0] sm:$0xff]  ;;  %v302_v23 = vld [vmem:[%s1345_s1 + $0xc8] sm:$0xff]  ;;  %v301_v24 = vld [vmem:[%s1345_s1 + $0xc0] sm:$0xff] }
  0x13   : > { %323 = vmatpush1.msra.mxu0 %v289_v4  ;;  %835 = vmatpush1.msra.mxu1 %v289_v4  ;;  %v300_v25 = vld [vmem:[%s1345_s1 + $0xb8] sm:$0xff]  ;;  %v299_v26 = vld [vmem:[%s1345_s1 + $0xb0] sm:$0xff]  ;;  %v298_v27 = vld [vmem:[%s1345_s1 + $0xa8] sm:$0xff] }
  0x14   : > { %324 = vmatprep.subr.mxu0 %v881_v1  ;;  %804 = vmatprep.subr.mxu1 %v881_v1  ;;  %v297_v28 = vld [vmem:[%s1345_s1 + $0xa0] sm:$0xff]  ;;  %v296_v29 = vld [vmem:[%s1345_s1 + $0x98] sm:$0xff]  ;;  %v295_v30 = vld [vmem:[%s1345_s1 + $0x90] sm:$0xff] }
  0x15   : > { %325 = vmatpush1.msra.mxu0 %v288_v5  ;;  %836 = vmatpush1.msra.mxu1 %v288_v5  ;;  %v294_v31 = vld [vmem:[%s1345_s1 + $0x88] sm:$0xff]  ;;  %v293_v32 = vld [vmem:[%s1345_s1 + $0x80] sm:$0xff]  ;;  %v228_v34 = vld [vmem:[%s1071_s29 + $0x198] sm:$0xff] }
  0x16   : > { %326 = vmatprep.subr.mxu0 %v881_v1  ;;  %805 = vmatprep.subr.mxu1 %v881_v1  ;;  %v178_v33 = vld [vmem:[%s1071_s29 + $0x8] sm:$0xff]  ;;  %v177_v35 = vld [vmem:[%s1071_s29] sm:$0xff]  ;;  %v227_v36 = vld [vmem:[%s1071_s29 + $0x190] sm:$0xff] }
  0x17   : > { %327 = vmatpush1.msra.mxu0 %v287_v6  ;;  %837 = vmatpush1.msra.mxu1 %v287_v6  ;;  %v180_v37 = vld [vmem:[%s1071_s29 + $0x18] sm:$0xff]  ;;  %v230_v38 = vld [vmem:[%s1071_s29 + $0x1a8] sm:$0xff]  ;;  %v179_v39 = vld [vmem:[%s1071_s29 + $0x10] sm:$0xff] }
  0x18   : > { %328 = vmatprep.subr.mxu0 %v881_v1  ;;  %806 = vmatprep.subr.mxu1 %v881_v1  ;;  %v229_v40 = vld [vmem:[%s1071_s29 + $0x1a0] sm:$0xff]  ;;  %v182_v41 = vld [vmem:[%s1071_s29 + $0x28] sm:$0xff]  ;;  %v232_v42 = vld [vmem:[%s1071_s29 + $0x1b8] sm:$0xff] }
  0x19   : > { %329 = vmatpush1.msra.mxu0 %v286_v7  ;;  %838 = vmatpush1.msra.mxu1 %v286_v7  ;;  %v181_v43 = vld [vmem:[%s1071_s29 + $0x20] sm:$0xff]  ;;  %v231_v44 = vld [vmem:[%s1071_s29 + $0x1b0] sm:$0xff]  ;;  %v184_v45 = vld [vmem:[%s1071_s29 + $0x38] sm:$0xff] }
  0x1a   : > { %330 = vmatprep.subr.mxu0 %v881_v1  ;;  %807 = vmatprep.subr.mxu1 %v881_v1  ;;  %v234_v46 = vld [vmem:[%s1071_s29 + $0x1c8] sm:$0xff]  ;;  %v183_v47 = vld [vmem:[%s1071_s29 + $0x30] sm:$0xff]  ;;  %v233_v48 = vld [vmem:[%s1071_s29 + $0x1c0] sm:$0xff] }
  0x1b   : > { %331 = vmatpush1.msra.mxu0 %v285_v8  ;;  %839 = vmatpush1.msra.mxu1 %v285_v8  ;;  %v186_v49 = vld [vmem:[%s1071_s29 + $0x48] sm:$0xff]  ;;  %v236_v50 = vld [vmem:[%s1071_s29 + $0x1d8] sm:$0xff]  ;;  %v185_v51 = vld [vmem:[%s1071_s29 + $0x40] sm:$0xff] }
  0x1c   : > { %332 = vmatprep.subr.mxu0 %v881_v1  ;;  %808 = vmatprep.subr.mxu1 %v881_v1  ;;  %v235_v52 = vld [vmem:[%s1071_s29 + $0x1d0] sm:$0xff]  ;;  %v188_v53 = vld [vmem:[%s1071_s29 + $0x58] sm:$0xff]  ;;  %v238_v54 = vld [vmem:[%s1071_s29 + $0x1e8] sm:$0xff] }
  0x1d   : > { %333 = vmatpush1.msra.mxu0 %v284_v9  ;;  %840 = vmatpush1.msra.mxu1 %v284_v9  ;;  %v187_v55 = vld [vmem:[%s1071_s29 + $0x50] sm:$0xff]  ;;  %v237_v56 = vld [vmem:[%s1071_s29 + $0x1e0] sm:$0xff]  ;;  %v190_v57 = vld [vmem:[%s1071_s29 + $0x68] sm:$0xff] }
  0x1e   : > { %334 = vmatprep.subr.mxu0 %v881_v1  ;;  %809 = vmatprep.subr.mxu1 %v881_v1  ;;  %v240_v58 = vld [vmem:[%s1071_s29 + $0x1f8] sm:$0xff]  ;;  %v189_v59 = vld [vmem:[%s1071_s29 + $0x60] sm:$0xff]  ;;  %v239_v60 = vld [vmem:[%s1071_s29 + $0x1f0] sm:$0xff] }
  0x1f   : > { %335 = vmatpush1.msra.mxu0 %v283_v10  ;;  %841 = vmatpush1.msra.mxu1 %v283_v10  ;;  %v192_v61 = vld [vmem:[%s1071_s29 + $0x78] sm:$0xff]  ;;  %v242_v62 = vld [vmem:[%s1071_s29 + $0x208] sm:$0xff]  ;;  %v191_v63 = vld [vmem:[%s1071_s29 + $0x70] sm:$0xff] }
  0x20   : > { %336 = vmatprep.subr.mxu0 %v881_v1  ;;  %810 = vmatprep.subr.mxu1 %v881_v1  ;;  %v241_v0 = vld [vmem:[%s1071_s29 + $0x200] sm:$0xff]  ;;  %v244_v2 = vld [vmem:[%s1071_s29 + $0x218] sm:$0xff]  ;;  %v243_v4 = vld [vmem:[%s1071_s29 + $0x210] sm:$0xff] }
  0x21   : > { %337 = vmatpush1.msra.mxu0 %v282_v11  ;;  %842 = vmatpush1.msra.mxu1 %v282_v11  ;;  %v193_v3 = vld [vmem:[%s1071_s29 + $0x80] sm:$0xff]  ;;  %v196_v5 = vld [vmem:[%s1071_s29 + $0x98] sm:$0xff]  ;;  %v246_v6 = vld [vmem:[%s1071_s29 + $0x228] sm:$0xff] }
  0x22   : > { %338 = vmatprep.subr.mxu0 %v881_v1  ;;  %811 = vmatprep.subr.mxu1 %v881_v1  ;;  %v195_v7 = vld [vmem:[%s1071_s29 + $0x90] sm:$0xff]  ;;  %v245_v8 = vld [vmem:[%s1071_s29 + $0x220] sm:$0xff]  ;;  %v198_v9 = vld [vmem:[%s1071_s29 + $0xa8] sm:$0xff] }
  0x23   : > { %339 = vmatpush1.msra.mxu0 %v281_v12  ;;  %843 = vmatpush1.msra.mxu1 %v281_v12  ;;  %v248_v10 = vld [vmem:[%s1071_s29 + $0x238] sm:$0xff]  ;;  %v197_v11 = vld [vmem:[%s1071_s29 + $0xa0] sm:$0xff]  ;;  %v247_v12 = vld [vmem:[%s1071_s29 + $0x230] sm:$0xff] }
  0x24   : > { %340 = vmatprep.subr.mxu0 %v881_v1  ;;  %812 = vmatprep.subr.mxu1 %v881_v1 }
  0x25   : > { %341 = vmatpush1.msra.mxu0 %v280_v13  ;;  %844 = vmatpush1.msra.mxu1 %v280_v13  ;;  %v200_v13 = vld [vmem:[%s1071_s29 + $0xb8] sm:$0xff] }
  0x26   : > { %342 = vmatprep.subr.mxu0 %v881_v1  ;;  %813 = vmatprep.subr.mxu1 %v881_v1 }
  0x27   : > { %343 = vmatpush1.msra.mxu0 %v279_v14  ;;  %845 = vmatpush1.msra.mxu1 %v279_v14  ;;  %v250_v14 = vld [vmem:[%s1071_s29 + $0x248] sm:$0xff] }
  0x28   : > { %344 = vmatprep.subr.mxu0 %v881_v1  ;;  %814 = vmatprep.subr.mxu1 %v881_v1 }
  0x29   : > { %345 = vmatpush1.msra.mxu0 %v278_v15  ;;  %846 = vmatpush1.msra.mxu1 %v278_v15  ;;  %v199_v15 = vld [vmem:[%s1071_s29 + $0xb0] sm:$0xff] }
  0x2a   : > { %346 = vmatprep.subr.mxu0 %v881_v1  ;;  %815 = vmatprep.subr.mxu1 %v881_v1 }
  0x2b   : > { %347 = vmatpush1.msra.mxu0 %v277_v16  ;;  %847 = vmatpush1.msra.mxu1 %v277_v16  ;;  %v249_v16 = vld [vmem:[%s1071_s29 + $0x240] sm:$0xff] }
  0x2c   : > { %348 = vmatprep.subr.mxu0 %v881_v1  ;;  %816 = vmatprep.subr.mxu1 %v881_v1 }
  0x2d   : > { %349 = vmatpush2.msra.mxu0 %v308_v17  ;;  %848 = vmatpush2.msra.mxu1 %v308_v17  ;;  %v202_v17 = vld [vmem:[%s1071_s29 + $0xc8] sm:$0xff] }
  0x2e   : > { %350 = vmatprep.subr.mxu0 %v881_v1  ;;  %817 = vmatprep.subr.mxu1 %v881_v1 }
  0x2f   : > { %351 = vmatpush2.msra.mxu0 %v307_v18  ;;  %849 = vmatpush2.msra.mxu1 %v307_v18  ;;  %v252_v18 = vld [vmem:[%s1071_s29 + $0x258] sm:$0xff] }
  0x30   : > { %352 = vmatprep.subr.mxu0 %v881_v1  ;;  %818 = vmatprep.subr.mxu1 %v881_v1 }
  0x31   : > { %353 = vmatpush2.msra.mxu0 %v306_v19  ;;  %850 = vmatpush2.msra.mxu1 %v306_v19  ;;  %v201_v19 = vld [vmem:[%s1071_s29 + $0xc0] sm:$0xff] }
  0x32   : > { %354 = vmatprep.subr.mxu0 %v881_v1  ;;  %819 = vmatprep.subr.mxu1 %v881_v1 }
  0x33   : > { %355 = vmatpush2.msra.mxu0 %v305_v20  ;;  %851 = vmatpush2.msra.mxu1 %v305_v20  ;;  %v251_v20 = vld [vmem:[%s1071_s29 + $0x250] sm:$0xff] }
  0x34   : > { %356 = vmatprep.subr.mxu0 %v881_v1  ;;  %820 = vmatprep.subr.mxu1 %v881_v1 }
  0x35   : > { %357 = vmatpush2.msra.mxu0 %v304_v21  ;;  %852 = vmatpush2.msra.mxu1 %v304_v21  ;;  %v204_v21 = vld [vmem:[%s1071_s29 + $0xd8] sm:$0xff] }
  0x36   : > { %358 = vmatprep.subr.mxu0 %v881_v1  ;;  %821 = vmatprep.subr.mxu1 %v881_v1 }
  0x37   : > { %359 = vmatpush2.msra.mxu0 %v303_v22  ;;  %853 = vmatpush2.msra.mxu1 %v303_v22  ;;  %v254_v22 = vld [vmem:[%s1071_s29 + $0x268] sm:$0xff] }
  0x38   : > { %360 = vmatprep.subr.mxu0 %v881_v1  ;;  %822 = vmatprep.subr.mxu1 %v881_v1 }
  0x39   : > { %361 = vmatpush2.msra.mxu0 %v302_v23  ;;  %854 = vmatpush2.msra.mxu1 %v302_v23  ;;  %v203_v23 = vld [vmem:[%s1071_s29 + $0xd0] sm:$0xff] }
  0x3a   : > { %362 = vmatprep.subr.mxu0 %v881_v1  ;;  %823 = vmatprep.subr.mxu1 %v881_v1 }
  0x3b   : > { %363 = vmatpush2.msra.mxu0 %v301_v24  ;;  %855 = vmatpush2.msra.mxu1 %v301_v24  ;;  %v253_v24 = vld [vmem:[%s1071_s29 + $0x260] sm:$0xff] }
  0x3c   : > { %364 = vmatprep.subr.mxu0 %v881_v1  ;;  %824 = vmatprep.subr.mxu1 %v881_v1 }
  0x3d   : > { %365 = vmatpush2.msra.mxu0 %v300_v25  ;;  %856 = vmatpush2.msra.mxu1 %v300_v25  ;;  %v206_v25 = vld [vmem:[%s1071_s29 + $0xe8] sm:$0xff] }
  0x3e   : > { %366 = vmatprep.subr.mxu0 %v881_v1  ;;  %825 = vmatprep.subr.mxu1 %v881_v1 }
  0x3f   : > { %367 = vmatpush2.msra.mxu0 %v299_v26  ;;  %857 = vmatpush2.msra.mxu1 %v299_v26  ;;  %v256_v26 = vld [vmem:[%s1071_s29 + $0x278] sm:$0xff] }
  0x40   : > { %368 = vmatprep.subr.mxu0 %v881_v1  ;;  %826 = vmatprep.subr.mxu1 %v881_v1 }
  0x41   : > { %369 = vmatpush2.msra.mxu0 %v298_v27  ;;  %858 = vmatpush2.msra.mxu1 %v298_v27  ;;  %v205_v27 = vld [vmem:[%s1071_s29 + $0xe0] sm:$0xff] }
  0x42   : > { %370 = vmatprep.subr.mxu0 %v881_v1  ;;  %827 = vmatprep.subr.mxu1 %v881_v1 }
  0x43   : > { %371 = vmatpush2.msra.mxu0 %v297_v28  ;;  %859 = vmatpush2.msra.mxu1 %v297_v28  ;;  %v255_v28 = vld [vmem:[%s1071_s29 + $0x270] sm:$0xff] }
  0x44   : > { %372 = vmatprep.subr.mxu0 %v881_v1  ;;  %828 = vmatprep.subr.mxu1 %v881_v1 }
  0x45   : > { %373 = vmatpush2.msra.mxu0 %v296_v29  ;;  %860 = vmatpush2.msra.mxu1 %v296_v29  ;;  %v208_v29 = vld [vmem:[%s1071_s29 + $0xf8] sm:$0xff] }
  0x46   : > { %374 = vmatprep.subr.mxu0 %v881_v1  ;;  %829 = vmatprep.subr.mxu1 %v881_v1 }
  0x47   : > { %375 = vmatpush2.msra.mxu0 %v295_v30  ;;  %861 = vmatpush2.msra.mxu1 %v295_v30  ;;  %v258_v30 = vld [vmem:[%s1071_s29 + $0x288] sm:$0xff] }
  0x48   : > { %376 = vmatprep.subr.mxu0 %v881_v1  ;;  %830 = vmatprep.subr.mxu1 %v881_v1 }
  0x49   : > { %377 = vmatpush2.msra.mxu0 %v294_v31  ;;  %862 = vmatpush2.msra.mxu1 %v294_v31  ;;  %v207_v31 = vld [vmem:[%s1071_s29 + $0xf0] sm:$0xff] }
  0x4a   : > { %378 = vmatprep.subr.mxu0 %v881_v1  ;;  %831 = vmatprep.subr.mxu1 %v881_v1  ;;  %v194_v1 = vld [vmem:[%s1071_s29 + $0x88] sm:$0xff] }
  0x4b   : > { %379 = vmatpush2.msra.mxu0 %v293_v32  ;;  %863 = vmatpush2.msra.mxu1 %v293_v32  ;;  %v257_v32 = vld [vmem:[%s1071_s29 + $0x280] sm:$0xff] }
  0x4c   : > { %380 = vmatprep.mubr.f32.mxu0 %v178_v33  ;;  %505 = vmatprep.mubr.f32.mxu1 %v228_v34  ;;  %v210_v33 = vld [vmem:[%s1071_s29 + $0x108] sm:$0xff]  ;;  %v260_v34 = vld [vmem:[%s1071_s29 + $0x298] sm:$0xff] }
  0x4d   : > { %381 = vmatmul.mubr.f32.vlgmr.msra.gmra.mxu0 %v177_v35  ;;  %506 = vmatmul.mubr.f32.vlgmr.msra.gmra.mxu1 %v227_v36  ;;  %v209_v35 = vld [vmem:[%s1071_s29 + $0x100] sm:$0xff]  ;;  %v259_v36 = vld [vmem:[%s1071_s29 + $0x290] sm:$0xff] }
  0x4e   : > { %385 = vmatprep.mubr.f32.mxu0 %v180_v37  ;;  %510 = vmatprep.mubr.f32.mxu1 %v230_v38  ;;  %v212_v37 = vld [vmem:[%s1071_s29 + $0x118] sm:$0xff]  ;;  %v262_v38 = vld [vmem:[%s1071_s29 + $0x2a8] sm:$0xff] }
  0x51   : > { %386 = vmatmul.mubr.f32.gmra.mxu0 %v179_v39  ;;  %511 = vmatmul.mubr.f32.gmra.mxu1 %v229_v40  ;;  %v211_v39 = vld [vmem:[%s1071_s29 + $0x110] sm:$0xff]  ;;  %v261_v40 = vld [vmem:[%s1071_s29 + $0x2a0] sm:$0xff] }
  0x52   : > { %390 = vmatprep.mubr.f32.mxu0 %v182_v41  ;;  %515 = vmatprep.mubr.f32.mxu1 %v232_v42  ;;  %v214_v41 = vld [vmem:[%s1071_s29 + $0x128] sm:$0xff]  ;;  %v264_v42 = vld [vmem:[%s1071_s29 + $0x2b8] sm:$0xff] }
  0x55   : > { %391 = vmatmul.mubr.f32.gmra.mxu0 %v181_v43  ;;  %516 = vmatmul.mubr.f32.gmra.mxu1 %v231_v44  ;;  %v213_v43 = vld [vmem:[%s1071_s29 + $0x120] sm:$0xff]  ;;  %v263_v44 = vld [vmem:[%s1071_s29 + $0x2b0] sm:$0xff] }
  0x56   : > { %395 = vmatprep.mubr.f32.mxu0 %v184_v45  ;;  %520 = vmatprep.mubr.f32.mxu1 %v234_v46  ;;  %v216_v45 = vld [vmem:[%s1071_s29 + $0x138] sm:$0xff]  ;;  %v266_v46 = vld [vmem:[%s1071_s29 + $0x2c8] sm:$0xff] }
  0x59   : > { %396 = vmatmul.mubr.f32.gmra.mxu0 %v183_v47  ;;  %521 = vmatmul.mubr.f32.gmra.mxu1 %v233_v48  ;;  %v215_v47 = vld [vmem:[%s1071_s29 + $0x130] sm:$0xff]  ;;  %v265_v48 = vld [vmem:[%s1071_s29 + $0x2c0] sm:$0xff] }
  0x5a   : > { %400 = vmatprep.mubr.f32.mxu0 %v186_v49  ;;  %525 = vmatprep.mubr.f32.mxu1 %v236_v50  ;;  %v218_v49 = vld [vmem:[%s1071_s29 + $0x148] sm:$0xff]  ;;  %v268_v50 = vld [vmem:[%s1071_s29 + $0x2d8] sm:$0xff] }
  0x5d   : > { %401 = vmatmul.mubr.f32.gmra.mxu0 %v185_v51  ;;  %526 = vmatmul.mubr.f32.gmra.mxu1 %v235_v52  ;;  %v217_v51 = vld [vmem:[%s1071_s29 + $0x140] sm:$0xff]  ;;  %v267_v52 = vld [vmem:[%s1071_s29 + $0x2d0] sm:$0xff] }
  0x5e   : > { %405 = vmatprep.mubr.f32.mxu0 %v188_v53  ;;  %530 = vmatprep.mubr.f32.mxu1 %v238_v54  ;;  %v220_v53 = vld [vmem:[%s1071_s29 + $0x158] sm:$0xff]  ;;  %v270_v54 = vld [vmem:[%s1071_s29 + $0x2e8] sm:$0xff] }
  0x61   : > { %406 = vmatmul.mubr.f32.gmra.mxu0 %v187_v55  ;;  %531 = vmatmul.mubr.f32.gmra.mxu1 %v237_v56  ;;  %v219_v55 = vld [vmem:[%s1071_s29 + $0x150] sm:$0xff]  ;;  %v269_v56 = vld [vmem:[%s1071_s29 + $0x2e0] sm:$0xff] }
  0x62   : > { %410 = vmatprep.mubr.f32.mxu0 %v190_v57  ;;  %535 = vmatprep.mubr.f32.mxu1 %v240_v58  ;;  %v222_v57 = vld [vmem:[%s1071_s29 + $0x168] sm:$0xff]  ;;  %v272_v58 = vld [vmem:[%s1071_s29 + $0x2f8] sm:$0xff] }
  0x65   : > { %411 = vmatmul.mubr.f32.gmra.mxu0 %v189_v59  ;;  %536 = vmatmul.mubr.f32.gmra.mxu1 %v239_v60  ;;  %v221_v59 = vld [vmem:[%s1071_s29 + $0x160] sm:$0xff]  ;;  %v271_v60 = vld [vmem:[%s1071_s29 + $0x2f0] sm:$0xff] }
  0x66   : > { %415 = vmatprep.mubr.f32.mxu0 %v192_v61  ;;  %540 = vmatprep.mubr.f32.mxu1 %v242_v62  ;;  %v224_v61 = vld [vmem:[%s1071_s29 + $0x178] sm:$0xff]  ;;  %v274_v62 = vld [vmem:[%s1071_s29 + $0x308] sm:$0xff] }
  0x69   : > { %416 = vmatmul.mubr.f32.gmra.mxu0 %v191_v63  ;;  %541 = vmatmul.mubr.f32.gmra.mxu1 %v241_v0  ;;  %v223_v63 = vld [vmem:[%s1071_s29 + $0x170] sm:$0xff]  ;;  %v273_v0 = vld [vmem:[%s1071_s29 + $0x300] sm:$0xff] }
  0x6a   : > { %420 = vmatprep.mubr.f32.mxu0 %v194_v1  ;;  %545 = vmatprep.mubr.f32.mxu1 %v244_v2  ;;  %v226_v1 = vld [vmem:[%s1071_s29 + $0x188] sm:$0xff]  ;;  %v276_v2 = vld [vmem:[%s1071_s29 + $0x318] sm:$0xff] }
  0x6d   : > { %421 = vmatmul.mubr.f32.gmra.mxu0 %v193_v3  ;;  %546 = vmatmul.mubr.f32.gmra.mxu1 %v243_v4  ;;  %v225_v3 = vld [vmem:[%s1071_s29 + $0x180] sm:$0xff]  ;;  %v275_v4 = vld [vmem:[%s1071_s29 + $0x310] sm:$0xff] }
  0x6e   : > { %425 = vmatprep.mubr.f32.mxu0 %v196_v5  ;;  %550 = vmatprep.mubr.f32.mxu1 %v246_v6  ;;  %v1183_v5 = vld [vmem:[%s1346_s2] ss:$0 sm:$0xff] }
  0x71   : > { %426 = vmatmul.mubr.f32.gmra.mxu0 %v195_v7  ;;  %551 = vmatmul.mubr.f32.gmra.mxu1 %v245_v8 }
  0x72   : > { %430 = vmatprep.mubr.f32.mxu0 %v198_v9  ;;  %555 = vmatprep.mubr.f32.mxu1 %v248_v10 }
  0x75   : > { %431 = vmatmul.mubr.f32.gmra.mxu0 %v197_v11  ;;  %556 = vmatmul.mubr.f32.gmra.mxu1 %v247_v12 }
  0x76   : > { %435 = vmatprep.mubr.f32.mxu0 %v200_v13  ;;  %560 = vmatprep.mubr.f32.mxu1 %v250_v14 }
  0x79   : > { %436 = vmatmul.mubr.f32.gmra.mxu0 %v199_v15  ;;  %561 = vmatmul.mubr.f32.gmra.mxu1 %v249_v16 }
  0x7a   : > { %440 = vmatprep.mubr.f32.mxu0 %v202_v17  ;;  %565 = vmatprep.mubr.f32.mxu1 %v252_v18 }
  0x7d   : > { %441 = vmatmul.mubr.f32.gmra.mxu0 %v201_v19  ;;  %566 = vmatmul.mubr.f32.gmra.mxu1 %v251_v20 }
  0x7e   : > { %445 = vmatprep.mubr.f32.mxu0 %v204_v21  ;;  %570 = vmatprep.mubr.f32.mxu1 %v254_v22 }
  0x81   : > { %446 = vmatmul.mubr.f32.gmra.mxu0 %v203_v23  ;;  %571 = vmatmul.mubr.f32.gmra.mxu1 %v253_v24 }
  0x82   : > { %450 = vmatprep.mubr.f32.mxu0 %v206_v25  ;;  %575 = vmatprep.mubr.f32.mxu1 %v256_v26 }
  0x85   : > { %451 = vmatmul.mubr.f32.gmra.mxu0 %v205_v27  ;;  %576 = vmatmul.mubr.f32.gmra.mxu1 %v255_v28 }
  0x86   : > { %455 = vmatprep.mubr.f32.mxu0 %v208_v29  ;;  %580 = vmatprep.mubr.f32.mxu1 %v258_v30 }
  0x89   : > { %456 = vmatmul.mubr.f32.gmra.mxu0 %v207_v31  ;;  %581 = vmatmul.mubr.f32.gmra.mxu1 %v257_v32 }
  0x8a   : > { %460 = vmatprep.mubr.f32.mxu0 %v210_v33  ;;  %585 = vmatprep.mubr.f32.mxu1 %v260_v34 }
  0x8d   : > { %461 = vmatmul.mubr.f32.gmra.mxu0 %v209_v35  ;;  %586 = vmatmul.mubr.f32.gmra.mxu1 %v259_v36 }
  0x8e   : > { %465 = vmatprep.mubr.f32.mxu0 %v212_v37  ;;  %590 = vmatprep.mubr.f32.mxu1 %v262_v38 }
  0x91   : > { %466 = vmatmul.mubr.f32.gmra.mxu0 %v211_v39  ;;  %591 = vmatmul.mubr.f32.gmra.mxu1 %v261_v40 }
  0x92   : > { %470 = vmatprep.mubr.f32.mxu0 %v214_v41  ;;  %595 = vmatprep.mubr.f32.mxu1 %v264_v42 }
  0x95   : > { %471 = vmatmul.mubr.f32.gmra.mxu0 %v213_v43  ;;  %596 = vmatmul.mubr.f32.gmra.mxu1 %v263_v44 }
  0x96   : > { %475 = vmatprep.mubr.f32.mxu0 %v216_v45  ;;  %600 = vmatprep.mubr.f32.mxu1 %v266_v46 }
  0x99   : > { %476 = vmatmul.mubr.f32.gmra.mxu0 %v215_v47  ;;  %601 = vmatmul.mubr.f32.gmra.mxu1 %v265_v48 }
  0x9a   : > { %480 = vmatprep.mubr.f32.mxu0 %v218_v49  ;;  %605 = vmatprep.mubr.f32.mxu1 %v268_v50 }
  0x9d   : > { %481 = vmatmul.mubr.f32.gmra.mxu0 %v217_v51  ;;  %606 = vmatmul.mubr.f32.gmra.mxu1 %v267_v52 }
  0x9e   : > { %485 = vmatprep.mubr.f32.mxu0 %v220_v53  ;;  %610 = vmatprep.mubr.f32.mxu1 %v270_v54 }
  0xa1   : > { %486 = vmatmul.mubr.f32.gmra.mxu0 %v219_v55  ;;  %611 = vmatmul.mubr.f32.gmra.mxu1 %v269_v56 }
  0xa2   : > { %490 = vmatprep.mubr.f32.mxu0 %v222_v57  ;;  %615 = vmatprep.mubr.f32.mxu1 %v272_v58 }
  0xa5   : > { %491 = vmatmul.mubr.f32.gmra.mxu0 %v221_v59  ;;  %616 = vmatmul.mubr.f32.gmra.mxu1 %v271_v60 }
  0xa6   : > { %495 = vmatprep.mubr.f32.mxu0 %v224_v61  ;;  %620 = vmatprep.mubr.f32.mxu1 %v274_v62 }
  0xa9   : > { %496 = vmatmul.mubr.f32.gmra.mxu0 %v223_v63  ;;  %621 = vmatmul.mubr.f32.gmra.mxu1 %v273_v0 }
  0xaa   : > { %500 = vmatprep.mubr.f32.mxu0 %v226_v1  ;;  %625 = vmatprep.mubr.f32.mxu1 %v276_v2 }
  0xad   : > { %501 = vmatmul.mubr.f32.gmra.mxu0 %v225_v3  ;;  %626 = vmatmul.mubr.f32.gmra.mxu1 %v275_v4 }
 0x10d   : > { %v382_v6 = vpop.f32.mrf.mxu0  ;;  %v507_v7 = vpop.f32.mrf.mxu1 }
 0x10e   : > { %v383_v8 = vadd.f32 %v1183_v5, %v382_v6  ;;  %v508_v9 = vadd.f32 %v1183_v5, %v507_v7 }
 0x10f   : > { %v384_v10 = vpop.f32.mrf.mxu0  ;;  %v509_v11 = vpop.f32.mrf.mxu1 }
 0x110   : > { %v631_v12 = vmax.f32 %v383_v8, 0.0  ;;  %v656_v13 = vmax.f32 %v508_v9, 0.0 }
 0x111   : > { %v387_v14 = vpop.f32.mrf.mxu0  ;;  %v512_v15 = vpop.f32.mrf.mxu1 }
 0x112   : > { %682 = vst.msk [vmem:[%s1191_s11] sm:$0xff] %vm681_vm0, %v631_v12  ;;  %707 = vst.msk [vmem:[%s1191_s11 + $0xc8] sm:$0xff] %vm681_vm0, %v656_v13  ;;  %v388_v16 = vadd.f32 %v1183_v5, %v387_v14  ;;  %v513_v17 = vadd.f32 %v1183_v5, %v512_v15 }
 0x113   : > { %v389_v18 = vpop.f32.mrf.mxu0  ;;  %v514_v19 = vpop.f32.mrf.mxu1 }
 0x114   : > { %v632_v20 = vmax.f32 %v388_v16, 0.0  ;;  %v657_v21 = vmax.f32 %v513_v17, 0.0 }
 0x115   : > { %v392_v22 = vpop.f32.mrf.mxu0  ;;  %v517_v23 = vpop.f32.mrf.mxu1 }
 0x116   : > { %683 = vst.msk [vmem:[%s1191_s11 + $0x8] sm:$0xff] %vm681_vm0, %v632_v20  ;;  %708 = vst.msk [vmem:[%s1191_s11 + $0xd0] sm:$0xff] %vm681_vm0, %v657_v21  ;;  %v393_v24 = vadd.f32 %v1183_v5, %v392_v22  ;;  %v518_v25 = vadd.f32 %v1183_v5, %v517_v23 }
 0x117   : > { %v394_v26 = vpop.f32.mrf.mxu0  ;;  %v519_v27 = vpop.f32.mrf.mxu1 }
 0x118   : > { %v633_v28 = vmax.f32 %v393_v24, 0.0  ;;  %v658_v29 = vmax.f32 %v518_v25, 0.0 }
 0x119   : > { %v397_v30 = vpop.f32.mrf.mxu0  ;;  %v522_v31 = vpop.f32.mrf.mxu1 }
 0x11a   : > { %684 = vst.msk [vmem:[%s1191_s11 + $0x10] sm:$0xff] %vm681_vm0, %v633_v28  ;;  %709 = vst.msk [vmem:[%s1191_s11 + $0xd8] sm:$0xff] %vm681_vm0, %v658_v29  ;;  %v398_v32 = vadd.f32 %v1183_v5, %v397_v30  ;;  %v523_v33 = vadd.f32 %v1183_v5, %v522_v31 }
 0x11b   : > { %v399_v34 = vpop.f32.mrf.mxu0  ;;  %v524_v35 = vpop.f32.mrf.mxu1 }
 0x11c   : > { %v634_v36 = vmax.f32 %v398_v32, 0.0  ;;  %v659_v37 = vmax.f32 %v523_v33, 0.0 }
 0x11d   : > { %v402_v38 = vpop.f32.mrf.mxu0  ;;  %v527_v39 = vpop.f32.mrf.mxu1 }
 0x11e   : > { %685 = vst.msk [vmem:[%s1191_s11 + $0x18] sm:$0xff] %vm681_vm0, %v634_v36  ;;  %710 = vst.msk [vmem:[%s1191_s11 + $0xe0] sm:$0xff] %vm681_vm0, %v659_v37  ;;  %v403_v40 = vadd.f32 %v1183_v5, %v402_v38  ;;  %v528_v41 = vadd.f32 %v1183_v5, %v527_v39 }
 0x11f   : > { %v404_v42 = vpop.f32.mrf.mxu0  ;;  %v529_v43 = vpop.f32.mrf.mxu1 }
 0x120   : > { %v635_v44 = vmax.f32 %v403_v40, 0.0  ;;  %v660_v45 = vmax.f32 %v528_v41, 0.0 }
 0x121   : > { %v407_v46 = vpop.f32.mrf.mxu0  ;;  %v532_v47 = vpop.f32.mrf.mxu1 }
 0x122   : > { %686 = vst.msk [vmem:[%s1191_s11 + $0x20] sm:$0xff] %vm681_vm0, %v635_v44  ;;  %711 = vst.msk [vmem:[%s1191_s11 + $0xe8] sm:$0xff] %vm681_vm0, %v660_v45  ;;  %v408_v48 = vadd.f32 %v1183_v5, %v407_v46  ;;  %v533_v49 = vadd.f32 %v1183_v5, %v532_v47 }
 0x123   : > { %v409_v50 = vpop.f32.mrf.mxu0  ;;  %v534_v51 = vpop.f32.mrf.mxu1 }
 0x124   : > { %v636_v52 = vmax.f32 %v408_v48, 0.0  ;;  %v661_v53 = vmax.f32 %v533_v49, 0.0 }
 0x125   : > { %v412_v54 = vpop.f32.mrf.mxu0  ;;  %v537_v55 = vpop.f32.mrf.mxu1 }
 0x126   : > { %687 = vst.msk [vmem:[%s1191_s11 + $0x28] sm:$0xff] %vm681_vm0, %v636_v52  ;;  %712 = vst.msk [vmem:[%s1191_s11 + $0xf0] sm:$0xff] %vm681_vm0, %v661_v53  ;;  %v413_v56 = vadd.f32 %v1183_v5, %v412_v54  ;;  %v538_v57 = vadd.f32 %v1183_v5, %v537_v55 }
 0x127   : > { %v414_v58 = vpop.f32.mrf.mxu0  ;;  %v539_v59 = vpop.f32.mrf.mxu1 }
 0x128   : > { %v637_v60 = vmax.f32 %v413_v56, 0.0  ;;  %v662_v61 = vmax.f32 %v538_v57, 0.0 }
 0x129   : > { %v417_v62 = vpop.f32.mrf.mxu0  ;;  %v542_v63 = vpop.f32.mrf.mxu1 }
 0x12a   : > { %688 = vst.msk [vmem:[%s1191_s11 + $0x30] sm:$0xff] %vm681_vm0, %v637_v60  ;;  %713 = vst.msk [vmem:[%s1191_s11 + $0xf8] sm:$0xff] %vm681_vm0, %v662_v61  ;;  %v418_v0 = vadd.f32 %v1183_v5, %v417_v62  ;;  %v543_v1 = vadd.f32 %v1183_v5, %v542_v63 }
 0x12b   : > { %v419_v2 = vpop.f32.mrf.mxu0  ;;  %v544_v3 = vpop.f32.mrf.mxu1 }
 0x12c   : > { %v638_v4 = vmax.f32 %v418_v0, 0.0  ;;  %v663_v6 = vmax.f32 %v543_v1, 0.0 }
 0x12d   : > { %v422_v7 = vpop.f32.mrf.mxu0  ;;  %v547_v8 = vpop.f32.mrf.mxu1 }
 0x12e   : > { %689 = vst.msk [vmem:[%s1191_s11 + $0x38] sm:$0xff] %vm681_vm0, %v638_v4  ;;  %714 = vst.msk [vmem:[%s1191_s11 + $0x100] sm:$0xff] %vm681_vm0, %v663_v6  ;;  %v423_v9 = vadd.f32 %v1183_v5, %v422_v7  ;;  %v548_v10 = vadd.f32 %v1183_v5, %v547_v8 }
 0x12f   : > { %v424_v11 = vpop.f32.mrf.mxu0  ;;  %v549_v12 = vpop.f32.mrf.mxu1 }
 0x130   : > { %v639_v13 = vmax.f32 %v423_v9, 0.0  ;;  %v664_v14 = vmax.f32 %v548_v10, 0.0 }
 0x131   : > { %v427_v15 = vpop.f32.mrf.mxu0  ;;  %v552_v16 = vpop.f32.mrf.mxu1 }
 0x132   : > { %690 = vst.msk [vmem:[%s1191_s11 + $0x40] sm:$0xff] %vm681_vm0, %v639_v13  ;;  %715 = vst.msk [vmem:[%s1191_s11 + $0x108] sm:$0xff] %vm681_vm0, %v664_v14  ;;  %v428_v17 = vadd.f32 %v1183_v5, %v427_v15  ;;  %v553_v18 = vadd.f32 %v1183_v5, %v552_v16 }
 0x133   : > { %v429_v19 = vpop.f32.mrf.mxu0  ;;  %v554_v20 = vpop.f32.mrf.mxu1 }
 0x134   : > { %v640_v21 = vmax.f32 %v428_v17, 0.0  ;;  %v665_v22 = vmax.f32 %v553_v18, 0.0 }
 0x135   : > { %v432_v23 = vpop.f32.mrf.mxu0  ;;  %v557_v24 = vpop.f32.mrf.mxu1 }
 0x136   : > { %691 = vst.msk [vmem:[%s1191_s11 + $0x48] sm:$0xff] %vm681_vm0, %v640_v21  ;;  %716 = vst.msk [vmem:[%s1191_s11 + $0x110] sm:$0xff] %vm681_vm0, %v665_v22  ;;  %v433_v25 = vadd.f32 %v1183_v5, %v432_v23  ;;  %v558_v26 = vadd.f32 %v1183_v5, %v557_v24 }
 0x137   : > { %v434_v27 = vpop.f32.mrf.mxu0  ;;  %v559_v28 = vpop.f32.mrf.mxu1 }
 0x138   : > { %v641_v29 = vmax.f32 %v433_v25, 0.0  ;;  %v666_v30 = vmax.f32 %v558_v26, 0.0 }
 0x139   : > { %v437_v31 = vpop.f32.mrf.mxu0  ;;  %v562_v32 = vpop.f32.mrf.mxu1 }
 0x13a   : > { %692 = vst.msk [vmem:[%s1191_s11 + $0x50] sm:$0xff] %vm681_vm0, %v641_v29  ;;  %717 = vst.msk [vmem:[%s1191_s11 + $0x118] sm:$0xff] %vm681_vm0, %v666_v30  ;;  %v438_v33 = vadd.f32 %v1183_v5, %v437_v31  ;;  %v563_v34 = vadd.f32 %v1183_v5, %v562_v32 }
 0x13b   : > { %v439_v35 = vpop.f32.mrf.mxu0  ;;  %v564_v36 = vpop.f32.mrf.mxu1 }
 0x13c   : > { %v642_v37 = vmax.f32 %v438_v33, 0.0  ;;  %v667_v38 = vmax.f32 %v563_v34, 0.0 }
 0x13d   : > { %v442_v39 = vpop.f32.mrf.mxu0  ;;  %v567_v40 = vpop.f32.mrf.mxu1 }
 0x13e   : > { %693 = vst.msk [vmem:[%s1191_s11 + $0x58] sm:$0xff] %vm681_vm0, %v642_v37  ;;  %718 = vst.msk [vmem:[%s1191_s11 + $0x120] sm:$0xff] %vm681_vm0, %v667_v38  ;;  %v443_v41 = vadd.f32 %v1183_v5, %v442_v39  ;;  %v568_v42 = vadd.f32 %v1183_v5, %v567_v40 }
 0x13f   : > { %v444_v43 = vpop.f32.mrf.mxu0  ;;  %v569_v44 = vpop.f32.mrf.mxu1 }
 0x140   : > { %v643_v45 = vmax.f32 %v443_v41, 0.0  ;;  %v668_v46 = vmax.f32 %v568_v42, 0.0 }
 0x141   : > { %v447_v47 = vpop.f32.mrf.mxu0  ;;  %v572_v48 = vpop.f32.mrf.mxu1 }
 0x142   : > { %694 = vst.msk [vmem:[%s1191_s11 + $0x60] sm:$0xff] %vm681_vm0, %v643_v45  ;;  %719 = vst.msk [vmem:[%s1191_s11 + $0x128] sm:$0xff] %vm681_vm0, %v668_v46  ;;  %v448_v49 = vadd.f32 %v1183_v5, %v447_v47  ;;  %v573_v50 = vadd.f32 %v1183_v5, %v572_v48 }
 0x143   : > { %v449_v51 = vpop.f32.mrf.mxu0  ;;  %v574_v52 = vpop.f32.mrf.mxu1 }
 0x144   : > { %v644_v53 = vmax.f32 %v448_v49, 0.0  ;;  %v669_v54 = vmax.f32 %v573_v50, 0.0 }
 0x145   : > { %v452_v55 = vpop.f32.mrf.mxu0  ;;  %v577_v56 = vpop.f32.mrf.mxu1 }
 0x146   : > { %695 = vst.msk [vmem:[%s1191_s11 + $0x68] sm:$0xff] %vm681_vm0, %v644_v53  ;;  %720 = vst.msk [vmem:[%s1191_s11 + $0x130] sm:$0xff] %vm681_vm0, %v669_v54  ;;  %v453_v57 = vadd.f32 %v1183_v5, %v452_v55  ;;  %v578_v58 = vadd.f32 %v1183_v5, %v577_v56 }
 0x147   : > { %v454_v59 = vpop.f32.mrf.mxu0  ;;  %v579_v60 = vpop.f32.mrf.mxu1 }
 0x148   : > { %v645_v61 = vmax.f32 %v453_v57, 0.0  ;;  %v670_v62 = vmax.f32 %v578_v58, 0.0 }
 0x149   : > { %v457_v63 = vpop.f32.mrf.mxu0  ;;  %v582_v0 = vpop.f32.mrf.mxu1 }
 0x14a   : > { %696 = vst.msk [vmem:[%s1191_s11 + $0x70] sm:$0xff] %vm681_vm0, %v645_v61  ;;  %721 = vst.msk [vmem:[%s1191_s11 + $0x138] sm:$0xff] %vm681_vm0, %v670_v62  ;;  %v458_v1 = vadd.f32 %v1183_v5, %v457_v63  ;;  %v583_v2 = vadd.f32 %v1183_v5, %v582_v0 }
 0x14b   : > { %v459_v3 = vpop.f32.mrf.mxu0  ;;  %v584_v4 = vpop.f32.mrf.mxu1 }
 0x14c   : > { %v646_v6 = vmax.f32 %v458_v1, 0.0  ;;  %v671_v7 = vmax.f32 %v583_v2, 0.0 }
 0x14d   : > { %v462_v8 = vpop.f32.mrf.mxu0  ;;  %v587_v9 = vpop.f32.mrf.mxu1 }
 0x14e   : > { %697 = vst.msk [vmem:[%s1191_s11 + $0x78] sm:$0xff] %vm681_vm0, %v646_v6  ;;  %722 = vst.msk [vmem:[%s1191_s11 + $0x140] sm:$0xff] %vm681_vm0, %v671_v7  ;;  %v463_v10 = vadd.f32 %v1183_v5, %v462_v8  ;;  %v588_v11 = vadd.f32 %v1183_v5, %v587_v9 }
 0x14f   : > { %v464_v12 = vpop.f32.mrf.mxu0  ;;  %v589_v13 = vpop.f32.mrf.mxu1 }
 0x150   : > { %v647_v14 = vmax.f32 %v463_v10, 0.0  ;;  %v672_v15 = vmax.f32 %v588_v11, 0.0 }
 0x151   : > { %v467_v16 = vpop.f32.mrf.mxu0  ;;  %v592_v17 = vpop.f32.mrf.mxu1 }
 0x152   : > { %698 = vst.msk [vmem:[%s1191_s11 + $0x80] sm:$0xff] %vm681_vm0, %v647_v14  ;;  %723 = vst.msk [vmem:[%s1191_s11 + $0x148] sm:$0xff] %vm681_vm0, %v672_v15  ;;  %v468_v18 = vadd.f32 %v1183_v5, %v467_v16  ;;  %v593_v19 = vadd.f32 %v1183_v5, %v592_v17 }
 0x153   : > { %v469_v20 = vpop.f32.mrf.mxu0  ;;  %v594_v21 = vpop.f32.mrf.mxu1 }
 0x154   : > { %v648_v22 = vmax.f32 %v468_v18, 0.0  ;;  %v673_v23 = vmax.f32 %v593_v19, 0.0 }
 0x155   : > { %v472_v24 = vpop.f32.mrf.mxu0  ;;  %v597_v25 = vpop.f32.mrf.mxu1 }
 0x156   : > { %699 = vst.msk [vmem:[%s1191_s11 + $0x88] sm:$0xff] %vm681_vm0, %v648_v22  ;;  %724 = vst.msk [vmem:[%s1191_s11 + $0x150] sm:$0xff] %vm681_vm0, %v673_v23  ;;  %v473_v26 = vadd.f32 %v1183_v5, %v472_v24  ;;  %v598_v27 = vadd.f32 %v1183_v5, %v597_v25 }
 0x157   : > { %v474_v28 = vpop.f32.mrf.mxu0  ;;  %v599_v29 = vpop.f32.mrf.mxu1 }
 0x158   : > { %v649_v30 = vmax.f32 %v473_v26, 0.0  ;;  %v674_v31 = vmax.f32 %v598_v27, 0.0 }
 0x159   : > { %v477_v32 = vpop.f32.mrf.mxu0  ;;  %v602_v33 = vpop.f32.mrf.mxu1 }
 0x15a   : > { %700 = vst.msk [vmem:[%s1191_s11 + $0x90] sm:$0xff] %vm681_vm0, %v649_v30  ;;  %725 = vst.msk [vmem:[%s1191_s11 + $0x158] sm:$0xff] %vm681_vm0, %v674_v31  ;;  %v478_v34 = vadd.f32 %v1183_v5, %v477_v32  ;;  %v603_v35 = vadd.f32 %v1183_v5, %v602_v33 }
 0x15b   : > { %v479_v36 = vpop.f32.mrf.mxu0  ;;  %v604_v37 = vpop.f32.mrf.mxu1 }
 0x15c   : > { %v650_v38 = vmax.f32 %v478_v34, 0.0  ;;  %v675_v39 = vmax.f32 %v603_v35, 0.0 }
 0x15d   : > { %v482_v40 = vpop.f32.mrf.mxu0  ;;  %v607_v41 = vpop.f32.mrf.mxu1 }
 0x15e   : > { %701 = vst.msk [vmem:[%s1191_s11 + $0x98] sm:$0xff] %vm681_vm0, %v650_v38  ;;  %726 = vst.msk [vmem:[%s1191_s11 + $0x160] sm:$0xff] %vm681_vm0, %v675_v39  ;;  %v483_v42 = vadd.f32 %v1183_v5, %v482_v40  ;;  %v608_v43 = vadd.f32 %v1183_v5, %v607_v41 }
 0x15f   : > { %v484_v44 = vpop.f32.mrf.mxu0  ;;  %v609_v45 = vpop.f32.mrf.mxu1 }
 0x160   : > { %v651_v46 = vmax.f32 %v483_v42, 0.0  ;;  %v676_v47 = vmax.f32 %v608_v43, 0.0 }
 0x161   : > { %v487_v48 = vpop.f32.mrf.mxu0  ;;  %v612_v49 = vpop.f32.mrf.mxu1 }
 0x162   : > { %702 = vst.msk [vmem:[%s1191_s11 + $0xa0] sm:$0xff] %vm681_vm0, %v651_v46  ;;  %727 = vst.msk [vmem:[%s1191_s11 + $0x168] sm:$0xff] %vm681_vm0, %v676_v47  ;;  %v488_v50 = vadd.f32 %v1183_v5, %v487_v48  ;;  %v613_v51 = vadd.f32 %v1183_v5, %v612_v49 }
 0x163   : > { %v489_v52 = vpop.f32.mrf.mxu0  ;;  %v614_v53 = vpop.f32.mrf.mxu1 }
 0x164   : > { %v652_v54 = vmax.f32 %v488_v50, 0.0  ;;  %v677_v55 = vmax.f32 %v613_v51, 0.0 }
 0x165   : > { %v492_v56 = vpop.f32.mrf.mxu0  ;;  %v617_v57 = vpop.f32.mrf.mxu1 }
 0x166   : > { %703 = vst.msk [vmem:[%s1191_s11 + $0xa8] sm:$0xff] %vm681_vm0, %v652_v54  ;;  %728 = vst.msk [vmem:[%s1191_s11 + $0x170] sm:$0xff] %vm681_vm0, %v677_v55  ;;  %v493_v58 = vadd.f32 %v1183_v5, %v492_v56  ;;  %v618_v59 = vadd.f32 %v1183_v5, %v617_v57 }
 0x167   : > { %v494_v60 = vpop.f32.mrf.mxu0  ;;  %v619_v61 = vpop.f32.mrf.mxu1 }
 0x168   : > { %v653_v62 = vmax.f32 %v493_v58, 0.0  ;;  %v678_v63 = vmax.f32 %v618_v59, 0.0 }
 0x169   : > { %v497_v0 = vpop.f32.mrf.mxu0  ;;  %v622_v1 = vpop.f32.mrf.mxu1 }
 0x16a   : > { %704 = vst.msk [vmem:[%s1191_s11 + $0xb0] sm:$0xff] %vm681_vm0, %v653_v62  ;;  %729 = vst.msk [vmem:[%s1191_s11 + $0x178] sm:$0xff] %vm681_vm0, %v678_v63  ;;  %v498_v2 = vadd.f32 %v1183_v5, %v497_v0  ;;  %v623_v3 = vadd.f32 %v1183_v5, %v622_v1 }
 0x16b   : > { %v499_v4 = vpop.f32.mrf.mxu0  ;;  %v624_v6 = vpop.f32.mrf.mxu1 }
 0x16c   : > { %v654_v7 = vmax.f32 %v498_v2, 0.0  ;;  %v679_v8 = vmax.f32 %v623_v3, 0.0 }
 0x16d   : > { %v502_v9 = vpop.f32.mrf.mxu0  ;;  %v627_v10 = vpop.f32.mrf.mxu1 }
 0x16e   : > { %705 = vst.msk [vmem:[%s1191_s11 + $0xb8] sm:$0xff] %vm681_vm0, %v654_v7  ;;  %730 = vst.msk [vmem:[%s1191_s11 + $0x180] sm:$0xff] %vm681_vm0, %v679_v8  ;;  %v503_v11 = vadd.f32 %v1183_v5, %v502_v9  ;;  %v628_v12 = vadd.f32 %v1183_v5, %v627_v10 }
 0x16f   : > { %v504_v13 = vpop.f32.mrf.mxu0  ;;  %v629_v14 = vpop.f32.mrf.mxu1 }
 0x170   : > { %v655_v15 = vmax.f32 %v503_v11, 0.0  ;;  %v680_v16 = vmax.f32 %v628_v12, 0.0 }
 0x172   : > { %706 = vst.msk [vmem:[%s1191_s11 + $0xc0] sm:$0xff] %vm681_vm0, %v655_v15  ;;  %731 = vst.msk [vmem:[%s1191_s11 + $0x188] sm:$0xff] %vm681_vm0, %v680_v16 }
 0x173 PF: > { %s13_s12 = sadd.s32 1, %s879_s12  }
 0x174   : > { %p10_p4 = scmp.ge.s32.totalorder %s13_s12, 4  }
 0x176   :  { %12 = sbr.rel (!%p10_p4) target bundleno = 1 (0x1), region = 62 }

// kernel: convnet_forward.5
= control target key start
LH: loop header
LB: loop body
LE: loop exit
PB: predicated region body
PF: predicated region fallthrough
CT: control target
= control target key end

     0   :  { %v558_v0 = vmov 0.0   ;;  %vm530_vm0 = vcmask 523264   ;;  %s1197_s1 = inlined_call_operand.vmem [shape: f32[512,64], index: 1, kind: input, shape index: {}]   ;;  %s1198_s0 = inlined_call_operand.vmem [shape: f32[168,512], index: 0, kind: input, shape index: {}]   ;;  %s1199_s2 = inlined_call_operand.vmem [shape: f32[1,64], index: 2, kind: input, shape index: {}]   ;;  %s1200_s3 = inlined_call_operand.vmem [shape: f32[168,64], index: 3, kind: output, shape index: {}]  }
   0x1   :  { %169 = vmatprep.subr.mxu0 %v558_v0  ;;  %339 = vmatprep.subr.mxu1 %v558_v0  ;;  %v113_v1 = vld [vmem:[%s1197_s1 + $0x78] sm:$0xff]  ;;  %v112_v3 = vld [vmem:[%s1197_s1 + $0x70] sm:$0xff]  ;;  %v111_v5 = vld [vmem:[%s1197_s1 + $0x68] sm:$0xff] }
   0x2   :  { %v145_v2 = vld [vmem:[%s1197_s1 + $0x178] sm:$0xff]  ;;  %170 = vmatpush1.msra.mxu0 %v113_v1  ;;  %v144_v4 = vld [vmem:[%s1197_s1 + $0x170] sm:$0xff]  ;;  %v143_v6 = vld [vmem:[%s1197_s1 + $0x168] sm:$0xff] }
   0x3   :  { %340 = vmatpush1.msra.mxu1 %v145_v2  ;;  %171 = vmatprep.subr.mxu0 %v558_v0  ;;  %v110_v7 = vld [vmem:[%s1197_s1 + $0x60] sm:$0xff]  ;;  %v109_v9 = vld [vmem:[%s1197_s1 + $0x58] sm:$0xff]  ;;  %v108_v11 = vld [vmem:[%s1197_s1 + $0x50] sm:$0xff] }
   0x4   :  { %341 = vmatprep.subr.mxu1 %v558_v0  ;;  %172 = vmatpush1.msra.mxu0 %v112_v3  ;;  %v142_v8 = vld [vmem:[%s1197_s1 + $0x160] sm:$0xff]  ;;  %v141_v10 = vld [vmem:[%s1197_s1 + $0x158] sm:$0xff]  ;;  %v140_v12 = vld [vmem:[%s1197_s1 + $0x150] sm:$0xff] }
   0x5   :  { %342 = vmatpush1.msra.mxu1 %v144_v4  ;;  %173 = vmatprep.subr.mxu0 %v558_v0  ;;  %v107_v13 = vld [vmem:[%s1197_s1 + $0x48] sm:$0xff]  ;;  %v106_v15 = vld [vmem:[%s1197_s1 + $0x40] sm:$0xff]  ;;  %v105_v17 = vld [vmem:[%s1197_s1 + $0x38] sm:$0xff] }
   0x6   :  { %343 = vmatprep.subr.mxu1 %v558_v0  ;;  %174 = vmatpush1.msra.mxu0 %v111_v5  ;;  %v139_v14 = vld [vmem:[%s1197_s1 + $0x148] sm:$0xff]  ;;  %v138_v16 = vld [vmem:[%s1197_s1 + $0x140] sm:$0xff]  ;;  %v137_v18 = vld [vmem:[%s1197_s1 + $0x138] sm:$0xff] }
   0x7   :  { %344 = vmatpush1.msra.mxu1 %v143_v6  ;;  %175 = vmatprep.subr.mxu0 %v558_v0  ;;  %v104_v19 = vld [vmem:[%s1197_s1 + $0x30] sm:$0xff]  ;;  %v103_v21 = vld [vmem:[%s1197_s1 + $0x28] sm:$0xff]  ;;  %v102_v23 = vld [vmem:[%s1197_s1 + $0x20] sm:$0xff] }
   0x8   :  { %345 = vmatprep.subr.mxu1 %v558_v0  ;;  %176 = vmatpush1.msra.mxu0 %v110_v7  ;;  %v136_v20 = vld [vmem:[%s1197_s1 + $0x130] sm:$0xff]  ;;  %v135_v22 = vld [vmem:[%s1197_s1 + $0x128] sm:$0xff]  ;;  %v134_v24 = vld [vmem:[%s1197_s1 + $0x120] sm:$0xff] }
   0x9   :  { %346 = vmatpush1.msra.mxu1 %v142_v8  ;;  %177 = vmatprep.subr.mxu0 %v558_v0  ;;  %v101_v25 = vld [vmem:[%s1197_s1 + $0x18] sm:$0xff]  ;;  %v100_v27 = vld [vmem:[%s1197_s1 + $0x10] sm:$0xff]  ;;  %v99_v29 = vld [vmem:[%s1197_s1 + $0x8] sm:$0xff] }
   0xa   :  { %347 = vmatprep.subr.mxu1 %v558_v0  ;;  %178 = vmatpush1.msra.mxu0 %v109_v9  ;;  %v133_v26 = vld [vmem:[%s1197_s1 + $0x118] sm:$0xff]  ;;  %v132_v28 = vld [vmem:[%s1197_s1 + $0x110] sm:$0xff]  ;;  %v131_v30 = vld [vmem:[%s1197_s1 + $0x108] sm:$0xff] }
   0xb   :  { %348 = vmatpush1.msra.mxu1 %v141_v10  ;;  %179 = vmatprep.subr.mxu0 %v558_v0  ;;  %v98_v31 = vld [vmem:[%s1197_s1] sm:$0xff]  ;;  %v129_v33 = vld [vmem:[%s1197_s1 + $0xf8] sm:$0xff]  ;;  %v128_v35 = vld [vmem:[%s1197_s1 + $0xf0] sm:$0xff] }
   0xc   :  { %349 = vmatprep.subr.mxu1 %v558_v0  ;;  %180 = vmatpush1.msra.mxu0 %v108_v11  ;;  %v130_v32 = vld [vmem:[%s1197_s1 + $0x100] sm:$0xff]  ;;  %v161_v34 = vld [vmem:[%s1197_s1 + $0x1f8] sm:$0xff]  ;;  %v160_v36 = vld [vmem:[%s1197_s1 + $0x1f0] sm:$0xff] }
   0xd   :  { %350 = vmatpush1.msra.mxu1 %v140_v12  ;;  %181 = vmatprep.subr.mxu0 %v558_v0  ;;  %v127_v37 = vld [vmem:[%s1197_s1 + $0xe8] sm:$0xff]  ;;  %v126_v39 = vld [vmem:[%s1197_s1 + $0xe0] sm:$0xff]  ;;  %v125_v41 = vld [vmem:[%s1197_s1 + $0xd8] sm:$0xff] }
   0xe   :  { %351 = vmatprep.subr.mxu1 %v558_v0  ;;  %182 = vmatpush1.msra.mxu0 %v107_v13  ;;  %v159_v38 = vld [vmem:[%s1197_s1 + $0x1e8] sm:$0xff]  ;;  %v158_v40 = vld [vmem:[%s1197_s1 + $0x1e0] sm:$0xff]  ;;  %v157_v42 = vld [vmem:[%s1197_s1 + $0x1d8] sm:$0xff] }
   0xf   :  { %352 = vmatpush1.msra.mxu1 %v139_v14  ;;  %183 = vmatprep.subr.mxu0 %v558_v0  ;;  %v124_v43 = vld [vmem:[%s1197_s1 + $0xd0] sm:$0xff]  ;;  %v123_v45 = vld [vmem:[%s1197_s1 + $0xc8] sm:$0xff]  ;;  %v122_v47 = vld [vmem:[%s1197_s1 + $0xc0] sm:$0xff] }
  0x10   :  { %353 = vmatprep.subr.mxu1 %v558_v0  ;;  %184 = vmatpush1.msra.mxu0 %v106_v15  ;;  %v156_v44 = vld [vmem:[%s1197_s1 + $0x1d0] sm:$0xff]  ;;  %v155_v46 = vld [vmem:[%s1197_s1 + $0x1c8] sm:$0xff]  ;;  %v154_v48 = vld [vmem:[%s1197_s1 + $0x1c0] sm:$0xff] }
  0x11   :  { %354 = vmatpush1.msra.mxu1 %v138_v16  ;;  %185 = vmatprep.subr.mxu0 %v558_v0  ;;  %v121_v49 = vld [vmem:[%s1197_s1 + $0xb8] sm:$0xff]  ;;  %v120_v51 = vld [vmem:[%s1197_s1 + $0xb0] sm:$0xff]  ;;  %v119_v53 = vld [vmem:[%s1197_s1 + $0xa8] sm:$0xff] }
  0x12   :  { %355 = vmatprep.subr.mxu1 %v558_v0  ;;  %186 = vmatpush1.msra.mxu0 %v105_v17  ;;  %v153_v50 = vld [vmem:[%s1197_s1 + $0x1b8] sm:$0xff]  ;;  %v152_v52 = vld [vmem:[%s1197_s1 + $0x1b0] sm:$0xff]  ;;  %v151_v54 = vld [vmem:[%s1197_s1 + $0x1a8] sm:$0xff] }
  0x13   :  { %356 = vmatpush1.msra.mxu1 %v137_v18  ;;  %187 = vmatprep.subr.mxu0 %v558_v0  ;;  %v118_v55 = vld [vmem:[%s1197_s1 + $0xa0] sm:$0xff]  ;;  %v117_v57 = vld [vmem:[%s1197_s1 + $0x98] sm:$0xff]  ;;  %v116_v59 = vld [vmem:[%s1197_s1 + $0x90] sm:$0xff] }
  0x14   :  { %357 = vmatprep.subr.mxu1 %v558_v0  ;;  %188 = vmatpush1.msra.mxu0 %v104_v19  ;;  %v150_v56 = vld [vmem:[%s1197_s1 + $0x1a0] sm:$0xff]  ;;  %v149_v58 = vld [vmem:[%s1197_s1 + $0x198] sm:$0xff]  ;;  %v148_v60 = vld [vmem:[%s1197_s1 + $0x190] sm:$0xff] }
  0x15   :  { %358 = vmatpush1.msra.mxu1 %v136_v20  ;;  %189 = vmatprep.subr.mxu0 %v558_v0  ;;  %v115_v61 = vld [vmem:[%s1197_s1 + $0x88] sm:$0xff]  ;;  %v114_v63 = vld [vmem:[%s1197_s1 + $0x80] sm:$0xff]  ;;  %v17_v3 = vld [vmem:[%s1198_s0 + $0x18] sm:$0xff] }
  0x16   :  { %359 = vmatprep.subr.mxu1 %v558_v0  ;;  %190 = vmatpush1.msra.mxu0 %v103_v21  ;;  %v147_v62 = vld [vmem:[%s1197_s1 + $0x188] sm:$0xff]  ;;  %v146_v2 = vld [vmem:[%s1197_s1 + $0x180] sm:$0xff]  ;;  %v16_v5 = vld [vmem:[%s1198_s0 + $0x10] sm:$0xff] }
  0x17   :  { %360 = vmatpush1.msra.mxu1 %v135_v22  ;;  %191 = vmatprep.subr.mxu0 %v558_v0  ;;  %v15_v1 = vld [vmem:[%s1198_s0 + $0x8] sm:$0xff]  ;;  %v14_v4 = vld [vmem:[%s1198_s0] sm:$0xff]  ;;  %v21_v7 = vld [vmem:[%s1198_s0 + $0x38] sm:$0xff] }
  0x18   :  { %361 = vmatprep.subr.mxu1 %v558_v0  ;;  %192 = vmatpush1.msra.mxu0 %v102_v23  ;;  %v19_v6 = vld [vmem:[%s1198_s0 + $0x28] sm:$0xff]  ;;  %v20_v8 = vld [vmem:[%s1198_s0 + $0x30] sm:$0xff]  ;;  %v25_v10 = vld [vmem:[%s1198_s0 + $0x58] sm:$0xff] }
  0x19   :  { %362 = vmatpush1.msra.mxu1 %v134_v24  ;;  %193 = vmatprep.subr.mxu0 %v558_v0  ;;  %v23_v9 = vld [vmem:[%s1198_s0 + $0x48] sm:$0xff]  ;;  %v22_v11 = vld [vmem:[%s1198_s0 + $0x40] sm:$0xff]  ;;  %v24_v12 = vld [vmem:[%s1198_s0 + $0x50] sm:$0xff] }
  0x1a   :  { %363 = vmatprep.subr.mxu1 %v558_v0  ;;  %194 = vmatpush1.msra.mxu0 %v101_v25  ;;  %v27_v13 = vld [vmem:[%s1198_s0 + $0x68] sm:$0xff]  ;;  %v29_v14 = vld [vmem:[%s1198_s0 + $0x78] sm:$0xff]  ;;  %v26_v15 = vld [vmem:[%s1198_s0 + $0x60] sm:$0xff] }
  0x1b   :  { %364 = vmatpush1.msra.mxu1 %v133_v26  ;;  %195 = vmatprep.subr.mxu0 %v558_v0  ;;  %v28_v16 = vld [vmem:[%s1198_s0 + $0x70] sm:$0xff]  ;;  %v31_v17 = vld [vmem:[%s1198_s0 + $0x88] sm:$0xff]  ;;  %v33_v18 = vld [vmem:[%s1198_s0 + $0x98] sm:$0xff] }
  0x1c   :  { %365 = vmatprep.subr.mxu1 %v558_v0  ;;  %196 = vmatpush1.msra.mxu0 %v100_v27  ;;  %v30_v19 = vld [vmem:[%s1198_s0 + $0x80] sm:$0xff]  ;;  %v32_v20 = vld [vmem:[%s1198_s0 + $0x90] sm:$0xff]  ;;  %v35_v21 = vld [vmem:[%s1198_s0 + $0xa8] sm:$0xff] }
  0x1d   :  { %366 = vmatpush1.msra.mxu1 %v132_v28  ;;  %197 = vmatprep.subr.mxu0 %v558_v0  ;;  %v37_v22 = vld [vmem:[%s1198_s0 + $0xb8] sm:$0xff]  ;;  %v34_v23 = vld [vmem:[%s1198_s0 + $0xa0] sm:$0xff]  ;;  %v36_v24 = vld [vmem:[%s1198_s0 + $0xb0] sm:$0xff] }
  0x1e   :  { %367 = vmatprep.subr.mxu1 %v558_v0  ;;  %198 = vmatpush1.msra.mxu0 %v99_v29  ;;  %v39_v25 = vld [vmem:[%s1198_s0 + $0xc8] sm:$0xff]  ;;  %v41_v26 = vld [vmem:[%s1198_s0 + $0xd8] sm:$0xff]  ;;  %v38_v27 = vld [vmem:[%s1198_s0 + $0xc0] sm:$0xff] }
  0x1f   :  { %368 = vmatpush1.msra.mxu1 %v131_v30  ;;  %199 = vmatprep.subr.mxu0 %v558_v0  ;;  %v40_v28 = vld [vmem:[%s1198_s0 + $0xd0] sm:$0xff]  ;;  %v43_v29 = vld [vmem:[%s1198_s0 + $0xe8] sm:$0xff]  ;;  %v45_v30 = vld [vmem:[%s1198_s0 + $0xf8] sm:$0xff] }
  0x20   :  { %369 = vmatprep.subr.mxu1 %v558_v0  ;;  %200 = vmatpush1.msra.mxu0 %v98_v31  ;;  %v42_v31 = vld [vmem:[%s1198_s0 + $0xe0] sm:$0xff] }
  0x21   :  { %370 = vmatpush1.msra.mxu1 %v130_v32  ;;  %201 = vmatprep.subr.mxu0 %v558_v0  ;;  %v44_v32 = vld [vmem:[%s1198_s0 + $0xf0] sm:$0xff] }
  0x22   :  { %371 = vmatprep.subr.mxu1 %v558_v0  ;;  %202 = vmatpush2.msra.mxu0 %v129_v33  ;;  %v47_v33 = vld [vmem:[%s1198_s0 + $0x108] sm:$0xff] }
  0x23   :  { %372 = vmatpush2.msra.mxu1 %v161_v34  ;;  %203 = vmatprep.subr.mxu0 %v558_v0  ;;  %v49_v34 = vld [vmem:[%s1198_s0 + $0x118] sm:$0xff] }
  0x24   :  { %373 = vmatprep.subr.mxu1 %v558_v0  ;;  %204 = vmatpush2.msra.mxu0 %v128_v35  ;;  %v46_v35 = vld [vmem:[%s1198_s0 + $0x100] sm:$0xff] }
  0x25   :  { %374 = vmatpush2.msra.mxu1 %v160_v36  ;;  %205 = vmatprep.subr.mxu0 %v558_v0  ;;  %v48_v36 = vld [vmem:[%s1198_s0 + $0x110] sm:$0xff] }
  0x26   :  { %375 = vmatprep.subr.mxu1 %v558_v0  ;;  %206 = vmatpush2.msra.mxu0 %v127_v37  ;;  %v51_v37 = vld [vmem:[%s1198_s0 + $0x128] sm:$0xff] }
  0x27   :  { %376 = vmatpush2.msra.mxu1 %v159_v38  ;;  %207 = vmatprep.subr.mxu0 %v558_v0  ;;  %v53_v38 = vld [vmem:[%s1198_s0 + $0x138] sm:$0xff] }
  0x28   :  { %377 = vmatprep.subr.mxu1 %v558_v0  ;;  %208 = vmatpush2.msra.mxu0 %v126_v39  ;;  %v50_v39 = vld [vmem:[%s1198_s0 + $0x120] sm:$0xff] }
  0x29   :  { %378 = vmatpush2.msra.mxu1 %v158_v40  ;;  %209 = vmatprep.subr.mxu0 %v558_v0  ;;  %v52_v40 = vld [vmem:[%s1198_s0 + $0x130] sm:$0xff] }
  0x2a   :  { %379 = vmatprep.subr.mxu1 %v558_v0  ;;  %210 = vmatpush2.msra.mxu0 %v125_v41  ;;  %v55_v41 = vld [vmem:[%s1198_s0 + $0x148] sm:$0xff] }
  0x2b   :  { %380 = vmatpush2.msra.mxu1 %v157_v42  ;;  %211 = vmatprep.subr.mxu0 %v558_v0  ;;  %v57_v42 = vld [vmem:[%s1198_s0 + $0x158] sm:$0xff] }
  0x2c   :  { %381 = vmatprep.subr.mxu1 %v558_v0  ;;  %212 = vmatpush2.msra.mxu0 %v124_v43  ;;  %v54_v43 = vld [vmem:[%s1198_s0 + $0x140] sm:$0xff] }
  0x2d   :  { %382 = vmatpush2.msra.mxu1 %v156_v44  ;;  %213 = vmatprep.subr.mxu0 %v558_v0  ;;  %v56_v44 = vld [vmem:[%s1198_s0 + $0x150] sm:$0xff] }
  0x2e   :  { %383 = vmatprep.subr.mxu1 %v558_v0  ;;  %214 = vmatpush2.msra.mxu0 %v123_v45  ;;  %v59_v45 = vld [vmem:[%s1198_s0 + $0x168] sm:$0xff] }
  0x2f   :  { %384 = vmatpush2.msra.mxu1 %v155_v46  ;;  %215 = vmatprep.subr.mxu0 %v558_v0  ;;  %v61_v46 = vld [vmem:[%s1198_s0 + $0x178] sm:$0xff] }
  0x30   :  { %385 = vmatprep.subr.mxu1 %v558_v0  ;;  %216 = vmatpush2.msra.mxu0 %v122_v47  ;;  %v58_v47 = vld [vmem:[%s1198_s0 + $0x160] sm:$0xff] }
  0x31   :  { %386 = vmatpush2.msra.mxu1 %v154_v48  ;;  %217 = vmatprep.subr.mxu0 %v558_v0  ;;  %v60_v48 = vld [vmem:[%s1198_s0 + $0x170] sm:$0xff] }
  0x32   :  { %387 = vmatprep.subr.mxu1 %v558_v0  ;;  %218 = vmatpush2.msra.mxu0 %v121_v49  ;;  %v63_v49 = vld [vmem:[%s1198_s0 + $0x188] sm:$0xff] }
  0x33   :  { %388 = vmatpush2.msra.mxu1 %v153_v50  ;;  %219 = vmatprep.subr.mxu0 %v558_v0  ;;  %v65_v50 = vld [vmem:[%s1198_s0 + $0x198] sm:$0xff] }
  0x34   :  { %389 = vmatprep.subr.mxu1 %v558_v0  ;;  %220 = vmatpush2.msra.mxu0 %v120_v51  ;;  %v62_v51 = vld [vmem:[%s1198_s0 + $0x180] sm:$0xff] }
  0x35   :  { %390 = vmatpush2.msra.mxu1 %v152_v52  ;;  %221 = vmatprep.subr.mxu0 %v558_v0  ;;  %v64_v52 = vld [vmem:[%s1198_s0 + $0x190] sm:$0xff] }
  0x36   :  { %391 = vmatprep.subr.mxu1 %v558_v0  ;;  %222 = vmatpush2.msra.mxu0 %v119_v53  ;;  %v67_v53 = vld [vmem:[%s1198_s0 + $0x1a8] sm:$0xff] }
  0x37   :  { %392 = vmatpush2.msra.mxu1 %v151_v54  ;;  %223 = vmatprep.subr.mxu0 %v558_v0  ;;  %v69_v54 = vld [vmem:[%s1198_s0 + $0x1b8] sm:$0xff] }
  0x38   :  { %393 = vmatprep.subr.mxu1 %v558_v0  ;;  %224 = vmatpush2.msra.mxu0 %v118_v55  ;;  %v66_v55 = vld [vmem:[%s1198_s0 + $0x1a0] sm:$0xff] }
  0x39   :  { %394 = vmatpush2.msra.mxu1 %v150_v56  ;;  %225 = vmatprep.subr.mxu0 %v558_v0  ;;  %v68_v56 = vld [vmem:[%s1198_s0 + $0x1b0] sm:$0xff] }
  0x3a   :  { %395 = vmatprep.subr.mxu1 %v558_v0  ;;  %226 = vmatpush2.msra.mxu0 %v117_v57  ;;  %v71_v57 = vld [vmem:[%s1198_s0 + $0x1c8] sm:$0xff] }
  0x3b   :  { %396 = vmatpush2.msra.mxu1 %v149_v58  ;;  %227 = vmatprep.subr.mxu0 %v558_v0  ;;  %v73_v58 = vld [vmem:[%s1198_s0 + $0x1d8] sm:$0xff] }
  0x3c   :  { %397 = vmatprep.subr.mxu1 %v558_v0  ;;  %228 = vmatpush2.msra.mxu0 %v116_v59  ;;  %v70_v59 = vld [vmem:[%s1198_s0 + $0x1c0] sm:$0xff] }
  0x3d   :  { %398 = vmatpush2.msra.mxu1 %v148_v60  ;;  %229 = vmatprep.subr.mxu0 %v558_v0  ;;  %v72_v60 = vld [vmem:[%s1198_s0 + $0x1d0] sm:$0xff] }
  0x3e   :  { %399 = vmatprep.subr.mxu1 %v558_v0  ;;  %230 = vmatpush2.msra.mxu0 %v115_v61  ;;  %v75_v61 = vld [vmem:[%s1198_s0 + $0x1e8] sm:$0xff] }
  0x3f   :  { %400 = vmatpush2.msra.mxu1 %v147_v62  ;;  %231 = vmatprep.subr.mxu0 %v558_v0  ;;  %v77_v62 = vld [vmem:[%s1198_s0 + $0x1f8] sm:$0xff] }
  0x40   :  { %401 = vmatprep.subr.mxu1 %v558_v0  ;;  %232 = vmatpush2.msra.mxu0 %v114_v63  ;;  %v18_v0 = vld [vmem:[%s1198_s0 + $0x20] sm:$0xff] }
  0x41   :  { %233 = vmatprep.mubr.f32.mxu0 %v15_v1  ;;  %402 = vmatpush2.msra.mxu1 %v146_v2  ;;  %v74_v63 = vld [vmem:[%s1198_s0 + $0x1e0] sm:$0xff]  ;;  %v76_v1 = vld [vmem:[%s1198_s0 + $0x1f0] sm:$0xff]  ;;  %v79_v2 = vld [vmem:[%s1198_s0 + $0x208] sm:$0xff] }
  0x42   :  { %403 = vmatprep.mubr.f32.mxu1 %v17_v3  ;;  %234 = vmatmul.mubr.f32.vlgmr.msra.gmra.mxu0 %v14_v4  ;;  %v81_v3 = vld [vmem:[%s1198_s0 + $0x218] sm:$0xff]  ;;  %v78_v4 = vld [vmem:[%s1198_s0 + $0x200] sm:$0xff] }
  0x43   :  { %404 = vmatmul.mubr.f32.vlgmr.msra.gmra.mxu1 %v16_v5  ;;  %238 = vmatprep.mubr.f32.mxu0 %v19_v6  ;;  %v80_v5 = vld [vmem:[%s1198_s0 + $0x210] sm:$0xff]  ;;  %v83_v6 = vld [vmem:[%s1198_s0 + $0x228] sm:$0xff] }
  0x44   :  { %408 = vmatprep.mubr.f32.mxu1 %v21_v7  ;;  %v85_v7 = vld [vmem:[%s1198_s0 + $0x238] sm:$0xff] }
  0x46   :  { %239 = vmatmul.mubr.f32.gmra.mxu0 %v18_v0  ;;  %v82_v0 = vld [vmem:[%s1198_s0 + $0x220] sm:$0xff] }
  0x47   :  { %409 = vmatmul.mubr.f32.gmra.mxu1 %v20_v8  ;;  %243 = vmatprep.mubr.f32.mxu0 %v23_v9  ;;  %v84_v8 = vld [vmem:[%s1198_s0 + $0x230] sm:$0xff]  ;;  %v87_v9 = vld [vmem:[%s1198_s0 + $0x248] sm:$0xff] }
  0x48   :  { %413 = vmatprep.mubr.f32.mxu1 %v25_v10  ;;  %v89_v10 = vld [vmem:[%s1198_s0 + $0x258] sm:$0xff] }
  0x4a   :  { %244 = vmatmul.mubr.f32.gmra.mxu0 %v22_v11  ;;  %v86_v11 = vld [vmem:[%s1198_s0 + $0x240] sm:$0xff] }
  0x4b   :  { %414 = vmatmul.mubr.f32.gmra.mxu1 %v24_v12  ;;  %248 = vmatprep.mubr.f32.mxu0 %v27_v13  ;;  %v88_v12 = vld [vmem:[%s1198_s0 + $0x250] sm:$0xff]  ;;  %v91_v13 = vld [vmem:[%s1198_s0 + $0x268] sm:$0xff] }
  0x4c   :  { %418 = vmatprep.mubr.f32.mxu1 %v29_v14  ;;  %v93_v14 = vld [vmem:[%s1198_s0 + $0x278] sm:$0xff] }
  0x4e   :  { %249 = vmatmul.mubr.f32.gmra.mxu0 %v26_v15  ;;  %v90_v15 = vld [vmem:[%s1198_s0 + $0x260] sm:$0xff] }
  0x4f   :  { %419 = vmatmul.mubr.f32.gmra.mxu1 %v28_v16  ;;  %253 = vmatprep.mubr.f32.mxu0 %v31_v17  ;;  %v92_v16 = vld [vmem:[%s1198_s0 + $0x270] sm:$0xff]  ;;  %v95_v17 = vld [vmem:[%s1198_s0 + $0x288] sm:$0xff] }
  0x50   :  { %423 = vmatprep.mubr.f32.mxu1 %v33_v18  ;;  %v97_v18 = vld [vmem:[%s1198_s0 + $0x298] sm:$0xff] }
  0x52   :  { %254 = vmatmul.mubr.f32.gmra.mxu0 %v30_v19  ;;  %v94_v19 = vld [vmem:[%s1198_s0 + $0x280] sm:$0xff] }
  0x53   :  { %424 = vmatmul.mubr.f32.gmra.mxu1 %v32_v20  ;;  %258 = vmatprep.mubr.f32.mxu0 %v35_v21  ;;  %v96_v20 = vld [vmem:[%s1198_s0 + $0x290] sm:$0xff]  ;;  %v1090_v21 = vld [vmem:[%s1199_s2] ss:$0 sm:$0xff] }
  0x54   :  { %428 = vmatprep.mubr.f32.mxu1 %v37_v22 }
  0x56   :  { %259 = vmatmul.mubr.f32.gmra.mxu0 %v34_v23 }
  0x57   :  { %429 = vmatmul.mubr.f32.gmra.mxu1 %v36_v24  ;;  %263 = vmatprep.mubr.f32.mxu0 %v39_v25 }
  0x58   :  { %433 = vmatprep.mubr.f32.mxu1 %v41_v26 }
  0x5a   :  { %264 = vmatmul.mubr.f32.gmra.mxu0 %v38_v27 }
  0x5b   :  { %434 = vmatmul.mubr.f32.gmra.mxu1 %v40_v28  ;;  %268 = vmatprep.mubr.f32.mxu0 %v43_v29 }
  0x5c   :  { %438 = vmatprep.mubr.f32.mxu1 %v45_v30 }
  0x5e   :  { %269 = vmatmul.mubr.f32.gmra.mxu0 %v42_v31 }
  0x5f   :  { %439 = vmatmul.mubr.f32.gmra.mxu1 %v44_v32  ;;  %273 = vmatprep.mubr.f32.mxu0 %v47_v33 }
  0x60   :  { %443 = vmatprep.mubr.f32.mxu1 %v49_v34 }
  0x62   :  { %274 = vmatmul.mubr.f32.gmra.mxu0 %v46_v35 }
  0x63   :  { %444 = vmatmul.mubr.f32.gmra.mxu1 %v48_v36  ;;  %278 = vmatprep.mubr.f32.mxu0 %v51_v37 }
  0x64   :  { %448 = vmatprep.mubr.f32.mxu1 %v53_v38 }
  0x66   :  { %279 = vmatmul.mubr.f32.gmra.mxu0 %v50_v39 }
  0x67   :  { %449 = vmatmul.mubr.f32.gmra.mxu1 %v52_v40  ;;  %283 = vmatprep.mubr.f32.mxu0 %v55_v41 }
  0x68   :  { %453 = vmatprep.mubr.f32.mxu1 %v57_v42 }
  0x6a   :  { %284 = vmatmul.mubr.f32.gmra.mxu0 %v54_v43 }
  0x6b   :  { %454 = vmatmul.mubr.f32.gmra.mxu1 %v56_v44  ;;  %288 = vmatprep.mubr.f32.mxu0 %v59_v45 }
  0x6c   :  { %458 = vmatprep.mubr.f32.mxu1 %v61_v46 }
  0x6e   :  { %289 = vmatmul.mubr.f32.gmra.mxu0 %v58_v47 }
  0x6f   :  { %459 = vmatmul.mubr.f32.gmra.mxu1 %v60_v48  ;;  %293 = vmatprep.mubr.f32.mxu0 %v63_v49 }
  0x70   :  { %463 = vmatprep.mubr.f32.mxu1 %v65_v50 }
  0x72   :  { %294 = vmatmul.mubr.f32.gmra.mxu0 %v62_v51 }
  0x73   :  { %464 = vmatmul.mubr.f32.gmra.mxu1 %v64_v52  ;;  %298 = vmatprep.mubr.f32.mxu0 %v67_v53 }
  0x74   :  { %468 = vmatprep.mubr.f32.mxu1 %v69_v54 }
  0x76   :  { %299 = vmatmul.mubr.f32.gmra.mxu0 %v66_v55 }
  0x77   :  { %469 = vmatmul.mubr.f32.gmra.mxu1 %v68_v56  ;;  %303 = vmatprep.mubr.f32.mxu0 %v71_v57 }
  0x78   :  { %473 = vmatprep.mubr.f32.mxu1 %v73_v58 }
  0x7a   :  { %304 = vmatmul.mubr.f32.gmra.mxu0 %v70_v59 }
  0x7b   :  { %474 = vmatmul.mubr.f32.gmra.mxu1 %v72_v60  ;;  %308 = vmatprep.mubr.f32.mxu0 %v75_v61 }
  0x7c   :  { %478 = vmatprep.mubr.f32.mxu1 %v77_v62 }
  0x7e   :  { %309 = vmatmul.mubr.f32.gmra.mxu0 %v74_v63 }
  0x7f   :  { %479 = vmatmul.mubr.f32.gmra.mxu1 %v76_v1  ;;  %313 = vmatprep.mubr.f32.mxu0 %v79_v2 }
  0x80   :  { %483 = vmatprep.mubr.f32.mxu1 %v81_v3 }
  0x82   :  { %314 = vmatmul.mubr.f32.gmra.mxu0 %v78_v4 }
  0x83   :  { %484 = vmatmul.mubr.f32.gmra.mxu1 %v80_v5  ;;  %318 = vmatprep.mubr.f32.mxu0 %v83_v6 }
  0x84   :  { %488 = vmatprep.mubr.f32.mxu1 %v85_v7 }
  0x86   :  { %319 = vmatmul.mubr.f32.gmra.mxu0 %v82_v0 }
  0x87   :  { %489 = vmatmul.mubr.f32.gmra.mxu1 %v84_v8  ;;  %323 = vmatprep.mubr.f32.mxu0 %v87_v9 }
  0x88   :  { %493 = vmatprep.mubr.f32.mxu1 %v89_v10 }
  0x8a   :  { %324 = vmatmul.mubr.f32.gmra.mxu0 %v86_v11 }
  0x8b   :  { %494 = vmatmul.mubr.f32.gmra.mxu1 %v88_v12  ;;  %328 = vmatprep.mubr.f32.mxu0 %v91_v13 }
  0x8c   :  { %498 = vmatprep.mubr.f32.mxu1 %v93_v14 }
  0x8e   :  { %329 = vmatmul.mubr.f32.gmra.mxu0 %v90_v15 }
  0x8f   :  { %499 = vmatmul.mubr.f32.gmra.mxu1 %v92_v16  ;;  %333 = vmatprep.mubr.f32.mxu0 %v95_v17 }
  0x90   :  { %503 = vmatprep.mubr.f32.mxu1 %v97_v18 }
  0x92   :  { %334 = vmatmul.mubr.f32.gmra.mxu0 %v94_v19 }
  0x93   :  { %504 = vmatmul.mubr.f32.gmra.mxu1 %v96_v20 }
 0x102   :  { %v235_v22 = vpop.f32.mrf.mxu0 }
 0x103   :  { %v405_v23 = vpop.f32.mrf.mxu1  ;;  %v236_v24 = vadd.f32 %v1090_v21, %v235_v22 }
 0x104   :  { %v237_v25 = vpop.f32.mrf.mxu0 }
 0x105   :  { %v407_v26 = vpop.f32.mrf.mxu1  ;;  %v406_v27 = vadd.f32 %v405_v23, %v236_v24 }
 0x106   :  { %v240_v28 = vpop.f32.mrf.mxu0 }
 0x107   :  { %v410_v29 = vpop.f32.mrf.mxu1  ;;  %v509_v30 = vmax.f32 %v406_v27, 0.0  ;;  %v241_v31 = vadd.f32 %v1090_v21, %v240_v28 }
 0x108   :  { %v242_v32 = vpop.f32.mrf.mxu0 }
 0x109   :  { %v412_v33 = vpop.f32.mrf.mxu1  ;;  %531 = vst.msk [vmem:[%s1200_s3] sm:$0xff] %vm530_vm0, %v509_v30  ;;  %v411_v34 = vadd.f32 %v410_v29, %v241_v31 }
 0x10a   :  { %v245_v35 = vpop.f32.mrf.mxu0 }
 0x10b   :  { %v415_v36 = vpop.f32.mrf.mxu1  ;;  %v510_v37 = vmax.f32 %v411_v34, 0.0  ;;  %v246_v38 = vadd.f32 %v1090_v21, %v245_v35 }
 0x10c   :  { %v247_v39 = vpop.f32.mrf.mxu0 }
 0x10d   :  { %v417_v40 = vpop.f32.mrf.mxu1  ;;  %532 = vst.msk [vmem:[%s1200_s3 + $0x8] sm:$0xff] %vm530_vm0, %v510_v37  ;;  %v416_v41 = vadd.f32 %v415_v36, %v246_v38 }
 0x10e   :  { %v250_v42 = vpop.f32.mrf.mxu0 }
 0x10f   :  { %v420_v43 = vpop.f32.mrf.mxu1  ;;  %v511_v44 = vmax.f32 %v416_v41, 0.0  ;;  %v251_v45 = vadd.f32 %v1090_v21, %v250_v42 }
 0x110   :  { %v252_v46 = vpop.f32.mrf.mxu0 }
 0x111   :  { %v422_v47 = vpop.f32.mrf.mxu1  ;;  %533 = vst.msk [vmem:[%s1200_s3 + $0x10] sm:$0xff] %vm530_vm0, %v511_v44  ;;  %v421_v48 = vadd.f32 %v420_v43, %v251_v45 }
 0x112   :  { %v255_v49 = vpop.f32.mrf.mxu0 }
 0x113   :  { %v425_v50 = vpop.f32.mrf.mxu1  ;;  %v512_v51 = vmax.f32 %v421_v48, 0.0  ;;  %v256_v52 = vadd.f32 %v1090_v21, %v255_v49 }
 0x114   :  { %v257_v53 = vpop.f32.mrf.mxu0 }
 0x115   :  { %v427_v54 = vpop.f32.mrf.mxu1  ;;  %534 = vst.msk [vmem:[%s1200_s3 + $0x18] sm:$0xff] %vm530_vm0, %v512_v51  ;;  %v426_v55 = vadd.f32 %v425_v50, %v256_v52 }
 0x116   :  { %v260_v56 = vpop.f32.mrf.mxu0 }
 0x117   :  { %v430_v57 = vpop.f32.mrf.mxu1  ;;  %v513_v58 = vmax.f32 %v426_v55, 0.0  ;;  %v261_v59 = vadd.f32 %v1090_v21, %v260_v56 }
 0x118   :  { %v262_v60 = vpop.f32.mrf.mxu0 }
 0x119   :  { %v432_v61 = vpop.f32.mrf.mxu1  ;;  %535 = vst.msk [vmem:[%s1200_s3 + $0x20] sm:$0xff] %vm530_vm0, %v513_v58  ;;  %v431_v62 = vadd.f32 %v430_v57, %v261_v59 }
 0x11a   :  { %v265_v63 = vpop.f32.mrf.mxu0 }
 0x11b   :  { %v435_v1 = vpop.f32.mrf.mxu1  ;;  %v514_v2 = vmax.f32 %v431_v62, 0.0  ;;  %v266_v3 = vadd.f32 %v1090_v21, %v265_v63 }
 0x11c   :  { %v267_v4 = vpop.f32.mrf.mxu0 }
 0x11d   :  { %v437_v5 = vpop.f32.mrf.mxu1  ;;  %536 = vst.msk [vmem:[%s1200_s3 + $0x28] sm:$0xff] %vm530_vm0, %v514_v2  ;;  %v436_v6 = vadd.f32 %v435_v1, %v266_v3 }
 0x11e   :  { %v270_v7 = vpop.f32.mrf.mxu0 }
 0x11f   :  { %v440_v0 = vpop.f32.mrf.mxu1  ;;  %v515_v8 = vmax.f32 %v436_v6, 0.0  ;;  %v271_v9 = vadd.f32 %v1090_v21, %v270_v7 }
 0x120   :  { %v272_v10 = vpop.f32.mrf.mxu0 }
 0x121   :  { %v442_v11 = vpop.f32.mrf.mxu1  ;;  %537 = vst.msk [vmem:[%s1200_s3 + $0x30] sm:$0xff] %vm530_vm0, %v515_v8  ;;  %v441_v12 = vadd.f32 %v440_v0, %v271_v9 }
 0x122   :  { %v275_v13 = vpop.f32.mrf.mxu0 }
 0x123   :  { %v445_v14 = vpop.f32.mrf.mxu1  ;;  %v516_v15 = vmax.f32 %v441_v12, 0.0  ;;  %v276_v16 = vadd.f32 %v1090_v21, %v275_v13 }
 0x124   :  { %v277_v17 = vpop.f32.mrf.mxu0 }
 0x125   :  { %v447_v18 = vpop.f32.mrf.mxu1  ;;  %538 = vst.msk [vmem:[%s1200_s3 + $0x38] sm:$0xff] %vm530_vm0, %v516_v15  ;;  %v446_v19 = vadd.f32 %v445_v14, %v276_v16 }
 0x126   :  { %v280_v20 = vpop.f32.mrf.mxu0 }
 0x127   :  { %v450_v22 = vpop.f32.mrf.mxu1  ;;  %v517_v23 = vmax.f32 %v446_v19, 0.0  ;;  %v281_v24 = vadd.f32 %v1090_v21, %v280_v20 }
 0x128   :  { %v282_v25 = vpop.f32.mrf.mxu0 }
 0x129   :  { %v452_v26 = vpop.f32.mrf.mxu1  ;;  %539 = vst.msk [vmem:[%s1200_s3 + $0x40] sm:$0xff] %vm530_vm0, %v517_v23  ;;  %v451_v27 = vadd.f32 %v450_v22, %v281_v24 }
 0x12a   :  { %v285_v28 = vpop.f32.mrf.mxu0 }
 0x12b   :  { %v455_v29 = vpop.f32.mrf.mxu1  ;;  %v518_v30 = vmax.f32 %v451_v27, 0.0  ;;  %v286_v31 = vadd.f32 %v1090_v21, %v285_v28 }
 0x12c   :  { %v287_v32 = vpop.f32.mrf.mxu0 }
 0x12d   :  { %v457_v33 = vpop.f32.mrf.mxu1  ;;  %540 = vst.msk [vmem:[%s1200_s3 + $0x48] sm:$0xff] %vm530_vm0, %v518_v30  ;;  %v456_v34 = vadd.f32 %v455_v29, %v286_v31 }
 0x12e   :  { %v290_v35 = vpop.f32.mrf.mxu0 }
 0x12f   :  { %v460_v36 = vpop.f32.mrf.mxu1  ;;  %v519_v37 = vmax.f32 %v456_v34, 0.0  ;;  %v291_v38 = vadd.f32 %v1090_v21, %v290_v35 }
 0x130   :  { %v292_v39 = vpop.f32.mrf.mxu0 }
 0x131   :  { %v462_v40 = vpop.f32.mrf.mxu1  ;;  %541 = vst.msk [vmem:[%s1200_s3 + $0x50] sm:$0xff] %vm530_vm0, %v519_v37  ;;  %v461_v41 = vadd.f32 %v460_v36, %v291_v38 }
 0x132   :  { %v295_v42 = vpop.f32.mrf.mxu0 }
 0x133   :  { %v465_v43 = vpop.f32.mrf.mxu1  ;;  %v520_v44 = vmax.f32 %v461_v41, 0.0  ;;  %v296_v45 = vadd.f32 %v1090_v21, %v295_v42 }
 0x134   :  { %v297_v46 = vpop.f32.mrf.mxu0 }
 0x135   :  { %v467_v47 = vpop.f32.mrf.mxu1  ;;  %542 = vst.msk [vmem:[%s1200_s3 + $0x58] sm:$0xff] %vm530_vm0, %v520_v44  ;;  %v466_v48 = vadd.f32 %v465_v43, %v296_v45 }
 0x136   :  { %v300_v49 = vpop.f32.mrf.mxu0 }
 0x137   :  { %v470_v50 = vpop.f32.mrf.mxu1  ;;  %v521_v51 = vmax.f32 %v466_v48, 0.0  ;;  %v301_v52 = vadd.f32 %v1090_v21, %v300_v49 }
 0x138   :  { %v302_v53 = vpop.f32.mrf.mxu0 }
 0x139   :  { %v472_v54 = vpop.f32.mrf.mxu1  ;;  %543 = vst.msk [vmem:[%s1200_s3 + $0x60] sm:$0xff] %vm530_vm0, %v521_v51  ;;  %v471_v55 = vadd.f32 %v470_v50, %v301_v52 }
 0x13a   :  { %v305_v56 = vpop.f32.mrf.mxu0 }
 0x13b   :  { %v475_v57 = vpop.f32.mrf.mxu1  ;;  %v522_v58 = vmax.f32 %v471_v55, 0.0  ;;  %v306_v59 = vadd.f32 %v1090_v21, %v305_v56 }
 0x13c   :  { %v307_v60 = vpop.f32.mrf.mxu0 }
 0x13d   :  { %v477_v61 = vpop.f32.mrf.mxu1  ;;  %544 = vst.msk [vmem:[%s1200_s3 + $0x68] sm:$0xff] %vm530_vm0, %v522_v58  ;;  %v476_v62 = vadd.f32 %v475_v57, %v306_v59 }
 0x13e   :  { %v310_v63 = vpop.f32.mrf.mxu0 }
 0x13f   :  { %v480_v1 = vpop.f32.mrf.mxu1  ;;  %v523_v2 = vmax.f32 %v476_v62, 0.0  ;;  %v311_v3 = vadd.f32 %v1090_v21, %v310_v63 }
 0x140   :  { %v312_v4 = vpop.f32.mrf.mxu0 }
 0x141   :  { %v482_v5 = vpop.f32.mrf.mxu1  ;;  %545 = vst.msk [vmem:[%s1200_s3 + $0x70] sm:$0xff] %vm530_vm0, %v523_v2  ;;  %v481_v6 = vadd.f32 %v480_v1, %v311_v3 }
 0x142   :  { %v315_v7 = vpop.f32.mrf.mxu0 }
 0x143   :  { %v485_v0 = vpop.f32.mrf.mxu1  ;;  %v524_v8 = vmax.f32 %v481_v6, 0.0  ;;  %v316_v9 = vadd.f32 %v1090_v21, %v315_v7 }
 0x144   :  { %v317_v10 = vpop.f32.mrf.mxu0 }
 0x145   :  { %v487_v11 = vpop.f32.mrf.mxu1  ;;  %546 = vst.msk [vmem:[%s1200_s3 + $0x78] sm:$0xff] %vm530_vm0, %v524_v8  ;;  %v486_v12 = vadd.f32 %v485_v0, %v316_v9 }
 0x146   :  { %v320_v13 = vpop.f32.mrf.mxu0 }
 0x147   :  { %v490_v14 = vpop.f32.mrf.mxu1  ;;  %v525_v15 = vmax.f32 %v486_v12, 0.0  ;;  %v321_v16 = vadd.f32 %v1090_v21, %v320_v13 }
 0x148   :  { %v322_v17 = vpop.f32.mrf.mxu0 }
 0x149   :  { %v492_v18 = vpop.f32.mrf.mxu1  ;;  %547 = vst.msk [vmem:[%s1200_s3 + $0x80] sm:$0xff] %vm530_vm0, %v525_v15  ;;  %v491_v19 = vadd.f32 %v490_v14, %v321_v16 }
 0x14a   :  { %v325_v20 = vpop.f32.mrf.mxu0 }
 0x14b   :  { %v495_v22 = vpop.f32.mrf.mxu1  ;;  %v526_v23 = vmax.f32 %v491_v19, 0.0  ;;  %v326_v24 = vadd.f32 %v1090_v21, %v325_v20 }
 0x14c   :  { %v327_v25 = vpop.f32.mrf.mxu0 }
 0x14d   :  { %v497_v26 = vpop.f32.mrf.mxu1  ;;  %548 = vst.msk [vmem:[%s1200_s3 + $0x88] sm:$0xff] %vm530_vm0, %v526_v23  ;;  %v496_v27 = vadd.f32 %v495_v22, %v326_v24 }
 0x14e   :  { %v330_v28 = vpop.f32.mrf.mxu0 }
 0x14f   :  { %v500_v29 = vpop.f32.mrf.mxu1  ;;  %v527_v30 = vmax.f32 %v496_v27, 0.0  ;;  %v331_v31 = vadd.f32 %v1090_v21, %v330_v28 }
 0x150   :  { %v332_v32 = vpop.f32.mrf.mxu0 }
 0x151   :  { %v502_v33 = vpop.f32.mrf.mxu1  ;;  %549 = vst.msk [vmem:[%s1200_s3 + $0x90] sm:$0xff] %vm530_vm0, %v527_v30  ;;  %v501_v34 = vadd.f32 %v500_v29, %v331_v31 }
 0x152   :  { %v335_v35 = vpop.f32.mrf.mxu0 }
 0x153   :  { %v505_v36 = vpop.f32.mrf.mxu1  ;;  %v528_v37 = vmax.f32 %v501_v34, 0.0  ;;  %v336_v38 = vadd.f32 %v1090_v21, %v335_v35 }
 0x154   :  { %v337_v39 = vpop.f32.mrf.mxu0 }
 0x155   :  { %v507_v40 = vpop.f32.mrf.mxu1  ;;  %550 = vst.msk [vmem:[%s1200_s3 + $0x98] sm:$0xff] %vm530_vm0, %v528_v37  ;;  %v506_v41 = vadd.f32 %v505_v36, %v336_v38 }
 0x157   :  { %v529_v42 = vmax.f32 %v506_v41, 0.0 }
 0x159   :  { %551 = vst.msk [vmem:[%s1200_s3 + $0xa0] sm:$0xff] %vm530_vm0, %v529_v42 }

// kernel: convnet_forward.6
= control target key start
LH: loop header
LB: loop body
LE: loop exit
PB: predicated region body
PF: predicated region fallthrough
CT: control target
= control target key end

     0   :  { %vm869_vm0 = vmmov 0   ;;  %vm158_vm1 = vcmask 523264   ;;  %s1480_s1 = inlined_call_operand.vmem [shape: f32[576,64], index: 1, kind: input, shape index: {}]   ;;  %s1481_s0 = inlined_call_operand.vmem [shape: f32[104,576], index: 0, kind: input, shape index: {}]   ;;  %s1482_s2 = inlined_call_operand.vmem [shape: f32[1,64], index: 2, kind: input, shape index: {}]   ;;  %s1483_s3 = inlined_call_operand.vmem [shape: f32[104,64], index: 3, kind: output, shape index: {}]  }
   0x1   :  { %v110_v0 = vld [vmem:[%s1480_s1 + $0xf8] sm:$0xff]  ;;  %v109_v4 = vld [vmem:[%s1480_s1 + $0xf0] sm:$0xff]  ;;  %v108_v8 = vld [vmem:[%s1480_s1 + $0xe8] sm:$0xff] }
   0x2   :  { %v142_v1 = vld [vmem:[%s1480_s1 + $0x1f8] sm:$0xff]  ;;  %632 = vmatprep.subr.mxu0 %v110_v0  ;;  %v141_v5 = vld [vmem:[%s1480_s1 + $0x1f0] sm:$0xff]  ;;  %v140_v9 = vld [vmem:[%s1480_s1 + $0x1e8] sm:$0xff] }
   0x3   :  { %v94_v2 = vld [vmem:[%s1480_s1 + $0x78] sm:$0xff]  ;;  %703 = vmatprep.subr.mxu1 %v142_v1  ;;  %v93_v6 = vld [vmem:[%s1480_s1 + $0x70] sm:$0xff]  ;;  %v92_v10 = vld [vmem:[%s1480_s1 + $0x68] sm:$0xff] }
   0x4   :  { %v126_v3 = vld [vmem:[%s1480_s1 + $0x178] sm:$0xff]  ;;  %633 = vmatpush3.msra.mxu0 %v94_v2  ;;  %v125_v7 = vld [vmem:[%s1480_s1 + $0x170] sm:$0xff]  ;;  %v124_v11 = vld [vmem:[%s1480_s1 + $0x168] sm:$0xff] }
   0x5   :  { %704 = vmatpush3.msra.mxu1 %v126_v3  ;;  %634 = vmatprep.subr.mxu0 %v109_v4  ;;  %v107_v12 = vld [vmem:[%s1480_s1 + $0xe0] sm:$0xff]  ;;  %v106_v16 = vld [vmem:[%s1480_s1 + $0xd8] sm:$0xff]  ;;  %v105_v20 = vld [vmem:[%s1480_s1 + $0xd0] sm:$0xff] }
   0x6   :  { %705 = vmatprep.subr.mxu1 %v141_v5  ;;  %635 = vmatpush3.msra.mxu0 %v93_v6  ;;  %v139_v13 = vld [vmem:[%s1480_s1 + $0x1e0] sm:$0xff]  ;;  %v138_v17 = vld [vmem:[%s1480_s1 + $0x1d8] sm:$0xff]  ;;  %v137_v21 = vld [vmem:[%s1480_s1 + $0x1d0] sm:$0xff] }
   0x7   :  { %706 = vmatpush3.msra.mxu1 %v125_v7  ;;  %636 = vmatprep.subr.mxu0 %v108_v8  ;;  %v91_v14 = vld [vmem:[%s1480_s1 + $0x60] sm:$0xff]  ;;  %v90_v18 = vld [vmem:[%s1480_s1 + $0x58] sm:$0xff]  ;;  %v89_v22 = vld [vmem:[%s1480_s1 + $0x50] sm:$0xff]  ;;  %v868_v7 = vmov 0.0  }
   0x8   :  { %707 = vmatprep.subr.mxu1 %v140_v9  ;;  %v123_v15 = vld [vmem:[%s1480_s1 + $0x160] sm:$0xff]  ;;  %637 = vmatpush3.msra.mxu0 %v92_v10  ;;  %v122_v19 = vld [vmem:[%s1480_s1 + $0x158] sm:$0xff]  ;;  %v121_v23 = vld [vmem:[%s1480_s1 + $0x150] sm:$0xff] }
   0x9   :  { %708 = vmatpush3.msra.mxu1 %v124_v11  ;;  %638 = vmatprep.subr.mxu0 %v107_v12  ;;  %v104_v24 = vld [vmem:[%s1480_s1 + $0xc8] sm:$0xff]  ;;  %v103_v28 = vld [vmem:[%s1480_s1 + $0xc0] sm:$0xff]  ;;  %v102_v32 = vld [vmem:[%s1480_s1 + $0xb8] sm:$0xff] }
   0xa   :  { %709 = vmatprep.subr.mxu1 %v139_v13  ;;  %639 = vmatpush3.msra.mxu0 %v91_v14  ;;  %v136_v25 = vld [vmem:[%s1480_s1 + $0x1c8] sm:$0xff]  ;;  %v135_v29 = vld [vmem:[%s1480_s1 + $0x1c0] sm:$0xff]  ;;  %v134_v33 = vld [vmem:[%s1480_s1 + $0x1b8] sm:$0xff] }
   0xb   :  { %710 = vmatpush3.msra.mxu1 %v123_v15  ;;  %640 = vmatprep.subr.mxu0 %v106_v16  ;;  %v88_v26 = vld [vmem:[%s1480_s1 + $0x48] sm:$0xff]  ;;  %v87_v30 = vld [vmem:[%s1480_s1 + $0x40] sm:$0xff]  ;;  %v86_v34 = vld [vmem:[%s1480_s1 + $0x38] sm:$0xff] }
   0xc   :  { %711 = vmatprep.subr.mxu1 %v138_v17  ;;  %641 = vmatpush3.msra.mxu0 %v90_v18  ;;  %v120_v27 = vld [vmem:[%s1480_s1 + $0x148] sm:$0xff]  ;;  %v119_v31 = vld [vmem:[%s1480_s1 + $0x140] sm:$0xff]  ;;  %v118_v35 = vld [vmem:[%s1480_s1 + $0x138] sm:$0xff] }
   0xd   :  { %712 = vmatpush3.msra.mxu1 %v122_v19  ;;  %642 = vmatprep.subr.mxu0 %v105_v20  ;;  %v101_v36 = vld [vmem:[%s1480_s1 + $0xb0] sm:$0xff]  ;;  %v100_v40 = vld [vmem:[%s1480_s1 + $0xa8] sm:$0xff]  ;;  %v99_v44 = vld [vmem:[%s1480_s1 + $0xa0] sm:$0xff] }
   0xe   :  { %713 = vmatprep.subr.mxu1 %v137_v21  ;;  %643 = vmatpush3.msra.mxu0 %v89_v22  ;;  %v133_v37 = vld [vmem:[%s1480_s1 + $0x1b0] sm:$0xff]  ;;  %v132_v41 = vld [vmem:[%s1480_s1 + $0x1a8] sm:$0xff]  ;;  %v131_v45 = vld [vmem:[%s1480_s1 + $0x1a0] sm:$0xff] }
   0xf   :  { %714 = vmatpush3.msra.mxu1 %v121_v23  ;;  %644 = vmatprep.subr.mxu0 %v104_v24  ;;  %v85_v38 = vld [vmem:[%s1480_s1 + $0x30] sm:$0xff]  ;;  %v84_v42 = vld [vmem:[%s1480_s1 + $0x28] sm:$0xff]  ;;  %v83_v46 = vld [vmem:[%s1480_s1 + $0x20] sm:$0xff] }
  0x10   :  { %715 = vmatprep.subr.mxu1 %v136_v25  ;;  %645 = vmatpush3.msra.mxu0 %v88_v26  ;;  %v117_v39 = vld [vmem:[%s1480_s1 + $0x130] sm:$0xff]  ;;  %v116_v43 = vld [vmem:[%s1480_s1 + $0x128] sm:$0xff]  ;;  %v115_v47 = vld [vmem:[%s1480_s1 + $0x120] sm:$0xff] }
  0x11   :  { %716 = vmatpush3.msra.mxu1 %v120_v27  ;;  %646 = vmatprep.subr.mxu0 %v103_v28  ;;  %v98_v48 = vld [vmem:[%s1480_s1 + $0x98] sm:$0xff]  ;;  %v97_v52 = vld [vmem:[%s1480_s1 + $0x90] sm:$0xff]  ;;  %v96_v56 = vld [vmem:[%s1480_s1 + $0x88] sm:$0xff] }
  0x12   :  { %717 = vmatprep.subr.mxu1 %v135_v29  ;;  %647 = vmatpush3.msra.mxu0 %v87_v30  ;;  %v130_v49 = vld [vmem:[%s1480_s1 + $0x198] sm:$0xff]  ;;  %v129_v53 = vld [vmem:[%s1480_s1 + $0x190] sm:$0xff]  ;;  %v128_v57 = vld [vmem:[%s1480_s1 + $0x188] sm:$0xff] }
  0x13   :  { %718 = vmatpush3.msra.mxu1 %v119_v31  ;;  %648 = vmatprep.subr.mxu0 %v102_v32  ;;  %v82_v50 = vld [vmem:[%s1480_s1 + $0x18] sm:$0xff]  ;;  %v81_v54 = vld [vmem:[%s1480_s1 + $0x10] sm:$0xff]  ;;  %v80_v58 = vld [vmem:[%s1480_s1 + $0x8] sm:$0xff] }
  0x14   :  { %719 = vmatprep.subr.mxu1 %v134_v33  ;;  %649 = vmatpush3.msra.mxu0 %v86_v34  ;;  %v114_v51 = vld [vmem:[%s1480_s1 + $0x118] sm:$0xff]  ;;  %v113_v55 = vld [vmem:[%s1480_s1 + $0x110] sm:$0xff]  ;;  %v112_v59 = vld [vmem:[%s1480_s1 + $0x108] sm:$0xff] }
  0x15   :  { %720 = vmatpush3.msra.mxu1 %v118_v35  ;;  %650 = vmatprep.subr.mxu0 %v101_v36  ;;  %v95_v60 = vld [vmem:[%s1480_s1 + $0x80] sm:$0xff]  ;;  %v15_v63 = vld [vmem:[%s1481_s0 + $0x8] sm:$0xff]  ;;  %v17_v1 = vld [vmem:[%s1481_s0 + $0x18] sm:$0xff] }
  0x16   :  { %721 = vmatprep.subr.mxu1 %v133_v37  ;;  %651 = vmatpush3.msra.mxu0 %v85_v38  ;;  %v127_v61 = vld [vmem:[%s1480_s1 + $0x180] sm:$0xff]  ;;  %v16_v3 = vld [vmem:[%s1481_s0 + $0x10] sm:$0xff]  ;;  %v150_v5 = vld [vmem:[%s1480_s1 + $0x238] sm:$0xff] }
  0x17   :  { %722 = vmatpush3.msra.mxu1 %v117_v39  ;;  %652 = vmatprep.subr.mxu0 %v100_v40  ;;  %v79_v62 = vld [vmem:[%s1480_s1] sm:$0xff]  ;;  %v20_v4 = vld [vmem:[%s1481_s0 + $0x30] sm:$0xff]  ;;  %v19_v8 = vld [vmem:[%s1481_s0 + $0x28] sm:$0xff] }
  0x18   :  { %723 = vmatprep.subr.mxu1 %v132_v41  ;;  %653 = vmatpush3.msra.mxu0 %v84_v42  ;;  %v111_v0 = vld [vmem:[%s1480_s1 + $0x100] sm:$0xff]  ;;  %v21_v9 = vld [vmem:[%s1481_s0 + $0x38] sm:$0xff]  ;;  %v27_v11 = vld [vmem:[%s1481_s0 + $0x68] sm:$0xff] }
  0x19   :  { %724 = vmatpush3.msra.mxu1 %v116_v43  ;;  %654 = vmatprep.subr.mxu0 %v99_v44  ;;  %v14_v2 = vld [vmem:[%s1481_s0] sm:$0xff]  ;;  %v25_v10 = vld [vmem:[%s1481_s0 + $0x58] sm:$0xff]  ;;  %v149_v12 = vld [vmem:[%s1480_s1 + $0x230] sm:$0xff] }
  0x1a   :  { %725 = vmatprep.subr.mxu1 %v131_v45  ;;  %655 = vmatpush3.msra.mxu0 %v83_v46  ;;  %v22_v6 = vld [vmem:[%s1481_s0 + $0x40] sm:$0xff]  ;;  %v24_v13 = vld [vmem:[%s1481_s0 + $0x50] sm:$0xff]  ;;  %v148_v17 = vld [vmem:[%s1480_s1 + $0x228] sm:$0xff] }
  0x1b   :  { %726 = vmatpush3.msra.mxu1 %v115_v47  ;;  %656 = vmatprep.subr.mxu0 %v98_v48  ;;  %v26_v14 = vld [vmem:[%s1481_s0 + $0x60] sm:$0xff]  ;;  %v32_v16 = vld [vmem:[%s1481_s0 + $0x90] sm:$0xff]  ;;  %v29_v18 = vld [vmem:[%s1481_s0 + $0x78] sm:$0xff] }
  0x1c   :  { %727 = vmatprep.subr.mxu1 %v130_v49  ;;  %657 = vmatpush3.msra.mxu0 %v82_v50  ;;  %v30_v15 = vld [vmem:[%s1481_s0 + $0x80] sm:$0xff]  ;;  %v31_v19 = vld [vmem:[%s1481_s0 + $0x88] sm:$0xff]  ;;  %v37_v21 = vld [vmem:[%s1481_s0 + $0xb8] sm:$0xff] }
  0x1d   :  { %728 = vmatpush3.msra.mxu1 %v114_v51  ;;  %658 = vmatprep.subr.mxu0 %v97_v52  ;;  %v35_v20 = vld [vmem:[%s1481_s0 + $0xa8] sm:$0xff]  ;;  %v147_v22 = vld [vmem:[%s1480_s1 + $0x220] sm:$0xff]  ;;  %v36_v24 = vld [vmem:[%s1481_s0 + $0xb0] sm:$0xff] }
  0x1e   :  { %729 = vmatprep.subr.mxu1 %v129_v53  ;;  %659 = vmatpush3.msra.mxu0 %v81_v54  ;;  %v34_v23 = vld [vmem:[%s1481_s0 + $0xa0] sm:$0xff]  ;;  %v40_v25 = vld [vmem:[%s1481_s0 + $0xd0] sm:$0xff]  ;;  %v146_v27 = vld [vmem:[%s1480_s1 + $0x218] sm:$0xff] }
  0x1f   :  { %730 = vmatpush3.msra.mxu1 %v113_v55  ;;  %660 = vmatprep.subr.mxu0 %v96_v56  ;;  %v42_v26 = vld [vmem:[%s1481_s0 + $0xe0] sm:$0xff]  ;;  %v39_v28 = vld [vmem:[%s1481_s0 + $0xc8] sm:$0xff]  ;;  %v41_v29 = vld [vmem:[%s1481_s0 + $0xd8] sm:$0xff] }
  0x20   :  { %731 = vmatprep.subr.mxu1 %v128_v57  ;;  %661 = vmatpush3.msra.mxu0 %v80_v58  ;;  %v45_v30 = vld [vmem:[%s1481_s0 + $0xf8] sm:$0xff]  ;;  %v47_v31 = vld [vmem:[%s1481_s0 + $0x108] sm:$0xff]  ;;  %v145_v32 = vld [vmem:[%s1480_s1 + $0x210] sm:$0xff] }
  0x21   :  { %732 = vmatpush3.msra.mxu1 %v112_v59  ;;  %662 = vmatprep.subr.mxu0 %v95_v60  ;;  %v44_v33 = vld [vmem:[%s1481_s0 + $0xf0] sm:$0xff]  ;;  %v46_v34 = vld [vmem:[%s1481_s0 + $0x100] sm:$0xff]  ;;  %v144_v37 = vld [vmem:[%s1480_s1 + $0x208] sm:$0xff] }
  0x22   :  { %733 = vmatprep.subr.mxu1 %v127_v61  ;;  %663 = vmatpush3.msra.mxu0 %v79_v62  ;;  %v50_v35 = vld [vmem:[%s1481_s0 + $0x120] sm:$0xff]  ;;  %v52_v36 = vld [vmem:[%s1481_s0 + $0x130] sm:$0xff]  ;;  %v49_v38 = vld [vmem:[%s1481_s0 + $0x118] sm:$0xff] }
  0x23   :  { %262 = vmatprep.mubr.f32.mxu0 %v15_v63  ;;  %734 = vmatpush3.msra.mxu1 %v111_v0  ;;  %v51_v39 = vld [vmem:[%s1481_s0 + $0x128] sm:$0xff]  ;;  %v57_v41 = vld [vmem:[%s1481_s0 + $0x158] sm:$0xff]  ;;  %v143_v42 = vld [vmem:[%s1480_s1 + $0x200] sm:$0xff] }
  0x24   :  { %392 = vmatprep.mubr.f32.mxu1 %v17_v1  ;;  %263 = vmatmul.mubr.f32.vlgmr.msra.gmra.mxu0 %v14_v2  ;;  %v55_v40 = vld [vmem:[%s1481_s0 + $0x148] sm:$0xff]  ;;  %v54_v43 = vld [vmem:[%s1481_s0 + $0x140] sm:$0xff]  ;;  %v56_v44 = vld [vmem:[%s1481_s0 + $0x150] sm:$0xff] }
  0x25   :  { %393 = vmatmul.mubr.f32.vlgmr.msra.gmra.mxu1 %v16_v3  ;;  %795 = vmatprep.subr.mxu0 %v868_v7  ;;  %v60_v45 = vld [vmem:[%s1481_s0 + $0x170] sm:$0xff]  ;;  %v62_v46 = vld [vmem:[%s1481_s0 + $0x180] sm:$0xff]  ;;  %v59_v47 = vld [vmem:[%s1481_s0 + $0x168] sm:$0xff] }
  0x26   :  { %267 = vmatprep.mubr.f32.mxu0 %v20_v4  ;;  %796 = vmatpush3.msra.mxu0 %v150_v5  ;;  %v61_v48 = vld [vmem:[%s1481_s0 + $0x178] sm:$0xff]  ;;  %v67_v50 = vld [vmem:[%s1481_s0 + $0x1a8] sm:$0xff]  ;;  %v64_v51 = vld [vmem:[%s1481_s0 + $0x190] sm:$0xff] }
  0x27   :  { %397 = vmatprep.mubr.f32.mxu1 %v22_v6  ;;  %850 = vmatprep.subr.mxu1 %v868_v7  ;;  %v65_v49 = vld [vmem:[%s1481_s0 + $0x198] sm:$0xff]  ;;  %v66_v52 = vld [vmem:[%s1481_s0 + $0x1a0] sm:$0xff]  ;;  %v72_v54 = vld [vmem:[%s1481_s0 + $0x1d0] sm:$0xff] }
  0x28   :  { %797 = vmatprep.subr.mxu0 %v868_v7  ;;  %268 = vmatmul.mubr.f32.gmra.mxu0 %v19_v8  ;;  %v70_v53 = vld [vmem:[%s1481_s0 + $0x1c0] sm:$0xff]  ;;  %v69_v55 = vld [vmem:[%s1481_s0 + $0x1b8] sm:$0xff]  ;;  %v71_v56 = vld [vmem:[%s1481_s0 + $0x1c8] sm:$0xff] }
  0x29   :  { %398 = vmatmul.mubr.f32.gmra.mxu1 %v21_v9  ;;  %272 = vmatprep.mubr.f32.mxu0 %v25_v10  ;;  %v75_v57 = vld [vmem:[%s1481_s0 + $0x1e8] sm:$0xff]  ;;  %v77_v58 = vld [vmem:[%s1481_s0 + $0x1f8] sm:$0xff]  ;;  %v74_v59 = vld [vmem:[%s1481_s0 + $0x1e0] sm:$0xff] }
  0x2a   :  { %858 = vmatpush3.msra.mxu1 %v150_v5  ;;  %402 = vmatprep.mubr.f32.mxu1 %v27_v11  ;;  %v76_v60 = vld [vmem:[%s1481_s0 + $0x1f0] sm:$0xff]  ;;  %v18_v61 = vld [vmem:[%s1481_s0 + $0x20] sm:$0xff]  ;;  %v53_v62 = vld [vmem:[%s1481_s0 + $0x138] sm:$0xff] }
  0x2b   :  { %798 = vmatpush3.msra.mxu0 %v149_v12  ;;  %851 = vmatprep.subr.mxu1 %v868_v7  ;;  %v23_v63 = vld [vmem:[%s1481_s0 + $0x48] sm:$0xff]  ;;  %v58_v0 = vld [vmem:[%s1481_s0 + $0x160] sm:$0xff]  ;;  %v28_v1 = vld [vmem:[%s1481_s0 + $0x70] sm:$0xff] }
  0x2c   :  { %799 = vmatprep.subr.mxu0 %v868_v7  ;;  %273 = vmatmul.mubr.f32.gmra.mxu0 %v24_v13  ;;  %v63_v2 = vld [vmem:[%s1481_s0 + $0x188] sm:$0xff]  ;;  %v33_v3 = vld [vmem:[%s1481_s0 + $0x98] sm:$0xff]  ;;  %v68_v4 = vld [vmem:[%s1481_s0 + $0x1b0] sm:$0xff] }
  0x2d   :  { %403 = vmatmul.mubr.f32.gmra.mxu1 %v26_v14  ;;  %277 = vmatprep.mubr.f32.mxu0 %v30_v15  ;;  %v38_v5 = vld [vmem:[%s1481_s0 + $0xc0] sm:$0xff]  ;;  %v73_v6 = vld [vmem:[%s1481_s0 + $0x1d8] sm:$0xff]  ;;  %v43_v8 = vld [vmem:[%s1481_s0 + $0xe8] sm:$0xff] }
  0x2e   :  { %407 = vmatprep.mubr.f32.mxu1 %v32_v16  ;;  %859 = vmatpush3.msra.mxu1 %v149_v12  ;;  %v78_v9 = vld [vmem:[%s1481_s0 + $0x200] sm:$0xff]  ;;  %v48_v10 = vld [vmem:[%s1481_s0 + $0x110] sm:$0xff] }
  0x2f   :  { %800 = vmatpush3.msra.mxu0 %v148_v17  ;;  %852 = vmatprep.subr.mxu1 %v868_v7 }
  0x30   :  { %801 = vmatprep.subr.mxu0 %v868_v7  ;;  %278 = vmatmul.mubr.f32.gmra.mxu0 %v29_v18 }
  0x31   :  { %408 = vmatmul.mubr.f32.gmra.mxu1 %v31_v19  ;;  %282 = vmatprep.mubr.f32.mxu0 %v35_v20 }
  0x32   :  { %412 = vmatprep.mubr.f32.mxu1 %v37_v21  ;;  %860 = vmatpush3.msra.mxu1 %v148_v17 }
  0x33   :  { %802 = vmatpush3.msra.mxu0 %v147_v22  ;;  %853 = vmatprep.subr.mxu1 %v868_v7 }
  0x34   :  { %803 = vmatprep.subr.mxu0 %v868_v7  ;;  %283 = vmatmul.mubr.f32.gmra.mxu0 %v34_v23 }
  0x35   :  { %413 = vmatmul.mubr.f32.gmra.mxu1 %v36_v24  ;;  %287 = vmatprep.mubr.f32.mxu0 %v40_v25 }
  0x36   :  { %417 = vmatprep.mubr.f32.mxu1 %v42_v26  ;;  %861 = vmatpush3.msra.mxu1 %v147_v22 }
  0x37   :  { %804 = vmatpush3.msra.mxu0 %v146_v27  ;;  %854 = vmatprep.subr.mxu1 %v868_v7 }
  0x38   :  { %805 = vmatprep.subr.mxu0 %v868_v7  ;;  %288 = vmatmul.mubr.f32.gmra.mxu0 %v39_v28 }
  0x39   :  { %418 = vmatmul.mubr.f32.gmra.mxu1 %v41_v29  ;;  %292 = vmatprep.mubr.f32.mxu0 %v45_v30 }
  0x3a   :  { %422 = vmatprep.mubr.f32.mxu1 %v47_v31  ;;  %862 = vmatpush3.msra.mxu1 %v146_v27 }
  0x3b   :  { %806 = vmatpush3.msra.mxu0 %v145_v32  ;;  %855 = vmatprep.subr.mxu1 %v868_v7 }
  0x3c   :  { %807 = vmatprep.subr.mxu0 %v868_v7  ;;  %293 = vmatmul.mubr.f32.gmra.mxu0 %v44_v33 }
  0x3d   :  { %423 = vmatmul.mubr.f32.gmra.mxu1 %v46_v34  ;;  %297 = vmatprep.mubr.f32.mxu0 %v50_v35 }
  0x3e   :  { %427 = vmatprep.mubr.f32.mxu1 %v52_v36  ;;  %863 = vmatpush3.msra.mxu1 %v145_v32 }
  0x3f   :  { %808 = vmatpush3.msra.mxu0 %v144_v37  ;;  %856 = vmatprep.subr.mxu1 %v868_v7 }
  0x40   :  { %809 = vmatprep.subr.mxu0 %v868_v7  ;;  %298 = vmatmul.mubr.f32.gmra.mxu0 %v49_v38 }
  0x41   :  { %428 = vmatmul.mubr.f32.gmra.mxu1 %v51_v39  ;;  %302 = vmatprep.mubr.f32.mxu0 %v55_v40 }
  0x42   :  { %432 = vmatprep.mubr.f32.mxu1 %v57_v41  ;;  %864 = vmatpush3.msra.mxu1 %v144_v37 }
  0x43   :  { %810 = vmatpush3.msra.mxu0 %v143_v42  ;;  %857 = vmatprep.subr.mxu1 %v868_v7 }
  0x44   :  { %303 = vmatmul.mubr.f32.gmra.mxu0 %v54_v43  ;;  %865 = vmatpush3.msra.mxu1 %v143_v42 }
  0x45   :  { %433 = vmatmul.mubr.f32.gmra.mxu1 %v56_v44  ;;  %307 = vmatprep.mubr.f32.mxu0 %v60_v45 }
  0x46   :  { %437 = vmatprep.mubr.f32.mxu1 %v62_v46 }
  0x48   :  { %308 = vmatmul.mubr.f32.gmra.mxu0 %v59_v47 }
  0x49   :  { %438 = vmatmul.mubr.f32.gmra.mxu1 %v61_v48  ;;  %312 = vmatprep.mubr.f32.mxu0 %v65_v49 }
  0x4a   :  { %442 = vmatprep.mubr.f32.mxu1 %v67_v50 }
  0x4c   :  { %313 = vmatmul.mubr.f32.gmra.mxu0 %v64_v51 }
  0x4d   :  { %443 = vmatmul.mubr.f32.gmra.mxu1 %v66_v52  ;;  %317 = vmatprep.mubr.f32.mxu0 %v70_v53 }
  0x4e   :  { %447 = vmatprep.mubr.f32.mxu1 %v72_v54 }
  0x50   :  { %318 = vmatmul.mubr.f32.gmra.mxu0 %v69_v55  ;;  %v1389_v55 = vld [vmem:[%s1482_s2] ss:$0 sm:$0xff] }
  0x51   :  { %448 = vmatmul.mubr.f32.gmra.mxu1 %v71_v56  ;;  %322 = vmatprep.mubr.f32.mxu0 %v75_v57 }
  0x52   :  { %452 = vmatprep.mubr.f32.mxu1 %v77_v58 }
  0x54   :  { %323 = vmatmul.mubr.f32.gmra.mxu0 %v74_v59 }
  0x55   :  { %453 = vmatmul.mubr.f32.gmra.mxu1 %v76_v60  ;;  %811 = vmatprep.mubr.msk.f32.mxu0 %vm869_vm0, %v868_v7 }
  0x56   :  { %832 = vmatprep.mubr.msk.f32.mxu1 %vm869_vm0, %v868_v7 }
  0x58   :  { %812 = vmatmul.mubr.msk.f32.vlgmr.msra.gmra.mxu0 %vm158_vm1, %v18_v61 }
  0x59   :  { %833 = vmatmul.mubr.msk.f32.vlgmr.msra.gmra.mxu1 %vm158_vm1, %v53_v62  ;;  %814 = vmatprep.mubr.msk.f32.mxu0 %vm869_vm0, %v868_v7 }
  0x5a   :  { %835 = vmatprep.mubr.msk.f32.mxu1 %vm869_vm0, %v868_v7 }
  0x5c   :  { %815 = vmatmul.mubr.msk.f32.gmra.mxu0 %vm158_vm1, %v23_v63 }
  0x5d   :  { %836 = vmatmul.mubr.msk.f32.gmra.mxu1 %vm158_vm1, %v58_v0  ;;  %817 = vmatprep.mubr.msk.f32.mxu0 %vm869_vm0, %v868_v7 }
  0x5e   :  { %838 = vmatprep.mubr.msk.f32.mxu1 %vm869_vm0, %v868_v7 }
  0x60   :  { %818 = vmatmul.mubr.msk.f32.gmra.mxu0 %vm158_vm1, %v28_v1 }
  0x61   :  { %839 = vmatmul.mubr.msk.f32.gmra.mxu1 %vm158_vm1, %v63_v2  ;;  %820 = vmatprep.mubr.msk.f32.mxu0 %vm869_vm0, %v868_v7 }
  0x62   :  { %841 = vmatprep.mubr.msk.f32.mxu1 %vm869_vm0, %v868_v7 }
  0x64   :  { %821 = vmatmul.mubr.msk.f32.gmra.mxu0 %vm158_vm1, %v33_v3 }
  0x65   :  { %842 = vmatmul.mubr.msk.f32.gmra.mxu1 %vm158_vm1, %v68_v4  ;;  %823 = vmatprep.mubr.msk.f32.mxu0 %vm869_vm0, %v868_v7 }
  0x66   :  { %844 = vmatprep.mubr.msk.f32.mxu1 %vm869_vm0, %v868_v7 }
  0x68   :  { %824 = vmatmul.mubr.msk.f32.gmra.mxu0 %vm158_vm1, %v38_v5 }
  0x69   :  { %845 = vmatmul.mubr.msk.f32.gmra.mxu1 %vm158_vm1, %v73_v6  ;;  %826 = vmatprep.mubr.msk.f32.mxu0 %vm869_vm0, %v868_v7 }
  0x6a   :  { %847 = vmatprep.mubr.msk.f32.mxu1 %vm869_vm0, %v868_v7 }
  0x6c   :  { %827 = vmatmul.mubr.msk.f32.gmra.mxu0 %vm158_vm1, %v43_v8 }
  0x6d   :  { %848 = vmatmul.mubr.msk.f32.gmra.mxu1 %vm158_vm1, %v78_v9  ;;  %829 = vmatprep.mubr.msk.f32.mxu0 %vm869_vm0, %v868_v7 }
  0x70   :  { %830 = vmatmul.mubr.msk.f32.gmra.mxu0 %vm158_vm1, %v48_v10 }
  0xe4   :  { %v664_v11 = vpop.f32.mrf.mxu0 }
  0xe5   :  { %v735_v12 = vpop.f32.mrf.mxu1 }
  0xe6   :  { %v665_v13 = vpop.f32.mrf.mxu0 }
  0xe7   :  { %v736_v14 = vpop.f32.mrf.mxu1  ;;  %v666_v52 = vadd.f32 %v665_v13, %v664_v11 }
  0xe8   :  { %v667_v15 = vpop.f32.mrf.mxu0  ;;  %v737_v60 = vadd.f32 %v736_v14, %v735_v12 }
  0xe9   :  { %v738_v16 = vpop.f32.mrf.mxu1  ;;  %v265_v59 = vadd.f32 %v666_v52, %v1389_v55 }
  0xea   :  { %v668_v17 = vpop.f32.mrf.mxu0 }
  0xeb   :  { %v739_v18 = vpop.f32.mrf.mxu1  ;;  %v669_v61 = vadd.f32 %v668_v17, %v667_v15  ;;  %v395_v11 = vadd.f32 %v737_v60, %v265_v59 }
  0xec   :  { %v670_v19 = vpop.f32.mrf.mxu0  ;;  %v740_v6 = vadd.f32 %v739_v18, %v738_v16 }
  0xed   :  { %v1356_v20 = vpop.f32.mrf.mxu1  ;;  %v270_v5 = vadd.f32 %v669_v61, %v1389_v55 }
  0xee   :  { %v671_v21 = vpop.f32.mrf.mxu0 }
  0xef   :  { %v742_v22 = vpop.f32.mrf.mxu1  ;;  %v672_v8 = vadd.f32 %v671_v21, %v670_v19  ;;  %v400_v52 = vadd.f32 %v740_v6, %v270_v5 }
  0xf0   :  { %v673_v7 = vpop.f32.mrf.mxu0 }
  0xf1   :  { %v1358_v23 = vpop.f32.mrf.mxu1 }
  0xf2   :  { %v674_v24 = vpop.f32.mrf.mxu0 }
  0xf3   :  { %v1360_v25 = vpop.f32.mrf.mxu1 }
  0xf4   :  { %v1362_v26 = vpop.f32.mrf.mxu0 }
  0xf5   :  { %v1364_v27 = vpop.f32.mrf.mxu1 }
  0xf6   :  { %v1366_v28 = vpop.f32.mrf.mxu0 }
  0xf7   :  { %v1368_v29 = vpop.f32.mrf.mxu1 }
  0xf8   :  { %v1370_v30 = vpop.f32.mrf.mxu0  ;;  %v749_v6 = vadd.f32 %v1368_v29, %v1364_v27 }
  0xf9   :  { %v1372_v31 = vpop.f32.mrf.mxu1 }
  0xfa   :  { %v1374_v32 = vpop.f32.mrf.mxu0 }
  0xfb   :  { %v1376_v33 = vpop.f32.mrf.mxu1 }
  0xfc   :  { %v1378_v34 = vpop.f32.mrf.mxu0 }
  0xfd   :  { %v1380_v35 = vpop.f32.mrf.mxu1 }
  0xfe   :  { %v1382_v36 = vpop.f32.mrf.mxu0 }
  0xff   :  { %v1384_v37 = vpop.f32.mrf.mxu1 }
 0x100   :  { %v685_v38 = vpop.f32.mrf.mxu0 }
 0x101   :  { %v756_v39 = vpop.f32.mrf.mxu1 }
 0x102   :  { %v686_v40 = vpop.f32.mrf.mxu0 }
 0x103   :  { %v757_v41 = vpop.f32.mrf.mxu1  ;;  %v687_v56 = vadd.f32 %v686_v40, %v685_v38  ;;  %v675_v40 = vadd.f32 %v674_v24, %v673_v7  ;;  %v678_v24 = vadd.f32 %v1366_v28, %v1362_v26 }
 0x104   :  { %v688_v42 = vpop.f32.mrf.mxu0  ;;  %v758_v1 = vadd.f32 %v757_v41, %v756_v39  ;;  %v743_v39 = vadd.f32 %v742_v22, %v1356_v20  ;;  %v746_v20 = vadd.f32 %v1360_v25, %v1358_v23 }
 0x105   :  { %v759_v43 = vpop.f32.mrf.mxu1  ;;  %v300_v0 = vadd.f32 %v687_v56, %v1389_v55  ;;  %v280_v60 = vadd.f32 %v675_v40, %v1389_v55 }
 0x106   :  { %v689_v44 = vpop.f32.mrf.mxu0 }
 0x107   :  { %v760_v45 = vpop.f32.mrf.mxu1  ;;  %v690_v2 = vadd.f32 %v689_v44, %v688_v42  ;;  %v430_v15 = vadd.f32 %v758_v1, %v300_v0  ;;  %v275_v44 = vadd.f32 %v672_v8, %v1389_v55 }
 0x108   :  { %v691_v46 = vpop.f32.mrf.mxu0  ;;  %v761_v13 = vadd.f32 %v760_v45, %v759_v43 }
 0x109   :  { %v762_v47 = vpop.f32.mrf.mxu1  ;;  %v305_v12 = vadd.f32 %v690_v2, %v1389_v55  ;;  %v405_v25 = vadd.f32 %v743_v39, %v275_v44 }
 0x10a   :  { %v692_v48 = vpop.f32.mrf.mxu0 }
 0x10b   :  { %v763_v49 = vpop.f32.mrf.mxu1  ;;  %v693_v14 = vadd.f32 %v692_v48, %v691_v46  ;;  %v435_v45 = vadd.f32 %v761_v13, %v305_v12 }
 0x10c   :  { %v694_v50 = vpop.f32.mrf.mxu0  ;;  %v764_v16 = vadd.f32 %v763_v49, %v762_v47 }
 0x10d   :  { %v765_v51 = vpop.f32.mrf.mxu1  ;;  %v310_v56 = vadd.f32 %v693_v14, %v1389_v55 }
 0x10e   :  { %v695_v53 = vpop.f32.mrf.mxu0 }
 0x10f   :  { %v766_v54 = vpop.f32.mrf.mxu1  ;;  %v696_v18 = vadd.f32 %v695_v53, %v694_v50  ;;  %v440_v1 = vadd.f32 %v764_v16, %v310_v56 }
 0x110   :  { %v697_v57 = vpop.f32.mrf.mxu0  ;;  %v767_v49 = vadd.f32 %v766_v54, %v765_v51  ;;  %v410_v51 = vadd.f32 %v746_v20, %v280_v60  ;;  %v285_v54 = vadd.f32 %v678_v24, %v1389_v55 }
 0x111   :  { %v1391_v58 = vpop.f32.mrf.mxu1  ;;  %v315_v47 = vadd.f32 %v696_v18, %v1389_v55 }
 0x112   :  { %v698_v62 = vpop.f32.mrf.mxu0 }
 0x113   :  { %v769_v63 = vpop.f32.mrf.mxu1  ;;  %v699_v53 = vadd.f32 %v698_v62, %v697_v57  ;;  %v681_v57 = vadd.f32 %v1374_v32, %v1370_v30  ;;  %v445_v8 = vadd.f32 %v767_v49, %v315_v47 }
 0x114   :  { %v700_v3 = vpop.f32.mrf.mxu0  ;;  %v770_v27 = vadd.f32 %v769_v63, %v1391_v58  ;;  %v684_v63 = vadd.f32 %v1382_v36, %v1378_v34 }
 0x115   :  { %v1395_v4 = vpop.f32.mrf.mxu1  ;;  %v290_v58 = vadd.f32 %v681_v57, %v1389_v55 }
 0x116   :  { %v701_v9 = vpop.f32.mrf.mxu0 }
 0x117   :  { %v1398_v10 = vpop.f32.mrf.mxu1  ;;  %v702_v12 = vadd.f32 %v701_v9, %v700_v3  ;;  %v415_v9 = vadd.f32 %v749_v6, %v285_v54 }
 0x118   :  { %v524_v17 = vpop.f32.mrf.mxu0 }
 0x119   :  { %v559_v38 = vpop.f32.mrf.mxu1  ;;  %v525_v41 = vadd.f32 %v524_v17, %v395_v11  ;;  %v320_v11 = vadd.f32 %v699_v53, %v1389_v55  ;;  %v325_v39 = vadd.f32 %v702_v12, %v1389_v55 }
 0x11a   :  { %v560_v42 = vadd.f32 %v559_v38, %v430_v15  ;;  %v813_v19 = vpop.f32.mrf.mxu0  ;;  %v752_v38 = vadd.f32 %v1376_v33, %v1372_v31  ;;  %v773_v31 = vadd.f32 %v1398_v10, %v1395_v4  ;;  %v755_v4 = vadd.f32 %v1384_v37, %v1380_v35 }
 0x11b   :  { %v834_v21 = vpop.f32.mrf.mxu1  ;;  %v588_v59 = vmax.f32 %v525_v41, 0.0 }
 0x11c   :  { %v595_v43 = vmax.f32 %v560_v42, 0.0  ;;  %v529_v46 = vpop.f32.mrf.mxu0  ;;  %v450_v42 = vadd.f32 %v770_v27, %v320_v11  ;;  %v420_v19 = vadd.f32 %v752_v38, %v290_v58  ;;  %v295_v21 = vadd.f32 %v684_v63, %v1389_v55 }
 0x11d   :  { %v564_v48 = vpop.f32.mrf.mxu1  ;;  %601 = vst.msk [vmem:[%s1483_s3] sm:$0xff] %vm158_vm1, %v588_v59  ;;  %v530_v22 = vadd.f32 %v529_v46, %v400_v52  ;;  %v455_v59 = vadd.f32 %v773_v31, %v325_v39 }
 0x11e   :  { %608 = vst.msk [vmem:[%s1483_s3 + $0x38] sm:$0xff] %vm158_vm1, %v595_v43  ;;  %v565_v7 = vadd.f32 %v564_v48, %v435_v45  ;;  %v816_v50 = vpop.f32.mrf.mxu0  ;;  %v425_v20 = vadd.f32 %v755_v4, %v295_v21 }
 0x11f   :  { %v837_v23 = vpop.f32.mrf.mxu1  ;;  %v589_v61 = vmax.f32 %v530_v22, 0.0 }
 0x120   :  { %v596_v0 = vmax.f32 %v565_v7, 0.0  ;;  %v534_v2 = vpop.f32.mrf.mxu0 }
 0x121   :  { %v569_v5 = vpop.f32.mrf.mxu1  ;;  %602 = vst.msk [vmem:[%s1483_s3 + $0x8] sm:$0xff] %vm158_vm1, %v589_v61  ;;  %v535_v26 = vadd.f32 %v534_v2, %v405_v25 }
 0x122   :  { %609 = vst.msk [vmem:[%s1483_s3 + $0x40] sm:$0xff] %vm158_vm1, %v596_v0  ;;  %v570_v28 = vadd.f32 %v569_v5, %v440_v1  ;;  %v819_v29 = vpop.f32.mrf.mxu0 }
 0x123   :  { %v840_v62 = vpop.f32.mrf.mxu1  ;;  %v590_v13 = vmax.f32 %v535_v26, 0.0 }
 0x124   :  { %v597_v14 = vmax.f32 %v570_v28, 0.0  ;;  %v539_v15 = vpop.f32.mrf.mxu0 }
 0x125   :  { %v574_v17 = vpop.f32.mrf.mxu1  ;;  %603 = vst.msk [vmem:[%s1483_s3 + $0x10] sm:$0xff] %vm158_vm1, %v590_v13  ;;  %v540_v30 = vadd.f32 %v539_v15, %v410_v51 }
 0x126   :  { %610 = vst.msk [vmem:[%s1483_s3 + $0x48] sm:$0xff] %vm158_vm1, %v597_v14  ;;  %v575_v32 = vadd.f32 %v574_v17, %v445_v8  ;;  %v822_v33 = vpop.f32.mrf.mxu0 }
 0x127   :  { %v843_v3 = vpop.f32.mrf.mxu1  ;;  %v591_v40 = vmax.f32 %v540_v30, 0.0 }
 0x128   :  { %v598_v41 = vmax.f32 %v575_v32, 0.0  ;;  %v544_v44 = vpop.f32.mrf.mxu0 }
 0x129   :  { %v579_v16 = vpop.f32.mrf.mxu1  ;;  %604 = vst.msk [vmem:[%s1483_s3 + $0x18] sm:$0xff] %vm158_vm1, %v591_v40  ;;  %v545_v34 = vadd.f32 %v544_v44, %v415_v9 }
 0x12a   :  { %611 = vst.msk [vmem:[%s1483_s3 + $0x50] sm:$0xff] %vm158_vm1, %v598_v41  ;;  %v580_v36 = vadd.f32 %v579_v16, %v450_v42  ;;  %v825_v10 = vpop.f32.mrf.mxu0 }
 0x12b   :  { %v846_v18 = vpop.f32.mrf.mxu1  ;;  %v592_v52 = vmax.f32 %v545_v34, 0.0 }
 0x12c   :  { %v599_v56 = vmax.f32 %v580_v36, 0.0  ;;  %v549_v43 = vpop.f32.mrf.mxu0 }
 0x12d   :  { %v584_v45 = vpop.f32.mrf.mxu1  ;;  %605 = vst.msk [vmem:[%s1483_s3 + $0x20] sm:$0xff] %vm158_vm1, %v592_v52  ;;  %v550_v35 = vadd.f32 %v549_v43, %v420_v19 }
 0x12e   :  { %612 = vst.msk [vmem:[%s1483_s3 + $0x58] sm:$0xff] %vm158_vm1, %v599_v56  ;;  %v585_v37 = vadd.f32 %v584_v45, %v455_v59  ;;  %v828_v46 = vpop.f32.mrf.mxu0 }
 0x12f   :  { %v849_v48 = vpop.f32.mrf.mxu1  ;;  %v593_v55 = vmax.f32 %v550_v35, 0.0 }
 0x130   :  { %v600_v60 = vmax.f32 %v585_v37, 0.0  ;;  %v554_v22 = vpop.f32.mrf.mxu0 }
 0x131   :  { %606 = vst.msk [vmem:[%s1483_s3 + $0x28] sm:$0xff] %vm158_vm1, %v593_v55  ;;  %v555_v7 = vadd.f32 %v554_v22, %v425_v20 }
 0x132   :  { %613 = vst.msk [vmem:[%s1483_s3 + $0x60] sm:$0xff] %vm158_vm1, %v600_v60  ;;  %v831_v24 = vpop.f32.mrf.mxu0 }
 0x133   :  { %v594_v47 = vmax.f32 %v555_v7, 0.0 }
 0x135   :  { %607 = vst.msk [vmem:[%s1483_s3 + $0x30] sm:$0xff] %vm158_vm1, %v594_v47 }

// kernel: convnet_forward.7
= control target key start
LH: loop header
LB: loop body
LE: loop exit
PB: predicated region body
PF: predicated region fallthrough
CT: control target
= control target key end

     0   :  { %vm1635_vm0 = vcmask 523264   ;;  %vm3700_vm1 = vcmask 48128   ;;  %s8946_s1 = inlined_call_operand.vmem [shape: f32[3136,512], index: 1, kind: input, shape index: {}]   ;;  %s8947_s0 = inlined_call_operand.vmem [shape: f32[8,3136], index: 0, kind: input, shape index: {}]   ;;  %s8948_s2 = inlined_call_operand.vmem [shape: f32[1,512], index: 2, kind: input, shape index: {}]   ;;  %s8949_s3 = inlined_call_operand.vmem [shape: f32[512,6], index: 3, kind: input, shape index: {}]   ;;  %s8950_s4 = inlined_call_operand.vmem [shape: f32[1,6], index: 4, kind: input, shape index: {}]   ;;  %s8951_s5 = inlined_call_operand.vmem [shape: f32[8,6], index: 5, kind: output, shape index: {}]  }
   0x1   :  { %v106_v0 = vld [vmem:[%s8946_s1 + $0x1e8] sm:$0xff]  ;;  %v105_v2 = vld [vmem:[%s8946_s1 + $0x1e0] sm:$0xff] }
   0x2   :  { %v234_v1 = vld [vmem:[%s8946_s1 + $0x5e8] sm:$0xff]  ;;  %1639 = vmatprep.subr.mxu0 %v106_v0  ;;  %v233_v3 = vld [vmem:[%s8946_s1 + $0x5e0] sm:$0xff] }
   0x3   :  { %1710 = vmatprep.subr.mxu1 %v234_v1  ;;  %v102_v4 = vld [vmem:[%s8946_s1 + $0x1c8] sm:$0xff]  ;;  %1640 = vmatpush1.msra.mxu0 %v105_v2  ;;  %v101_v6 = vld [vmem:[%s8946_s1 + $0x1c0] sm:$0xff] }
   0x4   :  { %v230_v5 = vld [vmem:[%s8946_s1 + $0x5c8] sm:$0xff]  ;;  %1711 = vmatpush1.msra.mxu1 %v233_v3  ;;  %v229_v7 = vld [vmem:[%s8946_s1 + $0x5c0] sm:$0xff]  ;;  %1641 = vmatprep.subr.mxu0 %v102_v4 }
   0x5   :  { %v98_v8 = vld [vmem:[%s8946_s1 + $0x1a8] sm:$0xff]  ;;  %1712 = vmatprep.subr.mxu1 %v230_v5  ;;  %v97_v10 = vld [vmem:[%s8946_s1 + $0x1a0] sm:$0xff]  ;;  %1642 = vmatpush1.msra.mxu0 %v101_v6 }
   0x6   :  { %v226_v9 = vld [vmem:[%s8946_s1 + $0x5a8] sm:$0xff]  ;;  %v225_v11 = vld [vmem:[%s8946_s1 + $0x5a0] sm:$0xff]  ;;  %1713 = vmatpush1.msra.mxu1 %v229_v7  ;;  %1643 = vmatprep.subr.mxu0 %v98_v8 }
   0x7   :  { %v94_v12 = vld [vmem:[%s8946_s1 + $0x188] sm:$0xff]  ;;  %1714 = vmatprep.subr.mxu1 %v226_v9  ;;  %v93_v14 = vld [vmem:[%s8946_s1 + $0x180] sm:$0xff]  ;;  %1644 = vmatpush1.msra.mxu0 %v97_v10 }
   0x8   :  { %v222_v13 = vld [vmem:[%s8946_s1 + $0x588] sm:$0xff]  ;;  %v221_v15 = vld [vmem:[%s8946_s1 + $0x580] sm:$0xff]  ;;  %1715 = vmatpush1.msra.mxu1 %v225_v11  ;;  %1645 = vmatprep.subr.mxu0 %v94_v12 }
   0x9   :  { %v90_v16 = vld [vmem:[%s8946_s1 + $0x168] sm:$0xff]  ;;  %1716 = vmatprep.subr.mxu1 %v222_v13  ;;  %v89_v18 = vld [vmem:[%s8946_s1 + $0x160] sm:$0xff]  ;;  %1646 = vmatpush1.msra.mxu0 %v93_v14 }
   0xa   :  { %v218_v17 = vld [vmem:[%s8946_s1 + $0x568] sm:$0xff]  ;;  %v217_v19 = vld [vmem:[%s8946_s1 + $0x560] sm:$0xff]  ;;  %1717 = vmatpush1.msra.mxu1 %v221_v15  ;;  %1647 = vmatprep.subr.mxu0 %v90_v16 }
   0xb   :  { %v86_v20 = vld [vmem:[%s8946_s1 + $0x148] sm:$0xff]  ;;  %1718 = vmatprep.subr.mxu1 %v218_v17  ;;  %v85_v22 = vld [vmem:[%s8946_s1 + $0x140] sm:$0xff]  ;;  %1648 = vmatpush1.msra.mxu0 %v89_v18 }
   0xc   :  { %v214_v21 = vld [vmem:[%s8946_s1 + $0x548] sm:$0xff]  ;;  %v213_v23 = vld [vmem:[%s8946_s1 + $0x540] sm:$0xff]  ;;  %1719 = vmatpush1.msra.mxu1 %v217_v19  ;;  %1649 = vmatprep.subr.mxu0 %v86_v20 }
   0xd   :  { %v82_v24 = vld [vmem:[%s8946_s1 + $0x128] sm:$0xff]  ;;  %1720 = vmatprep.subr.mxu1 %v214_v21  ;;  %v81_v26 = vld [vmem:[%s8946_s1 + $0x120] sm:$0xff]  ;;  %1650 = vmatpush1.msra.mxu0 %v85_v22 }
   0xe   :  { %v210_v25 = vld [vmem:[%s8946_s1 + $0x528] sm:$0xff]  ;;  %v209_v27 = vld [vmem:[%s8946_s1 + $0x520] sm:$0xff]  ;;  %1721 = vmatpush1.msra.mxu1 %v213_v23  ;;  %1651 = vmatprep.subr.mxu0 %v82_v24 }
   0xf   :  { %v78_v28 = vld [vmem:[%s8946_s1 + $0x108] sm:$0xff]  ;;  %1722 = vmatprep.subr.mxu1 %v210_v25  ;;  %v77_v30 = vld [vmem:[%s8946_s1 + $0x100] sm:$0xff]  ;;  %1652 = vmatpush1.msra.mxu0 %v81_v26 }
  0x10   :  { %v206_v29 = vld [vmem:[%s8946_s1 + $0x508] sm:$0xff]  ;;  %v205_v31 = vld [vmem:[%s8946_s1 + $0x500] sm:$0xff]  ;;  %1723 = vmatpush1.msra.mxu1 %v209_v27  ;;  %1653 = vmatprep.subr.mxu0 %v78_v28 }
  0x11   :  { %v74_v32 = vld [vmem:[%s8946_s1 + $0xe8] sm:$0xff]  ;;  %1724 = vmatprep.subr.mxu1 %v206_v29  ;;  %v73_v34 = vld [vmem:[%s8946_s1 + $0xe0] sm:$0xff]  ;;  %1654 = vmatpush1.msra.mxu0 %v77_v30 }
  0x12   :  { %v202_v33 = vld [vmem:[%s8946_s1 + $0x4e8] sm:$0xff]  ;;  %v201_v35 = vld [vmem:[%s8946_s1 + $0x4e0] sm:$0xff]  ;;  %1725 = vmatpush1.msra.mxu1 %v205_v31  ;;  %1655 = vmatprep.subr.mxu0 %v74_v32 }
  0x13   :  { %v70_v36 = vld [vmem:[%s8946_s1 + $0xc8] sm:$0xff]  ;;  %1726 = vmatprep.subr.mxu1 %v202_v33  ;;  %v69_v38 = vld [vmem:[%s8946_s1 + $0xc0] sm:$0xff]  ;;  %1656 = vmatpush1.msra.mxu0 %v73_v34 }
  0x14   :  { %v198_v37 = vld [vmem:[%s8946_s1 + $0x4c8] sm:$0xff]  ;;  %v197_v39 = vld [vmem:[%s8946_s1 + $0x4c0] sm:$0xff]  ;;  %1727 = vmatpush1.msra.mxu1 %v201_v35  ;;  %1657 = vmatprep.subr.mxu0 %v70_v36 }
  0x15   :  { %v66_v40 = vld [vmem:[%s8946_s1 + $0xa8] sm:$0xff]  ;;  %1728 = vmatprep.subr.mxu1 %v198_v37  ;;  %v65_v42 = vld [vmem:[%s8946_s1 + $0xa0] sm:$0xff]  ;;  %1658 = vmatpush1.msra.mxu0 %v69_v38 }
  0x16   :  { %v194_v41 = vld [vmem:[%s8946_s1 + $0x4a8] sm:$0xff]  ;;  %v193_v43 = vld [vmem:[%s8946_s1 + $0x4a0] sm:$0xff]  ;;  %1729 = vmatpush1.msra.mxu1 %v197_v39  ;;  %1659 = vmatprep.subr.mxu0 %v66_v40 }
  0x17   :  { %v62_v44 = vld [vmem:[%s8946_s1 + $0x88] sm:$0xff]  ;;  %1730 = vmatprep.subr.mxu1 %v194_v41  ;;  %v61_v46 = vld [vmem:[%s8946_s1 + $0x80] sm:$0xff]  ;;  %1660 = vmatpush1.msra.mxu0 %v65_v42 }
  0x18   :  { %v190_v45 = vld [vmem:[%s8946_s1 + $0x488] sm:$0xff]  ;;  %v189_v47 = vld [vmem:[%s8946_s1 + $0x480] sm:$0xff]  ;;  %1731 = vmatpush1.msra.mxu1 %v193_v43  ;;  %1661 = vmatprep.subr.mxu0 %v62_v44 }
  0x19   :  { %v58_v48 = vld [vmem:[%s8946_s1 + $0x68] sm:$0xff]  ;;  %1732 = vmatprep.subr.mxu1 %v190_v45  ;;  %v57_v50 = vld [vmem:[%s8946_s1 + $0x60] sm:$0xff]  ;;  %1662 = vmatpush1.msra.mxu0 %v61_v46 }
  0x1a   :  { %v186_v49 = vld [vmem:[%s8946_s1 + $0x468] sm:$0xff]  ;;  %v185_v51 = vld [vmem:[%s8946_s1 + $0x460] sm:$0xff]  ;;  %1733 = vmatpush1.msra.mxu1 %v189_v47  ;;  %1663 = vmatprep.subr.mxu0 %v58_v48 }
  0x1b   :  { %v54_v52 = vld [vmem:[%s8946_s1 + $0x48] sm:$0xff]  ;;  %1734 = vmatprep.subr.mxu1 %v186_v49  ;;  %v53_v54 = vld [vmem:[%s8946_s1 + $0x40] sm:$0xff]  ;;  %1664 = vmatpush1.msra.mxu0 %v57_v50 }
  0x1c   :  { %v182_v53 = vld [vmem:[%s8946_s1 + $0x448] sm:$0xff]  ;;  %v181_v55 = vld [vmem:[%s8946_s1 + $0x440] sm:$0xff]  ;;  %1735 = vmatpush1.msra.mxu1 %v185_v51  ;;  %1665 = vmatprep.subr.mxu0 %v54_v52 }
  0x1d   :  { %v50_v56 = vld [vmem:[%s8946_s1 + $0x28] sm:$0xff]  ;;  %1736 = vmatprep.subr.mxu1 %v182_v53  ;;  %v49_v58 = vld [vmem:[%s8946_s1 + $0x20] sm:$0xff]  ;;  %1666 = vmatpush1.msra.mxu0 %v53_v54 }
  0x1e   :  { %v178_v57 = vld [vmem:[%s8946_s1 + $0x428] sm:$0xff]  ;;  %v177_v59 = vld [vmem:[%s8946_s1 + $0x420] sm:$0xff]  ;;  %1737 = vmatpush1.msra.mxu1 %v181_v55  ;;  %1667 = vmatprep.subr.mxu0 %v50_v56 }
  0x1f   :  { %v46_v60 = vld [vmem:[%s8946_s1 + $0x8] sm:$0xff]  ;;  %1738 = vmatprep.subr.mxu1 %v178_v57  ;;  %v45_v62 = vld [vmem:[%s8946_s1] sm:$0xff]  ;;  %1668 = vmatpush1.msra.mxu0 %v49_v58 }
  0x20   :  { %v174_v61 = vld [vmem:[%s8946_s1 + $0x408] sm:$0xff]  ;;  %v173_v63 = vld [vmem:[%s8946_s1 + $0x400] sm:$0xff]  ;;  %1739 = vmatpush1.msra.mxu1 %v177_v59  ;;  %1669 = vmatprep.subr.mxu0 %v46_v60 }
  0x21   :  { %v170_v0 = vld [vmem:[%s8946_s1 + $0x3e8] sm:$0xff]  ;;  %1740 = vmatprep.subr.mxu1 %v174_v61  ;;  %v169_v2 = vld [vmem:[%s8946_s1 + $0x3e0] sm:$0xff]  ;;  %1670 = vmatpush1.msra.mxu0 %v45_v62 }
  0x22   :  { %v298_v1 = vld [vmem:[%s8946_s1 + $0x7e8] sm:$0xff]  ;;  %v297_v3 = vld [vmem:[%s8946_s1 + $0x7e0] sm:$0xff]  ;;  %1741 = vmatpush1.msra.mxu1 %v173_v63  ;;  %1671 = vmatprep.subr.mxu0 %v170_v0 }
  0x23   :  { %v166_v4 = vld [vmem:[%s8946_s1 + $0x3c8] sm:$0xff]  ;;  %1742 = vmatprep.subr.mxu1 %v298_v1  ;;  %v165_v6 = vld [vmem:[%s8946_s1 + $0x3c0] sm:$0xff]  ;;  %1672 = vmatpush2.msra.mxu0 %v169_v2  ;;  %v23_v2 = vld [vmem:[%s8947_s0 + $0x18] sm:$0xff] }
  0x24   :  { %v294_v5 = vld [vmem:[%s8946_s1 + $0x7c8] sm:$0xff]  ;;  %v293_v7 = vld [vmem:[%s8946_s1 + $0x7c0] sm:$0xff]  ;;  %1743 = vmatpush2.msra.mxu1 %v297_v3  ;;  %1673 = vmatprep.subr.mxu0 %v166_v4 }
  0x25   :  { %v162_v8 = vld [vmem:[%s8946_s1 + $0x3a8] sm:$0xff]  ;;  %1744 = vmatprep.subr.mxu1 %v294_v5  ;;  %v161_v10 = vld [vmem:[%s8946_s1 + $0x3a0] sm:$0xff]  ;;  %1674 = vmatpush2.msra.mxu0 %v165_v6  ;;  %v22_v5 = vld [vmem:[%s8947_s0 + $0x10] sm:$0xff] }
  0x26   :  { %v290_v9 = vld [vmem:[%s8946_s1 + $0x7a8] sm:$0xff]  ;;  %v289_v11 = vld [vmem:[%s8946_s1 + $0x7a0] sm:$0xff]  ;;  %1745 = vmatpush2.msra.mxu1 %v293_v7  ;;  %1675 = vmatprep.subr.mxu0 %v162_v8 }
  0x27   :  { %v158_v12 = vld [vmem:[%s8946_s1 + $0x388] sm:$0xff]  ;;  %1746 = vmatprep.subr.mxu1 %v290_v9  ;;  %v157_v14 = vld [vmem:[%s8946_s1 + $0x380] sm:$0xff]  ;;  %1676 = vmatpush2.msra.mxu0 %v161_v10 }
  0x28   :  { %v286_v13 = vld [vmem:[%s8946_s1 + $0x788] sm:$0xff]  ;;  %v285_v15 = vld [vmem:[%s8946_s1 + $0x780] sm:$0xff]  ;;  %1747 = vmatpush2.msra.mxu1 %v289_v11  ;;  %1677 = vmatprep.subr.mxu0 %v158_v12 }
  0x29   :  { %v154_v16 = vld [vmem:[%s8946_s1 + $0x368] sm:$0xff]  ;;  %1748 = vmatprep.subr.mxu1 %v286_v13  ;;  %v153_v18 = vld [vmem:[%s8946_s1 + $0x360] sm:$0xff]  ;;  %1678 = vmatpush2.msra.mxu0 %v157_v14 }
  0x2a   :  { %v282_v17 = vld [vmem:[%s8946_s1 + $0x768] sm:$0xff]  ;;  %v281_v19 = vld [vmem:[%s8946_s1 + $0x760] sm:$0xff]  ;;  %1749 = vmatpush2.msra.mxu1 %v285_v15  ;;  %1679 = vmatprep.subr.mxu0 %v154_v16 }
  0x2b   :  { %v150_v20 = vld [vmem:[%s8946_s1 + $0x348] sm:$0xff]  ;;  %1750 = vmatprep.subr.mxu1 %v282_v17  ;;  %v149_v22 = vld [vmem:[%s8946_s1 + $0x340] sm:$0xff]  ;;  %1680 = vmatpush2.msra.mxu0 %v153_v18 }
  0x2c   :  { %v278_v21 = vld [vmem:[%s8946_s1 + $0x748] sm:$0xff]  ;;  %v277_v23 = vld [vmem:[%s8946_s1 + $0x740] sm:$0xff]  ;;  %1751 = vmatpush2.msra.mxu1 %v281_v19  ;;  %1681 = vmatprep.subr.mxu0 %v150_v20 }
  0x2d   :  { %v146_v24 = vld [vmem:[%s8946_s1 + $0x328] sm:$0xff]  ;;  %1752 = vmatprep.subr.mxu1 %v278_v21  ;;  %v145_v26 = vld [vmem:[%s8946_s1 + $0x320] sm:$0xff]  ;;  %1682 = vmatpush2.msra.mxu0 %v149_v22 }
  0x2e   :  { %v274_v25 = vld [vmem:[%s8946_s1 + $0x728] sm:$0xff]  ;;  %v273_v27 = vld [vmem:[%s8946_s1 + $0x720] sm:$0xff]  ;;  %1753 = vmatpush2.msra.mxu1 %v277_v23  ;;  %1683 = vmatprep.subr.mxu0 %v146_v24 }
  0x2f   :  { %v142_v28 = vld [vmem:[%s8946_s1 + $0x308] sm:$0xff]  ;;  %1754 = vmatprep.subr.mxu1 %v274_v25  ;;  %v141_v30 = vld [vmem:[%s8946_s1 + $0x300] sm:$0xff]  ;;  %1684 = vmatpush2.msra.mxu0 %v145_v26 }
  0x30   :  { %v270_v29 = vld [vmem:[%s8946_s1 + $0x708] sm:$0xff]  ;;  %v269_v31 = vld [vmem:[%s8946_s1 + $0x700] sm:$0xff]  ;;  %1755 = vmatpush2.msra.mxu1 %v273_v27  ;;  %1685 = vmatprep.subr.mxu0 %v142_v28 }
  0x31   :  { %v138_v32 = vld [vmem:[%s8946_s1 + $0x2e8] sm:$0xff]  ;;  %1756 = vmatprep.subr.mxu1 %v270_v29  ;;  %v137_v34 = vld [vmem:[%s8946_s1 + $0x2e0] sm:$0xff]  ;;  %1686 = vmatpush2.msra.mxu0 %v141_v30 }
  0x32   :  { %v266_v33 = vld [vmem:[%s8946_s1 + $0x6e8] sm:$0xff]  ;;  %v265_v35 = vld [vmem:[%s8946_s1 + $0x6e0] sm:$0xff]  ;;  %1757 = vmatpush2.msra.mxu1 %v269_v31  ;;  %1687 = vmatprep.subr.mxu0 %v138_v32 }
  0x33   :  { %v134_v36 = vld [vmem:[%s8946_s1 + $0x2c8] sm:$0xff]  ;;  %1758 = vmatprep.subr.mxu1 %v266_v33  ;;  %v133_v38 = vld [vmem:[%s8946_s1 + $0x2c0] sm:$0xff]  ;;  %1688 = vmatpush2.msra.mxu0 %v137_v34 }
  0x34   :  { %v262_v37 = vld [vmem:[%s8946_s1 + $0x6c8] sm:$0xff]  ;;  %v261_v39 = vld [vmem:[%s8946_s1 + $0x6c0] sm:$0xff]  ;;  %1759 = vmatpush2.msra.mxu1 %v265_v35  ;;  %1689 = vmatprep.subr.mxu0 %v134_v36 }
  0x35   :  { %v130_v40 = vld [vmem:[%s8946_s1 + $0x2a8] sm:$0xff]  ;;  %1760 = vmatprep.subr.mxu1 %v262_v37  ;;  %v129_v42 = vld [vmem:[%s8946_s1 + $0x2a0] sm:$0xff]  ;;  %1690 = vmatpush2.msra.mxu0 %v133_v38 }
  0x36   :  { %v258_v41 = vld [vmem:[%s8946_s1 + $0x6a8] sm:$0xff]  ;;  %v257_v43 = vld [vmem:[%s8946_s1 + $0x6a0] sm:$0xff]  ;;  %1761 = vmatpush2.msra.mxu1 %v261_v39  ;;  %1691 = vmatprep.subr.mxu0 %v130_v40 }
  0x37   :  { %v126_v44 = vld [vmem:[%s8946_s1 + $0x288] sm:$0xff]  ;;  %1762 = vmatprep.subr.mxu1 %v258_v41  ;;  %v125_v46 = vld [vmem:[%s8946_s1 + $0x280] sm:$0xff]  ;;  %1692 = vmatpush2.msra.mxu0 %v129_v42 }
  0x38   :  { %v254_v45 = vld [vmem:[%s8946_s1 + $0x688] sm:$0xff]  ;;  %v253_v47 = vld [vmem:[%s8946_s1 + $0x680] sm:$0xff]  ;;  %1763 = vmatpush2.msra.mxu1 %v257_v43  ;;  %1693 = vmatprep.subr.mxu0 %v126_v44 }
  0x39   :  { %v122_v48 = vld [vmem:[%s8946_s1 + $0x268] sm:$0xff]  ;;  %1764 = vmatprep.subr.mxu1 %v254_v45  ;;  %v121_v50 = vld [vmem:[%s8946_s1 + $0x260] sm:$0xff]  ;;  %1694 = vmatpush2.msra.mxu0 %v125_v46 }
  0x3a   :  { %v250_v49 = vld [vmem:[%s8946_s1 + $0x668] sm:$0xff]  ;;  %v249_v51 = vld [vmem:[%s8946_s1 + $0x660] sm:$0xff]  ;;  %1765 = vmatpush2.msra.mxu1 %v253_v47  ;;  %1695 = vmatprep.subr.mxu0 %v122_v48 }
  0x3b   :  { %v118_v52 = vld [vmem:[%s8946_s1 + $0x248] sm:$0xff]  ;;  %1766 = vmatprep.subr.mxu1 %v250_v49  ;;  %v117_v54 = vld [vmem:[%s8946_s1 + $0x240] sm:$0xff]  ;;  %1696 = vmatpush2.msra.mxu0 %v121_v50 }
  0x3c   :  { %v246_v53 = vld [vmem:[%s8946_s1 + $0x648] sm:$0xff]  ;;  %v245_v55 = vld [vmem:[%s8946_s1 + $0x640] sm:$0xff]  ;;  %1767 = vmatpush2.msra.mxu1 %v249_v51  ;;  %1697 = vmatprep.subr.mxu0 %v118_v52 }
  0x3d   :  { %v114_v56 = vld [vmem:[%s8946_s1 + $0x228] sm:$0xff]  ;;  %1768 = vmatprep.subr.mxu1 %v246_v53  ;;  %v113_v58 = vld [vmem:[%s8946_s1 + $0x220] sm:$0xff]  ;;  %1698 = vmatpush2.msra.mxu0 %v117_v54 }
  0x3e   :  { %v242_v57 = vld [vmem:[%s8946_s1 + $0x628] sm:$0xff]  ;;  %v241_v59 = vld [vmem:[%s8946_s1 + $0x620] sm:$0xff]  ;;  %1769 = vmatpush2.msra.mxu1 %v245_v55  ;;  %1699 = vmatprep.subr.mxu0 %v114_v56 }
  0x3f   :  { %v110_v60 = vld [vmem:[%s8946_s1 + $0x208] sm:$0xff]  ;;  %1770 = vmatprep.subr.mxu1 %v242_v57  ;;  %v109_v62 = vld [vmem:[%s8946_s1 + $0x200] sm:$0xff]  ;;  %1700 = vmatpush2.msra.mxu0 %v113_v58 }
  0x40   :  { %v238_v61 = vld [vmem:[%s8946_s1 + $0x608] sm:$0xff]  ;;  %1771 = vmatpush2.msra.mxu1 %v241_v59  ;;  %v237_v0 = vld [vmem:[%s8946_s1 + $0x600] sm:$0xff]  ;;  %1701 = vmatprep.subr.mxu0 %v110_v60 }
  0x41   :  { %v21_v63 = vld [vmem:[%s8947_s0 + $0x8] sm:$0xff]  ;;  %v20_v1 = vld [vmem:[%s8947_s0] sm:$0xff]  ;;  %1772 = vmatprep.subr.mxu1 %v238_v61  ;;  %1702 = vmatpush2.msra.mxu0 %v109_v62 }
  0x42   :  { %v362_v3 = vld [vmem:[%s8946_s1 + $0x9e8] sm:$0xff]  ;;  %1703 = vmatprep.mubr.f32.mxu0 %v21_v63  ;;  %1773 = vmatpush2.msra.mxu1 %v237_v0  ;;  %v361_v6 = vld [vmem:[%s8946_s1 + $0x9e0] sm:$0xff] }
  0x43   :  { %v490_v4 = vld [vmem:[%s8946_s1 + $0xde8] sm:$0xff]  ;;  %1704 = vmatmul.mubr.f32.vlgmr.msra.gmra.mxu0 %v20_v1  ;;  %v489_v7 = vld [vmem:[%s8946_s1 + $0xde0] sm:$0xff]  ;;  %1774 = vmatprep.mubr.f32.mxu1 %v23_v2 }
  0x44   :  { %1781 = vmatprep.subr.mxu0 %v362_v3  ;;  %v358_v8 = vld [vmem:[%s8946_s1 + $0x9c8] sm:$0xff]  ;;  %1852 = vmatprep.subr.mxu1 %v490_v4  ;;  %v357_v10 = vld [vmem:[%s8946_s1 + $0x9c0] sm:$0xff] }
  0x45   :  { %v486_v9 = vld [vmem:[%s8946_s1 + $0xdc8] sm:$0xff]  ;;  %1775 = vmatmul.mubr.f32.vlgmr.msra.gmra.mxu1 %v22_v5  ;;  %v485_v11 = vld [vmem:[%s8946_s1 + $0xdc0] sm:$0xff]  ;;  %1782 = vmatpush1.msra.mxu0 %v361_v6 }
  0x46   :  { %1853 = vmatpush1.msra.mxu1 %v489_v7  ;;  %v354_v12 = vld [vmem:[%s8946_s1 + $0x9a8] sm:$0xff]  ;;  %1783 = vmatprep.subr.mxu0 %v358_v8  ;;  %v353_v14 = vld [vmem:[%s8946_s1 + $0x9a0] sm:$0xff] }
  0x47   :  { %v482_v13 = vld [vmem:[%s8946_s1 + $0xda8] sm:$0xff]  ;;  %1854 = vmatprep.subr.mxu1 %v486_v9  ;;  %v481_v15 = vld [vmem:[%s8946_s1 + $0xda0] sm:$0xff]  ;;  %1784 = vmatpush1.msra.mxu0 %v357_v10 }
  0x48   :  { %1855 = vmatpush1.msra.mxu1 %v485_v11  ;;  %v350_v16 = vld [vmem:[%s8946_s1 + $0x988] sm:$0xff]  ;;  %1785 = vmatprep.subr.mxu0 %v354_v12  ;;  %v349_v18 = vld [vmem:[%s8946_s1 + $0x980] sm:$0xff] }
  0x49   :  { %v478_v17 = vld [vmem:[%s8946_s1 + $0xd88] sm:$0xff]  ;;  %1856 = vmatprep.subr.mxu1 %v482_v13  ;;  %v477_v19 = vld [vmem:[%s8946_s1 + $0xd80] sm:$0xff]  ;;  %1786 = vmatpush1.msra.mxu0 %v353_v14 }
  0x4a   :  { %1857 = vmatpush1.msra.mxu1 %v481_v15  ;;  %v346_v20 = vld [vmem:[%s8946_s1 + $0x968] sm:$0xff]  ;;  %1787 = vmatprep.subr.mxu0 %v350_v16  ;;  %v345_v22 = vld [vmem:[%s8946_s1 + $0x960] sm:$0xff] }
  0x4b   :  { %v474_v21 = vld [vmem:[%s8946_s1 + $0xd68] sm:$0xff]  ;;  %1858 = vmatprep.subr.mxu1 %v478_v17  ;;  %v473_v23 = vld [vmem:[%s8946_s1 + $0xd60] sm:$0xff]  ;;  %1788 = vmatpush1.msra.mxu0 %v349_v18 }
  0x4c   :  { %1859 = vmatpush1.msra.mxu1 %v477_v19  ;;  %v342_v24 = vld [vmem:[%s8946_s1 + $0x948] sm:$0xff]  ;;  %1789 = vmatprep.subr.mxu0 %v346_v20  ;;  %v341_v26 = vld [vmem:[%s8946_s1 + $0x940] sm:$0xff] }
  0x4d   :  { %v470_v25 = vld [vmem:[%s8946_s1 + $0xd48] sm:$0xff]  ;;  %1860 = vmatprep.subr.mxu1 %v474_v21  ;;  %v469_v27 = vld [vmem:[%s8946_s1 + $0xd40] sm:$0xff]  ;;  %1790 = vmatpush1.msra.mxu0 %v345_v22 }
  0x4e   :  { %1861 = vmatpush1.msra.mxu1 %v473_v23  ;;  %v338_v28 = vld [vmem:[%s8946_s1 + $0x928] sm:$0xff]  ;;  %1791 = vmatprep.subr.mxu0 %v342_v24  ;;  %v337_v30 = vld [vmem:[%s8946_s1 + $0x920] sm:$0xff] }
  0x4f   :  { %v466_v29 = vld [vmem:[%s8946_s1 + $0xd28] sm:$0xff]  ;;  %1862 = vmatprep.subr.mxu1 %v470_v25  ;;  %v465_v31 = vld [vmem:[%s8946_s1 + $0xd20] sm:$0xff]  ;;  %1792 = vmatpush1.msra.mxu0 %v341_v26 }
  0x50   :  { %1863 = vmatpush1.msra.mxu1 %v469_v27  ;;  %v334_v32 = vld [vmem:[%s8946_s1 + $0x908] sm:$0xff]  ;;  %1793 = vmatprep.subr.mxu0 %v338_v28  ;;  %v333_v34 = vld [vmem:[%s8946_s1 + $0x900] sm:$0xff] }
  0x51   :  { %v462_v33 = vld [vmem:[%s8946_s1 + $0xd08] sm:$0xff]  ;;  %1864 = vmatprep.subr.mxu1 %v466_v29  ;;  %v461_v35 = vld [vmem:[%s8946_s1 + $0xd00] sm:$0xff]  ;;  %1794 = vmatpush1.msra.mxu0 %v337_v30 }
  0x52   :  { %1865 = vmatpush1.msra.mxu1 %v465_v31  ;;  %v330_v36 = vld [vmem:[%s8946_s1 + $0x8e8] sm:$0xff]  ;;  %1795 = vmatprep.subr.mxu0 %v334_v32  ;;  %v329_v38 = vld [vmem:[%s8946_s1 + $0x8e0] sm:$0xff] }
  0x53   :  { %v458_v37 = vld [vmem:[%s8946_s1 + $0xce8] sm:$0xff]  ;;  %1866 = vmatprep.subr.mxu1 %v462_v33  ;;  %v457_v39 = vld [vmem:[%s8946_s1 + $0xce0] sm:$0xff]  ;;  %1796 = vmatpush1.msra.mxu0 %v333_v34 }
  0x54   :  { %1867 = vmatpush1.msra.mxu1 %v461_v35  ;;  %v326_v40 = vld [vmem:[%s8946_s1 + $0x8c8] sm:$0xff]  ;;  %1797 = vmatprep.subr.mxu0 %v330_v36  ;;  %v325_v42 = vld [vmem:[%s8946_s1 + $0x8c0] sm:$0xff] }
  0x55   :  { %v454_v41 = vld [vmem:[%s8946_s1 + $0xcc8] sm:$0xff]  ;;  %1868 = vmatprep.subr.mxu1 %v458_v37  ;;  %v453_v43 = vld [vmem:[%s8946_s1 + $0xcc0] sm:$0xff]  ;;  %1798 = vmatpush1.msra.mxu0 %v329_v38 }
  0x56   :  { %1869 = vmatpush1.msra.mxu1 %v457_v39  ;;  %v322_v44 = vld [vmem:[%s8946_s1 + $0x8a8] sm:$0xff]  ;;  %1799 = vmatprep.subr.mxu0 %v326_v40  ;;  %v321_v46 = vld [vmem:[%s8946_s1 + $0x8a0] sm:$0xff] }
  0x57   :  { %v450_v45 = vld [vmem:[%s8946_s1 + $0xca8] sm:$0xff]  ;;  %1870 = vmatprep.subr.mxu1 %v454_v41  ;;  %v449_v47 = vld [vmem:[%s8946_s1 + $0xca0] sm:$0xff]  ;;  %1800 = vmatpush1.msra.mxu0 %v325_v42 }
  0x58   :  { %1871 = vmatpush1.msra.mxu1 %v453_v43  ;;  %v318_v48 = vld [vmem:[%s8946_s1 + $0x888] sm:$0xff]  ;;  %1801 = vmatprep.subr.mxu0 %v322_v44  ;;  %v317_v50 = vld [vmem:[%s8946_s1 + $0x880] sm:$0xff] }
  0x59   :  { %v446_v49 = vld [vmem:[%s8946_s1 + $0xc88] sm:$0xff]  ;;  %1872 = vmatprep.subr.mxu1 %v450_v45  ;;  %v445_v51 = vld [vmem:[%s8946_s1 + $0xc80] sm:$0xff]  ;;  %1802 = vmatpush1.msra.mxu0 %v321_v46 }
  0x5a   :  { %1873 = vmatpush1.msra.mxu1 %v449_v47  ;;  %v314_v52 = vld [vmem:[%s8946_s1 + $0x868] sm:$0xff]  ;;  %1803 = vmatprep.subr.mxu0 %v318_v48  ;;  %v313_v54 = vld [vmem:[%s8946_s1 + $0x860] sm:$0xff] }
  0x5b   :  { %v442_v53 = vld [vmem:[%s8946_s1 + $0xc68] sm:$0xff]  ;;  %1874 = vmatprep.subr.mxu1 %v446_v49  ;;  %v441_v55 = vld [vmem:[%s8946_s1 + $0xc60] sm:$0xff]  ;;  %1804 = vmatpush1.msra.mxu0 %v317_v50 }
  0x5c   :  { %1875 = vmatpush1.msra.mxu1 %v445_v51  ;;  %v310_v56 = vld [vmem:[%s8946_s1 + $0x848] sm:$0xff]  ;;  %1805 = vmatprep.subr.mxu0 %v314_v52  ;;  %v309_v58 = vld [vmem:[%s8946_s1 + $0x840] sm:$0xff] }
  0x5d   :  { %v438_v57 = vld [vmem:[%s8946_s1 + $0xc48] sm:$0xff]  ;;  %1876 = vmatprep.subr.mxu1 %v442_v53  ;;  %v437_v59 = vld [vmem:[%s8946_s1 + $0xc40] sm:$0xff]  ;;  %1806 = vmatpush1.msra.mxu0 %v313_v54 }
  0x5e   :  { %1877 = vmatpush1.msra.mxu1 %v441_v55  ;;  %v306_v60 = vld [vmem:[%s8946_s1 + $0x828] sm:$0xff]  ;;  %1807 = vmatprep.subr.mxu0 %v310_v56  ;;  %v305_v62 = vld [vmem:[%s8946_s1 + $0x820] sm:$0xff] }
  0x5f   :  { %v434_v61 = vld [vmem:[%s8946_s1 + $0xc28] sm:$0xff]  ;;  %1878 = vmatprep.subr.mxu1 %v438_v57  ;;  %v433_v63 = vld [vmem:[%s8946_s1 + $0xc20] sm:$0xff]  ;;  %1808 = vmatpush1.msra.mxu0 %v309_v58 }
  0x60   :  { %1879 = vmatpush1.msra.mxu1 %v437_v59  ;;  %v302_v0 = vld [vmem:[%s8946_s1 + $0x808] sm:$0xff]  ;;  %1809 = vmatprep.subr.mxu0 %v306_v60  ;;  %v301_v2 = vld [vmem:[%s8946_s1 + $0x800] sm:$0xff] }
  0x61   :  { %v430_v1 = vld [vmem:[%s8946_s1 + $0xc08] sm:$0xff]  ;;  %1880 = vmatprep.subr.mxu1 %v434_v61  ;;  %v429_v3 = vld [vmem:[%s8946_s1 + $0xc00] sm:$0xff]  ;;  %1810 = vmatpush1.msra.mxu0 %v305_v62 }
  0x62   :  { %1881 = vmatpush1.msra.mxu1 %v433_v63  ;;  %v426_v4 = vld [vmem:[%s8946_s1 + $0xbe8] sm:$0xff]  ;;  %1811 = vmatprep.subr.mxu0 %v302_v0  ;;  %v425_v6 = vld [vmem:[%s8946_s1 + $0xbe0] sm:$0xff] }
  0x63   :  { %v554_v5 = vld [vmem:[%s8946_s1 + $0xfe8] sm:$0xff]  ;;  %1882 = vmatprep.subr.mxu1 %v430_v1  ;;  %v553_v7 = vld [vmem:[%s8946_s1 + $0xfe0] sm:$0xff]  ;;  %1812 = vmatpush1.msra.mxu0 %v301_v2 }
  0x64   :  { %1883 = vmatpush1.msra.mxu1 %v429_v3  ;;  %v422_v8 = vld [vmem:[%s8946_s1 + $0xbc8] sm:$0xff]  ;;  %1813 = vmatprep.subr.mxu0 %v426_v4  ;;  %v421_v10 = vld [vmem:[%s8946_s1 + $0xbc0] sm:$0xff] }
  0x65   :  { %v550_v9 = vld [vmem:[%s8946_s1 + $0xfc8] sm:$0xff]  ;;  %1884 = vmatprep.subr.mxu1 %v554_v5  ;;  %v549_v11 = vld [vmem:[%s8946_s1 + $0xfc0] sm:$0xff]  ;;  %1814 = vmatpush2.msra.mxu0 %v425_v6  ;;  %v27_v6 = vld [vmem:[%s8947_s0 + $0x38] sm:$0xff] }
  0x66   :  { %1885 = vmatpush2.msra.mxu1 %v553_v7  ;;  %v418_v12 = vld [vmem:[%s8946_s1 + $0xba8] sm:$0xff]  ;;  %1815 = vmatprep.subr.mxu0 %v422_v8  ;;  %v417_v14 = vld [vmem:[%s8946_s1 + $0xba0] sm:$0xff] }
  0x67   :  { %v546_v13 = vld [vmem:[%s8946_s1 + $0xfa8] sm:$0xff]  ;;  %1886 = vmatprep.subr.mxu1 %v550_v9  ;;  %v545_v15 = vld [vmem:[%s8946_s1 + $0xfa0] sm:$0xff]  ;;  %1816 = vmatpush2.msra.mxu0 %v421_v10  ;;  %v26_v9 = vld [vmem:[%s8947_s0 + $0x30] sm:$0xff] }
  0x68   :  { %1887 = vmatpush2.msra.mxu1 %v549_v11  ;;  %v414_v16 = vld [vmem:[%s8946_s1 + $0xb88] sm:$0xff]  ;;  %1817 = vmatprep.subr.mxu0 %v418_v12  ;;  %v413_v18 = vld [vmem:[%s8946_s1 + $0xb80] sm:$0xff] }
  0x69   :  { %v542_v17 = vld [vmem:[%s8946_s1 + $0xf88] sm:$0xff]  ;;  %1888 = vmatprep.subr.mxu1 %v546_v13  ;;  %v541_v19 = vld [vmem:[%s8946_s1 + $0xf80] sm:$0xff]  ;;  %1818 = vmatpush2.msra.mxu0 %v417_v14 }
  0x6a   :  { %1889 = vmatpush2.msra.mxu1 %v545_v15  ;;  %v410_v20 = vld [vmem:[%s8946_s1 + $0xb68] sm:$0xff]  ;;  %1819 = vmatprep.subr.mxu0 %v414_v16  ;;  %v409_v22 = vld [vmem:[%s8946_s1 + $0xb60] sm:$0xff] }
  0x6b   :  { %v538_v21 = vld [vmem:[%s8946_s1 + $0xf68] sm:$0xff]  ;;  %1890 = vmatprep.subr.mxu1 %v542_v17  ;;  %v537_v23 = vld [vmem:[%s8946_s1 + $0xf60] sm:$0xff]  ;;  %1820 = vmatpush2.msra.mxu0 %v413_v18 }
  0x6c   :  { %1891 = vmatpush2.msra.mxu1 %v541_v19  ;;  %v406_v24 = vld [vmem:[%s8946_s1 + $0xb48] sm:$0xff]  ;;  %1821 = vmatprep.subr.mxu0 %v410_v20  ;;  %v405_v26 = vld [vmem:[%s8946_s1 + $0xb40] sm:$0xff] }
  0x6d   :  { %v534_v25 = vld [vmem:[%s8946_s1 + $0xf48] sm:$0xff]  ;;  %1892 = vmatprep.subr.mxu1 %v538_v21  ;;  %v533_v27 = vld [vmem:[%s8946_s1 + $0xf40] sm:$0xff]  ;;  %1822 = vmatpush2.msra.mxu0 %v409_v22 }
  0x6e   :  { %1893 = vmatpush2.msra.mxu1 %v537_v23  ;;  %v402_v28 = vld [vmem:[%s8946_s1 + $0xb28] sm:$0xff]  ;;  %1823 = vmatprep.subr.mxu0 %v406_v24  ;;  %v401_v30 = vld [vmem:[%s8946_s1 + $0xb20] sm:$0xff] }
  0x6f   :  { %v530_v29 = vld [vmem:[%s8946_s1 + $0xf28] sm:$0xff]  ;;  %1894 = vmatprep.subr.mxu1 %v534_v25  ;;  %v529_v31 = vld [vmem:[%s8946_s1 + $0xf20] sm:$0xff]  ;;  %1824 = vmatpush2.msra.mxu0 %v405_v26 }
  0x70   :  { %1895 = vmatpush2.msra.mxu1 %v533_v27  ;;  %v398_v32 = vld [vmem:[%s8946_s1 + $0xb08] sm:$0xff]  ;;  %1825 = vmatprep.subr.mxu0 %v402_v28  ;;  %v397_v34 = vld [vmem:[%s8946_s1 + $0xb00] sm:$0xff] }
  0x71   :  { %v526_v33 = vld [vmem:[%s8946_s1 + $0xf08] sm:$0xff]  ;;  %1896 = vmatprep.subr.mxu1 %v530_v29  ;;  %v525_v35 = vld [vmem:[%s8946_s1 + $0xf00] sm:$0xff]  ;;  %1826 = vmatpush2.msra.mxu0 %v401_v30 }
  0x72   :  { %1897 = vmatpush2.msra.mxu1 %v529_v31  ;;  %v394_v36 = vld [vmem:[%s8946_s1 + $0xae8] sm:$0xff]  ;;  %1827 = vmatprep.subr.mxu0 %v398_v32  ;;  %v393_v38 = vld [vmem:[%s8946_s1 + $0xae0] sm:$0xff] }
  0x73   :  { %v522_v37 = vld [vmem:[%s8946_s1 + $0xee8] sm:$0xff]  ;;  %1898 = vmatprep.subr.mxu1 %v526_v33  ;;  %v521_v39 = vld [vmem:[%s8946_s1 + $0xee0] sm:$0xff]  ;;  %1828 = vmatpush2.msra.mxu0 %v397_v34 }
  0x74   :  { %1899 = vmatpush2.msra.mxu1 %v525_v35  ;;  %v390_v40 = vld [vmem:[%s8946_s1 + $0xac8] sm:$0xff]  ;;  %1829 = vmatprep.subr.mxu0 %v394_v36  ;;  %v389_v42 = vld [vmem:[%s8946_s1 + $0xac0] sm:$0xff] }
  0x75   :  { %v518_v41 = vld [vmem:[%s8946_s1 + $0xec8] sm:$0xff]  ;;  %1900 = vmatprep.subr.mxu1 %v522_v37  ;;  %v517_v43 = vld [vmem:[%s8946_s1 + $0xec0] sm:$0xff]  ;;  %1830 = vmatpush2.msra.mxu0 %v393_v38 }
  0x76   :  { %1901 = vmatpush2.msra.mxu1 %v521_v39  ;;  %v386_v44 = vld [vmem:[%s8946_s1 + $0xaa8] sm:$0xff]  ;;  %1831 = vmatprep.subr.mxu0 %v390_v40  ;;  %v385_v46 = vld [vmem:[%s8946_s1 + $0xaa0] sm:$0xff] }
  0x77   :  { %v514_v45 = vld [vmem:[%s8946_s1 + $0xea8] sm:$0xff]  ;;  %1902 = vmatprep.subr.mxu1 %v518_v41  ;;  %v513_v47 = vld [vmem:[%s8946_s1 + $0xea0] sm:$0xff]  ;;  %1832 = vmatpush2.msra.mxu0 %v389_v42 }
  0x78   :  { %1903 = vmatpush2.msra.mxu1 %v517_v43  ;;  %v382_v48 = vld [vmem:[%s8946_s1 + $0xa88] sm:$0xff]  ;;  %1833 = vmatprep.subr.mxu0 %v386_v44  ;;  %v381_v50 = vld [vmem:[%s8946_s1 + $0xa80] sm:$0xff] }
  0x79   :  { %v510_v49 = vld [vmem:[%s8946_s1 + $0xe88] sm:$0xff]  ;;  %1904 = vmatprep.subr.mxu1 %v514_v45  ;;  %v509_v51 = vld [vmem:[%s8946_s1 + $0xe80] sm:$0xff]  ;;  %1834 = vmatpush2.msra.mxu0 %v385_v46 }
  0x7a   :  { %1905 = vmatpush2.msra.mxu1 %v513_v47  ;;  %v378_v52 = vld [vmem:[%s8946_s1 + $0xa68] sm:$0xff]  ;;  %1835 = vmatprep.subr.mxu0 %v382_v48  ;;  %v377_v54 = vld [vmem:[%s8946_s1 + $0xa60] sm:$0xff] }
  0x7b   :  { %v506_v53 = vld [vmem:[%s8946_s1 + $0xe68] sm:$0xff]  ;;  %1906 = vmatprep.subr.mxu1 %v510_v49  ;;  %v505_v55 = vld [vmem:[%s8946_s1 + $0xe60] sm:$0xff]  ;;  %1836 = vmatpush2.msra.mxu0 %v381_v50 }
  0x7c   :  { %1907 = vmatpush2.msra.mxu1 %v509_v51  ;;  %v374_v56 = vld [vmem:[%s8946_s1 + $0xa48] sm:$0xff]  ;;  %1837 = vmatprep.subr.mxu0 %v378_v52  ;;  %v373_v58 = vld [vmem:[%s8946_s1 + $0xa40] sm:$0xff] }
  0x7d   :  { %v502_v57 = vld [vmem:[%s8946_s1 + $0xe48] sm:$0xff]  ;;  %1908 = vmatprep.subr.mxu1 %v506_v53  ;;  %v501_v59 = vld [vmem:[%s8946_s1 + $0xe40] sm:$0xff]  ;;  %1838 = vmatpush2.msra.mxu0 %v377_v54 }
  0x7e   :  { %1909 = vmatpush2.msra.mxu1 %v505_v55  ;;  %v370_v60 = vld [vmem:[%s8946_s1 + $0xa28] sm:$0xff]  ;;  %1839 = vmatprep.subr.mxu0 %v374_v56  ;;  %v369_v62 = vld [vmem:[%s8946_s1 + $0xa20] sm:$0xff] }
  0x7f   :  { %v498_v61 = vld [vmem:[%s8946_s1 + $0xe28] sm:$0xff]  ;;  %1910 = vmatprep.subr.mxu1 %v502_v57  ;;  %v497_v63 = vld [vmem:[%s8946_s1 + $0xe20] sm:$0xff]  ;;  %1840 = vmatpush2.msra.mxu0 %v373_v58 }
  0x80   :  { %1911 = vmatpush2.msra.mxu1 %v501_v59  ;;  %v366_v0 = vld [vmem:[%s8946_s1 + $0xa08] sm:$0xff]  ;;  %1841 = vmatprep.subr.mxu0 %v370_v60  ;;  %v365_v2 = vld [vmem:[%s8946_s1 + $0xa00] sm:$0xff] }
  0x81   :  { %v494_v1 = vld [vmem:[%s8946_s1 + $0xe08] sm:$0xff]  ;;  %1912 = vmatprep.subr.mxu1 %v498_v61  ;;  %1842 = vmatpush2.msra.mxu0 %v369_v62  ;;  %v493_v4 = vld [vmem:[%s8946_s1 + $0xe00] sm:$0xff] }
  0x82   :  { %v25_v3 = vld [vmem:[%s8947_s0 + $0x28] sm:$0xff]  ;;  %1913 = vmatpush2.msra.mxu1 %v497_v63  ;;  %v24_v5 = vld [vmem:[%s8947_s0 + $0x20] sm:$0xff]  ;;  %1843 = vmatprep.subr.mxu0 %v366_v0 }
  0x83   :  { %1914 = vmatprep.subr.mxu1 %v494_v1  ;;  %v618_v7 = vld [vmem:[%s8946_s1 + $0x11e8] sm:$0xff]  ;;  %1844 = vmatpush2.msra.mxu0 %v365_v2  ;;  %v617_v10 = vld [vmem:[%s8946_s1 + $0x11e0] sm:$0xff] }
  0x84   :  { %1845 = vmatprep.mubr.f32.mxu0 %v25_v3  ;;  %v746_v8 = vld [vmem:[%s8946_s1 + $0x15e8] sm:$0xff]  ;;  %1915 = vmatpush2.msra.mxu1 %v493_v4  ;;  %v745_v11 = vld [vmem:[%s8946_s1 + $0x15e0] sm:$0xff] }
  0x85   :  { %1846 = vmatmul.mubr.f32.vlgmr.msra.gmra.mxu0 %v24_v5  ;;  %1916 = vmatprep.mubr.f32.mxu1 %v27_v6  ;;  %v614_v12 = vld [vmem:[%s8946_s1 + $0x11c8] sm:$0xff]  ;;  %v613_v14 = vld [vmem:[%s8946_s1 + $0x11c0] sm:$0xff] }
  0x86   :  { %1923 = vmatprep.subr.mxu0 %v618_v7  ;;  %v742_v13 = vld [vmem:[%s8946_s1 + $0x15c8] sm:$0xff]  ;;  %1994 = vmatprep.subr.mxu1 %v746_v8  ;;  %v741_v15 = vld [vmem:[%s8946_s1 + $0x15c0] sm:$0xff] }
  0x87   :  { %1917 = vmatmul.mubr.f32.vlgmr.msra.gmra.mxu1 %v26_v9  ;;  %1924 = vmatpush1.msra.mxu0 %v617_v10  ;;  %v610_v16 = vld [vmem:[%s8946_s1 + $0x11a8] sm:$0xff]  ;;  %v609_v18 = vld [vmem:[%s8946_s1 + $0x11a0] sm:$0xff] }
  0x88   :  { %1995 = vmatpush1.msra.mxu1 %v745_v11  ;;  %v738_v17 = vld [vmem:[%s8946_s1 + $0x15a8] sm:$0xff]  ;;  %1925 = vmatprep.subr.mxu0 %v614_v12  ;;  %v737_v19 = vld [vmem:[%s8946_s1 + $0x15a0] sm:$0xff] }
  0x89   :  { %1996 = vmatprep.subr.mxu1 %v742_v13  ;;  %1926 = vmatpush1.msra.mxu0 %v613_v14  ;;  %v606_v20 = vld [vmem:[%s8946_s1 + $0x1188] sm:$0xff]  ;;  %v605_v22 = vld [vmem:[%s8946_s1 + $0x1180] sm:$0xff] }
  0x8a   :  { %1997 = vmatpush1.msra.mxu1 %v741_v15  ;;  %v734_v21 = vld [vmem:[%s8946_s1 + $0x1588] sm:$0xff]  ;;  %1927 = vmatprep.subr.mxu0 %v610_v16  ;;  %v733_v23 = vld [vmem:[%s8946_s1 + $0x1580] sm:$0xff] }
  0x8b   :  { %1998 = vmatprep.subr.mxu1 %v738_v17  ;;  %1928 = vmatpush1.msra.mxu0 %v609_v18  ;;  %v602_v24 = vld [vmem:[%s8946_s1 + $0x1168] sm:$0xff]  ;;  %v601_v26 = vld [vmem:[%s8946_s1 + $0x1160] sm:$0xff] }
  0x8c   :  { %1999 = vmatpush1.msra.mxu1 %v737_v19  ;;  %v730_v25 = vld [vmem:[%s8946_s1 + $0x1568] sm:$0xff]  ;;  %1929 = vmatprep.subr.mxu0 %v606_v20  ;;  %v729_v27 = vld [vmem:[%s8946_s1 + $0x1560] sm:$0xff] }
  0x8d   :  { %2000 = vmatprep.subr.mxu1 %v734_v21  ;;  %1930 = vmatpush1.msra.mxu0 %v605_v22  ;;  %v598_v28 = vld [vmem:[%s8946_s1 + $0x1148] sm:$0xff]  ;;  %v597_v30 = vld [vmem:[%s8946_s1 + $0x1140] sm:$0xff] }
  0x8e   :  { %2001 = vmatpush1.msra.mxu1 %v733_v23  ;;  %v726_v29 = vld [vmem:[%s8946_s1 + $0x1548] sm:$0xff]  ;;  %1931 = vmatprep.subr.mxu0 %v602_v24  ;;  %v725_v31 = vld [vmem:[%s8946_s1 + $0x1540] sm:$0xff] }
  0x8f   :  { %2002 = vmatprep.subr.mxu1 %v730_v25  ;;  %1932 = vmatpush1.msra.mxu0 %v601_v26  ;;  %v594_v32 = vld [vmem:[%s8946_s1 + $0x1128] sm:$0xff]  ;;  %v593_v34 = vld [vmem:[%s8946_s1 + $0x1120] sm:$0xff] }
  0x90   :  { %2003 = vmatpush1.msra.mxu1 %v729_v27  ;;  %v722_v33 = vld [vmem:[%s8946_s1 + $0x1528] sm:$0xff]  ;;  %1933 = vmatprep.subr.mxu0 %v598_v28  ;;  %v721_v35 = vld [vmem:[%s8946_s1 + $0x1520] sm:$0xff] }
  0x91   :  { %2004 = vmatprep.subr.mxu1 %v726_v29  ;;  %1934 = vmatpush1.msra.mxu0 %v597_v30  ;;  %v590_v36 = vld [vmem:[%s8946_s1 + $0x1108] sm:$0xff]  ;;  %v589_v38 = vld [vmem:[%s8946_s1 + $0x1100] sm:$0xff] }
  0x92   :  { %2005 = vmatpush1.msra.mxu1 %v725_v31  ;;  %v718_v37 = vld [vmem:[%s8946_s1 + $0x1508] sm:$0xff]  ;;  %1935 = vmatprep.subr.mxu0 %v594_v32  ;;  %v717_v39 = vld [vmem:[%s8946_s1 + $0x1500] sm:$0xff] }
  0x93   :  { %2006 = vmatprep.subr.mxu1 %v722_v33  ;;  %1936 = vmatpush1.msra.mxu0 %v593_v34  ;;  %v586_v40 = vld [vmem:[%s8946_s1 + $0x10e8] sm:$0xff]  ;;  %v585_v42 = vld [vmem:[%s8946_s1 + $0x10e0] sm:$0xff] }
  0x94   :  { %2007 = vmatpush1.msra.mxu1 %v721_v35  ;;  %v714_v41 = vld [vmem:[%s8946_s1 + $0x14e8] sm:$0xff]  ;;  %1937 = vmatprep.subr.mxu0 %v590_v36  ;;  %v713_v43 = vld [vmem:[%s8946_s1 + $0x14e0] sm:$0xff] }
  0x95   :  { %2008 = vmatprep.subr.mxu1 %v718_v37  ;;  %1938 = vmatpush1.msra.mxu0 %v589_v38  ;;  %v582_v44 = vld [vmem:[%s8946_s1 + $0x10c8] sm:$0xff]  ;;  %v581_v46 = vld [vmem:[%s8946_s1 + $0x10c0] sm:$0xff] }
  0x96   :  { %2009 = vmatpush1.msra.mxu1 %v717_v39  ;;  %v710_v45 = vld [vmem:[%s8946_s1 + $0x14c8] sm:$0xff]  ;;  %1939 = vmatprep.subr.mxu0 %v586_v40  ;;  %v709_v47 = vld [vmem:[%s8946_s1 + $0x14c0] sm:$0xff] }
  0x97   :  { %2010 = vmatprep.subr.mxu1 %v714_v41  ;;  %1940 = vmatpush1.msra.mxu0 %v585_v42  ;;  %v578_v48 = vld [vmem:[%s8946_s1 + $0x10a8] sm:$0xff]  ;;  %v577_v50 = vld [vmem:[%s8946_s1 + $0x10a0] sm:$0xff] }
  0x98   :  { %2011 = vmatpush1.msra.mxu1 %v713_v43  ;;  %v706_v49 = vld [vmem:[%s8946_s1 + $0x14a8] sm:$0xff]  ;;  %1941 = vmatprep.subr.mxu0 %v582_v44  ;;  %v705_v51 = vld [vmem:[%s8946_s1 + $0x14a0] sm:$0xff] }
  0x99   :  { %2012 = vmatprep.subr.mxu1 %v710_v45  ;;  %1942 = vmatpush1.msra.mxu0 %v581_v46  ;;  %v574_v52 = vld [vmem:[%s8946_s1 + $0x1088] sm:$0xff]  ;;  %v573_v54 = vld [vmem:[%s8946_s1 + $0x1080] sm:$0xff] }
  0x9a   :  { %2013 = vmatpush1.msra.mxu1 %v709_v47  ;;  %v702_v53 = vld [vmem:[%s8946_s1 + $0x1488] sm:$0xff]  ;;  %1943 = vmatprep.subr.mxu0 %v578_v48  ;;  %v701_v55 = vld [vmem:[%s8946_s1 + $0x1480] sm:$0xff] }
  0x9b   :  { %2014 = vmatprep.subr.mxu1 %v706_v49  ;;  %1944 = vmatpush1.msra.mxu0 %v577_v50  ;;  %v570_v56 = vld [vmem:[%s8946_s1 + $0x1068] sm:$0xff]  ;;  %v569_v58 = vld [vmem:[%s8946_s1 + $0x1060] sm:$0xff] }
  0x9c   :  { %2015 = vmatpush1.msra.mxu1 %v705_v51  ;;  %v698_v57 = vld [vmem:[%s8946_s1 + $0x1468] sm:$0xff]  ;;  %1945 = vmatprep.subr.mxu0 %v574_v52  ;;  %v697_v59 = vld [vmem:[%s8946_s1 + $0x1460] sm:$0xff] }
  0x9d   :  { %2016 = vmatprep.subr.mxu1 %v702_v53  ;;  %1946 = vmatpush1.msra.mxu0 %v573_v54  ;;  %v566_v60 = vld [vmem:[%s8946_s1 + $0x1048] sm:$0xff]  ;;  %v565_v62 = vld [vmem:[%s8946_s1 + $0x1040] sm:$0xff] }
  0x9e   :  { %2017 = vmatpush1.msra.mxu1 %v701_v55  ;;  %v694_v61 = vld [vmem:[%s8946_s1 + $0x1448] sm:$0xff]  ;;  %1947 = vmatprep.subr.mxu0 %v570_v56  ;;  %v693_v63 = vld [vmem:[%s8946_s1 + $0x1440] sm:$0xff] }
  0x9f   :  { %2018 = vmatprep.subr.mxu1 %v698_v57  ;;  %1948 = vmatpush1.msra.mxu0 %v569_v58  ;;  %v562_v0 = vld [vmem:[%s8946_s1 + $0x1028] sm:$0xff]  ;;  %v561_v2 = vld [vmem:[%s8946_s1 + $0x1020] sm:$0xff] }
  0xa0   :  { %2019 = vmatpush1.msra.mxu1 %v697_v59  ;;  %v690_v1 = vld [vmem:[%s8946_s1 + $0x1428] sm:$0xff]  ;;  %1949 = vmatprep.subr.mxu0 %v566_v60  ;;  %v689_v3 = vld [vmem:[%s8946_s1 + $0x1420] sm:$0xff] }
  0xa1   :  { %2020 = vmatprep.subr.mxu1 %v694_v61  ;;  %1950 = vmatpush1.msra.mxu0 %v565_v62  ;;  %v558_v4 = vld [vmem:[%s8946_s1 + $0x1008] sm:$0xff]  ;;  %v557_v6 = vld [vmem:[%s8946_s1 + $0x1000] sm:$0xff] }
  0xa2   :  { %2021 = vmatpush1.msra.mxu1 %v693_v63  ;;  %v686_v5 = vld [vmem:[%s8946_s1 + $0x1408] sm:$0xff]  ;;  %1951 = vmatprep.subr.mxu0 %v562_v0  ;;  %v685_v7 = vld [vmem:[%s8946_s1 + $0x1400] sm:$0xff] }
  0xa3   :  { %2022 = vmatprep.subr.mxu1 %v690_v1  ;;  %1952 = vmatpush1.msra.mxu0 %v561_v2  ;;  %v682_v8 = vld [vmem:[%s8946_s1 + $0x13e8] sm:$0xff]  ;;  %v681_v10 = vld [vmem:[%s8946_s1 + $0x13e0] sm:$0xff] }
  0xa4   :  { %2023 = vmatpush1.msra.mxu1 %v689_v3  ;;  %v810_v9 = vld [vmem:[%s8946_s1 + $0x17e8] sm:$0xff]  ;;  %1953 = vmatprep.subr.mxu0 %v558_v4  ;;  %v809_v11 = vld [vmem:[%s8946_s1 + $0x17e0] sm:$0xff] }
  0xa5   :  { %2024 = vmatprep.subr.mxu1 %v686_v5  ;;  %1954 = vmatpush1.msra.mxu0 %v557_v6  ;;  %v678_v12 = vld [vmem:[%s8946_s1 + $0x13c8] sm:$0xff]  ;;  %v677_v14 = vld [vmem:[%s8946_s1 + $0x13c0] sm:$0xff] }
  0xa6   :  { %2025 = vmatpush1.msra.mxu1 %v685_v7  ;;  %v806_v13 = vld [vmem:[%s8946_s1 + $0x17c8] sm:$0xff]  ;;  %1955 = vmatprep.subr.mxu0 %v682_v8  ;;  %v805_v15 = vld [vmem:[%s8946_s1 + $0x17c0] sm:$0xff] }
  0xa7   :  { %2026 = vmatprep.subr.mxu1 %v810_v9  ;;  %1956 = vmatpush2.msra.mxu0 %v681_v10  ;;  %v674_v16 = vld [vmem:[%s8946_s1 + $0x13a8] sm:$0xff]  ;;  %v673_v18 = vld [vmem:[%s8946_s1 + $0x13a0] sm:$0xff]  ;;  %v31_v10 = vld [vmem:[%s8947_s0 + $0x58] sm:$0xff] }
  0xa8   :  { %2027 = vmatpush2.msra.mxu1 %v809_v11  ;;  %v802_v17 = vld [vmem:[%s8946_s1 + $0x17a8] sm:$0xff]  ;;  %1957 = vmatprep.subr.mxu0 %v678_v12  ;;  %v801_v19 = vld [vmem:[%s8946_s1 + $0x17a0] sm:$0xff] }
  0xa9   :  { %2028 = vmatprep.subr.mxu1 %v806_v13  ;;  %1958 = vmatpush2.msra.mxu0 %v677_v14  ;;  %v670_v20 = vld [vmem:[%s8946_s1 + $0x1388] sm:$0xff]  ;;  %v669_v22 = vld [vmem:[%s8946_s1 + $0x1380] sm:$0xff]  ;;  %v30_v13 = vld [vmem:[%s8947_s0 + $0x50] sm:$0xff] }
  0xaa   :  { %2029 = vmatpush2.msra.mxu1 %v805_v15  ;;  %v798_v21 = vld [vmem:[%s8946_s1 + $0x1788] sm:$0xff]  ;;  %1959 = vmatprep.subr.mxu0 %v674_v16  ;;  %v797_v23 = vld [vmem:[%s8946_s1 + $0x1780] sm:$0xff] }
  0xab   :  { %2030 = vmatprep.subr.mxu1 %v802_v17  ;;  %1960 = vmatpush2.msra.mxu0 %v673_v18  ;;  %v666_v24 = vld [vmem:[%s8946_s1 + $0x1368] sm:$0xff]  ;;  %v665_v26 = vld [vmem:[%s8946_s1 + $0x1360] sm:$0xff] }
  0xac   :  { %2031 = vmatpush2.msra.mxu1 %v801_v19  ;;  %v794_v25 = vld [vmem:[%s8946_s1 + $0x1768] sm:$0xff]  ;;  %1961 = vmatprep.subr.mxu0 %v670_v20  ;;  %v793_v27 = vld [vmem:[%s8946_s1 + $0x1760] sm:$0xff] }
  0xad   :  { %2032 = vmatprep.subr.mxu1 %v798_v21  ;;  %1962 = vmatpush2.msra.mxu0 %v669_v22  ;;  %v662_v28 = vld [vmem:[%s8946_s1 + $0x1348] sm:$0xff]  ;;  %v661_v30 = vld [vmem:[%s8946_s1 + $0x1340] sm:$0xff] }
  0xae   :  { %2033 = vmatpush2.msra.mxu1 %v797_v23  ;;  %v790_v29 = vld [vmem:[%s8946_s1 + $0x1748] sm:$0xff]  ;;  %1963 = vmatprep.subr.mxu0 %v666_v24  ;;  %v789_v31 = vld [vmem:[%s8946_s1 + $0x1740] sm:$0xff] }
  0xaf   :  { %2034 = vmatprep.subr.mxu1 %v794_v25  ;;  %1964 = vmatpush2.msra.mxu0 %v665_v26  ;;  %v658_v32 = vld [vmem:[%s8946_s1 + $0x1328] sm:$0xff]  ;;  %v657_v34 = vld [vmem:[%s8946_s1 + $0x1320] sm:$0xff] }
  0xb0   :  { %2035 = vmatpush2.msra.mxu1 %v793_v27  ;;  %v786_v33 = vld [vmem:[%s8946_s1 + $0x1728] sm:$0xff]  ;;  %1965 = vmatprep.subr.mxu0 %v662_v28  ;;  %v785_v35 = vld [vmem:[%s8946_s1 + $0x1720] sm:$0xff] }
  0xb1   :  { %2036 = vmatprep.subr.mxu1 %v790_v29  ;;  %1966 = vmatpush2.msra.mxu0 %v661_v30  ;;  %v654_v36 = vld [vmem:[%s8946_s1 + $0x1308] sm:$0xff]  ;;  %v653_v38 = vld [vmem:[%s8946_s1 + $0x1300] sm:$0xff] }
  0xb2   :  { %2037 = vmatpush2.msra.mxu1 %v789_v31  ;;  %v782_v37 = vld [vmem:[%s8946_s1 + $0x1708] sm:$0xff]  ;;  %1967 = vmatprep.subr.mxu0 %v658_v32  ;;  %v781_v39 = vld [vmem:[%s8946_s1 + $0x1700] sm:$0xff] }
  0xb3   :  { %2038 = vmatprep.subr.mxu1 %v786_v33  ;;  %1968 = vmatpush2.msra.mxu0 %v657_v34  ;;  %v650_v40 = vld [vmem:[%s8946_s1 + $0x12e8] sm:$0xff]  ;;  %v649_v42 = vld [vmem:[%s8946_s1 + $0x12e0] sm:$0xff] }
  0xb4   :  { %2039 = vmatpush2.msra.mxu1 %v785_v35  ;;  %v778_v41 = vld [vmem:[%s8946_s1 + $0x16e8] sm:$0xff]  ;;  %1969 = vmatprep.subr.mxu0 %v654_v36  ;;  %v777_v43 = vld [vmem:[%s8946_s1 + $0x16e0] sm:$0xff] }
  0xb5   :  { %2040 = vmatprep.subr.mxu1 %v782_v37  ;;  %1970 = vmatpush2.msra.mxu0 %v653_v38  ;;  %v646_v44 = vld [vmem:[%s8946_s1 + $0x12c8] sm:$0xff]  ;;  %v645_v46 = vld [vmem:[%s8946_s1 + $0x12c0] sm:$0xff] }
  0xb6   :  { %2041 = vmatpush2.msra.mxu1 %v781_v39  ;;  %v774_v45 = vld [vmem:[%s8946_s1 + $0x16c8] sm:$0xff]  ;;  %1971 = vmatprep.subr.mxu0 %v650_v40  ;;  %v773_v47 = vld [vmem:[%s8946_s1 + $0x16c0] sm:$0xff] }
  0xb7   :  { %2042 = vmatprep.subr.mxu1 %v778_v41  ;;  %1972 = vmatpush2.msra.mxu0 %v649_v42  ;;  %v642_v48 = vld [vmem:[%s8946_s1 + $0x12a8] sm:$0xff]  ;;  %v641_v50 = vld [vmem:[%s8946_s1 + $0x12a0] sm:$0xff] }
  0xb8   :  { %2043 = vmatpush2.msra.mxu1 %v777_v43  ;;  %v770_v49 = vld [vmem:[%s8946_s1 + $0x16a8] sm:$0xff]  ;;  %1973 = vmatprep.subr.mxu0 %v646_v44  ;;  %v769_v51 = vld [vmem:[%s8946_s1 + $0x16a0] sm:$0xff] }
  0xb9   :  { %2044 = vmatprep.subr.mxu1 %v774_v45  ;;  %1974 = vmatpush2.msra.mxu0 %v645_v46  ;;  %v638_v52 = vld [vmem:[%s8946_s1 + $0x1288] sm:$0xff]  ;;  %v637_v54 = vld [vmem:[%s8946_s1 + $0x1280] sm:$0xff] }
  0xba   :  { %2045 = vmatpush2.msra.mxu1 %v773_v47  ;;  %v766_v53 = vld [vmem:[%s8946_s1 + $0x1688] sm:$0xff]  ;;  %1975 = vmatprep.subr.mxu0 %v642_v48  ;;  %v765_v55 = vld [vmem:[%s8946_s1 + $0x1680] sm:$0xff] }
  0xbb   :  { %2046 = vmatprep.subr.mxu1 %v770_v49  ;;  %1976 = vmatpush2.msra.mxu0 %v641_v50  ;;  %v634_v56 = vld [vmem:[%s8946_s1 + $0x1268] sm:$0xff]  ;;  %v633_v58 = vld [vmem:[%s8946_s1 + $0x1260] sm:$0xff] }
  0xbc   :  { %2047 = vmatpush2.msra.mxu1 %v769_v51  ;;  %v762_v57 = vld [vmem:[%s8946_s1 + $0x1668] sm:$0xff]  ;;  %1977 = vmatprep.subr.mxu0 %v638_v52  ;;  %v761_v59 = vld [vmem:[%s8946_s1 + $0x1660] sm:$0xff] }
  0xbd   :  { %2048 = vmatprep.subr.mxu1 %v766_v53  ;;  %1978 = vmatpush2.msra.mxu0 %v637_v54  ;;  %v630_v60 = vld [vmem:[%s8946_s1 + $0x1248] sm:$0xff]  ;;  %v629_v62 = vld [vmem:[%s8946_s1 + $0x1240] sm:$0xff] }
  0xbe   :  { %2049 = vmatpush2.msra.mxu1 %v765_v55  ;;  %v758_v61 = vld [vmem:[%s8946_s1 + $0x1648] sm:$0xff]  ;;  %1979 = vmatprep.subr.mxu0 %v634_v56  ;;  %v757_v63 = vld [vmem:[%s8946_s1 + $0x1640] sm:$0xff] }
  0xbf   :  { %2050 = vmatprep.subr.mxu1 %v762_v57  ;;  %1980 = vmatpush2.msra.mxu0 %v633_v58  ;;  %v626_v0 = vld [vmem:[%s8946_s1 + $0x1228] sm:$0xff]  ;;  %v625_v2 = vld [vmem:[%s8946_s1 + $0x1220] sm:$0xff] }
  0xc0   :  { %2051 = vmatpush2.msra.mxu1 %v761_v59  ;;  %v754_v1 = vld [vmem:[%s8946_s1 + $0x1628] sm:$0xff]  ;;  %1981 = vmatprep.subr.mxu0 %v630_v60  ;;  %v753_v3 = vld [vmem:[%s8946_s1 + $0x1620] sm:$0xff] }
  0xc1   :  { %2052 = vmatprep.subr.mxu1 %v758_v61  ;;  %1982 = vmatpush2.msra.mxu0 %v629_v62  ;;  %v622_v4 = vld [vmem:[%s8946_s1 + $0x1208] sm:$0xff]  ;;  %v621_v6 = vld [vmem:[%s8946_s1 + $0x1200] sm:$0xff] }
  0xc2   :  { %2053 = vmatpush2.msra.mxu1 %v757_v63  ;;  %v750_v5 = vld [vmem:[%s8946_s1 + $0x1608] sm:$0xff]  ;;  %1983 = vmatprep.subr.mxu0 %v626_v0  ;;  %v749_v8 = vld [vmem:[%s8946_s1 + $0x1600] sm:$0xff] }
  0xc3   :  { %2054 = vmatprep.subr.mxu1 %v754_v1  ;;  %v29_v7 = vld [vmem:[%s8947_s0 + $0x48] sm:$0xff]  ;;  %1984 = vmatpush2.msra.mxu0 %v625_v2  ;;  %v28_v9 = vld [vmem:[%s8947_s0 + $0x40] sm:$0xff] }
  0xc4   :  { %2055 = vmatpush2.msra.mxu1 %v753_v3  ;;  %1985 = vmatprep.subr.mxu0 %v622_v4  ;;  %v874_v11 = vld [vmem:[%s8946_s1 + $0x19e8] sm:$0xff]  ;;  %v873_v14 = vld [vmem:[%s8946_s1 + $0x19e0] sm:$0xff] }
  0xc5   :  { %2056 = vmatprep.subr.mxu1 %v750_v5  ;;  %1986 = vmatpush2.msra.mxu0 %v621_v6  ;;  %v1002_v12 = vld [vmem:[%s8946_s1 + $0x1de8] sm:$0xff]  ;;  %v1001_v15 = vld [vmem:[%s8946_s1 + $0x1de0] sm:$0xff] }
  0xc6   :  { %1987 = vmatprep.mubr.f32.mxu0 %v29_v7  ;;  %2057 = vmatpush2.msra.mxu1 %v749_v8  ;;  %v870_v16 = vld [vmem:[%s8946_s1 + $0x19c8] sm:$0xff]  ;;  %v869_v18 = vld [vmem:[%s8946_s1 + $0x19c0] sm:$0xff] }
  0xc7   :  { %1988 = vmatmul.mubr.f32.vlgmr.msra.gmra.mxu0 %v28_v9  ;;  %2058 = vmatprep.mubr.f32.mxu1 %v31_v10  ;;  %v998_v17 = vld [vmem:[%s8946_s1 + $0x1dc8] sm:$0xff]  ;;  %v997_v19 = vld [vmem:[%s8946_s1 + $0x1dc0] sm:$0xff] }
  0xc8   :  { %2065 = vmatprep.subr.mxu0 %v874_v11  ;;  %2136 = vmatprep.subr.mxu1 %v1002_v12  ;;  %v866_v20 = vld [vmem:[%s8946_s1 + $0x19a8] sm:$0xff]  ;;  %v865_v22 = vld [vmem:[%s8946_s1 + $0x19a0] sm:$0xff] }
  0xc9   :  { %2059 = vmatmul.mubr.f32.vlgmr.msra.gmra.mxu1 %v30_v13  ;;  %2066 = vmatpush1.msra.mxu0 %v873_v14  ;;  %v994_v21 = vld [vmem:[%s8946_s1 + $0x1da8] sm:$0xff]  ;;  %v993_v23 = vld [vmem:[%s8946_s1 + $0x1da0] sm:$0xff] }
  0xca   :  { %2137 = vmatpush1.msra.mxu1 %v1001_v15  ;;  %2067 = vmatprep.subr.mxu0 %v870_v16  ;;  %v862_v24 = vld [vmem:[%s8946_s1 + $0x1988] sm:$0xff]  ;;  %v861_v26 = vld [vmem:[%s8946_s1 + $0x1980] sm:$0xff] }
  0xcb   :  { %2138 = vmatprep.subr.mxu1 %v998_v17  ;;  %2068 = vmatpush1.msra.mxu0 %v869_v18  ;;  %v990_v25 = vld [vmem:[%s8946_s1 + $0x1d88] sm:$0xff]  ;;  %v989_v27 = vld [vmem:[%s8946_s1 + $0x1d80] sm:$0xff] }
  0xcc   :  { %2139 = vmatpush1.msra.mxu1 %v997_v19  ;;  %2069 = vmatprep.subr.mxu0 %v866_v20  ;;  %v858_v28 = vld [vmem:[%s8946_s1 + $0x1968] sm:$0xff]  ;;  %v857_v30 = vld [vmem:[%s8946_s1 + $0x1960] sm:$0xff] }
  0xcd   :  { %2140 = vmatprep.subr.mxu1 %v994_v21  ;;  %2070 = vmatpush1.msra.mxu0 %v865_v22  ;;  %v986_v29 = vld [vmem:[%s8946_s1 + $0x1d68] sm:$0xff]  ;;  %v985_v31 = vld [vmem:[%s8946_s1 + $0x1d60] sm:$0xff] }
  0xce   :  { %2141 = vmatpush1.msra.mxu1 %v993_v23  ;;  %2071 = vmatprep.subr.mxu0 %v862_v24  ;;  %v854_v32 = vld [vmem:[%s8946_s1 + $0x1948] sm:$0xff]  ;;  %v853_v34 = vld [vmem:[%s8946_s1 + $0x1940] sm:$0xff] }
  0xcf   :  { %2142 = vmatprep.subr.mxu1 %v990_v25  ;;  %2072 = vmatpush1.msra.mxu0 %v861_v26  ;;  %v982_v33 = vld [vmem:[%s8946_s1 + $0x1d48] sm:$0xff]  ;;  %v981_v35 = vld [vmem:[%s8946_s1 + $0x1d40] sm:$0xff] }
  0xd0   :  { %2143 = vmatpush1.msra.mxu1 %v989_v27  ;;  %2073 = vmatprep.subr.mxu0 %v858_v28  ;;  %v850_v36 = vld [vmem:[%s8946_s1 + $0x1928] sm:$0xff]  ;;  %v849_v38 = vld [vmem:[%s8946_s1 + $0x1920] sm:$0xff] }
  0xd1   :  { %2144 = vmatprep.subr.mxu1 %v986_v29  ;;  %2074 = vmatpush1.msra.mxu0 %v857_v30  ;;  %v978_v37 = vld [vmem:[%s8946_s1 + $0x1d28] sm:$0xff]  ;;  %v977_v39 = vld [vmem:[%s8946_s1 + $0x1d20] sm:$0xff] }
  0xd2   :  { %2145 = vmatpush1.msra.mxu1 %v985_v31  ;;  %2075 = vmatprep.subr.mxu0 %v854_v32  ;;  %v846_v40 = vld [vmem:[%s8946_s1 + $0x1908] sm:$0xff]  ;;  %v845_v42 = vld [vmem:[%s8946_s1 + $0x1900] sm:$0xff] }
  0xd3   :  { %2146 = vmatprep.subr.mxu1 %v982_v33  ;;  %2076 = vmatpush1.msra.mxu0 %v853_v34  ;;  %v974_v41 = vld [vmem:[%s8946_s1 + $0x1d08] sm:$0xff]  ;;  %v973_v43 = vld [vmem:[%s8946_s1 + $0x1d00] sm:$0xff] }
  0xd4   :  { %2147 = vmatpush1.msra.mxu1 %v981_v35  ;;  %2077 = vmatprep.subr.mxu0 %v850_v36  ;;  %v842_v44 = vld [vmem:[%s8946_s1 + $0x18e8] sm:$0xff]  ;;  %v841_v46 = vld [vmem:[%s8946_s1 + $0x18e0] sm:$0xff] }
  0xd5   :  { %2148 = vmatprep.subr.mxu1 %v978_v37  ;;  %2078 = vmatpush1.msra.mxu0 %v849_v38  ;;  %v970_v45 = vld [vmem:[%s8946_s1 + $0x1ce8] sm:$0xff]  ;;  %v969_v47 = vld [vmem:[%s8946_s1 + $0x1ce0] sm:$0xff] }
  0xd6   :  { %2149 = vmatpush1.msra.mxu1 %v977_v39  ;;  %2079 = vmatprep.subr.mxu0 %v846_v40  ;;  %v838_v48 = vld [vmem:[%s8946_s1 + $0x18c8] sm:$0xff]  ;;  %v837_v50 = vld [vmem:[%s8946_s1 + $0x18c0] sm:$0xff] }
  0xd7   :  { %2150 = vmatprep.subr.mxu1 %v974_v41  ;;  %2080 = vmatpush1.msra.mxu0 %v845_v42  ;;  %v966_v49 = vld [vmem:[%s8946_s1 + $0x1cc8] sm:$0xff]  ;;  %v965_v51 = vld [vmem:[%s8946_s1 + $0x1cc0] sm:$0xff] }
  0xd8   :  { %2151 = vmatpush1.msra.mxu1 %v973_v43  ;;  %2081 = vmatprep.subr.mxu0 %v842_v44  ;;  %v834_v52 = vld [vmem:[%s8946_s1 + $0x18a8] sm:$0xff]  ;;  %v833_v54 = vld [vmem:[%s8946_s1 + $0x18a0] sm:$0xff] }
  0xd9   :  { %2152 = vmatprep.subr.mxu1 %v970_v45  ;;  %2082 = vmatpush1.msra.mxu0 %v841_v46  ;;  %v962_v53 = vld [vmem:[%s8946_s1 + $0x1ca8] sm:$0xff]  ;;  %v961_v55 = vld [vmem:[%s8946_s1 + $0x1ca0] sm:$0xff] }
  0xda   :  { %2153 = vmatpush1.msra.mxu1 %v969_v47  ;;  %2083 = vmatprep.subr.mxu0 %v838_v48  ;;  %v830_v56 = vld [vmem:[%s8946_s1 + $0x1888] sm:$0xff]  ;;  %v829_v58 = vld [vmem:[%s8946_s1 + $0x1880] sm:$0xff] }
  0xdb   :  { %2154 = vmatprep.subr.mxu1 %v966_v49  ;;  %2084 = vmatpush1.msra.mxu0 %v837_v50  ;;  %v958_v57 = vld [vmem:[%s8946_s1 + $0x1c88] sm:$0xff]  ;;  %v957_v59 = vld [vmem:[%s8946_s1 + $0x1c80] sm:$0xff] }
  0xdc   :  { %2155 = vmatpush1.msra.mxu1 %v965_v51  ;;  %2085 = vmatprep.subr.mxu0 %v834_v52  ;;  %v826_v60 = vld [vmem:[%s8946_s1 + $0x1868] sm:$0xff]  ;;  %v825_v62 = vld [vmem:[%s8946_s1 + $0x1860] sm:$0xff] }
  0xdd   :  { %2156 = vmatprep.subr.mxu1 %v962_v53  ;;  %2086 = vmatpush1.msra.mxu0 %v833_v54  ;;  %v954_v61 = vld [vmem:[%s8946_s1 + $0x1c68] sm:$0xff]  ;;  %v953_v63 = vld [vmem:[%s8946_s1 + $0x1c60] sm:$0xff] }
  0xde   :  { %2157 = vmatpush1.msra.mxu1 %v961_v55  ;;  %2087 = vmatprep.subr.mxu0 %v830_v56  ;;  %v822_v0 = vld [vmem:[%s8946_s1 + $0x1848] sm:$0xff]  ;;  %v821_v2 = vld [vmem:[%s8946_s1 + $0x1840] sm:$0xff] }
  0xdf   :  { %2158 = vmatprep.subr.mxu1 %v958_v57  ;;  %2088 = vmatpush1.msra.mxu0 %v829_v58  ;;  %v950_v1 = vld [vmem:[%s8946_s1 + $0x1c48] sm:$0xff]  ;;  %v949_v3 = vld [vmem:[%s8946_s1 + $0x1c40] sm:$0xff] }
  0xe0   :  { %2159 = vmatpush1.msra.mxu1 %v957_v59  ;;  %2089 = vmatprep.subr.mxu0 %v826_v60  ;;  %v818_v4 = vld [vmem:[%s8946_s1 + $0x1828] sm:$0xff]  ;;  %v817_v6 = vld [vmem:[%s8946_s1 + $0x1820] sm:$0xff] }
  0xe1   :  { %2160 = vmatprep.subr.mxu1 %v954_v61  ;;  %2090 = vmatpush1.msra.mxu0 %v825_v62  ;;  %v946_v5 = vld [vmem:[%s8946_s1 + $0x1c28] sm:$0xff]  ;;  %v945_v7 = vld [vmem:[%s8946_s1 + $0x1c20] sm:$0xff] }
  0xe2   :  { %2161 = vmatpush1.msra.mxu1 %v953_v63  ;;  %2091 = vmatprep.subr.mxu0 %v822_v0  ;;  %v814_v8 = vld [vmem:[%s8946_s1 + $0x1808] sm:$0xff]  ;;  %v813_v10 = vld [vmem:[%s8946_s1 + $0x1800] sm:$0xff] }
  0xe3   :  { %2162 = vmatprep.subr.mxu1 %v950_v1  ;;  %2092 = vmatpush1.msra.mxu0 %v821_v2  ;;  %v942_v9 = vld [vmem:[%s8946_s1 + $0x1c08] sm:$0xff]  ;;  %v941_v11 = vld [vmem:[%s8946_s1 + $0x1c00] sm:$0xff] }
  0xe4   :  { %2163 = vmatpush1.msra.mxu1 %v949_v3  ;;  %2093 = vmatprep.subr.mxu0 %v818_v4  ;;  %v938_v12 = vld [vmem:[%s8946_s1 + $0x1be8] sm:$0xff]  ;;  %v937_v14 = vld [vmem:[%s8946_s1 + $0x1be0] sm:$0xff] }
  0xe5   :  { %2164 = vmatprep.subr.mxu1 %v946_v5  ;;  %2094 = vmatpush1.msra.mxu0 %v817_v6  ;;  %v1066_v13 = vld [vmem:[%s8946_s1 + $0x1fe8] sm:$0xff]  ;;  %v1065_v15 = vld [vmem:[%s8946_s1 + $0x1fe0] sm:$0xff] }
  0xe6   :  { %2165 = vmatpush1.msra.mxu1 %v945_v7  ;;  %2095 = vmatprep.subr.mxu0 %v814_v8  ;;  %v934_v16 = vld [vmem:[%s8946_s1 + $0x1bc8] sm:$0xff]  ;;  %v933_v18 = vld [vmem:[%s8946_s1 + $0x1bc0] sm:$0xff] }
  0xe7   :  { %2166 = vmatprep.subr.mxu1 %v942_v9  ;;  %2096 = vmatpush1.msra.mxu0 %v813_v10  ;;  %v1062_v17 = vld [vmem:[%s8946_s1 + $0x1fc8] sm:$0xff]  ;;  %v1061_v19 = vld [vmem:[%s8946_s1 + $0x1fc0] sm:$0xff] }
  0xe8   :  { %2167 = vmatpush1.msra.mxu1 %v941_v11  ;;  %2097 = vmatprep.subr.mxu0 %v938_v12  ;;  %v930_v20 = vld [vmem:[%s8946_s1 + $0x1ba8] sm:$0xff]  ;;  %v929_v22 = vld [vmem:[%s8946_s1 + $0x1ba0] sm:$0xff] }
  0xe9   :  { %2168 = vmatprep.subr.mxu1 %v1066_v13  ;;  %2098 = vmatpush2.msra.mxu0 %v937_v14  ;;  %v1058_v21 = vld [vmem:[%s8946_s1 + $0x1fa8] sm:$0xff]  ;;  %v1057_v23 = vld [vmem:[%s8946_s1 + $0x1fa0] sm:$0xff]  ;;  %v35_v14 = vld [vmem:[%s8947_s0 + $0x78] sm:$0xff] }
  0xea   :  { %2169 = vmatpush2.msra.mxu1 %v1065_v15  ;;  %2099 = vmatprep.subr.mxu0 %v934_v16  ;;  %v926_v24 = vld [vmem:[%s8946_s1 + $0x1b88] sm:$0xff]  ;;  %v925_v26 = vld [vmem:[%s8946_s1 + $0x1b80] sm:$0xff] }
  0xeb   :  { %2170 = vmatprep.subr.mxu1 %v1062_v17  ;;  %2100 = vmatpush2.msra.mxu0 %v933_v18  ;;  %v1054_v25 = vld [vmem:[%s8946_s1 + $0x1f88] sm:$0xff]  ;;  %v1053_v27 = vld [vmem:[%s8946_s1 + $0x1f80] sm:$0xff]  ;;  %v34_v17 = vld [vmem:[%s8947_s0 + $0x70] sm:$0xff] }
  0xec   :  { %2171 = vmatpush2.msra.mxu1 %v1061_v19  ;;  %2101 = vmatprep.subr.mxu0 %v930_v20  ;;  %v922_v28 = vld [vmem:[%s8946_s1 + $0x1b68] sm:$0xff]  ;;  %v921_v30 = vld [vmem:[%s8946_s1 + $0x1b60] sm:$0xff] }
  0xed   :  { %2172 = vmatprep.subr.mxu1 %v1058_v21  ;;  %2102 = vmatpush2.msra.mxu0 %v929_v22  ;;  %v1050_v29 = vld [vmem:[%s8946_s1 + $0x1f68] sm:$0xff]  ;;  %v1049_v31 = vld [vmem:[%s8946_s1 + $0x1f60] sm:$0xff] }
  0xee   :  { %2173 = vmatpush2.msra.mxu1 %v1057_v23  ;;  %2103 = vmatprep.subr.mxu0 %v926_v24  ;;  %v918_v32 = vld [vmem:[%s8946_s1 + $0x1b48] sm:$0xff]  ;;  %v917_v34 = vld [vmem:[%s8946_s1 + $0x1b40] sm:$0xff] }
  0xef   :  { %2174 = vmatprep.subr.mxu1 %v1054_v25  ;;  %2104 = vmatpush2.msra.mxu0 %v925_v26  ;;  %v1046_v33 = vld [vmem:[%s8946_s1 + $0x1f48] sm:$0xff]  ;;  %v1045_v35 = vld [vmem:[%s8946_s1 + $0x1f40] sm:$0xff] }
  0xf0   :  { %2175 = vmatpush2.msra.mxu1 %v1053_v27  ;;  %2105 = vmatprep.subr.mxu0 %v922_v28  ;;  %v914_v36 = vld [vmem:[%s8946_s1 + $0x1b28] sm:$0xff]  ;;  %v913_v38 = vld [vmem:[%s8946_s1 + $0x1b20] sm:$0xff] }
  0xf1   :  { %2176 = vmatprep.subr.mxu1 %v1050_v29  ;;  %2106 = vmatpush2.msra.mxu0 %v921_v30  ;;  %v1042_v37 = vld [vmem:[%s8946_s1 + $0x1f28] sm:$0xff]  ;;  %v1041_v39 = vld [vmem:[%s8946_s1 + $0x1f20] sm:$0xff] }
  0xf2   :  { %2177 = vmatpush2.msra.mxu1 %v1049_v31  ;;  %2107 = vmatprep.subr.mxu0 %v918_v32  ;;  %v910_v40 = vld [vmem:[%s8946_s1 + $0x1b08] sm:$0xff]  ;;  %v909_v42 = vld [vmem:[%s8946_s1 + $0x1b00] sm:$0xff] }
  0xf3   :  { %2178 = vmatprep.subr.mxu1 %v1046_v33  ;;  %2108 = vmatpush2.msra.mxu0 %v917_v34  ;;  %v1038_v41 = vld [vmem:[%s8946_s1 + $0x1f08] sm:$0xff]  ;;  %v1037_v43 = vld [vmem:[%s8946_s1 + $0x1f00] sm:$0xff] }
  0xf4   :  { %2179 = vmatpush2.msra.mxu1 %v1045_v35  ;;  %2109 = vmatprep.subr.mxu0 %v914_v36  ;;  %v906_v44 = vld [vmem:[%s8946_s1 + $0x1ae8] sm:$0xff]  ;;  %v905_v46 = vld [vmem:[%s8946_s1 + $0x1ae0] sm:$0xff] }
  0xf5   :  { %2180 = vmatprep.subr.mxu1 %v1042_v37  ;;  %2110 = vmatpush2.msra.mxu0 %v913_v38  ;;  %v1034_v45 = vld [vmem:[%s8946_s1 + $0x1ee8] sm:$0xff]  ;;  %v1033_v47 = vld [vmem:[%s8946_s1 + $0x1ee0] sm:$0xff] }
  0xf6   :  { %2181 = vmatpush2.msra.mxu1 %v1041_v39  ;;  %2111 = vmatprep.subr.mxu0 %v910_v40  ;;  %v902_v48 = vld [vmem:[%s8946_s1 + $0x1ac8] sm:$0xff]  ;;  %v901_v50 = vld [vmem:[%s8946_s1 + $0x1ac0] sm:$0xff] }
  0xf7   :  { %2182 = vmatprep.subr.mxu1 %v1038_v41  ;;  %2112 = vmatpush2.msra.mxu0 %v909_v42  ;;  %v1030_v49 = vld [vmem:[%s8946_s1 + $0x1ec8] sm:$0xff]  ;;  %v1029_v51 = vld [vmem:[%s8946_s1 + $0x1ec0] sm:$0xff] }
  0xf8   :  { %2183 = vmatpush2.msra.mxu1 %v1037_v43  ;;  %2113 = vmatprep.subr.mxu0 %v906_v44  ;;  %v898_v52 = vld [vmem:[%s8946_s1 + $0x1aa8] sm:$0xff]  ;;  %v897_v54 = vld [vmem:[%s8946_s1 + $0x1aa0] sm:$0xff] }
  0xf9   :  { %2184 = vmatprep.subr.mxu1 %v1034_v45  ;;  %2114 = vmatpush2.msra.mxu0 %v905_v46  ;;  %v1026_v53 = vld [vmem:[%s8946_s1 + $0x1ea8] sm:$0xff]  ;;  %v1025_v55 = vld [vmem:[%s8946_s1 + $0x1ea0] sm:$0xff] }
  0xfa   :  { %2185 = vmatpush2.msra.mxu1 %v1033_v47  ;;  %2115 = vmatprep.subr.mxu0 %v902_v48  ;;  %v894_v56 = vld [vmem:[%s8946_s1 + $0x1a88] sm:$0xff]  ;;  %v893_v58 = vld [vmem:[%s8946_s1 + $0x1a80] sm:$0xff] }
  0xfb   :  { %2186 = vmatprep.subr.mxu1 %v1030_v49  ;;  %2116 = vmatpush2.msra.mxu0 %v901_v50  ;;  %v1022_v57 = vld [vmem:[%s8946_s1 + $0x1e88] sm:$0xff]  ;;  %v1021_v59 = vld [vmem:[%s8946_s1 + $0x1e80] sm:$0xff] }
  0xfc   :  { %2187 = vmatpush2.msra.mxu1 %v1029_v51  ;;  %2117 = vmatprep.subr.mxu0 %v898_v52  ;;  %v890_v60 = vld [vmem:[%s8946_s1 + $0x1a68] sm:$0xff]  ;;  %v889_v62 = vld [vmem:[%s8946_s1 + $0x1a60] sm:$0xff] }
  0xfd   :  { %2188 = vmatprep.subr.mxu1 %v1026_v53  ;;  %2118 = vmatpush2.msra.mxu0 %v897_v54  ;;  %v1018_v61 = vld [vmem:[%s8946_s1 + $0x1e68] sm:$0xff]  ;;  %v1017_v63 = vld [vmem:[%s8946_s1 + $0x1e60] sm:$0xff] }
  0xfe   :  { %2189 = vmatpush2.msra.mxu1 %v1025_v55  ;;  %2119 = vmatprep.subr.mxu0 %v894_v56  ;;  %v886_v0 = vld [vmem:[%s8946_s1 + $0x1a48] sm:$0xff]  ;;  %v885_v2 = vld [vmem:[%s8946_s1 + $0x1a40] sm:$0xff] }
  0xff   :  { %2190 = vmatprep.subr.mxu1 %v1022_v57  ;;  %2120 = vmatpush2.msra.mxu0 %v893_v58  ;;  %v1014_v1 = vld [vmem:[%s8946_s1 + $0x1e48] sm:$0xff]  ;;  %v1013_v3 = vld [vmem:[%s8946_s1 + $0x1e40] sm:$0xff] }
 0x100   :  { %2191 = vmatpush2.msra.mxu1 %v1021_v59  ;;  %2121 = vmatprep.subr.mxu0 %v890_v60  ;;  %v882_v4 = vld [vmem:[%s8946_s1 + $0x1a28] sm:$0xff]  ;;  %v881_v6 = vld [vmem:[%s8946_s1 + $0x1a20] sm:$0xff] }
 0x101   :  { %2192 = vmatprep.subr.mxu1 %v1018_v61  ;;  %2122 = vmatpush2.msra.mxu0 %v889_v62  ;;  %v1010_v5 = vld [vmem:[%s8946_s1 + $0x1e28] sm:$0xff]  ;;  %v1009_v7 = vld [vmem:[%s8946_s1 + $0x1e20] sm:$0xff] }
 0x102   :  { %2193 = vmatpush2.msra.mxu1 %v1017_v63  ;;  %2123 = vmatprep.subr.mxu0 %v886_v0  ;;  %v878_v8 = vld [vmem:[%s8946_s1 + $0x1a08] sm:$0xff]  ;;  %v877_v10 = vld [vmem:[%s8946_s1 + $0x1a00] sm:$0xff] }
 0x103   :  { %2194 = vmatprep.subr.mxu1 %v1014_v1  ;;  %2124 = vmatpush2.msra.mxu0 %v885_v2  ;;  %v1006_v9 = vld [vmem:[%s8946_s1 + $0x1e08] sm:$0xff]  ;;  %v1005_v12 = vld [vmem:[%s8946_s1 + $0x1e00] sm:$0xff] }
 0x104   :  { %2195 = vmatpush2.msra.mxu1 %v1013_v3  ;;  %2125 = vmatprep.subr.mxu0 %v882_v4  ;;  %v33_v11 = vld [vmem:[%s8947_s0 + $0x68] sm:$0xff]  ;;  %v32_v13 = vld [vmem:[%s8947_s0 + $0x60] sm:$0xff] }
 0x105   :  { %2196 = vmatprep.subr.mxu1 %v1010_v5  ;;  %2126 = vmatpush2.msra.mxu0 %v881_v6  ;;  %v1130_v15 = vld [vmem:[%s8946_s1 + $0x21e8] sm:$0xff]  ;;  %v1129_v18 = vld [vmem:[%s8946_s1 + $0x21e0] sm:$0xff] }
 0x106   :  { %2197 = vmatpush2.msra.mxu1 %v1009_v7  ;;  %2127 = vmatprep.subr.mxu0 %v878_v8  ;;  %v1258_v16 = vld [vmem:[%s8946_s1 + $0x25e8] sm:$0xff]  ;;  %v1257_v19 = vld [vmem:[%s8946_s1 + $0x25e0] sm:$0xff] }
 0x107   :  { %2198 = vmatprep.subr.mxu1 %v1006_v9  ;;  %2128 = vmatpush2.msra.mxu0 %v877_v10  ;;  %v1126_v20 = vld [vmem:[%s8946_s1 + $0x21c8] sm:$0xff]  ;;  %v1125_v22 = vld [vmem:[%s8946_s1 + $0x21c0] sm:$0xff] }
 0x108   :  { %2129 = vmatprep.mubr.f32.mxu0 %v33_v11  ;;  %2199 = vmatpush2.msra.mxu1 %v1005_v12  ;;  %v1254_v21 = vld [vmem:[%s8946_s1 + $0x25c8] sm:$0xff]  ;;  %v1253_v23 = vld [vmem:[%s8946_s1 + $0x25c0] sm:$0xff] }
 0x109   :  { %2130 = vmatmul.mubr.f32.vlgmr.msra.gmra.mxu0 %v32_v13  ;;  %2200 = vmatprep.mubr.f32.mxu1 %v35_v14  ;;  %v1122_v24 = vld [vmem:[%s8946_s1 + $0x21a8] sm:$0xff]  ;;  %v1121_v26 = vld [vmem:[%s8946_s1 + $0x21a0] sm:$0xff] }
 0x10a   :  { %2207 = vmatprep.subr.mxu0 %v1130_v15  ;;  %2278 = vmatprep.subr.mxu1 %v1258_v16  ;;  %v1250_v25 = vld [vmem:[%s8946_s1 + $0x25a8] sm:$0xff]  ;;  %v1249_v27 = vld [vmem:[%s8946_s1 + $0x25a0] sm:$0xff] }
 0x10b   :  { %2201 = vmatmul.mubr.f32.vlgmr.msra.gmra.mxu1 %v34_v17  ;;  %2208 = vmatpush1.msra.mxu0 %v1129_v18  ;;  %v1118_v28 = vld [vmem:[%s8946_s1 + $0x2188] sm:$0xff]  ;;  %v1117_v30 = vld [vmem:[%s8946_s1 + $0x2180] sm:$0xff] }
 0x10c   :  { %2279 = vmatpush1.msra.mxu1 %v1257_v19  ;;  %2209 = vmatprep.subr.mxu0 %v1126_v20  ;;  %v1246_v29 = vld [vmem:[%s8946_s1 + $0x2588] sm:$0xff]  ;;  %v1245_v31 = vld [vmem:[%s8946_s1 + $0x2580] sm:$0xff] }
 0x10d   :  { %2280 = vmatprep.subr.mxu1 %v1254_v21  ;;  %2210 = vmatpush1.msra.mxu0 %v1125_v22  ;;  %v1114_v32 = vld [vmem:[%s8946_s1 + $0x2168] sm:$0xff]  ;;  %v1113_v34 = vld [vmem:[%s8946_s1 + $0x2160] sm:$0xff] }
 0x10e   :  { %2281 = vmatpush1.msra.mxu1 %v1253_v23  ;;  %2211 = vmatprep.subr.mxu0 %v1122_v24  ;;  %v1242_v33 = vld [vmem:[%s8946_s1 + $0x2568] sm:$0xff]  ;;  %v1241_v35 = vld [vmem:[%s8946_s1 + $0x2560] sm:$0xff] }
 0x10f   :  { %2282 = vmatprep.subr.mxu1 %v1250_v25  ;;  %2212 = vmatpush1.msra.mxu0 %v1121_v26  ;;  %v1110_v36 = vld [vmem:[%s8946_s1 + $0x2148] sm:$0xff]  ;;  %v1109_v38 = vld [vmem:[%s8946_s1 + $0x2140] sm:$0xff] }
 0x110   :  { %2283 = vmatpush1.msra.mxu1 %v1249_v27  ;;  %2213 = vmatprep.subr.mxu0 %v1118_v28  ;;  %v1238_v37 = vld [vmem:[%s8946_s1 + $0x2548] sm:$0xff]  ;;  %v1237_v39 = vld [vmem:[%s8946_s1 + $0x2540] sm:$0xff] }
 0x111   :  { %2284 = vmatprep.subr.mxu1 %v1246_v29  ;;  %2214 = vmatpush1.msra.mxu0 %v1117_v30  ;;  %v1106_v40 = vld [vmem:[%s8946_s1 + $0x2128] sm:$0xff]  ;;  %v1105_v42 = vld [vmem:[%s8946_s1 + $0x2120] sm:$0xff] }
 0x112   :  { %2285 = vmatpush1.msra.mxu1 %v1245_v31  ;;  %2215 = vmatprep.subr.mxu0 %v1114_v32  ;;  %v1234_v41 = vld [vmem:[%s8946_s1 + $0x2528] sm:$0xff]  ;;  %v1233_v43 = vld [vmem:[%s8946_s1 + $0x2520] sm:$0xff] }
 0x113   :  { %2286 = vmatprep.subr.mxu1 %v1242_v33  ;;  %2216 = vmatpush1.msra.mxu0 %v1113_v34  ;;  %v1102_v44 = vld [vmem:[%s8946_s1 + $0x2108] sm:$0xff]  ;;  %v1101_v46 = vld [vmem:[%s8946_s1 + $0x2100] sm:$0xff] }
 0x114   :  { %2287 = vmatpush1.msra.mxu1 %v1241_v35  ;;  %2217 = vmatprep.subr.mxu0 %v1110_v36  ;;  %v1230_v45 = vld [vmem:[%s8946_s1 + $0x2508] sm:$0xff]  ;;  %v1229_v47 = vld [vmem:[%s8946_s1 + $0x2500] sm:$0xff] }
 0x115   :  { %2288 = vmatprep.subr.mxu1 %v1238_v37  ;;  %2218 = vmatpush1.msra.mxu0 %v1109_v38  ;;  %v1098_v48 = vld [vmem:[%s8946_s1 + $0x20e8] sm:$0xff]  ;;  %v1097_v50 = vld [vmem:[%s8946_s1 + $0x20e0] sm:$0xff] }
 0x116   :  { %2289 = vmatpush1.msra.mxu1 %v1237_v39  ;;  %2219 = vmatprep.subr.mxu0 %v1106_v40  ;;  %v1226_v49 = vld [vmem:[%s8946_s1 + $0x24e8] sm:$0xff]  ;;  %v1225_v51 = vld [vmem:[%s8946_s1 + $0x24e0] sm:$0xff] }
 0x117   :  { %2290 = vmatprep.subr.mxu1 %v1234_v41  ;;  %2220 = vmatpush1.msra.mxu0 %v1105_v42  ;;  %v1094_v52 = vld [vmem:[%s8946_s1 + $0x20c8] sm:$0xff]  ;;  %v1093_v54 = vld [vmem:[%s8946_s1 + $0x20c0] sm:$0xff] }
 0x118   :  { %2291 = vmatpush1.msra.mxu1 %v1233_v43  ;;  %2221 = vmatprep.subr.mxu0 %v1102_v44  ;;  %v1222_v53 = vld [vmem:[%s8946_s1 + $0x24c8] sm:$0xff]  ;;  %v1221_v55 = vld [vmem:[%s8946_s1 + $0x24c0] sm:$0xff] }
 0x119   :  { %2292 = vmatprep.subr.mxu1 %v1230_v45  ;;  %2222 = vmatpush1.msra.mxu0 %v1101_v46  ;;  %v1090_v56 = vld [vmem:[%s8946_s1 + $0x20a8] sm:$0xff]  ;;  %v1089_v58 = vld [vmem:[%s8946_s1 + $0x20a0] sm:$0xff] }
 0x11a   :  { %2293 = vmatpush1.msra.mxu1 %v1229_v47  ;;  %2223 = vmatprep.subr.mxu0 %v1098_v48  ;;  %v1218_v57 = vld [vmem:[%s8946_s1 + $0x24a8] sm:$0xff]  ;;  %v1217_v59 = vld [vmem:[%s8946_s1 + $0x24a0] sm:$0xff] }
 0x11b   :  { %2294 = vmatprep.subr.mxu1 %v1226_v49  ;;  %2224 = vmatpush1.msra.mxu0 %v1097_v50  ;;  %v1086_v60 = vld [vmem:[%s8946_s1 + $0x2088] sm:$0xff]  ;;  %v1085_v62 = vld [vmem:[%s8946_s1 + $0x2080] sm:$0xff] }
 0x11c   :  { %2295 = vmatpush1.msra.mxu1 %v1225_v51  ;;  %2225 = vmatprep.subr.mxu0 %v1094_v52  ;;  %v1214_v61 = vld [vmem:[%s8946_s1 + $0x2488] sm:$0xff]  ;;  %v1213_v63 = vld [vmem:[%s8946_s1 + $0x2480] sm:$0xff] }
 0x11d   :  { %2296 = vmatprep.subr.mxu1 %v1222_v53  ;;  %2226 = vmatpush1.msra.mxu0 %v1093_v54  ;;  %v1082_v0 = vld [vmem:[%s8946_s1 + $0x2068] sm:$0xff]  ;;  %v1081_v2 = vld [vmem:[%s8946_s1 + $0x2060] sm:$0xff] }
 0x11e   :  { %2297 = vmatpush1.msra.mxu1 %v1221_v55  ;;  %2227 = vmatprep.subr.mxu0 %v1090_v56  ;;  %v1210_v1 = vld [vmem:[%s8946_s1 + $0x2468] sm:$0xff]  ;;  %v1209_v3 = vld [vmem:[%s8946_s1 + $0x2460] sm:$0xff] }
 0x11f   :  { %2298 = vmatprep.subr.mxu1 %v1218_v57  ;;  %2228 = vmatpush1.msra.mxu0 %v1089_v58  ;;  %v1078_v4 = vld [vmem:[%s8946_s1 + $0x2048] sm:$0xff]  ;;  %v1077_v6 = vld [vmem:[%s8946_s1 + $0x2040] sm:$0xff] }
 0x120   :  { %2299 = vmatpush1.msra.mxu1 %v1217_v59  ;;  %2229 = vmatprep.subr.mxu0 %v1086_v60  ;;  %v1206_v5 = vld [vmem:[%s8946_s1 + $0x2448] sm:$0xff]  ;;  %v1205_v7 = vld [vmem:[%s8946_s1 + $0x2440] sm:$0xff] }
 0x121   :  { %2300 = vmatprep.subr.mxu1 %v1214_v61  ;;  %2230 = vmatpush1.msra.mxu0 %v1085_v62  ;;  %v1074_v8 = vld [vmem:[%s8946_s1 + $0x2028] sm:$0xff]  ;;  %v1073_v10 = vld [vmem:[%s8946_s1 + $0x2020] sm:$0xff] }
 0x122   :  { %2301 = vmatpush1.msra.mxu1 %v1213_v63  ;;  %2231 = vmatprep.subr.mxu0 %v1082_v0  ;;  %v1202_v9 = vld [vmem:[%s8946_s1 + $0x2428] sm:$0xff]  ;;  %v1201_v11 = vld [vmem:[%s8946_s1 + $0x2420] sm:$0xff] }
 0x123   :  { %2302 = vmatprep.subr.mxu1 %v1210_v1  ;;  %2232 = vmatpush1.msra.mxu0 %v1081_v2  ;;  %v1070_v12 = vld [vmem:[%s8946_s1 + $0x2008] sm:$0xff]  ;;  %v1069_v14 = vld [vmem:[%s8946_s1 + $0x2000] sm:$0xff] }
 0x124   :  { %2303 = vmatpush1.msra.mxu1 %v1209_v3  ;;  %2233 = vmatprep.subr.mxu0 %v1078_v4  ;;  %v1198_v13 = vld [vmem:[%s8946_s1 + $0x2408] sm:$0xff]  ;;  %v1197_v15 = vld [vmem:[%s8946_s1 + $0x2400] sm:$0xff] }
 0x125   :  { %2304 = vmatprep.subr.mxu1 %v1206_v5  ;;  %2234 = vmatpush1.msra.mxu0 %v1077_v6  ;;  %v1194_v16 = vld [vmem:[%s8946_s1 + $0x23e8] sm:$0xff]  ;;  %v1193_v18 = vld [vmem:[%s8946_s1 + $0x23e0] sm:$0xff] }
 0x126   :  { %2305 = vmatpush1.msra.mxu1 %v1205_v7  ;;  %2235 = vmatprep.subr.mxu0 %v1074_v8  ;;  %v1322_v17 = vld [vmem:[%s8946_s1 + $0x27e8] sm:$0xff]  ;;  %v1321_v19 = vld [vmem:[%s8946_s1 + $0x27e0] sm:$0xff] }
 0x127   :  { %2306 = vmatprep.subr.mxu1 %v1202_v9  ;;  %2236 = vmatpush1.msra.mxu0 %v1073_v10  ;;  %v1190_v20 = vld [vmem:[%s8946_s1 + $0x23c8] sm:$0xff]  ;;  %v1189_v22 = vld [vmem:[%s8946_s1 + $0x23c0] sm:$0xff] }
 0x128   :  { %2307 = vmatpush1.msra.mxu1 %v1201_v11  ;;  %2237 = vmatprep.subr.mxu0 %v1070_v12  ;;  %v1318_v21 = vld [vmem:[%s8946_s1 + $0x27c8] sm:$0xff]  ;;  %v1317_v23 = vld [vmem:[%s8946_s1 + $0x27c0] sm:$0xff] }
 0x129   :  { %2308 = vmatprep.subr.mxu1 %v1198_v13  ;;  %2238 = vmatpush1.msra.mxu0 %v1069_v14  ;;  %v1186_v24 = vld [vmem:[%s8946_s1 + $0x23a8] sm:$0xff]  ;;  %v1185_v26 = vld [vmem:[%s8946_s1 + $0x23a0] sm:$0xff] }
 0x12a   :  { %2309 = vmatpush1.msra.mxu1 %v1197_v15  ;;  %2239 = vmatprep.subr.mxu0 %v1194_v16  ;;  %v1314_v25 = vld [vmem:[%s8946_s1 + $0x27a8] sm:$0xff]  ;;  %v1313_v27 = vld [vmem:[%s8946_s1 + $0x27a0] sm:$0xff] }
 0x12b   :  { %2310 = vmatprep.subr.mxu1 %v1322_v17  ;;  %2240 = vmatpush2.msra.mxu0 %v1193_v18  ;;  %v1182_v28 = vld [vmem:[%s8946_s1 + $0x2388] sm:$0xff]  ;;  %v1181_v30 = vld [vmem:[%s8946_s1 + $0x2380] sm:$0xff]  ;;  %v39_v18 = vld [vmem:[%s8947_s0 + $0x98] sm:$0xff] }
 0x12c   :  { %2311 = vmatpush2.msra.mxu1 %v1321_v19  ;;  %2241 = vmatprep.subr.mxu0 %v1190_v20  ;;  %v1310_v29 = vld [vmem:[%s8946_s1 + $0x2788] sm:$0xff]  ;;  %v1309_v31 = vld [vmem:[%s8946_s1 + $0x2780] sm:$0xff] }
 0x12d   :  { %2312 = vmatprep.subr.mxu1 %v1318_v21  ;;  %2242 = vmatpush2.msra.mxu0 %v1189_v22  ;;  %v1178_v32 = vld [vmem:[%s8946_s1 + $0x2368] sm:$0xff]  ;;  %v1177_v34 = vld [vmem:[%s8946_s1 + $0x2360] sm:$0xff]  ;;  %v38_v21 = vld [vmem:[%s8947_s0 + $0x90] sm:$0xff] }
 0x12e   :  { %2313 = vmatpush2.msra.mxu1 %v1317_v23  ;;  %2243 = vmatprep.subr.mxu0 %v1186_v24  ;;  %v1306_v33 = vld [vmem:[%s8946_s1 + $0x2768] sm:$0xff]  ;;  %v1305_v35 = vld [vmem:[%s8946_s1 + $0x2760] sm:$0xff] }
 0x12f   :  { %2314 = vmatprep.subr.mxu1 %v1314_v25  ;;  %2244 = vmatpush2.msra.mxu0 %v1185_v26  ;;  %v1174_v36 = vld [vmem:[%s8946_s1 + $0x2348] sm:$0xff]  ;;  %v1173_v38 = vld [vmem:[%s8946_s1 + $0x2340] sm:$0xff] }
 0x130   :  { %2315 = vmatpush2.msra.mxu1 %v1313_v27  ;;  %2245 = vmatprep.subr.mxu0 %v1182_v28  ;;  %v1302_v37 = vld [vmem:[%s8946_s1 + $0x2748] sm:$0xff]  ;;  %v1301_v39 = vld [vmem:[%s8946_s1 + $0x2740] sm:$0xff] }
 0x131   :  { %2316 = vmatprep.subr.mxu1 %v1310_v29  ;;  %2246 = vmatpush2.msra.mxu0 %v1181_v30  ;;  %v1170_v40 = vld [vmem:[%s8946_s1 + $0x2328] sm:$0xff]  ;;  %v1169_v42 = vld [vmem:[%s8946_s1 + $0x2320] sm:$0xff] }
 0x132   :  { %2317 = vmatpush2.msra.mxu1 %v1309_v31  ;;  %2247 = vmatprep.subr.mxu0 %v1178_v32  ;;  %v1298_v41 = vld [vmem:[%s8946_s1 + $0x2728] sm:$0xff]  ;;  %v1297_v43 = vld [vmem:[%s8946_s1 + $0x2720] sm:$0xff] }
 0x133   :  { %2318 = vmatprep.subr.mxu1 %v1306_v33  ;;  %2248 = vmatpush2.msra.mxu0 %v1177_v34  ;;  %v1166_v44 = vld [vmem:[%s8946_s1 + $0x2308] sm:$0xff]  ;;  %v1165_v46 = vld [vmem:[%s8946_s1 + $0x2300] sm:$0xff] }
 0x134   :  { %2319 = vmatpush2.msra.mxu1 %v1305_v35  ;;  %2249 = vmatprep.subr.mxu0 %v1174_v36  ;;  %v1294_v45 = vld [vmem:[%s8946_s1 + $0x2708] sm:$0xff]  ;;  %v1293_v47 = vld [vmem:[%s8946_s1 + $0x2700] sm:$0xff] }
 0x135   :  { %2320 = vmatprep.subr.mxu1 %v1302_v37  ;;  %2250 = vmatpush2.msra.mxu0 %v1173_v38  ;;  %v1162_v48 = vld [vmem:[%s8946_s1 + $0x22e8] sm:$0xff]  ;;  %v1161_v50 = vld [vmem:[%s8946_s1 + $0x22e0] sm:$0xff] }
 0x136   :  { %2321 = vmatpush2.msra.mxu1 %v1301_v39  ;;  %2251 = vmatprep.subr.mxu0 %v1170_v40  ;;  %v1290_v49 = vld [vmem:[%s8946_s1 + $0x26e8] sm:$0xff]  ;;  %v1289_v51 = vld [vmem:[%s8946_s1 + $0x26e0] sm:$0xff] }
 0x137   :  { %2322 = vmatprep.subr.mxu1 %v1298_v41  ;;  %2252 = vmatpush2.msra.mxu0 %v1169_v42  ;;  %v1158_v52 = vld [vmem:[%s8946_s1 + $0x22c8] sm:$0xff]  ;;  %v1157_v54 = vld [vmem:[%s8946_s1 + $0x22c0] sm:$0xff] }
 0x138   :  { %2323 = vmatpush2.msra.mxu1 %v1297_v43  ;;  %2253 = vmatprep.subr.mxu0 %v1166_v44  ;;  %v1286_v53 = vld [vmem:[%s8946_s1 + $0x26c8] sm:$0xff]  ;;  %v1285_v55 = vld [vmem:[%s8946_s1 + $0x26c0] sm:$0xff] }
 0x139   :  { %2324 = vmatprep.subr.mxu1 %v1294_v45  ;;  %2254 = vmatpush2.msra.mxu0 %v1165_v46  ;;  %v1154_v56 = vld [vmem:[%s8946_s1 + $0x22a8] sm:$0xff]  ;;  %v1153_v58 = vld [vmem:[%s8946_s1 + $0x22a0] sm:$0xff] }
 0x13a   :  { %2325 = vmatpush2.msra.mxu1 %v1293_v47  ;;  %2255 = vmatprep.subr.mxu0 %v1162_v48  ;;  %v1282_v57 = vld [vmem:[%s8946_s1 + $0x26a8] sm:$0xff]  ;;  %v1281_v59 = vld [vmem:[%s8946_s1 + $0x26a0] sm:$0xff] }
 0x13b   :  { %2326 = vmatprep.subr.mxu1 %v1290_v49  ;;  %2256 = vmatpush2.msra.mxu0 %v1161_v50  ;;  %v1150_v60 = vld [vmem:[%s8946_s1 + $0x2288] sm:$0xff]  ;;  %v1149_v62 = vld [vmem:[%s8946_s1 + $0x2280] sm:$0xff] }
 0x13c   :  { %2327 = vmatpush2.msra.mxu1 %v1289_v51  ;;  %2257 = vmatprep.subr.mxu0 %v1158_v52  ;;  %v1278_v61 = vld [vmem:[%s8946_s1 + $0x2688] sm:$0xff]  ;;  %v1277_v63 = vld [vmem:[%s8946_s1 + $0x2680] sm:$0xff] }
 0x13d   :  { %2328 = vmatprep.subr.mxu1 %v1286_v53  ;;  %2258 = vmatpush2.msra.mxu0 %v1157_v54  ;;  %v1146_v0 = vld [vmem:[%s8946_s1 + $0x2268] sm:$0xff]  ;;  %v1145_v2 = vld [vmem:[%s8946_s1 + $0x2260] sm:$0xff] }
 0x13e   :  { %2329 = vmatpush2.msra.mxu1 %v1285_v55  ;;  %2259 = vmatprep.subr.mxu0 %v1154_v56  ;;  %v1274_v1 = vld [vmem:[%s8946_s1 + $0x2668] sm:$0xff]  ;;  %v1273_v3 = vld [vmem:[%s8946_s1 + $0x2660] sm:$0xff] }
 0x13f   :  { %2330 = vmatprep.subr.mxu1 %v1282_v57  ;;  %2260 = vmatpush2.msra.mxu0 %v1153_v58  ;;  %v1142_v4 = vld [vmem:[%s8946_s1 + $0x2248] sm:$0xff]  ;;  %v1141_v6 = vld [vmem:[%s8946_s1 + $0x2240] sm:$0xff] }
 0x140   :  { %2331 = vmatpush2.msra.mxu1 %v1281_v59  ;;  %2261 = vmatprep.subr.mxu0 %v1150_v60  ;;  %v1270_v5 = vld [vmem:[%s8946_s1 + $0x2648] sm:$0xff]  ;;  %v1269_v7 = vld [vmem:[%s8946_s1 + $0x2640] sm:$0xff] }
 0x141   :  { %2332 = vmatprep.subr.mxu1 %v1278_v61  ;;  %2262 = vmatpush2.msra.mxu0 %v1149_v62  ;;  %v1138_v8 = vld [vmem:[%s8946_s1 + $0x2228] sm:$0xff]  ;;  %v1137_v10 = vld [vmem:[%s8946_s1 + $0x2220] sm:$0xff] }
 0x142   :  { %2333 = vmatpush2.msra.mxu1 %v1277_v63  ;;  %2263 = vmatprep.subr.mxu0 %v1146_v0  ;;  %v1266_v9 = vld [vmem:[%s8946_s1 + $0x2628] sm:$0xff]  ;;  %v1265_v11 = vld [vmem:[%s8946_s1 + $0x2620] sm:$0xff] }
 0x143   :  { %2334 = vmatprep.subr.mxu1 %v1274_v1  ;;  %2264 = vmatpush2.msra.mxu0 %v1145_v2  ;;  %v1134_v12 = vld [vmem:[%s8946_s1 + $0x2208] sm:$0xff]  ;;  %v1133_v14 = vld [vmem:[%s8946_s1 + $0x2200] sm:$0xff] }
 0x144   :  { %2335 = vmatpush2.msra.mxu1 %v1273_v3  ;;  %2265 = vmatprep.subr.mxu0 %v1142_v4  ;;  %v1262_v13 = vld [vmem:[%s8946_s1 + $0x2608] sm:$0xff]  ;;  %v1261_v16 = vld [vmem:[%s8946_s1 + $0x2600] sm:$0xff] }
 0x145   :  { %2336 = vmatprep.subr.mxu1 %v1270_v5  ;;  %2266 = vmatpush2.msra.mxu0 %v1141_v6  ;;  %v37_v15 = vld [vmem:[%s8947_s0 + $0x88] sm:$0xff]  ;;  %v36_v17 = vld [vmem:[%s8947_s0 + $0x80] sm:$0xff] }
 0x146   :  { %2337 = vmatpush2.msra.mxu1 %v1269_v7  ;;  %2267 = vmatprep.subr.mxu0 %v1138_v8  ;;  %v1386_v19 = vld [vmem:[%s8946_s1 + $0x29e8] sm:$0xff]  ;;  %v1385_v22 = vld [vmem:[%s8946_s1 + $0x29e0] sm:$0xff] }
 0x147   :  { %2338 = vmatprep.subr.mxu1 %v1266_v9  ;;  %2268 = vmatpush2.msra.mxu0 %v1137_v10  ;;  %v1514_v20 = vld [vmem:[%s8946_s1 + $0x2de8] sm:$0xff]  ;;  %v1513_v23 = vld [vmem:[%s8946_s1 + $0x2de0] sm:$0xff] }
 0x148   :  { %2339 = vmatpush2.msra.mxu1 %v1265_v11  ;;  %2269 = vmatprep.subr.mxu0 %v1134_v12  ;;  %v1382_v24 = vld [vmem:[%s8946_s1 + $0x29c8] sm:$0xff]  ;;  %v1381_v26 = vld [vmem:[%s8946_s1 + $0x29c0] sm:$0xff] }
 0x149   :  { %2340 = vmatprep.subr.mxu1 %v1262_v13  ;;  %2270 = vmatpush2.msra.mxu0 %v1133_v14  ;;  %v1510_v25 = vld [vmem:[%s8946_s1 + $0x2dc8] sm:$0xff]  ;;  %v1509_v27 = vld [vmem:[%s8946_s1 + $0x2dc0] sm:$0xff] }
 0x14a   :  { %2271 = vmatprep.mubr.f32.mxu0 %v37_v15  ;;  %2341 = vmatpush2.msra.mxu1 %v1261_v16  ;;  %v1378_v28 = vld [vmem:[%s8946_s1 + $0x29a8] sm:$0xff]  ;;  %v1377_v30 = vld [vmem:[%s8946_s1 + $0x29a0] sm:$0xff] }
 0x14b   :  { %2272 = vmatmul.mubr.f32.vlgmr.msra.gmra.mxu0 %v36_v17  ;;  %2342 = vmatprep.mubr.f32.mxu1 %v39_v18  ;;  %v1506_v29 = vld [vmem:[%s8946_s1 + $0x2da8] sm:$0xff]  ;;  %v1505_v31 = vld [vmem:[%s8946_s1 + $0x2da0] sm:$0xff] }
 0x14c   :  { %2349 = vmatprep.subr.mxu0 %v1386_v19  ;;  %2420 = vmatprep.subr.mxu1 %v1514_v20  ;;  %v1374_v32 = vld [vmem:[%s8946_s1 + $0x2988] sm:$0xff]  ;;  %v1373_v34 = vld [vmem:[%s8946_s1 + $0x2980] sm:$0xff] }
 0x14d   :  { %2343 = vmatmul.mubr.f32.vlgmr.msra.gmra.mxu1 %v38_v21  ;;  %2350 = vmatpush1.msra.mxu0 %v1385_v22  ;;  %v1502_v33 = vld [vmem:[%s8946_s1 + $0x2d88] sm:$0xff]  ;;  %v1501_v35 = vld [vmem:[%s8946_s1 + $0x2d80] sm:$0xff] }
 0x14e   :  { %2421 = vmatpush1.msra.mxu1 %v1513_v23  ;;  %2351 = vmatprep.subr.mxu0 %v1382_v24  ;;  %v1370_v36 = vld [vmem:[%s8946_s1 + $0x2968] sm:$0xff]  ;;  %v1369_v38 = vld [vmem:[%s8946_s1 + $0x2960] sm:$0xff] }
 0x14f   :  { %2422 = vmatprep.subr.mxu1 %v1510_v25  ;;  %2352 = vmatpush1.msra.mxu0 %v1381_v26  ;;  %v1498_v37 = vld [vmem:[%s8946_s1 + $0x2d68] sm:$0xff]  ;;  %v1497_v39 = vld [vmem:[%s8946_s1 + $0x2d60] sm:$0xff] }
 0x150   :  { %2423 = vmatpush1.msra.mxu1 %v1509_v27  ;;  %2353 = vmatprep.subr.mxu0 %v1378_v28  ;;  %v1366_v40 = vld [vmem:[%s8946_s1 + $0x2948] sm:$0xff]  ;;  %v1365_v42 = vld [vmem:[%s8946_s1 + $0x2940] sm:$0xff] }
 0x151   :  { %2424 = vmatprep.subr.mxu1 %v1506_v29  ;;  %2354 = vmatpush1.msra.mxu0 %v1377_v30  ;;  %v1494_v41 = vld [vmem:[%s8946_s1 + $0x2d48] sm:$0xff]  ;;  %v1493_v43 = vld [vmem:[%s8946_s1 + $0x2d40] sm:$0xff] }
 0x152   :  { %2425 = vmatpush1.msra.mxu1 %v1505_v31  ;;  %2355 = vmatprep.subr.mxu0 %v1374_v32  ;;  %v1362_v44 = vld [vmem:[%s8946_s1 + $0x2928] sm:$0xff]  ;;  %v1361_v46 = vld [vmem:[%s8946_s1 + $0x2920] sm:$0xff] }
 0x153   :  { %2426 = vmatprep.subr.mxu1 %v1502_v33  ;;  %2356 = vmatpush1.msra.mxu0 %v1373_v34  ;;  %v1490_v45 = vld [vmem:[%s8946_s1 + $0x2d28] sm:$0xff]  ;;  %v1489_v47 = vld [vmem:[%s8946_s1 + $0x2d20] sm:$0xff] }
 0x154   :  { %2427 = vmatpush1.msra.mxu1 %v1501_v35  ;;  %2357 = vmatprep.subr.mxu0 %v1370_v36  ;;  %v1358_v48 = vld [vmem:[%s8946_s1 + $0x2908] sm:$0xff]  ;;  %v1357_v50 = vld [vmem:[%s8946_s1 + $0x2900] sm:$0xff] }
 0x155   :  { %2428 = vmatprep.subr.mxu1 %v1498_v37  ;;  %2358 = vmatpush1.msra.mxu0 %v1369_v38  ;;  %v1486_v49 = vld [vmem:[%s8946_s1 + $0x2d08] sm:$0xff]  ;;  %v1485_v51 = vld [vmem:[%s8946_s1 + $0x2d00] sm:$0xff] }
 0x156   :  { %2429 = vmatpush1.msra.mxu1 %v1497_v39  ;;  %2359 = vmatprep.subr.mxu0 %v1366_v40  ;;  %v1354_v52 = vld [vmem:[%s8946_s1 + $0x28e8] sm:$0xff]  ;;  %v1353_v54 = vld [vmem:[%s8946_s1 + $0x28e0] sm:$0xff] }
 0x157   :  { %2430 = vmatprep.subr.mxu1 %v1494_v41  ;;  %2360 = vmatpush1.msra.mxu0 %v1365_v42  ;;  %v1482_v53 = vld [vmem:[%s8946_s1 + $0x2ce8] sm:$0xff]  ;;  %v1481_v55 = vld [vmem:[%s8946_s1 + $0x2ce0] sm:$0xff] }
 0x158   :  { %2431 = vmatpush1.msra.mxu1 %v1493_v43  ;;  %2361 = vmatprep.subr.mxu0 %v1362_v44  ;;  %v1350_v56 = vld [vmem:[%s8946_s1 + $0x28c8] sm:$0xff]  ;;  %v1349_v58 = vld [vmem:[%s8946_s1 + $0x28c0] sm:$0xff] }
 0x159   :  { %2432 = vmatprep.subr.mxu1 %v1490_v45  ;;  %2362 = vmatpush1.msra.mxu0 %v1361_v46  ;;  %v1478_v57 = vld [vmem:[%s8946_s1 + $0x2cc8] sm:$0xff]  ;;  %v1477_v59 = vld [vmem:[%s8946_s1 + $0x2cc0] sm:$0xff] }
 0x15a   :  { %2433 = vmatpush1.msra.mxu1 %v1489_v47  ;;  %2363 = vmatprep.subr.mxu0 %v1358_v48  ;;  %v1346_v60 = vld [vmem:[%s8946_s1 + $0x28a8] sm:$0xff]  ;;  %v1345_v62 = vld [vmem:[%s8946_s1 + $0x28a0] sm:$0xff] }
 0x15b   :  { %2434 = vmatprep.subr.mxu1 %v1486_v49  ;;  %2364 = vmatpush1.msra.mxu0 %v1357_v50  ;;  %v1474_v61 = vld [vmem:[%s8946_s1 + $0x2ca8] sm:$0xff]  ;;  %v1473_v63 = vld [vmem:[%s8946_s1 + $0x2ca0] sm:$0xff] }
 0x15c   :  { %2435 = vmatpush1.msra.mxu1 %v1485_v51  ;;  %2365 = vmatprep.subr.mxu0 %v1354_v52  ;;  %v1342_v0 = vld [vmem:[%s8946_s1 + $0x2888] sm:$0xff]  ;;  %v1341_v2 = vld [vmem:[%s8946_s1 + $0x2880] sm:$0xff] }
 0x15d   :  { %2436 = vmatprep.subr.mxu1 %v1482_v53  ;;  %2366 = vmatpush1.msra.mxu0 %v1353_v54  ;;  %v1470_v1 = vld [vmem:[%s8946_s1 + $0x2c88] sm:$0xff]  ;;  %v1469_v3 = vld [vmem:[%s8946_s1 + $0x2c80] sm:$0xff] }
 0x15e   :  { %2437 = vmatpush1.msra.mxu1 %v1481_v55  ;;  %2367 = vmatprep.subr.mxu0 %v1350_v56  ;;  %v1338_v4 = vld [vmem:[%s8946_s1 + $0x2868] sm:$0xff]  ;;  %v1337_v6 = vld [vmem:[%s8946_s1 + $0x2860] sm:$0xff] }
 0x15f   :  { %2438 = vmatprep.subr.mxu1 %v1478_v57  ;;  %2368 = vmatpush1.msra.mxu0 %v1349_v58  ;;  %v1466_v5 = vld [vmem:[%s8946_s1 + $0x2c68] sm:$0xff]  ;;  %v1465_v7 = vld [vmem:[%s8946_s1 + $0x2c60] sm:$0xff] }
 0x160   :  { %2439 = vmatpush1.msra.mxu1 %v1477_v59  ;;  %2369 = vmatprep.subr.mxu0 %v1346_v60  ;;  %v1334_v8 = vld [vmem:[%s8946_s1 + $0x2848] sm:$0xff]  ;;  %v1333_v10 = vld [vmem:[%s8946_s1 + $0x2840] sm:$0xff] }
 0x161   :  { %2440 = vmatprep.subr.mxu1 %v1474_v61  ;;  %2370 = vmatpush1.msra.mxu0 %v1345_v62  ;;  %v1462_v9 = vld [vmem:[%s8946_s1 + $0x2c48] sm:$0xff]  ;;  %v1461_v11 = vld [vmem:[%s8946_s1 + $0x2c40] sm:$0xff] }
 0x162   :  { %2441 = vmatpush1.msra.mxu1 %v1473_v63  ;;  %2371 = vmatprep.subr.mxu0 %v1342_v0  ;;  %v1330_v12 = vld [vmem:[%s8946_s1 + $0x2828] sm:$0xff]  ;;  %v1329_v14 = vld [vmem:[%s8946_s1 + $0x2820] sm:$0xff] }
 0x163   :  { %2442 = vmatprep.subr.mxu1 %v1470_v1  ;;  %2372 = vmatpush1.msra.mxu0 %v1341_v2  ;;  %v1458_v13 = vld [vmem:[%s8946_s1 + $0x2c28] sm:$0xff]  ;;  %v1457_v15 = vld [vmem:[%s8946_s1 + $0x2c20] sm:$0xff] }
 0x164   :  { %2443 = vmatpush1.msra.mxu1 %v1469_v3  ;;  %2373 = vmatprep.subr.mxu0 %v1338_v4  ;;  %v1326_v16 = vld [vmem:[%s8946_s1 + $0x2808] sm:$0xff]  ;;  %v1325_v18 = vld [vmem:[%s8946_s1 + $0x2800] sm:$0xff] }
 0x165   :  { %2444 = vmatprep.subr.mxu1 %v1466_v5  ;;  %2374 = vmatpush1.msra.mxu0 %v1337_v6  ;;  %v1454_v17 = vld [vmem:[%s8946_s1 + $0x2c08] sm:$0xff]  ;;  %v1453_v19 = vld [vmem:[%s8946_s1 + $0x2c00] sm:$0xff] }
 0x166   :  { %2445 = vmatpush1.msra.mxu1 %v1465_v7  ;;  %2375 = vmatprep.subr.mxu0 %v1334_v8  ;;  %v1450_v20 = vld [vmem:[%s8946_s1 + $0x2be8] sm:$0xff]  ;;  %v1449_v22 = vld [vmem:[%s8946_s1 + $0x2be0] sm:$0xff] }
 0x167   :  { %2446 = vmatprep.subr.mxu1 %v1462_v9  ;;  %2376 = vmatpush1.msra.mxu0 %v1333_v10  ;;  %v1578_v21 = vld [vmem:[%s8946_s1 + $0x2fe8] sm:$0xff]  ;;  %v1577_v23 = vld [vmem:[%s8946_s1 + $0x2fe0] sm:$0xff] }
 0x168   :  { %2447 = vmatpush1.msra.mxu1 %v1461_v11  ;;  %2377 = vmatprep.subr.mxu0 %v1330_v12  ;;  %v1446_v24 = vld [vmem:[%s8946_s1 + $0x2bc8] sm:$0xff]  ;;  %v1445_v26 = vld [vmem:[%s8946_s1 + $0x2bc0] sm:$0xff] }
 0x169   :  { %2448 = vmatprep.subr.mxu1 %v1458_v13  ;;  %2378 = vmatpush1.msra.mxu0 %v1329_v14  ;;  %v1574_v25 = vld [vmem:[%s8946_s1 + $0x2fc8] sm:$0xff]  ;;  %v1573_v27 = vld [vmem:[%s8946_s1 + $0x2fc0] sm:$0xff] }
 0x16a   :  { %2449 = vmatpush1.msra.mxu1 %v1457_v15  ;;  %2379 = vmatprep.subr.mxu0 %v1326_v16  ;;  %v1442_v28 = vld [vmem:[%s8946_s1 + $0x2ba8] sm:$0xff]  ;;  %v1441_v30 = vld [vmem:[%s8946_s1 + $0x2ba0] sm:$0xff] }
 0x16b   :  { %2450 = vmatprep.subr.mxu1 %v1454_v17  ;;  %2380 = vmatpush1.msra.mxu0 %v1325_v18  ;;  %v1570_v29 = vld [vmem:[%s8946_s1 + $0x2fa8] sm:$0xff]  ;;  %v1569_v31 = vld [vmem:[%s8946_s1 + $0x2fa0] sm:$0xff] }
 0x16c   :  { %2451 = vmatpush1.msra.mxu1 %v1453_v19  ;;  %2381 = vmatprep.subr.mxu0 %v1450_v20  ;;  %v1438_v32 = vld [vmem:[%s8946_s1 + $0x2b88] sm:$0xff]  ;;  %v1437_v34 = vld [vmem:[%s8946_s1 + $0x2b80] sm:$0xff] }
 0x16d   :  { %2452 = vmatprep.subr.mxu1 %v1578_v21  ;;  %2382 = vmatpush2.msra.mxu0 %v1449_v22  ;;  %v1566_v33 = vld [vmem:[%s8946_s1 + $0x2f88] sm:$0xff]  ;;  %v1565_v35 = vld [vmem:[%s8946_s1 + $0x2f80] sm:$0xff]  ;;  %v43_v22 = vld [vmem:[%s8947_s0 + $0xb8] sm:$0xff] }
 0x16e   :  { %2453 = vmatpush2.msra.mxu1 %v1577_v23  ;;  %2383 = vmatprep.subr.mxu0 %v1446_v24  ;;  %v1434_v36 = vld [vmem:[%s8946_s1 + $0x2b68] sm:$0xff]  ;;  %v1433_v38 = vld [vmem:[%s8946_s1 + $0x2b60] sm:$0xff]  ;;  %v108_v24 = vld [vmem:[%s8946_s1 + $0x1f8] sm:$0xff] }
 0x16f   :  { %2454 = vmatprep.subr.mxu1 %v1574_v25  ;;  %2384 = vmatpush2.msra.mxu0 %v1445_v26  ;;  %v1562_v37 = vld [vmem:[%s8946_s1 + $0x2f68] sm:$0xff]  ;;  %v1561_v39 = vld [vmem:[%s8946_s1 + $0x2f60] sm:$0xff]  ;;  %v42_v25 = vld [vmem:[%s8947_s0 + $0xb0] sm:$0xff] }
 0x170   :  { %2455 = vmatpush2.msra.mxu1 %v1573_v27  ;;  %2385 = vmatprep.subr.mxu0 %v1442_v28  ;;  %v1430_v40 = vld [vmem:[%s8946_s1 + $0x2b48] sm:$0xff]  ;;  %v1429_v42 = vld [vmem:[%s8946_s1 + $0x2b40] sm:$0xff]  ;;  %v107_v27 = vld [vmem:[%s8946_s1 + $0x1f0] sm:$0xff] }
 0x171   :  { %2456 = vmatprep.subr.mxu1 %v1570_v29  ;;  %2386 = vmatpush2.msra.mxu0 %v1441_v30  ;;  %v1558_v41 = vld [vmem:[%s8946_s1 + $0x2f48] sm:$0xff]  ;;  %v1557_v43 = vld [vmem:[%s8946_s1 + $0x2f40] sm:$0xff]  ;;  %v104_v29 = vld [vmem:[%s8946_s1 + $0x1d8] sm:$0xff] }
 0x172   :  { %2457 = vmatpush2.msra.mxu1 %v1569_v31  ;;  %2387 = vmatprep.subr.mxu0 %v1438_v32  ;;  %v1426_v44 = vld [vmem:[%s8946_s1 + $0x2b28] sm:$0xff]  ;;  %v1425_v46 = vld [vmem:[%s8946_s1 + $0x2b20] sm:$0xff]  ;;  %v103_v31 = vld [vmem:[%s8946_s1 + $0x1d0] sm:$0xff] }
 0x173   :  { %2458 = vmatprep.subr.mxu1 %v1566_v33  ;;  %2388 = vmatpush2.msra.mxu0 %v1437_v34  ;;  %v1554_v45 = vld [vmem:[%s8946_s1 + $0x2f28] sm:$0xff]  ;;  %v1553_v47 = vld [vmem:[%s8946_s1 + $0x2f20] sm:$0xff]  ;;  %v100_v33 = vld [vmem:[%s8946_s1 + $0x1b8] sm:$0xff] }
 0x174   :  { %2459 = vmatpush2.msra.mxu1 %v1565_v35  ;;  %2389 = vmatprep.subr.mxu0 %v1434_v36  ;;  %v1422_v48 = vld [vmem:[%s8946_s1 + $0x2b08] sm:$0xff]  ;;  %v1421_v50 = vld [vmem:[%s8946_s1 + $0x2b00] sm:$0xff]  ;;  %v99_v35 = vld [vmem:[%s8946_s1 + $0x1b0] sm:$0xff] }
 0x175   :  { %2460 = vmatprep.subr.mxu1 %v1562_v37  ;;  %2390 = vmatpush2.msra.mxu0 %v1433_v38  ;;  %v1550_v49 = vld [vmem:[%s8946_s1 + $0x2f08] sm:$0xff]  ;;  %v1549_v51 = vld [vmem:[%s8946_s1 + $0x2f00] sm:$0xff]  ;;  %v96_v37 = vld [vmem:[%s8946_s1 + $0x198] sm:$0xff] }
 0x176   :  { %2461 = vmatpush2.msra.mxu1 %v1561_v39  ;;  %2391 = vmatprep.subr.mxu0 %v1430_v40  ;;  %v1418_v52 = vld [vmem:[%s8946_s1 + $0x2ae8] sm:$0xff]  ;;  %v1417_v54 = vld [vmem:[%s8946_s1 + $0x2ae0] sm:$0xff]  ;;  %v95_v39 = vld [vmem:[%s8946_s1 + $0x190] sm:$0xff] }
 0x177   :  { %2462 = vmatprep.subr.mxu1 %v1558_v41  ;;  %2392 = vmatpush2.msra.mxu0 %v1429_v42  ;;  %v1546_v53 = vld [vmem:[%s8946_s1 + $0x2ee8] sm:$0xff]  ;;  %v1545_v55 = vld [vmem:[%s8946_s1 + $0x2ee0] sm:$0xff]  ;;  %v92_v41 = vld [vmem:[%s8946_s1 + $0x178] sm:$0xff] }
 0x178   :  { %2463 = vmatpush2.msra.mxu1 %v1557_v43  ;;  %2393 = vmatprep.subr.mxu0 %v1426_v44  ;;  %v1414_v56 = vld [vmem:[%s8946_s1 + $0x2ac8] sm:$0xff]  ;;  %v1413_v58 = vld [vmem:[%s8946_s1 + $0x2ac0] sm:$0xff]  ;;  %v91_v43 = vld [vmem:[%s8946_s1 + $0x170] sm:$0xff] }
 0x179   :  { %2464 = vmatprep.subr.mxu1 %v1554_v45  ;;  %2394 = vmatpush2.msra.mxu0 %v1425_v46  ;;  %v1542_v57 = vld [vmem:[%s8946_s1 + $0x2ec8] sm:$0xff]  ;;  %v1541_v59 = vld [vmem:[%s8946_s1 + $0x2ec0] sm:$0xff]  ;;  %v88_v45 = vld [vmem:[%s8946_s1 + $0x158] sm:$0xff] }
 0x17a   :  { %2465 = vmatpush2.msra.mxu1 %v1553_v47  ;;  %2395 = vmatprep.subr.mxu0 %v1422_v48  ;;  %v1410_v60 = vld [vmem:[%s8946_s1 + $0x2aa8] sm:$0xff]  ;;  %v1409_v62 = vld [vmem:[%s8946_s1 + $0x2aa0] sm:$0xff]  ;;  %v87_v47 = vld [vmem:[%s8946_s1 + $0x150] sm:$0xff] }
 0x17b   :  { %2466 = vmatprep.subr.mxu1 %v1550_v49  ;;  %2396 = vmatpush2.msra.mxu0 %v1421_v50  ;;  %v1538_v61 = vld [vmem:[%s8946_s1 + $0x2ea8] sm:$0xff]  ;;  %v1537_v63 = vld [vmem:[%s8946_s1 + $0x2ea0] sm:$0xff]  ;;  %v84_v49 = vld [vmem:[%s8946_s1 + $0x138] sm:$0xff] }
 0x17c   :  { %2467 = vmatpush2.msra.mxu1 %v1549_v51  ;;  %2397 = vmatprep.subr.mxu0 %v1418_v52  ;;  %v1406_v0 = vld [vmem:[%s8946_s1 + $0x2a88] sm:$0xff]  ;;  %v1405_v2 = vld [vmem:[%s8946_s1 + $0x2a80] sm:$0xff]  ;;  %v83_v51 = vld [vmem:[%s8946_s1 + $0x130] sm:$0xff] }
 0x17d   :  { %2468 = vmatprep.subr.mxu1 %v1546_v53  ;;  %2398 = vmatpush2.msra.mxu0 %v1417_v54  ;;  %v1534_v1 = vld [vmem:[%s8946_s1 + $0x2e88] sm:$0xff]  ;;  %v1533_v3 = vld [vmem:[%s8946_s1 + $0x2e80] sm:$0xff]  ;;  %v80_v53 = vld [vmem:[%s8946_s1 + $0x118] sm:$0xff] }
 0x17e   :  { %2469 = vmatpush2.msra.mxu1 %v1545_v55  ;;  %2399 = vmatprep.subr.mxu0 %v1414_v56  ;;  %v1402_v4 = vld [vmem:[%s8946_s1 + $0x2a68] sm:$0xff]  ;;  %v1401_v6 = vld [vmem:[%s8946_s1 + $0x2a60] sm:$0xff]  ;;  %v79_v55 = vld [vmem:[%s8946_s1 + $0x110] sm:$0xff] }
 0x17f   :  { %2470 = vmatprep.subr.mxu1 %v1542_v57  ;;  %2400 = vmatpush2.msra.mxu0 %v1413_v58  ;;  %v1530_v5 = vld [vmem:[%s8946_s1 + $0x2e68] sm:$0xff]  ;;  %v1529_v7 = vld [vmem:[%s8946_s1 + $0x2e60] sm:$0xff]  ;;  %v76_v57 = vld [vmem:[%s8946_s1 + $0xf8] sm:$0xff] }
 0x180   :  { %2471 = vmatpush2.msra.mxu1 %v1541_v59  ;;  %2401 = vmatprep.subr.mxu0 %v1410_v60  ;;  %v1398_v8 = vld [vmem:[%s8946_s1 + $0x2a48] sm:$0xff]  ;;  %v1397_v10 = vld [vmem:[%s8946_s1 + $0x2a40] sm:$0xff]  ;;  %v236_v58 = vld [vmem:[%s8946_s1 + $0x5f8] sm:$0xff]  ;;  %v3805_v59 = vmov 0.0  }
 0x181   :  { %2472 = vmatprep.subr.mxu1 %v1538_v61  ;;  %2402 = vmatpush2.msra.mxu0 %v1409_v62  ;;  %v1526_v9 = vld [vmem:[%s8946_s1 + $0x2e48] sm:$0xff]  ;;  %v1525_v11 = vld [vmem:[%s8946_s1 + $0x2e40] sm:$0xff]  ;;  %v75_v60 = vld [vmem:[%s8946_s1 + $0xf0] sm:$0xff] }
 0x182   :  { %2473 = vmatpush2.msra.mxu1 %v1537_v63  ;;  %2403 = vmatprep.subr.mxu0 %v1406_v0  ;;  %v1394_v12 = vld [vmem:[%s8946_s1 + $0x2a28] sm:$0xff]  ;;  %v1393_v14 = vld [vmem:[%s8946_s1 + $0x2a20] sm:$0xff]  ;;  %v235_v61 = vld [vmem:[%s8946_s1 + $0x5f0] sm:$0xff] }
 0x183   :  { %2474 = vmatprep.subr.mxu1 %v1534_v1  ;;  %2404 = vmatpush2.msra.mxu0 %v1405_v2  ;;  %v1522_v13 = vld [vmem:[%s8946_s1 + $0x2e28] sm:$0xff]  ;;  %v1521_v15 = vld [vmem:[%s8946_s1 + $0x2e20] sm:$0xff]  ;;  %v72_v62 = vld [vmem:[%s8946_s1 + $0xd8] sm:$0xff] }
 0x184   :  { %2475 = vmatpush2.msra.mxu1 %v1533_v3  ;;  %2405 = vmatprep.subr.mxu0 %v1402_v4  ;;  %v1390_v16 = vld [vmem:[%s8946_s1 + $0x2a08] sm:$0xff]  ;;  %v1389_v18 = vld [vmem:[%s8946_s1 + $0x2a00] sm:$0xff]  ;;  %v232_v63 = vld [vmem:[%s8946_s1 + $0x5d8] sm:$0xff] }
 0x185   :  { %2476 = vmatprep.subr.mxu1 %v1530_v5  ;;  %2406 = vmatpush2.msra.mxu0 %v1401_v6  ;;  %v1518_v17 = vld [vmem:[%s8946_s1 + $0x2e08] sm:$0xff]  ;;  %v1517_v20 = vld [vmem:[%s8946_s1 + $0x2e00] sm:$0xff]  ;;  %v71_v0 = vld [vmem:[%s8946_s1 + $0xd0] sm:$0xff] }
 0x186   :  { %2477 = vmatpush2.msra.mxu1 %v1529_v7  ;;  %2407 = vmatprep.subr.mxu0 %v1398_v8  ;;  %v41_v19 = vld [vmem:[%s8947_s0 + $0xa8] sm:$0xff]  ;;  %v40_v21 = vld [vmem:[%s8947_s0 + $0xa0] sm:$0xff]  ;;  %v231_v1 = vld [vmem:[%s8946_s1 + $0x5d0] sm:$0xff] }
 0x187   :  { %2478 = vmatprep.subr.mxu1 %v1526_v9  ;;  %2408 = vmatpush2.msra.mxu0 %v1397_v10  ;;  %v1610_v23 = vld [vmem:[%s8946_s1 + $0x30e8] sm:$0xff]  ;;  %v1609_v26 = vld [vmem:[%s8946_s1 + $0x30e0] sm:$0xff]  ;;  %v68_v2 = vld [vmem:[%s8946_s1 + $0xb8] sm:$0xff] }
 0x188   :  { %2479 = vmatpush2.msra.mxu1 %v1525_v11  ;;  %2409 = vmatprep.subr.mxu0 %v1394_v12  ;;  %v1606_v28 = vld [vmem:[%s8946_s1 + $0x30c8] sm:$0xff]  ;;  %v1605_v30 = vld [vmem:[%s8946_s1 + $0x30c0] sm:$0xff]  ;;  %v228_v3 = vld [vmem:[%s8946_s1 + $0x5b8] sm:$0xff] }
 0x189   :  { %2480 = vmatprep.subr.mxu1 %v1522_v13  ;;  %2410 = vmatpush2.msra.mxu0 %v1393_v14  ;;  %v1602_v32 = vld [vmem:[%s8946_s1 + $0x30a8] sm:$0xff]  ;;  %v1601_v34 = vld [vmem:[%s8946_s1 + $0x30a0] sm:$0xff]  ;;  %v67_v4 = vld [vmem:[%s8946_s1 + $0xb0] sm:$0xff] }
 0x18a   :  { %2481 = vmatpush2.msra.mxu1 %v1521_v15  ;;  %2411 = vmatprep.subr.mxu0 %v1390_v16  ;;  %v1598_v36 = vld [vmem:[%s8946_s1 + $0x3088] sm:$0xff]  ;;  %v1597_v38 = vld [vmem:[%s8946_s1 + $0x3080] sm:$0xff]  ;;  %v227_v5 = vld [vmem:[%s8946_s1 + $0x5b0] sm:$0xff] }
 0x18b   :  { %2482 = vmatprep.subr.mxu1 %v1518_v17  ;;  %2412 = vmatpush2.msra.mxu0 %v1389_v18  ;;  %v1594_v40 = vld [vmem:[%s8946_s1 + $0x3068] sm:$0xff]  ;;  %v1593_v42 = vld [vmem:[%s8946_s1 + $0x3060] sm:$0xff]  ;;  %v64_v6 = vld [vmem:[%s8946_s1 + $0x98] sm:$0xff] }
 0x18c   :  { %2413 = vmatprep.mubr.f32.mxu0 %v41_v19  ;;  %2483 = vmatpush2.msra.mxu1 %v1517_v20  ;;  %v1590_v44 = vld [vmem:[%s8946_s1 + $0x3048] sm:$0xff]  ;;  %v1589_v46 = vld [vmem:[%s8946_s1 + $0x3040] sm:$0xff]  ;;  %v224_v7 = vld [vmem:[%s8946_s1 + $0x598] sm:$0xff] }
 0x18d   :  { %2414 = vmatmul.mubr.f32.vlgmr.msra.gmra.mxu0 %v40_v21  ;;  %2484 = vmatprep.mubr.f32.mxu1 %v43_v22  ;;  %v1586_v48 = vld [vmem:[%s8946_s1 + $0x3028] sm:$0xff]  ;;  %v1585_v50 = vld [vmem:[%s8946_s1 + $0x3020] sm:$0xff]  ;;  %v63_v8 = vld [vmem:[%s8946_s1 + $0x90] sm:$0xff] }
 0x18e   :  { %2507 = vmatprep.subr.mxu0 %v1610_v23  ;;  %2562 = vmatprep.subr.mxu1 %v108_v24  ;;  %v1582_v52 = vld [vmem:[%s8946_s1 + $0x3008] sm:$0xff]  ;;  %v1581_v54 = vld [vmem:[%s8946_s1 + $0x3000] sm:$0xff]  ;;  %v223_v9 = vld [vmem:[%s8946_s1 + $0x590] sm:$0xff] }
 0x18f   :  { %2485 = vmatmul.mubr.f32.vlgmr.msra.gmra.mxu1 %v42_v25  ;;  %2508 = vmatpush1.msra.mxu0 %v1609_v26  ;;  %v44_v56 = vld [vmem:[%s8947_s0 + $0xc0] sm:$0xff]  ;;  %v60_v10 = vld [vmem:[%s8946_s1 + $0x78] sm:$0xff]  ;;  %v59_v12 = vld [vmem:[%s8946_s1 + $0x70] sm:$0xff] }
 0x190   :  { %2563 = vmatpush1.msra.mxu1 %v107_v27  ;;  %2509 = vmatprep.subr.mxu0 %v1606_v28  ;;  %v220_v11 = vld [vmem:[%s8946_s1 + $0x578] sm:$0xff]  ;;  %v219_v13 = vld [vmem:[%s8946_s1 + $0x570] sm:$0xff] }
 0x191   :  { %2564 = vmatprep.subr.mxu1 %v104_v29  ;;  %2510 = vmatpush1.msra.mxu0 %v1605_v30  ;;  %v56_v14 = vld [vmem:[%s8946_s1 + $0x58] sm:$0xff]  ;;  %v55_v16 = vld [vmem:[%s8946_s1 + $0x50] sm:$0xff] }
 0x192   :  { %2565 = vmatpush1.msra.mxu1 %v103_v31  ;;  %2511 = vmatprep.subr.mxu0 %v1602_v32  ;;  %v216_v15 = vld [vmem:[%s8946_s1 + $0x558] sm:$0xff]  ;;  %v215_v17 = vld [vmem:[%s8946_s1 + $0x550] sm:$0xff] }
 0x193   :  { %2566 = vmatprep.subr.mxu1 %v100_v33  ;;  %2512 = vmatpush1.msra.mxu0 %v1601_v34  ;;  %v52_v18 = vld [vmem:[%s8946_s1 + $0x38] sm:$0xff]  ;;  %v51_v20 = vld [vmem:[%s8946_s1 + $0x30] sm:$0xff] }
 0x194   :  { %2567 = vmatpush1.msra.mxu1 %v99_v35  ;;  %2513 = vmatprep.subr.mxu0 %v1598_v36  ;;  %v212_v19 = vld [vmem:[%s8946_s1 + $0x538] sm:$0xff]  ;;  %v211_v21 = vld [vmem:[%s8946_s1 + $0x530] sm:$0xff] }
 0x195   :  { %2568 = vmatprep.subr.mxu1 %v96_v37  ;;  %2514 = vmatpush1.msra.mxu0 %v1597_v38  ;;  %v48_v22 = vld [vmem:[%s8946_s1 + $0x18] sm:$0xff]  ;;  %v47_v24 = vld [vmem:[%s8946_s1 + $0x10] sm:$0xff] }
 0x196   :  { %2569 = vmatpush1.msra.mxu1 %v95_v39  ;;  %2515 = vmatprep.subr.mxu0 %v1594_v40  ;;  %v208_v23 = vld [vmem:[%s8946_s1 + $0x518] sm:$0xff]  ;;  %v207_v25 = vld [vmem:[%s8946_s1 + $0x510] sm:$0xff] }
 0x197   :  { %2570 = vmatprep.subr.mxu1 %v92_v41  ;;  %2516 = vmatpush1.msra.mxu0 %v1593_v42  ;;  %v172_v26 = vld [vmem:[%s8946_s1 + $0x3f8] sm:$0xff]  ;;  %v171_v28 = vld [vmem:[%s8946_s1 + $0x3f0] sm:$0xff] }
 0x198   :  { %2571 = vmatpush1.msra.mxu1 %v91_v43  ;;  %2517 = vmatprep.subr.mxu0 %v1590_v44  ;;  %v204_v27 = vld [vmem:[%s8946_s1 + $0x4f8] sm:$0xff]  ;;  %v203_v29 = vld [vmem:[%s8946_s1 + $0x4f0] sm:$0xff] }
 0x199   :  { %2572 = vmatprep.subr.mxu1 %v88_v45  ;;  %2518 = vmatpush1.msra.mxu0 %v1589_v46  ;;  %v168_v30 = vld [vmem:[%s8946_s1 + $0x3d8] sm:$0xff]  ;;  %v167_v32 = vld [vmem:[%s8946_s1 + $0x3d0] sm:$0xff] }
 0x19a   :  { %2573 = vmatpush1.msra.mxu1 %v87_v47  ;;  %2519 = vmatprep.subr.mxu0 %v1586_v48  ;;  %v200_v31 = vld [vmem:[%s8946_s1 + $0x4d8] sm:$0xff]  ;;  %v199_v33 = vld [vmem:[%s8946_s1 + $0x4d0] sm:$0xff] }
 0x19b   :  { %2574 = vmatprep.subr.mxu1 %v84_v49  ;;  %2520 = vmatpush1.msra.mxu0 %v1585_v50  ;;  %v164_v34 = vld [vmem:[%s8946_s1 + $0x3b8] sm:$0xff]  ;;  %v163_v36 = vld [vmem:[%s8946_s1 + $0x3b0] sm:$0xff] }
 0x19c   :  { %2575 = vmatpush1.msra.mxu1 %v83_v51  ;;  %2521 = vmatprep.subr.mxu0 %v1582_v52  ;;  %v196_v35 = vld [vmem:[%s8946_s1 + $0x4b8] sm:$0xff]  ;;  %v195_v37 = vld [vmem:[%s8946_s1 + $0x4b0] sm:$0xff] }
 0x19d   :  { %2576 = vmatprep.subr.mxu1 %v80_v53  ;;  %2522 = vmatpush1.msra.mxu0 %v1581_v54  ;;  %v160_v38 = vld [vmem:[%s8946_s1 + $0x398] sm:$0xff]  ;;  %v159_v40 = vld [vmem:[%s8946_s1 + $0x390] sm:$0xff] }
 0x19e   :  { %2555 = vmatprep.mubr.f32.mxu0 %v3805_v59  ;;  %2577 = vmatpush1.msra.mxu1 %v79_v55  ;;  %v192_v39 = vld [vmem:[%s8946_s1 + $0x498] sm:$0xff]  ;;  %v191_v41 = vld [vmem:[%s8946_s1 + $0x490] sm:$0xff] }
 0x19f   :  { %3706 = vmatmul.mubr.msk.f32.vlgmr.msra.gmra.mxu0 %vm1635_vm0, %v44_v56  ;;  %2578 = vmatprep.subr.mxu1 %v76_v57  ;;  %v156_v42 = vld [vmem:[%s8946_s1 + $0x378] sm:$0xff]  ;;  %v155_v44 = vld [vmem:[%s8946_s1 + $0x370] sm:$0xff] }
 0x1a0   :  { %2633 = vmatprep.subr.mxu0 %v236_v58  ;;  %2579 = vmatpush1.msra.mxu1 %v75_v60  ;;  %v188_v43 = vld [vmem:[%s8946_s1 + $0x478] sm:$0xff]  ;;  %v187_v45 = vld [vmem:[%s8946_s1 + $0x470] sm:$0xff] }
 0x1a1   :  { %2634 = vmatpush1.msra.mxu0 %v235_v61  ;;  %2580 = vmatprep.subr.mxu1 %v72_v62  ;;  %v152_v46 = vld [vmem:[%s8946_s1 + $0x358] sm:$0xff]  ;;  %v151_v48 = vld [vmem:[%s8946_s1 + $0x350] sm:$0xff] }
 0x1a2   :  { %2635 = vmatprep.subr.mxu0 %v232_v63  ;;  %2581 = vmatpush1.msra.mxu1 %v71_v0  ;;  %v184_v47 = vld [vmem:[%s8946_s1 + $0x458] sm:$0xff]  ;;  %v183_v49 = vld [vmem:[%s8946_s1 + $0x450] sm:$0xff] }
 0x1a3   :  { %2636 = vmatpush1.msra.mxu0 %v231_v1  ;;  %2582 = vmatprep.subr.mxu1 %v68_v2  ;;  %v148_v50 = vld [vmem:[%s8946_s1 + $0x338] sm:$0xff]  ;;  %v147_v52 = vld [vmem:[%s8946_s1 + $0x330] sm:$0xff] }
 0x1a4   :  { %2637 = vmatprep.subr.mxu0 %v228_v3  ;;  %2583 = vmatpush1.msra.mxu1 %v67_v4  ;;  %v180_v51 = vld [vmem:[%s8946_s1 + $0x438] sm:$0xff]  ;;  %v179_v53 = vld [vmem:[%s8946_s1 + $0x430] sm:$0xff] }
 0x1a5   :  { %2638 = vmatpush1.msra.mxu0 %v227_v5  ;;  %2584 = vmatprep.subr.mxu1 %v64_v6  ;;  %v144_v54 = vld [vmem:[%s8946_s1 + $0x318] sm:$0xff]  ;;  %v143_v56 = vld [vmem:[%s8946_s1 + $0x310] sm:$0xff] }
 0x1a6   :  { %2639 = vmatprep.subr.mxu0 %v224_v7  ;;  %2585 = vmatpush1.msra.mxu1 %v63_v8  ;;  %v176_v55 = vld [vmem:[%s8946_s1 + $0x418] sm:$0xff]  ;;  %v175_v57 = vld [vmem:[%s8946_s1 + $0x410] sm:$0xff] }
 0x1a7   :  { %2640 = vmatpush1.msra.mxu0 %v223_v9  ;;  %2586 = vmatprep.subr.mxu1 %v60_v10  ;;  %v140_v58 = vld [vmem:[%s8946_s1 + $0x2f8] sm:$0xff]  ;;  %v139_v61 = vld [vmem:[%s8946_s1 + $0x2f0] sm:$0xff] }
 0x1a8   :  { %2641 = vmatprep.subr.mxu0 %v220_v11  ;;  %2587 = vmatpush1.msra.mxu1 %v59_v12  ;;  %v300_v60 = vld [vmem:[%s8946_s1 + $0x7f8] sm:$0xff]  ;;  %v299_v62 = vld [vmem:[%s8946_s1 + $0x7f0] sm:$0xff] }
 0x1a9   :  { %2642 = vmatpush1.msra.mxu0 %v219_v13  ;;  %2588 = vmatprep.subr.mxu1 %v56_v14  ;;  %v136_v63 = vld [vmem:[%s8946_s1 + $0x2d8] sm:$0xff]  ;;  %v135_v1 = vld [vmem:[%s8946_s1 + $0x2d0] sm:$0xff] }
 0x1aa   :  { %2643 = vmatprep.subr.mxu0 %v216_v15  ;;  %2589 = vmatpush1.msra.mxu1 %v55_v16  ;;  %v296_v0 = vld [vmem:[%s8946_s1 + $0x7d8] sm:$0xff]  ;;  %v295_v2 = vld [vmem:[%s8946_s1 + $0x7d0] sm:$0xff] }
 0x1ab   :  { %2644 = vmatpush1.msra.mxu0 %v215_v17  ;;  %2590 = vmatprep.subr.mxu1 %v52_v18  ;;  %v132_v3 = vld [vmem:[%s8946_s1 + $0x2b8] sm:$0xff]  ;;  %v131_v5 = vld [vmem:[%s8946_s1 + $0x2b0] sm:$0xff] }
 0x1ac   :  { %2645 = vmatprep.subr.mxu0 %v212_v19  ;;  %2591 = vmatpush1.msra.mxu1 %v51_v20  ;;  %v292_v4 = vld [vmem:[%s8946_s1 + $0x7b8] sm:$0xff]  ;;  %v291_v6 = vld [vmem:[%s8946_s1 + $0x7b0] sm:$0xff] }
 0x1ad   :  { %2646 = vmatpush1.msra.mxu0 %v211_v21  ;;  %2592 = vmatprep.subr.mxu1 %v48_v22  ;;  %v128_v7 = vld [vmem:[%s8946_s1 + $0x298] sm:$0xff]  ;;  %v127_v9 = vld [vmem:[%s8946_s1 + $0x290] sm:$0xff] }
 0x1ae   :  { %2647 = vmatprep.subr.mxu0 %v208_v23  ;;  %2593 = vmatpush1.msra.mxu1 %v47_v24  ;;  %v288_v8 = vld [vmem:[%s8946_s1 + $0x798] sm:$0xff]  ;;  %v287_v10 = vld [vmem:[%s8946_s1 + $0x790] sm:$0xff] }
 0x1af   :  { %2648 = vmatpush1.msra.mxu0 %v207_v25  ;;  %2594 = vmatprep.subr.mxu1 %v172_v26  ;;  %v124_v11 = vld [vmem:[%s8946_s1 + $0x278] sm:$0xff]  ;;  %v123_v13 = vld [vmem:[%s8946_s1 + $0x270] sm:$0xff] }
 0x1b0   :  { %2649 = vmatprep.subr.mxu0 %v204_v27  ;;  %2595 = vmatpush2.msra.mxu1 %v171_v28  ;;  %v284_v12 = vld [vmem:[%s8946_s1 + $0x778] sm:$0xff]  ;;  %v283_v14 = vld [vmem:[%s8946_s1 + $0x770] sm:$0xff] }
 0x1b1   :  { %2650 = vmatpush1.msra.mxu0 %v203_v29  ;;  %2596 = vmatprep.subr.mxu1 %v168_v30  ;;  %v120_v15 = vld [vmem:[%s8946_s1 + $0x258] sm:$0xff]  ;;  %v119_v17 = vld [vmem:[%s8946_s1 + $0x250] sm:$0xff] }
 0x1b2   :  { %2651 = vmatprep.subr.mxu0 %v200_v31  ;;  %2597 = vmatpush2.msra.mxu1 %v167_v32  ;;  %v280_v16 = vld [vmem:[%s8946_s1 + $0x758] sm:$0xff]  ;;  %v279_v18 = vld [vmem:[%s8946_s1 + $0x750] sm:$0xff]  ;;  %v3780_v31 = vld [vmem:[%s8947_s0 + $0x8] sm:$0xff] }
 0x1b3   :  { %2652 = vmatpush1.msra.mxu0 %v199_v33  ;;  %2598 = vmatprep.subr.mxu1 %v164_v34  ;;  %v116_v19 = vld [vmem:[%s8946_s1 + $0x238] sm:$0xff]  ;;  %v115_v21 = vld [vmem:[%s8946_s1 + $0x230] sm:$0xff]  ;;  %v3781_v34 = vld [vmem:[%s8947_s0] sm:$0xff] }
 0x1b4   :  { %2653 = vmatprep.subr.mxu0 %v196_v35  ;;  %2599 = vmatpush2.msra.mxu1 %v163_v36  ;;  %v276_v20 = vld [vmem:[%s8946_s1 + $0x738] sm:$0xff]  ;;  %v275_v22 = vld [vmem:[%s8946_s1 + $0x730] sm:$0xff] }
 0x1b5   :  { %2654 = vmatpush1.msra.mxu0 %v195_v37  ;;  %2600 = vmatprep.subr.mxu1 %v160_v38  ;;  %v112_v23 = vld [vmem:[%s8946_s1 + $0x218] sm:$0xff]  ;;  %v111_v25 = vld [vmem:[%s8946_s1 + $0x210] sm:$0xff] }
 0x1b6   :  { %2655 = vmatprep.subr.mxu0 %v192_v39  ;;  %2601 = vmatpush2.msra.mxu1 %v159_v40  ;;  %v272_v24 = vld [vmem:[%s8946_s1 + $0x718] sm:$0xff]  ;;  %v271_v26 = vld [vmem:[%s8946_s1 + $0x710] sm:$0xff] }
 0x1b7   :  { %2656 = vmatpush1.msra.mxu0 %v191_v41  ;;  %2602 = vmatprep.subr.mxu1 %v156_v42  ;;  %v268_v27 = vld [vmem:[%s8946_s1 + $0x6f8] sm:$0xff]  ;;  %v267_v29 = vld [vmem:[%s8946_s1 + $0x6f0] sm:$0xff] }
 0x1b8   :  { %2657 = vmatprep.subr.mxu0 %v188_v43  ;;  %2603 = vmatpush2.msra.mxu1 %v155_v44  ;;  %v364_v28 = vld [vmem:[%s8946_s1 + $0x9f8] sm:$0xff]  ;;  %v363_v30 = vld [vmem:[%s8946_s1 + $0x9f0] sm:$0xff] }
 0x1b9   :  { %2658 = vmatpush1.msra.mxu0 %v187_v45  ;;  %2604 = vmatprep.subr.mxu1 %v152_v46  ;;  %v264_v32 = vld [vmem:[%s8946_s1 + $0x6d8] sm:$0xff]  ;;  %v263_v35 = vld [vmem:[%s8946_s1 + $0x6d0] sm:$0xff] }
 0x1ba   :  { %2659 = vmatprep.subr.mxu0 %v184_v47  ;;  %2605 = vmatpush2.msra.mxu1 %v151_v48  ;;  %v360_v33 = vld [vmem:[%s8946_s1 + $0x9d8] sm:$0xff]  ;;  %v359_v36 = vld [vmem:[%s8946_s1 + $0x9d0] sm:$0xff] }
 0x1bb   :  { %2660 = vmatpush1.msra.mxu0 %v183_v49  ;;  %2606 = vmatprep.subr.mxu1 %v148_v50  ;;  %v260_v37 = vld [vmem:[%s8946_s1 + $0x6b8] sm:$0xff]  ;;  %v259_v39 = vld [vmem:[%s8946_s1 + $0x6b0] sm:$0xff] }
 0x1bc   :  { %2661 = vmatprep.subr.mxu0 %v180_v51  ;;  %2607 = vmatpush2.msra.mxu1 %v147_v52  ;;  %v356_v38 = vld [vmem:[%s8946_s1 + $0x9b8] sm:$0xff]  ;;  %v355_v40 = vld [vmem:[%s8946_s1 + $0x9b0] sm:$0xff] }
 0x1bd   :  { %2662 = vmatpush1.msra.mxu0 %v179_v53  ;;  %2608 = vmatprep.subr.mxu1 %v144_v54  ;;  %v256_v41 = vld [vmem:[%s8946_s1 + $0x698] sm:$0xff]  ;;  %v255_v43 = vld [vmem:[%s8946_s1 + $0x690] sm:$0xff] }
 0x1be   :  { %2663 = vmatprep.subr.mxu0 %v176_v55  ;;  %2609 = vmatpush2.msra.mxu1 %v143_v56  ;;  %v352_v42 = vld [vmem:[%s8946_s1 + $0x998] sm:$0xff]  ;;  %v351_v44 = vld [vmem:[%s8946_s1 + $0x990] sm:$0xff] }
 0x1bf   :  { %2664 = vmatpush1.msra.mxu0 %v175_v57  ;;  %2610 = vmatprep.subr.mxu1 %v140_v58  ;;  %v252_v45 = vld [vmem:[%s8946_s1 + $0x678] sm:$0xff]  ;;  %v251_v47 = vld [vmem:[%s8946_s1 + $0x670] sm:$0xff] }
 0x1c0   :  { %2665 = vmatprep.subr.mxu0 %v300_v60  ;;  %2611 = vmatpush2.msra.mxu1 %v139_v61  ;;  %v348_v46 = vld [vmem:[%s8946_s1 + $0x978] sm:$0xff]  ;;  %v347_v48 = vld [vmem:[%s8946_s1 + $0x970] sm:$0xff] }
 0x1c1   :  { %2666 = vmatpush2.msra.mxu0 %v299_v62  ;;  %2612 = vmatprep.subr.mxu1 %v136_v63  ;;  %v248_v49 = vld [vmem:[%s8946_s1 + $0x658] sm:$0xff]  ;;  %v247_v51 = vld [vmem:[%s8946_s1 + $0x650] sm:$0xff] }
 0x1c2   :  { %2667 = vmatprep.subr.mxu0 %v296_v0  ;;  %2613 = vmatpush2.msra.mxu1 %v135_v1  ;;  %v344_v50 = vld [vmem:[%s8946_s1 + $0x958] sm:$0xff]  ;;  %v343_v52 = vld [vmem:[%s8946_s1 + $0x950] sm:$0xff] }
 0x1c3   :  { %2668 = vmatpush2.msra.mxu0 %v295_v2  ;;  %2614 = vmatprep.subr.mxu1 %v132_v3  ;;  %v244_v53 = vld [vmem:[%s8946_s1 + $0x638] sm:$0xff]  ;;  %v243_v55 = vld [vmem:[%s8946_s1 + $0x630] sm:$0xff] }
 0x1c4   :  { %2669 = vmatprep.subr.mxu0 %v292_v4  ;;  %2615 = vmatpush2.msra.mxu1 %v131_v5  ;;  %v340_v54 = vld [vmem:[%s8946_s1 + $0x938] sm:$0xff]  ;;  %v339_v56 = vld [vmem:[%s8946_s1 + $0x930] sm:$0xff] }
 0x1c5   :  { %2670 = vmatpush2.msra.mxu0 %v291_v6  ;;  %2616 = vmatprep.subr.mxu1 %v128_v7  ;;  %v240_v57 = vld [vmem:[%s8946_s1 + $0x618] sm:$0xff]  ;;  %v239_v60 = vld [vmem:[%s8946_s1 + $0x610] sm:$0xff] }
 0x1c6   :  { %2671 = vmatprep.subr.mxu0 %v288_v8  ;;  %2617 = vmatpush2.msra.mxu1 %v127_v9  ;;  %v336_v58 = vld [vmem:[%s8946_s1 + $0x918] sm:$0xff]  ;;  %v335_v61 = vld [vmem:[%s8946_s1 + $0x910] sm:$0xff] }
 0x1c7   :  { %2672 = vmatpush2.msra.mxu0 %v287_v10  ;;  %2618 = vmatprep.subr.mxu1 %v124_v11  ;;  %v332_v62 = vld [vmem:[%s8946_s1 + $0x8f8] sm:$0xff]  ;;  %v331_v1 = vld [vmem:[%s8946_s1 + $0x8f0] sm:$0xff] }
 0x1c8   :  { %2673 = vmatprep.subr.mxu0 %v284_v12  ;;  %2619 = vmatpush2.msra.mxu1 %v123_v13  ;;  %v492_v63 = vld [vmem:[%s8946_s1 + $0xdf8] sm:$0xff]  ;;  %v491_v2 = vld [vmem:[%s8946_s1 + $0xdf0] sm:$0xff] }
 0x1c9   :  { %2674 = vmatpush2.msra.mxu0 %v283_v14  ;;  %2620 = vmatprep.subr.mxu1 %v120_v15  ;;  %v3782_v0 = vld [vmem:[%s8947_s0 + $0x18] sm:$0xff]  ;;  %v3783_v3 = vld [vmem:[%s8947_s0 + $0x10] sm:$0xff] }
 0x1ca   :  { %2675 = vmatprep.subr.mxu0 %v280_v16  ;;  %2621 = vmatpush2.msra.mxu1 %v119_v17  ;;  %v328_v4 = vld [vmem:[%s8946_s1 + $0x8d8] sm:$0xff]  ;;  %v327_v6 = vld [vmem:[%s8946_s1 + $0x8d0] sm:$0xff] }
 0x1cb   :  { %2676 = vmatpush2.msra.mxu0 %v279_v18  ;;  %2622 = vmatprep.subr.mxu1 %v116_v19  ;;  %v488_v5 = vld [vmem:[%s8946_s1 + $0xdd8] sm:$0xff]  ;;  %v487_v7 = vld [vmem:[%s8946_s1 + $0xdd0] sm:$0xff] }
 0x1cc   :  { %2677 = vmatprep.subr.mxu0 %v276_v20  ;;  %2623 = vmatpush2.msra.mxu1 %v115_v21  ;;  %v324_v8 = vld [vmem:[%s8946_s1 + $0x8b8] sm:$0xff]  ;;  %v323_v10 = vld [vmem:[%s8946_s1 + $0x8b0] sm:$0xff] }
 0x1cd   :  { %2678 = vmatpush2.msra.mxu0 %v275_v22  ;;  %2624 = vmatprep.subr.mxu1 %v112_v23  ;;  %v484_v9 = vld [vmem:[%s8946_s1 + $0xdb8] sm:$0xff]  ;;  %v483_v11 = vld [vmem:[%s8946_s1 + $0xdb0] sm:$0xff] }
 0x1ce   :  { %2679 = vmatprep.subr.mxu0 %v272_v24  ;;  %2625 = vmatpush2.msra.mxu1 %v111_v25  ;;  %v320_v12 = vld [vmem:[%s8946_s1 + $0x898] sm:$0xff]  ;;  %v319_v14 = vld [vmem:[%s8946_s1 + $0x890] sm:$0xff] }
 0x1cf   :  { %2680 = vmatpush2.msra.mxu0 %v271_v26  ;;  %2626 = vmatprep.mubr.f32.mxu1 %v3780_v31  ;;  %v480_v13 = vld [vmem:[%s8946_s1 + $0xd98] sm:$0xff]  ;;  %v479_v15 = vld [vmem:[%s8946_s1 + $0xd90] sm:$0xff] }
 0x1d0   :  { %2681 = vmatprep.subr.mxu0 %v268_v27  ;;  %2704 = vmatprep.subr.mxu1 %v364_v28  ;;  %v316_v16 = vld [vmem:[%s8946_s1 + $0x878] sm:$0xff]  ;;  %v315_v18 = vld [vmem:[%s8946_s1 + $0x870] sm:$0xff] }
 0x1d1   :  { %2627 = vmatmul.mubr.f32.vlgmr.msra.gmra.mxu1 %v3781_v34  ;;  %2682 = vmatpush2.msra.mxu0 %v267_v29  ;;  %v476_v17 = vld [vmem:[%s8946_s1 + $0xd78] sm:$0xff]  ;;  %v475_v19 = vld [vmem:[%s8946_s1 + $0xd70] sm:$0xff] }
 0x1d2   :  { %2705 = vmatpush1.msra.mxu1 %v363_v30  ;;  %2683 = vmatprep.subr.mxu0 %v264_v32  ;;  %v312_v20 = vld [vmem:[%s8946_s1 + $0x858] sm:$0xff]  ;;  %v311_v22 = vld [vmem:[%s8946_s1 + $0x850] sm:$0xff] }
 0x1d3   :  { %2706 = vmatprep.subr.mxu1 %v360_v33  ;;  %2684 = vmatpush2.msra.mxu0 %v263_v35  ;;  %v472_v21 = vld [vmem:[%s8946_s1 + $0xd58] sm:$0xff]  ;;  %v471_v23 = vld [vmem:[%s8946_s1 + $0xd50] sm:$0xff] }
 0x1d4   :  { %2707 = vmatpush1.msra.mxu1 %v359_v36  ;;  %2685 = vmatprep.subr.mxu0 %v260_v37  ;;  %v308_v24 = vld [vmem:[%s8946_s1 + $0x838] sm:$0xff]  ;;  %v307_v26 = vld [vmem:[%s8946_s1 + $0x830] sm:$0xff] }
 0x1d5   :  { %2708 = vmatprep.subr.mxu1 %v356_v38  ;;  %2686 = vmatpush2.msra.mxu0 %v259_v39  ;;  %v468_v25 = vld [vmem:[%s8946_s1 + $0xd38] sm:$0xff]  ;;  %v467_v27 = vld [vmem:[%s8946_s1 + $0xd30] sm:$0xff] }
 0x1d6   :  { %2709 = vmatpush1.msra.mxu1 %v355_v40  ;;  %2687 = vmatprep.subr.mxu0 %v256_v41  ;;  %v304_v28 = vld [vmem:[%s8946_s1 + $0x818] sm:$0xff]  ;;  %v303_v30 = vld [vmem:[%s8946_s1 + $0x810] sm:$0xff] }
 0x1d7   :  { %2710 = vmatprep.subr.mxu1 %v352_v42  ;;  %2688 = vmatpush2.msra.mxu0 %v255_v43  ;;  %v464_v29 = vld [vmem:[%s8946_s1 + $0xd18] sm:$0xff]  ;;  %v463_v31 = vld [vmem:[%s8946_s1 + $0xd10] sm:$0xff] }
 0x1d8   :  { %2711 = vmatpush1.msra.mxu1 %v351_v44  ;;  %2689 = vmatprep.subr.mxu0 %v252_v45  ;;  %v428_v32 = vld [vmem:[%s8946_s1 + $0xbf8] sm:$0xff]  ;;  %v427_v34 = vld [vmem:[%s8946_s1 + $0xbf0] sm:$0xff] }
 0x1d9   :  { %2712 = vmatprep.subr.mxu1 %v348_v46  ;;  %2690 = vmatpush2.msra.mxu0 %v251_v47  ;;  %v460_v33 = vld [vmem:[%s8946_s1 + $0xcf8] sm:$0xff]  ;;  %v459_v35 = vld [vmem:[%s8946_s1 + $0xcf0] sm:$0xff] }
 0x1da   :  { %2713 = vmatpush1.msra.mxu1 %v347_v48  ;;  %2691 = vmatprep.subr.mxu0 %v248_v49  ;;  %v424_v36 = vld [vmem:[%s8946_s1 + $0xbd8] sm:$0xff]  ;;  %v423_v38 = vld [vmem:[%s8946_s1 + $0xbd0] sm:$0xff] }
 0x1db   :  { %2714 = vmatprep.subr.mxu1 %v344_v50  ;;  %2692 = vmatpush2.msra.mxu0 %v247_v51  ;;  %v456_v37 = vld [vmem:[%s8946_s1 + $0xcd8] sm:$0xff]  ;;  %v455_v39 = vld [vmem:[%s8946_s1 + $0xcd0] sm:$0xff] }
 0x1dc   :  { %2715 = vmatpush1.msra.mxu1 %v343_v52  ;;  %2693 = vmatprep.subr.mxu0 %v244_v53  ;;  %v420_v40 = vld [vmem:[%s8946_s1 + $0xbb8] sm:$0xff]  ;;  %v419_v42 = vld [vmem:[%s8946_s1 + $0xbb0] sm:$0xff] }
 0x1dd   :  { %2716 = vmatprep.subr.mxu1 %v340_v54  ;;  %2694 = vmatpush2.msra.mxu0 %v243_v55  ;;  %v452_v41 = vld [vmem:[%s8946_s1 + $0xcb8] sm:$0xff]  ;;  %v451_v43 = vld [vmem:[%s8946_s1 + $0xcb0] sm:$0xff] }
 0x1de   :  { %2717 = vmatpush1.msra.mxu1 %v339_v56  ;;  %2695 = vmatprep.subr.mxu0 %v240_v57  ;;  %v416_v44 = vld [vmem:[%s8946_s1 + $0xb98] sm:$0xff]  ;;  %v415_v46 = vld [vmem:[%s8946_s1 + $0xb90] sm:$0xff] }
 0x1df   :  { %2718 = vmatprep.subr.mxu1 %v336_v58  ;;  %2696 = vmatpush2.msra.mxu0 %v239_v60  ;;  %v448_v45 = vld [vmem:[%s8946_s1 + $0xc98] sm:$0xff]  ;;  %v447_v47 = vld [vmem:[%s8946_s1 + $0xc90] sm:$0xff] }
 0x1e0   :  { %2697 = vmatprep.mubr.f32.mxu0 %v3782_v0  ;;  %2719 = vmatpush1.msra.mxu1 %v335_v61  ;;  %v412_v48 = vld [vmem:[%s8946_s1 + $0xb78] sm:$0xff]  ;;  %v411_v50 = vld [vmem:[%s8946_s1 + $0xb70] sm:$0xff] }
 0x1e1   :  { %2698 = vmatmul.mubr.f32.vlgmr.msra.gmra.mxu0 %v3783_v3  ;;  %2720 = vmatprep.subr.mxu1 %v332_v62  ;;  %v444_v49 = vld [vmem:[%s8946_s1 + $0xc78] sm:$0xff]  ;;  %v443_v51 = vld [vmem:[%s8946_s1 + $0xc70] sm:$0xff] }
 0x1e2   :  { %2775 = vmatprep.subr.mxu0 %v492_v63  ;;  %2721 = vmatpush1.msra.mxu1 %v331_v1  ;;  %v408_v52 = vld [vmem:[%s8946_s1 + $0xb58] sm:$0xff]  ;;  %v407_v54 = vld [vmem:[%s8946_s1 + $0xb50] sm:$0xff] }
 0x1e3   :  { %2776 = vmatpush1.msra.mxu0 %v491_v2  ;;  %2722 = vmatprep.subr.mxu1 %v328_v4  ;;  %v440_v53 = vld [vmem:[%s8946_s1 + $0xc58] sm:$0xff]  ;;  %v439_v55 = vld [vmem:[%s8946_s1 + $0xc50] sm:$0xff] }
 0x1e4   :  { %2777 = vmatprep.subr.mxu0 %v488_v5  ;;  %2723 = vmatpush1.msra.mxu1 %v327_v6  ;;  %v404_v56 = vld [vmem:[%s8946_s1 + $0xb38] sm:$0xff]  ;;  %v403_v58 = vld [vmem:[%s8946_s1 + $0xb30] sm:$0xff] }
 0x1e5   :  { %2778 = vmatpush1.msra.mxu0 %v487_v7  ;;  %2724 = vmatprep.subr.mxu1 %v324_v8  ;;  %v436_v57 = vld [vmem:[%s8946_s1 + $0xc38] sm:$0xff]  ;;  %v435_v60 = vld [vmem:[%s8946_s1 + $0xc30] sm:$0xff] }
 0x1e6   :  { %2779 = vmatprep.subr.mxu0 %v484_v9  ;;  %2725 = vmatpush1.msra.mxu1 %v323_v10  ;;  %v400_v61 = vld [vmem:[%s8946_s1 + $0xb18] sm:$0xff]  ;;  %v399_v63 = vld [vmem:[%s8946_s1 + $0xb10] sm:$0xff] }
 0x1e7   :  { %2780 = vmatpush1.msra.mxu0 %v483_v11  ;;  %2726 = vmatprep.subr.mxu1 %v320_v12  ;;  %v432_v62 = vld [vmem:[%s8946_s1 + $0xc18] sm:$0xff]  ;;  %v431_v0 = vld [vmem:[%s8946_s1 + $0xc10] sm:$0xff] }
 0x1e8   :  { %2781 = vmatprep.subr.mxu0 %v480_v13  ;;  %2727 = vmatpush1.msra.mxu1 %v319_v14  ;;  %v396_v1 = vld [vmem:[%s8946_s1 + $0xaf8] sm:$0xff]  ;;  %v395_v3 = vld [vmem:[%s8946_s1 + $0xaf0] sm:$0xff] }
 0x1e9   :  { %2782 = vmatpush1.msra.mxu0 %v479_v15  ;;  %2728 = vmatprep.subr.mxu1 %v316_v16  ;;  %v556_v2 = vld [vmem:[%s8946_s1 + $0xff8] sm:$0xff]  ;;  %v555_v4 = vld [vmem:[%s8946_s1 + $0xff0] sm:$0xff] }
 0x1ea   :  { %2783 = vmatprep.subr.mxu0 %v476_v17  ;;  %2729 = vmatpush1.msra.mxu1 %v315_v18  ;;  %v392_v5 = vld [vmem:[%s8946_s1 + $0xad8] sm:$0xff]  ;;  %v391_v7 = vld [vmem:[%s8946_s1 + $0xad0] sm:$0xff] }
 0x1eb   :  { %2784 = vmatpush1.msra.mxu0 %v475_v19  ;;  %2730 = vmatprep.subr.mxu1 %v312_v20  ;;  %v552_v6 = vld [vmem:[%s8946_s1 + $0xfd8] sm:$0xff]  ;;  %v551_v8 = vld [vmem:[%s8946_s1 + $0xfd0] sm:$0xff] }
 0x1ec   :  { %2785 = vmatprep.subr.mxu0 %v472_v21  ;;  %2731 = vmatpush1.msra.mxu1 %v311_v22  ;;  %v388_v9 = vld [vmem:[%s8946_s1 + $0xab8] sm:$0xff]  ;;  %v387_v11 = vld [vmem:[%s8946_s1 + $0xab0] sm:$0xff] }
 0x1ed   :  { %2786 = vmatpush1.msra.mxu0 %v471_v23  ;;  %2732 = vmatprep.subr.mxu1 %v308_v24  ;;  %v548_v10 = vld [vmem:[%s8946_s1 + $0xfb8] sm:$0xff]  ;;  %v547_v12 = vld [vmem:[%s8946_s1 + $0xfb0] sm:$0xff] }
 0x1ee   :  { %2787 = vmatprep.subr.mxu0 %v468_v25  ;;  %2733 = vmatpush1.msra.mxu1 %v307_v26  ;;  %v384_v13 = vld [vmem:[%s8946_s1 + $0xa98] sm:$0xff]  ;;  %v383_v15 = vld [vmem:[%s8946_s1 + $0xa90] sm:$0xff] }
 0x1ef   :  { %2788 = vmatpush1.msra.mxu0 %v467_v27  ;;  %2734 = vmatprep.subr.mxu1 %v304_v28  ;;  %v544_v14 = vld [vmem:[%s8946_s1 + $0xf98] sm:$0xff]  ;;  %v543_v16 = vld [vmem:[%s8946_s1 + $0xf90] sm:$0xff] }
 0x1f0   :  { %2789 = vmatprep.subr.mxu0 %v464_v29  ;;  %2735 = vmatpush1.msra.mxu1 %v303_v30  ;;  %v380_v17 = vld [vmem:[%s8946_s1 + $0xa78] sm:$0xff]  ;;  %v379_v19 = vld [vmem:[%s8946_s1 + $0xa70] sm:$0xff] }
 0x1f1   :  { %2790 = vmatpush1.msra.mxu0 %v463_v31  ;;  %2736 = vmatprep.subr.mxu1 %v428_v32  ;;  %v540_v18 = vld [vmem:[%s8946_s1 + $0xf78] sm:$0xff]  ;;  %v539_v20 = vld [vmem:[%s8946_s1 + $0xf70] sm:$0xff] }
 0x1f2   :  { %2791 = vmatprep.subr.mxu0 %v460_v33  ;;  %2737 = vmatpush2.msra.mxu1 %v427_v34  ;;  %v376_v21 = vld [vmem:[%s8946_s1 + $0xa58] sm:$0xff]  ;;  %v375_v23 = vld [vmem:[%s8946_s1 + $0xa50] sm:$0xff] }
 0x1f3   :  { %2792 = vmatpush1.msra.mxu0 %v459_v35  ;;  %2738 = vmatprep.subr.mxu1 %v424_v36  ;;  %v536_v22 = vld [vmem:[%s8946_s1 + $0xf58] sm:$0xff]  ;;  %v535_v24 = vld [vmem:[%s8946_s1 + $0xf50] sm:$0xff]  ;;  %v3784_v35 = vld [vmem:[%s8947_s0 + $0x28] sm:$0xff] }
 0x1f4   :  { %2793 = vmatprep.subr.mxu0 %v456_v37  ;;  %2739 = vmatpush2.msra.mxu1 %v423_v38  ;;  %v372_v25 = vld [vmem:[%s8946_s1 + $0xa38] sm:$0xff]  ;;  %v371_v27 = vld [vmem:[%s8946_s1 + $0xa30] sm:$0xff]  ;;  %v3785_v38 = vld [vmem:[%s8947_s0 + $0x20] sm:$0xff] }
 0x1f5   :  { %2794 = vmatpush1.msra.mxu0 %v455_v39  ;;  %2740 = vmatprep.subr.mxu1 %v420_v40  ;;  %v532_v26 = vld [vmem:[%s8946_s1 + $0xf38] sm:$0xff]  ;;  %v531_v28 = vld [vmem:[%s8946_s1 + $0xf30] sm:$0xff] }
 0x1f6   :  { %2795 = vmatprep.subr.mxu0 %v452_v41  ;;  %2741 = vmatpush2.msra.mxu1 %v419_v42  ;;  %v368_v29 = vld [vmem:[%s8946_s1 + $0xa18] sm:$0xff]  ;;  %v367_v31 = vld [vmem:[%s8946_s1 + $0xa10] sm:$0xff] }
 0x1f7   :  { %2796 = vmatpush1.msra.mxu0 %v451_v43  ;;  %2742 = vmatprep.subr.mxu1 %v416_v44  ;;  %v528_v30 = vld [vmem:[%s8946_s1 + $0xf18] sm:$0xff]  ;;  %v527_v32 = vld [vmem:[%s8946_s1 + $0xf10] sm:$0xff] }
 0x1f8   :  { %2797 = vmatprep.subr.mxu0 %v448_v45  ;;  %2743 = vmatpush2.msra.mxu1 %v415_v46  ;;  %v524_v33 = vld [vmem:[%s8946_s1 + $0xef8] sm:$0xff]  ;;  %v523_v36 = vld [vmem:[%s8946_s1 + $0xef0] sm:$0xff] }
 0x1f9   :  { %2798 = vmatpush1.msra.mxu0 %v447_v47  ;;  %2744 = vmatprep.subr.mxu1 %v412_v48  ;;  %v620_v34 = vld [vmem:[%s8946_s1 + $0x11f8] sm:$0xff]  ;;  %v619_v37 = vld [vmem:[%s8946_s1 + $0x11f0] sm:$0xff] }
 0x1fa   :  { %2799 = vmatprep.subr.mxu0 %v444_v49  ;;  %2745 = vmatpush2.msra.mxu1 %v411_v50  ;;  %v520_v39 = vld [vmem:[%s8946_s1 + $0xed8] sm:$0xff]  ;;  %v519_v41 = vld [vmem:[%s8946_s1 + $0xed0] sm:$0xff] }
 0x1fb   :  { %2800 = vmatpush1.msra.mxu0 %v443_v51  ;;  %2746 = vmatprep.subr.mxu1 %v408_v52  ;;  %v616_v40 = vld [vmem:[%s8946_s1 + $0x11d8] sm:$0xff]  ;;  %v615_v42 = vld [vmem:[%s8946_s1 + $0x11d0] sm:$0xff] }
 0x1fc   :  { %2801 = vmatprep.subr.mxu0 %v440_v53  ;;  %2747 = vmatpush2.msra.mxu1 %v407_v54  ;;  %v516_v43 = vld [vmem:[%s8946_s1 + $0xeb8] sm:$0xff]  ;;  %v515_v45 = vld [vmem:[%s8946_s1 + $0xeb0] sm:$0xff] }
 0x1fd   :  { %2802 = vmatpush1.msra.mxu0 %v439_v55  ;;  %2748 = vmatprep.subr.mxu1 %v404_v56  ;;  %v612_v44 = vld [vmem:[%s8946_s1 + $0x11b8] sm:$0xff]  ;;  %v611_v46 = vld [vmem:[%s8946_s1 + $0x11b0] sm:$0xff] }
 0x1fe   :  { %2803 = vmatprep.subr.mxu0 %v436_v57  ;;  %2749 = vmatpush2.msra.mxu1 %v403_v58  ;;  %v512_v47 = vld [vmem:[%s8946_s1 + $0xe98] sm:$0xff]  ;;  %v511_v49 = vld [vmem:[%s8946_s1 + $0xe90] sm:$0xff] }
 0x1ff   :  { %2804 = vmatpush1.msra.mxu0 %v435_v60  ;;  %2750 = vmatprep.subr.mxu1 %v400_v61  ;;  %v608_v48 = vld [vmem:[%s8946_s1 + $0x1198] sm:$0xff]  ;;  %v607_v50 = vld [vmem:[%s8946_s1 + $0x1190] sm:$0xff] }
 0x200   :  { %2805 = vmatprep.subr.mxu0 %v432_v62  ;;  %2751 = vmatpush2.msra.mxu1 %v399_v63  ;;  %v508_v51 = vld [vmem:[%s8946_s1 + $0xe78] sm:$0xff]  ;;  %v507_v53 = vld [vmem:[%s8946_s1 + $0xe70] sm:$0xff] }
 0x201   :  { %2806 = vmatpush1.msra.mxu0 %v431_v0  ;;  %2752 = vmatprep.subr.mxu1 %v396_v1  ;;  %v604_v52 = vld [vmem:[%s8946_s1 + $0x1178] sm:$0xff]  ;;  %v603_v54 = vld [vmem:[%s8946_s1 + $0x1170] sm:$0xff] }
 0x202   :  { %2807 = vmatprep.subr.mxu0 %v556_v2  ;;  %2753 = vmatpush2.msra.mxu1 %v395_v3  ;;  %v504_v55 = vld [vmem:[%s8946_s1 + $0xe58] sm:$0xff]  ;;  %v503_v57 = vld [vmem:[%s8946_s1 + $0xe50] sm:$0xff] }
 0x203   :  { %2808 = vmatpush2.msra.mxu0 %v555_v4  ;;  %2754 = vmatprep.subr.mxu1 %v392_v5  ;;  %v600_v56 = vld [vmem:[%s8946_s1 + $0x1158] sm:$0xff]  ;;  %v599_v58 = vld [vmem:[%s8946_s1 + $0x1150] sm:$0xff] }
 0x204   :  { %2809 = vmatprep.subr.mxu0 %v552_v6  ;;  %2755 = vmatpush2.msra.mxu1 %v391_v7  ;;  %v500_v60 = vld [vmem:[%s8946_s1 + $0xe38] sm:$0xff]  ;;  %v499_v62 = vld [vmem:[%s8946_s1 + $0xe30] sm:$0xff] }
 0x205   :  { %2810 = vmatpush2.msra.mxu0 %v551_v8  ;;  %2756 = vmatprep.subr.mxu1 %v388_v9  ;;  %v596_v61 = vld [vmem:[%s8946_s1 + $0x1138] sm:$0xff]  ;;  %v595_v63 = vld [vmem:[%s8946_s1 + $0x1130] sm:$0xff] }
 0x206   :  { %2811 = vmatprep.subr.mxu0 %v548_v10  ;;  %2757 = vmatpush2.msra.mxu1 %v387_v11  ;;  %v496_v0 = vld [vmem:[%s8946_s1 + $0xe18] sm:$0xff]  ;;  %v495_v2 = vld [vmem:[%s8946_s1 + $0xe10] sm:$0xff] }
 0x207   :  { %2812 = vmatpush2.msra.mxu0 %v547_v12  ;;  %2758 = vmatprep.subr.mxu1 %v384_v13  ;;  %v592_v1 = vld [vmem:[%s8946_s1 + $0x1118] sm:$0xff]  ;;  %v591_v3 = vld [vmem:[%s8946_s1 + $0x1110] sm:$0xff] }
 0x208   :  { %2813 = vmatprep.subr.mxu0 %v544_v14  ;;  %2759 = vmatpush2.msra.mxu1 %v383_v15  ;;  %v588_v4 = vld [vmem:[%s8946_s1 + $0x10f8] sm:$0xff]  ;;  %v587_v7 = vld [vmem:[%s8946_s1 + $0x10f0] sm:$0xff] }
 0x209   :  { %2814 = vmatpush2.msra.mxu0 %v543_v16  ;;  %2760 = vmatprep.subr.mxu1 %v380_v17  ;;  %v748_v5 = vld [vmem:[%s8946_s1 + $0x15f8] sm:$0xff]  ;;  %v747_v8 = vld [vmem:[%s8946_s1 + $0x15f0] sm:$0xff] }
 0x20a   :  { %2815 = vmatprep.subr.mxu0 %v540_v18  ;;  %2761 = vmatpush2.msra.mxu1 %v379_v19  ;;  %v3786_v6 = vld [vmem:[%s8947_s0 + $0x38] sm:$0xff]  ;;  %v3787_v9 = vld [vmem:[%s8947_s0 + $0x30] sm:$0xff] }
 0x20b   :  { %2816 = vmatpush2.msra.mxu0 %v539_v20  ;;  %2762 = vmatprep.subr.mxu1 %v376_v21  ;;  %v584_v10 = vld [vmem:[%s8946_s1 + $0x10d8] sm:$0xff]  ;;  %v583_v12 = vld [vmem:[%s8946_s1 + $0x10d0] sm:$0xff] }
 0x20c   :  { %2817 = vmatprep.subr.mxu0 %v536_v22  ;;  %2763 = vmatpush2.msra.mxu1 %v375_v23  ;;  %v744_v11 = vld [vmem:[%s8946_s1 + $0x15d8] sm:$0xff]  ;;  %v743_v13 = vld [vmem:[%s8946_s1 + $0x15d0] sm:$0xff] }
 0x20d   :  { %2818 = vmatpush2.msra.mxu0 %v535_v24  ;;  %2764 = vmatprep.subr.mxu1 %v372_v25  ;;  %v580_v14 = vld [vmem:[%s8946_s1 + $0x10b8] sm:$0xff]  ;;  %v579_v16 = vld [vmem:[%s8946_s1 + $0x10b0] sm:$0xff] }
 0x20e   :  { %2819 = vmatprep.subr.mxu0 %v532_v26  ;;  %2765 = vmatpush2.msra.mxu1 %v371_v27  ;;  %v740_v15 = vld [vmem:[%s8946_s1 + $0x15b8] sm:$0xff]  ;;  %v739_v17 = vld [vmem:[%s8946_s1 + $0x15b0] sm:$0xff] }
 0x20f   :  { %2820 = vmatpush2.msra.mxu0 %v531_v28  ;;  %2766 = vmatprep.subr.mxu1 %v368_v29  ;;  %v576_v18 = vld [vmem:[%s8946_s1 + $0x1098] sm:$0xff]  ;;  %v575_v20 = vld [vmem:[%s8946_s1 + $0x1090] sm:$0xff] }
 0x210   :  { %2821 = vmatprep.subr.mxu0 %v528_v30  ;;  %2767 = vmatpush2.msra.mxu1 %v367_v31  ;;  %v736_v19 = vld [vmem:[%s8946_s1 + $0x1598] sm:$0xff]  ;;  %v735_v21 = vld [vmem:[%s8946_s1 + $0x1590] sm:$0xff] }
 0x211   :  { %2768 = vmatprep.mubr.f32.mxu1 %v3784_v35  ;;  %2822 = vmatpush2.msra.mxu0 %v527_v32  ;;  %v572_v22 = vld [vmem:[%s8946_s1 + $0x1078] sm:$0xff]  ;;  %v571_v24 = vld [vmem:[%s8946_s1 + $0x1070] sm:$0xff] }
 0x212   :  { %2769 = vmatmul.mubr.f32.vlgmr.msra.gmra.mxu1 %v3785_v38  ;;  %2823 = vmatprep.subr.mxu0 %v524_v33  ;;  %v732_v23 = vld [vmem:[%s8946_s1 + $0x1578] sm:$0xff]  ;;  %v731_v25 = vld [vmem:[%s8946_s1 + $0x1570] sm:$0xff] }
 0x213   :  { %2846 = vmatprep.subr.mxu1 %v620_v34  ;;  %2824 = vmatpush2.msra.mxu0 %v523_v36  ;;  %v568_v26 = vld [vmem:[%s8946_s1 + $0x1058] sm:$0xff]  ;;  %v567_v28 = vld [vmem:[%s8946_s1 + $0x1050] sm:$0xff] }
 0x214   :  { %2847 = vmatpush1.msra.mxu1 %v619_v37  ;;  %2825 = vmatprep.subr.mxu0 %v520_v39  ;;  %v728_v27 = vld [vmem:[%s8946_s1 + $0x1558] sm:$0xff]  ;;  %v727_v29 = vld [vmem:[%s8946_s1 + $0x1550] sm:$0xff] }
 0x215   :  { %2848 = vmatprep.subr.mxu1 %v616_v40  ;;  %2826 = vmatpush2.msra.mxu0 %v519_v41  ;;  %v564_v30 = vld [vmem:[%s8946_s1 + $0x1038] sm:$0xff]  ;;  %v563_v32 = vld [vmem:[%s8946_s1 + $0x1030] sm:$0xff] }
 0x216   :  { %2849 = vmatpush1.msra.mxu1 %v615_v42  ;;  %2827 = vmatprep.subr.mxu0 %v516_v43  ;;  %v724_v31 = vld [vmem:[%s8946_s1 + $0x1538] sm:$0xff]  ;;  %v723_v33 = vld [vmem:[%s8946_s1 + $0x1530] sm:$0xff] }
 0x217   :  { %2850 = vmatprep.subr.mxu1 %v612_v44  ;;  %2828 = vmatpush2.msra.mxu0 %v515_v45  ;;  %v560_v34 = vld [vmem:[%s8946_s1 + $0x1018] sm:$0xff]  ;;  %v559_v36 = vld [vmem:[%s8946_s1 + $0x1010] sm:$0xff] }
 0x218   :  { %2851 = vmatpush1.msra.mxu1 %v611_v46  ;;  %2829 = vmatprep.subr.mxu0 %v512_v47  ;;  %v720_v35 = vld [vmem:[%s8946_s1 + $0x1518] sm:$0xff]  ;;  %v719_v37 = vld [vmem:[%s8946_s1 + $0x1510] sm:$0xff] }
 0x219   :  { %2852 = vmatprep.subr.mxu1 %v608_v48  ;;  %2830 = vmatpush2.msra.mxu0 %v511_v49  ;;  %v684_v38 = vld [vmem:[%s8946_s1 + $0x13f8] sm:$0xff]  ;;  %v683_v40 = vld [vmem:[%s8946_s1 + $0x13f0] sm:$0xff] }
 0x21a   :  { %2853 = vmatpush1.msra.mxu1 %v607_v50  ;;  %2831 = vmatprep.subr.mxu0 %v508_v51  ;;  %v716_v39 = vld [vmem:[%s8946_s1 + $0x14f8] sm:$0xff]  ;;  %v715_v41 = vld [vmem:[%s8946_s1 + $0x14f0] sm:$0xff] }
 0x21b   :  { %2854 = vmatprep.subr.mxu1 %v604_v52  ;;  %2832 = vmatpush2.msra.mxu0 %v507_v53  ;;  %v680_v42 = vld [vmem:[%s8946_s1 + $0x13d8] sm:$0xff]  ;;  %v679_v44 = vld [vmem:[%s8946_s1 + $0x13d0] sm:$0xff] }
 0x21c   :  { %2855 = vmatpush1.msra.mxu1 %v603_v54  ;;  %2833 = vmatprep.subr.mxu0 %v504_v55  ;;  %v712_v43 = vld [vmem:[%s8946_s1 + $0x14d8] sm:$0xff]  ;;  %v711_v45 = vld [vmem:[%s8946_s1 + $0x14d0] sm:$0xff] }
 0x21d   :  { %2856 = vmatprep.subr.mxu1 %v600_v56  ;;  %2834 = vmatpush2.msra.mxu0 %v503_v57  ;;  %v676_v46 = vld [vmem:[%s8946_s1 + $0x13b8] sm:$0xff]  ;;  %v675_v48 = vld [vmem:[%s8946_s1 + $0x13b0] sm:$0xff] }
 0x21e   :  { %2857 = vmatpush1.msra.mxu1 %v599_v58  ;;  %2835 = vmatprep.subr.mxu0 %v500_v60  ;;  %v708_v47 = vld [vmem:[%s8946_s1 + $0x14b8] sm:$0xff]  ;;  %v707_v49 = vld [vmem:[%s8946_s1 + $0x14b0] sm:$0xff] }
 0x21f   :  { %2858 = vmatprep.subr.mxu1 %v596_v61  ;;  %2836 = vmatpush2.msra.mxu0 %v499_v62  ;;  %v672_v50 = vld [vmem:[%s8946_s1 + $0x1398] sm:$0xff]  ;;  %v671_v52 = vld [vmem:[%s8946_s1 + $0x1390] sm:$0xff] }
 0x220   :  { %2859 = vmatpush1.msra.mxu1 %v595_v63  ;;  %2837 = vmatprep.subr.mxu0 %v496_v0  ;;  %v704_v51 = vld [vmem:[%s8946_s1 + $0x1498] sm:$0xff]  ;;  %v703_v53 = vld [vmem:[%s8946_s1 + $0x1490] sm:$0xff] }
 0x221   :  { %2860 = vmatprep.subr.mxu1 %v592_v1  ;;  %2838 = vmatpush2.msra.mxu0 %v495_v2  ;;  %v668_v54 = vld [vmem:[%s8946_s1 + $0x1378] sm:$0xff]  ;;  %v667_v56 = vld [vmem:[%s8946_s1 + $0x1370] sm:$0xff] }
 0x222   :  { %2839 = vmatprep.mubr.f32.mxu0 %v3786_v6  ;;  %2861 = vmatpush1.msra.mxu1 %v591_v3  ;;  %v700_v55 = vld [vmem:[%s8946_s1 + $0x1478] sm:$0xff]  ;;  %v699_v57 = vld [vmem:[%s8946_s1 + $0x1470] sm:$0xff] }
 0x223   :  { %2840 = vmatmul.mubr.f32.vlgmr.msra.gmra.mxu0 %v3787_v9  ;;  %2862 = vmatprep.subr.mxu1 %v588_v4  ;;  %v664_v58 = vld [vmem:[%s8946_s1 + $0x1358] sm:$0xff]  ;;  %v663_v61 = vld [vmem:[%s8946_s1 + $0x1350] sm:$0xff] }
 0x224   :  { %2917 = vmatprep.subr.mxu0 %v748_v5  ;;  %2863 = vmatpush1.msra.mxu1 %v587_v7  ;;  %v696_v60 = vld [vmem:[%s8946_s1 + $0x1458] sm:$0xff]  ;;  %v695_v62 = vld [vmem:[%s8946_s1 + $0x1450] sm:$0xff] }
 0x225   :  { %2918 = vmatpush1.msra.mxu0 %v747_v8  ;;  %2864 = vmatprep.subr.mxu1 %v584_v10  ;;  %v660_v63 = vld [vmem:[%s8946_s1 + $0x1338] sm:$0xff]  ;;  %v659_v1 = vld [vmem:[%s8946_s1 + $0x1330] sm:$0xff] }
 0x226   :  { %2919 = vmatprep.subr.mxu0 %v744_v11  ;;  %2865 = vmatpush1.msra.mxu1 %v583_v12  ;;  %v692_v0 = vld [vmem:[%s8946_s1 + $0x1438] sm:$0xff]  ;;  %v691_v2 = vld [vmem:[%s8946_s1 + $0x1430] sm:$0xff] }
 0x227   :  { %2920 = vmatpush1.msra.mxu0 %v743_v13  ;;  %2866 = vmatprep.subr.mxu1 %v580_v14  ;;  %v656_v3 = vld [vmem:[%s8946_s1 + $0x1318] sm:$0xff]  ;;  %v655_v5 = vld [vmem:[%s8946_s1 + $0x1310] sm:$0xff] }
 0x228   :  { %2921 = vmatprep.subr.mxu0 %v740_v15  ;;  %2867 = vmatpush1.msra.mxu1 %v579_v16  ;;  %v688_v4 = vld [vmem:[%s8946_s1 + $0x1418] sm:$0xff]  ;;  %v687_v6 = vld [vmem:[%s8946_s1 + $0x1410] sm:$0xff] }
 0x229   :  { %2922 = vmatpush1.msra.mxu0 %v739_v17  ;;  %2868 = vmatprep.subr.mxu1 %v576_v18  ;;  %v652_v7 = vld [vmem:[%s8946_s1 + $0x12f8] sm:$0xff]  ;;  %v651_v9 = vld [vmem:[%s8946_s1 + $0x12f0] sm:$0xff] }
 0x22a   :  { %2923 = vmatprep.subr.mxu0 %v736_v19  ;;  %2869 = vmatpush1.msra.mxu1 %v575_v20  ;;  %v812_v8 = vld [vmem:[%s8946_s1 + $0x17f8] sm:$0xff]  ;;  %v811_v10 = vld [vmem:[%s8946_s1 + $0x17f0] sm:$0xff] }
 0x22b   :  { %2924 = vmatpush1.msra.mxu0 %v735_v21  ;;  %2870 = vmatprep.subr.mxu1 %v572_v22  ;;  %v648_v11 = vld [vmem:[%s8946_s1 + $0x12d8] sm:$0xff]  ;;  %v647_v13 = vld [vmem:[%s8946_s1 + $0x12d0] sm:$0xff] }
 0x22c   :  { %2925 = vmatprep.subr.mxu0 %v732_v23  ;;  %2871 = vmatpush1.msra.mxu1 %v571_v24  ;;  %v808_v12 = vld [vmem:[%s8946_s1 + $0x17d8] sm:$0xff]  ;;  %v807_v14 = vld [vmem:[%s8946_s1 + $0x17d0] sm:$0xff] }
 0x22d   :  { %2926 = vmatpush1.msra.mxu0 %v731_v25  ;;  %2872 = vmatprep.subr.mxu1 %v568_v26  ;;  %v644_v15 = vld [vmem:[%s8946_s1 + $0x12b8] sm:$0xff]  ;;  %v643_v17 = vld [vmem:[%s8946_s1 + $0x12b0] sm:$0xff] }
 0x22e   :  { %2927 = vmatprep.subr.mxu0 %v728_v27  ;;  %2873 = vmatpush1.msra.mxu1 %v567_v28  ;;  %v804_v16 = vld [vmem:[%s8946_s1 + $0x17b8] sm:$0xff]  ;;  %v803_v18 = vld [vmem:[%s8946_s1 + $0x17b0] sm:$0xff] }
 0x22f   :  { %2928 = vmatpush1.msra.mxu0 %v727_v29  ;;  %2874 = vmatprep.subr.mxu1 %v564_v30  ;;  %v640_v19 = vld [vmem:[%s8946_s1 + $0x1298] sm:$0xff]  ;;  %v639_v21 = vld [vmem:[%s8946_s1 + $0x1290] sm:$0xff] }
 0x230   :  { %2929 = vmatprep.subr.mxu0 %v724_v31  ;;  %2875 = vmatpush1.msra.mxu1 %v563_v32  ;;  %v800_v20 = vld [vmem:[%s8946_s1 + $0x1798] sm:$0xff]  ;;  %v799_v22 = vld [vmem:[%s8946_s1 + $0x1790] sm:$0xff] }
 0x231   :  { %2930 = vmatpush1.msra.mxu0 %v723_v33  ;;  %2876 = vmatprep.subr.mxu1 %v560_v34  ;;  %v636_v23 = vld [vmem:[%s8946_s1 + $0x1278] sm:$0xff]  ;;  %v635_v25 = vld [vmem:[%s8946_s1 + $0x1270] sm:$0xff] }
 0x232   :  { %2931 = vmatprep.subr.mxu0 %v720_v35  ;;  %2877 = vmatpush1.msra.mxu1 %v559_v36  ;;  %v796_v24 = vld [vmem:[%s8946_s1 + $0x1778] sm:$0xff]  ;;  %v795_v26 = vld [vmem:[%s8946_s1 + $0x1770] sm:$0xff] }
 0x233   :  { %2932 = vmatpush1.msra.mxu0 %v719_v37  ;;  %2878 = vmatprep.subr.mxu1 %v684_v38  ;;  %v632_v27 = vld [vmem:[%s8946_s1 + $0x1258] sm:$0xff]  ;;  %v631_v29 = vld [vmem:[%s8946_s1 + $0x1250] sm:$0xff] }
 0x234   :  { %2933 = vmatprep.subr.mxu0 %v716_v39  ;;  %2879 = vmatpush2.msra.mxu1 %v683_v40  ;;  %v792_v28 = vld [vmem:[%s8946_s1 + $0x1758] sm:$0xff]  ;;  %v791_v30 = vld [vmem:[%s8946_s1 + $0x1750] sm:$0xff] }
 0x235   :  { %2934 = vmatpush1.msra.mxu0 %v715_v41  ;;  %2880 = vmatprep.subr.mxu1 %v680_v42  ;;  %v628_v31 = vld [vmem:[%s8946_s1 + $0x1238] sm:$0xff]  ;;  %v627_v33 = vld [vmem:[%s8946_s1 + $0x1230] sm:$0xff]  ;;  %v3788_v41 = vld [vmem:[%s8947_s0 + $0x48] sm:$0xff] }
 0x236   :  { %2935 = vmatprep.subr.mxu0 %v712_v43  ;;  %2881 = vmatpush2.msra.mxu1 %v679_v44  ;;  %v788_v32 = vld [vmem:[%s8946_s1 + $0x1738] sm:$0xff]  ;;  %v787_v34 = vld [vmem:[%s8946_s1 + $0x1730] sm:$0xff]  ;;  %v3789_v44 = vld [vmem:[%s8947_s0 + $0x40] sm:$0xff] }
 0x237   :  { %2936 = vmatpush1.msra.mxu0 %v711_v45  ;;  %2882 = vmatprep.subr.mxu1 %v676_v46  ;;  %v624_v35 = vld [vmem:[%s8946_s1 + $0x1218] sm:$0xff]  ;;  %v623_v37 = vld [vmem:[%s8946_s1 + $0x1210] sm:$0xff] }
 0x238   :  { %2937 = vmatprep.subr.mxu0 %v708_v47  ;;  %2883 = vmatpush2.msra.mxu1 %v675_v48  ;;  %v784_v36 = vld [vmem:[%s8946_s1 + $0x1718] sm:$0xff]  ;;  %v783_v38 = vld [vmem:[%s8946_s1 + $0x1710] sm:$0xff] }
 0x239   :  { %2938 = vmatpush1.msra.mxu0 %v707_v49  ;;  %2884 = vmatprep.subr.mxu1 %v672_v50  ;;  %v780_v39 = vld [vmem:[%s8946_s1 + $0x16f8] sm:$0xff]  ;;  %v779_v42 = vld [vmem:[%s8946_s1 + $0x16f0] sm:$0xff] }
 0x23a   :  { %2939 = vmatprep.subr.mxu0 %v704_v51  ;;  %2885 = vmatpush2.msra.mxu1 %v671_v52  ;;  %v876_v40 = vld [vmem:[%s8946_s1 + $0x19f8] sm:$0xff]  ;;  %v875_v43 = vld [vmem:[%s8946_s1 + $0x19f0] sm:$0xff] }
 0x23b   :  { %2940 = vmatpush1.msra.mxu0 %v703_v53  ;;  %2886 = vmatprep.subr.mxu1 %v668_v54  ;;  %v776_v45 = vld [vmem:[%s8946_s1 + $0x16d8] sm:$0xff]  ;;  %v775_v47 = vld [vmem:[%s8946_s1 + $0x16d0] sm:$0xff] }
 0x23c   :  { %2941 = vmatprep.subr.mxu0 %v700_v55  ;;  %2887 = vmatpush2.msra.mxu1 %v667_v56  ;;  %v872_v46 = vld [vmem:[%s8946_s1 + $0x19d8] sm:$0xff]  ;;  %v871_v48 = vld [vmem:[%s8946_s1 + $0x19d0] sm:$0xff] }
 0x23d   :  { %2942 = vmatpush1.msra.mxu0 %v699_v57  ;;  %2888 = vmatprep.subr.mxu1 %v664_v58  ;;  %v772_v49 = vld [vmem:[%s8946_s1 + $0x16b8] sm:$0xff]  ;;  %v771_v51 = vld [vmem:[%s8946_s1 + $0x16b0] sm:$0xff] }
 0x23e   :  { %2943 = vmatprep.subr.mxu0 %v696_v60  ;;  %2889 = vmatpush2.msra.mxu1 %v663_v61  ;;  %v868_v50 = vld [vmem:[%s8946_s1 + $0x19b8] sm:$0xff]  ;;  %v867_v52 = vld [vmem:[%s8946_s1 + $0x19b0] sm:$0xff] }
 0x23f   :  { %2944 = vmatpush1.msra.mxu0 %v695_v62  ;;  %2890 = vmatprep.subr.mxu1 %v660_v63  ;;  %v768_v53 = vld [vmem:[%s8946_s1 + $0x1698] sm:$0xff]  ;;  %v767_v55 = vld [vmem:[%s8946_s1 + $0x1690] sm:$0xff] }
 0x240   :  { %2945 = vmatprep.subr.mxu0 %v692_v0  ;;  %2891 = vmatpush2.msra.mxu1 %v659_v1  ;;  %v864_v54 = vld [vmem:[%s8946_s1 + $0x1998] sm:$0xff]  ;;  %v863_v56 = vld [vmem:[%s8946_s1 + $0x1990] sm:$0xff] }
 0x241   :  { %2946 = vmatpush1.msra.mxu0 %v691_v2  ;;  %2892 = vmatprep.subr.mxu1 %v656_v3  ;;  %v764_v57 = vld [vmem:[%s8946_s1 + $0x1678] sm:$0xff]  ;;  %v763_v60 = vld [vmem:[%s8946_s1 + $0x1670] sm:$0xff] }
 0x242   :  { %2947 = vmatprep.subr.mxu0 %v688_v4  ;;  %2893 = vmatpush2.msra.mxu1 %v655_v5  ;;  %v860_v58 = vld [vmem:[%s8946_s1 + $0x1978] sm:$0xff]  ;;  %v859_v61 = vld [vmem:[%s8946_s1 + $0x1970] sm:$0xff] }
 0x243   :  { %2948 = vmatpush1.msra.mxu0 %v687_v6  ;;  %2894 = vmatprep.subr.mxu1 %v652_v7  ;;  %v760_v62 = vld [vmem:[%s8946_s1 + $0x1658] sm:$0xff]  ;;  %v759_v0 = vld [vmem:[%s8946_s1 + $0x1650] sm:$0xff] }
 0x244   :  { %2949 = vmatprep.subr.mxu0 %v812_v8  ;;  %2895 = vmatpush2.msra.mxu1 %v651_v9  ;;  %v856_v63 = vld [vmem:[%s8946_s1 + $0x1958] sm:$0xff]  ;;  %v855_v1 = vld [vmem:[%s8946_s1 + $0x1950] sm:$0xff] }
 0x245   :  { %2950 = vmatpush2.msra.mxu0 %v811_v10  ;;  %2896 = vmatprep.subr.mxu1 %v648_v11  ;;  %v756_v2 = vld [vmem:[%s8946_s1 + $0x1638] sm:$0xff]  ;;  %v755_v4 = vld [vmem:[%s8946_s1 + $0x1630] sm:$0xff] }
 0x246   :  { %2951 = vmatprep.subr.mxu0 %v808_v12  ;;  %2897 = vmatpush2.msra.mxu1 %v647_v13  ;;  %v852_v3 = vld [vmem:[%s8946_s1 + $0x1938] sm:$0xff]  ;;  %v851_v5 = vld [vmem:[%s8946_s1 + $0x1930] sm:$0xff] }
 0x247   :  { %2952 = vmatpush2.msra.mxu0 %v807_v14  ;;  %2898 = vmatprep.subr.mxu1 %v644_v15  ;;  %v752_v6 = vld [vmem:[%s8946_s1 + $0x1618] sm:$0xff]  ;;  %v751_v8 = vld [vmem:[%s8946_s1 + $0x1610] sm:$0xff] }
 0x248   :  { %2953 = vmatprep.subr.mxu0 %v804_v16  ;;  %2899 = vmatpush2.msra.mxu1 %v643_v17  ;;  %v848_v7 = vld [vmem:[%s8946_s1 + $0x1918] sm:$0xff]  ;;  %v847_v9 = vld [vmem:[%s8946_s1 + $0x1910] sm:$0xff] }
 0x249   :  { %2954 = vmatpush2.msra.mxu0 %v803_v18  ;;  %2900 = vmatprep.subr.mxu1 %v640_v19  ;;  %v844_v10 = vld [vmem:[%s8946_s1 + $0x18f8] sm:$0xff]  ;;  %v843_v13 = vld [vmem:[%s8946_s1 + $0x18f0] sm:$0xff] }
 0x24a   :  { %2955 = vmatprep.subr.mxu0 %v800_v20  ;;  %2901 = vmatpush2.msra.mxu1 %v639_v21  ;;  %v1004_v11 = vld [vmem:[%s8946_s1 + $0x1df8] sm:$0xff]  ;;  %v1003_v14 = vld [vmem:[%s8946_s1 + $0x1df0] sm:$0xff] }
 0x24b   :  { %2956 = vmatpush2.msra.mxu0 %v799_v22  ;;  %2902 = vmatprep.subr.mxu1 %v636_v23  ;;  %v3790_v12 = vld [vmem:[%s8947_s0 + $0x58] sm:$0xff]  ;;  %v3791_v15 = vld [vmem:[%s8947_s0 + $0x50] sm:$0xff] }
 0x24c   :  { %2957 = vmatprep.subr.mxu0 %v796_v24  ;;  %2903 = vmatpush2.msra.mxu1 %v635_v25  ;;  %v840_v16 = vld [vmem:[%s8946_s1 + $0x18d8] sm:$0xff]  ;;  %v839_v18 = vld [vmem:[%s8946_s1 + $0x18d0] sm:$0xff] }
 0x24d   :  { %2958 = vmatpush2.msra.mxu0 %v795_v26  ;;  %2904 = vmatprep.subr.mxu1 %v632_v27  ;;  %v1000_v17 = vld [vmem:[%s8946_s1 + $0x1dd8] sm:$0xff]  ;;  %v999_v19 = vld [vmem:[%s8946_s1 + $0x1dd0] sm:$0xff] }
 0x24e   :  { %2959 = vmatprep.subr.mxu0 %v792_v28  ;;  %2905 = vmatpush2.msra.mxu1 %v631_v29  ;;  %v836_v20 = vld [vmem:[%s8946_s1 + $0x18b8] sm:$0xff]  ;;  %v835_v22 = vld [vmem:[%s8946_s1 + $0x18b0] sm:$0xff] }
 0x24f   :  { %2960 = vmatpush2.msra.mxu0 %v791_v30  ;;  %2906 = vmatprep.subr.mxu1 %v628_v31  ;;  %v996_v21 = vld [vmem:[%s8946_s1 + $0x1db8] sm:$0xff]  ;;  %v995_v23 = vld [vmem:[%s8946_s1 + $0x1db0] sm:$0xff] }
 0x250   :  { %2961 = vmatprep.subr.mxu0 %v788_v32  ;;  %2907 = vmatpush2.msra.mxu1 %v627_v33  ;;  %v832_v24 = vld [vmem:[%s8946_s1 + $0x1898] sm:$0xff]  ;;  %v831_v26 = vld [vmem:[%s8946_s1 + $0x1890] sm:$0xff] }
 0x251   :  { %2962 = vmatpush2.msra.mxu0 %v787_v34  ;;  %2908 = vmatprep.subr.mxu1 %v624_v35  ;;  %v992_v25 = vld [vmem:[%s8946_s1 + $0x1d98] sm:$0xff]  ;;  %v991_v27 = vld [vmem:[%s8946_s1 + $0x1d90] sm:$0xff] }
 0x252   :  { %2963 = vmatprep.subr.mxu0 %v784_v36  ;;  %2909 = vmatpush2.msra.mxu1 %v623_v37  ;;  %v828_v28 = vld [vmem:[%s8946_s1 + $0x1878] sm:$0xff]  ;;  %v827_v30 = vld [vmem:[%s8946_s1 + $0x1870] sm:$0xff] }
 0x253   :  { %2910 = vmatprep.mubr.f32.mxu1 %v3788_v41  ;;  %2964 = vmatpush2.msra.mxu0 %v783_v38  ;;  %v988_v29 = vld [vmem:[%s8946_s1 + $0x1d78] sm:$0xff]  ;;  %v987_v31 = vld [vmem:[%s8946_s1 + $0x1d70] sm:$0xff] }
 0x254   :  { %2911 = vmatmul.mubr.f32.vlgmr.msra.gmra.mxu1 %v3789_v44  ;;  %2965 = vmatprep.subr.mxu0 %v780_v39  ;;  %v824_v32 = vld [vmem:[%s8946_s1 + $0x1858] sm:$0xff]  ;;  %v823_v34 = vld [vmem:[%s8946_s1 + $0x1850] sm:$0xff] }
 0x255   :  { %2988 = vmatprep.subr.mxu1 %v876_v40  ;;  %2966 = vmatpush2.msra.mxu0 %v779_v42  ;;  %v984_v33 = vld [vmem:[%s8946_s1 + $0x1d58] sm:$0xff]  ;;  %v983_v35 = vld [vmem:[%s8946_s1 + $0x1d50] sm:$0xff] }
 0x256   :  { %2989 = vmatpush1.msra.mxu1 %v875_v43  ;;  %2967 = vmatprep.subr.mxu0 %v776_v45  ;;  %v820_v36 = vld [vmem:[%s8946_s1 + $0x1838] sm:$0xff]  ;;  %v819_v38 = vld [vmem:[%s8946_s1 + $0x1830] sm:$0xff] }
 0x257   :  { %2990 = vmatprep.subr.mxu1 %v872_v46  ;;  %2968 = vmatpush2.msra.mxu0 %v775_v47  ;;  %v980_v37 = vld [vmem:[%s8946_s1 + $0x1d38] sm:$0xff]  ;;  %v979_v39 = vld [vmem:[%s8946_s1 + $0x1d30] sm:$0xff] }
 0x258   :  { %2991 = vmatpush1.msra.mxu1 %v871_v48  ;;  %2969 = vmatprep.subr.mxu0 %v772_v49  ;;  %v816_v40 = vld [vmem:[%s8946_s1 + $0x1818] sm:$0xff]  ;;  %v815_v42 = vld [vmem:[%s8946_s1 + $0x1810] sm:$0xff] }
 0x259   :  { %2992 = vmatprep.subr.mxu1 %v868_v50  ;;  %2970 = vmatpush2.msra.mxu0 %v771_v51  ;;  %v976_v41 = vld [vmem:[%s8946_s1 + $0x1d18] sm:$0xff]  ;;  %v975_v43 = vld [vmem:[%s8946_s1 + $0x1d10] sm:$0xff] }
 0x25a   :  { %2993 = vmatpush1.msra.mxu1 %v867_v52  ;;  %2971 = vmatprep.subr.mxu0 %v768_v53  ;;  %v940_v44 = vld [vmem:[%s8946_s1 + $0x1bf8] sm:$0xff]  ;;  %v939_v46 = vld [vmem:[%s8946_s1 + $0x1bf0] sm:$0xff] }
 0x25b   :  { %2994 = vmatprep.subr.mxu1 %v864_v54  ;;  %2972 = vmatpush2.msra.mxu0 %v767_v55  ;;  %v972_v45 = vld [vmem:[%s8946_s1 + $0x1cf8] sm:$0xff]  ;;  %v971_v47 = vld [vmem:[%s8946_s1 + $0x1cf0] sm:$0xff] }
 0x25c   :  { %2995 = vmatpush1.msra.mxu1 %v863_v56  ;;  %2973 = vmatprep.subr.mxu0 %v764_v57  ;;  %v936_v48 = vld [vmem:[%s8946_s1 + $0x1bd8] sm:$0xff]  ;;  %v935_v50 = vld [vmem:[%s8946_s1 + $0x1bd0] sm:$0xff] }
 0x25d   :  { %2996 = vmatprep.subr.mxu1 %v860_v58  ;;  %2974 = vmatpush2.msra.mxu0 %v763_v60  ;;  %v968_v49 = vld [vmem:[%s8946_s1 + $0x1cd8] sm:$0xff]  ;;  %v967_v51 = vld [vmem:[%s8946_s1 + $0x1cd0] sm:$0xff] }
 0x25e   :  { %2997 = vmatpush1.msra.mxu1 %v859_v61  ;;  %2975 = vmatprep.subr.mxu0 %v760_v62  ;;  %v932_v52 = vld [vmem:[%s8946_s1 + $0x1bb8] sm:$0xff]  ;;  %v931_v54 = vld [vmem:[%s8946_s1 + $0x1bb0] sm:$0xff] }
 0x25f   :  { %2998 = vmatprep.subr.mxu1 %v856_v63  ;;  %2976 = vmatpush2.msra.mxu0 %v759_v0  ;;  %v964_v53 = vld [vmem:[%s8946_s1 + $0x1cb8] sm:$0xff]  ;;  %v963_v55 = vld [vmem:[%s8946_s1 + $0x1cb0] sm:$0xff] }
 0x260   :  { %2999 = vmatpush1.msra.mxu1 %v855_v1  ;;  %2977 = vmatprep.subr.mxu0 %v756_v2  ;;  %v928_v56 = vld [vmem:[%s8946_s1 + $0x1b98] sm:$0xff]  ;;  %v927_v58 = vld [vmem:[%s8946_s1 + $0x1b90] sm:$0xff] }
 0x261   :  { %3000 = vmatprep.subr.mxu1 %v852_v3  ;;  %2978 = vmatpush2.msra.mxu0 %v755_v4  ;;  %v960_v57 = vld [vmem:[%s8946_s1 + $0x1c98] sm:$0xff]  ;;  %v959_v60 = vld [vmem:[%s8946_s1 + $0x1c90] sm:$0xff] }
 0x262   :  { %3001 = vmatpush1.msra.mxu1 %v851_v5  ;;  %2979 = vmatprep.subr.mxu0 %v752_v6  ;;  %v924_v61 = vld [vmem:[%s8946_s1 + $0x1b78] sm:$0xff]  ;;  %v923_v63 = vld [vmem:[%s8946_s1 + $0x1b70] sm:$0xff] }
 0x263   :  { %3002 = vmatprep.subr.mxu1 %v848_v7  ;;  %2980 = vmatpush2.msra.mxu0 %v751_v8  ;;  %v956_v62 = vld [vmem:[%s8946_s1 + $0x1c78] sm:$0xff]  ;;  %v955_v0 = vld [vmem:[%s8946_s1 + $0x1c70] sm:$0xff] }
 0x264   :  { %2981 = vmatprep.mubr.f32.mxu0 %v3790_v12  ;;  %3003 = vmatpush1.msra.mxu1 %v847_v9  ;;  %v920_v1 = vld [vmem:[%s8946_s1 + $0x1b58] sm:$0xff]  ;;  %v919_v3 = vld [vmem:[%s8946_s1 + $0x1b50] sm:$0xff] }
 0x265   :  { %2982 = vmatmul.mubr.f32.vlgmr.msra.gmra.mxu0 %v3791_v15  ;;  %3004 = vmatprep.subr.mxu1 %v844_v10  ;;  %v952_v2 = vld [vmem:[%s8946_s1 + $0x1c58] sm:$0xff]  ;;  %v951_v4 = vld [vmem:[%s8946_s1 + $0x1c50] sm:$0xff] }
 0x266   :  { %3059 = vmatprep.subr.mxu0 %v1004_v11  ;;  %3005 = vmatpush1.msra.mxu1 %v843_v13  ;;  %v916_v5 = vld [vmem:[%s8946_s1 + $0x1b38] sm:$0xff]  ;;  %v915_v7 = vld [vmem:[%s8946_s1 + $0x1b30] sm:$0xff] }
 0x267   :  { %3060 = vmatpush1.msra.mxu0 %v1003_v14  ;;  %3006 = vmatprep.subr.mxu1 %v840_v16  ;;  %v948_v6 = vld [vmem:[%s8946_s1 + $0x1c38] sm:$0xff]  ;;  %v947_v8 = vld [vmem:[%s8946_s1 + $0x1c30] sm:$0xff] }
 0x268   :  { %3061 = vmatprep.subr.mxu0 %v1000_v17  ;;  %3007 = vmatpush1.msra.mxu1 %v839_v18  ;;  %v912_v9 = vld [vmem:[%s8946_s1 + $0x1b18] sm:$0xff]  ;;  %v911_v11 = vld [vmem:[%s8946_s1 + $0x1b10] sm:$0xff] }
 0x269   :  { %3062 = vmatpush1.msra.mxu0 %v999_v19  ;;  %3008 = vmatprep.subr.mxu1 %v836_v20  ;;  %v944_v10 = vld [vmem:[%s8946_s1 + $0x1c18] sm:$0xff]  ;;  %v943_v12 = vld [vmem:[%s8946_s1 + $0x1c10] sm:$0xff] }
 0x26a   :  { %3063 = vmatprep.subr.mxu0 %v996_v21  ;;  %3009 = vmatpush1.msra.mxu1 %v835_v22  ;;  %v908_v13 = vld [vmem:[%s8946_s1 + $0x1af8] sm:$0xff]  ;;  %v907_v15 = vld [vmem:[%s8946_s1 + $0x1af0] sm:$0xff] }
 0x26b   :  { %3064 = vmatpush1.msra.mxu0 %v995_v23  ;;  %3010 = vmatprep.subr.mxu1 %v832_v24  ;;  %v1068_v14 = vld [vmem:[%s8946_s1 + $0x1ff8] sm:$0xff]  ;;  %v1067_v16 = vld [vmem:[%s8946_s1 + $0x1ff0] sm:$0xff] }
 0x26c   :  { %3065 = vmatprep.subr.mxu0 %v992_v25  ;;  %3011 = vmatpush1.msra.mxu1 %v831_v26  ;;  %v904_v17 = vld [vmem:[%s8946_s1 + $0x1ad8] sm:$0xff]  ;;  %v903_v19 = vld [vmem:[%s8946_s1 + $0x1ad0] sm:$0xff] }
 0x26d   :  { %3066 = vmatpush1.msra.mxu0 %v991_v27  ;;  %3012 = vmatprep.subr.mxu1 %v828_v28  ;;  %v1064_v18 = vld [vmem:[%s8946_s1 + $0x1fd8] sm:$0xff]  ;;  %v1063_v20 = vld [vmem:[%s8946_s1 + $0x1fd0] sm:$0xff] }
 0x26e   :  { %3067 = vmatprep.subr.mxu0 %v988_v29  ;;  %3013 = vmatpush1.msra.mxu1 %v827_v30  ;;  %v900_v21 = vld [vmem:[%s8946_s1 + $0x1ab8] sm:$0xff]  ;;  %v899_v23 = vld [vmem:[%s8946_s1 + $0x1ab0] sm:$0xff] }
 0x26f   :  { %3068 = vmatpush1.msra.mxu0 %v987_v31  ;;  %3014 = vmatprep.subr.mxu1 %v824_v32  ;;  %v1060_v22 = vld [vmem:[%s8946_s1 + $0x1fb8] sm:$0xff]  ;;  %v1059_v24 = vld [vmem:[%s8946_s1 + $0x1fb0] sm:$0xff] }
 0x270   :  { %3069 = vmatprep.subr.mxu0 %v984_v33  ;;  %3015 = vmatpush1.msra.mxu1 %v823_v34  ;;  %v896_v25 = vld [vmem:[%s8946_s1 + $0x1a98] sm:$0xff]  ;;  %v895_v27 = vld [vmem:[%s8946_s1 + $0x1a90] sm:$0xff] }
 0x271   :  { %3070 = vmatpush1.msra.mxu0 %v983_v35  ;;  %3016 = vmatprep.subr.mxu1 %v820_v36  ;;  %v1056_v26 = vld [vmem:[%s8946_s1 + $0x1f98] sm:$0xff]  ;;  %v1055_v28 = vld [vmem:[%s8946_s1 + $0x1f90] sm:$0xff] }
 0x272   :  { %3071 = vmatprep.subr.mxu0 %v980_v37  ;;  %3017 = vmatpush1.msra.mxu1 %v819_v38  ;;  %v892_v29 = vld [vmem:[%s8946_s1 + $0x1a78] sm:$0xff]  ;;  %v891_v31 = vld [vmem:[%s8946_s1 + $0x1a70] sm:$0xff] }
 0x273   :  { %3072 = vmatpush1.msra.mxu0 %v979_v39  ;;  %3018 = vmatprep.subr.mxu1 %v816_v40  ;;  %v1052_v30 = vld [vmem:[%s8946_s1 + $0x1f78] sm:$0xff]  ;;  %v1051_v32 = vld [vmem:[%s8946_s1 + $0x1f70] sm:$0xff] }
 0x274   :  { %3073 = vmatprep.subr.mxu0 %v976_v41  ;;  %3019 = vmatpush1.msra.mxu1 %v815_v42  ;;  %v888_v33 = vld [vmem:[%s8946_s1 + $0x1a58] sm:$0xff]  ;;  %v887_v35 = vld [vmem:[%s8946_s1 + $0x1a50] sm:$0xff] }
 0x275   :  { %3074 = vmatpush1.msra.mxu0 %v975_v43  ;;  %3020 = vmatprep.subr.mxu1 %v940_v44  ;;  %v1048_v34 = vld [vmem:[%s8946_s1 + $0x1f58] sm:$0xff]  ;;  %v1047_v36 = vld [vmem:[%s8946_s1 + $0x1f50] sm:$0xff] }
 0x276   :  { %3075 = vmatprep.subr.mxu0 %v972_v45  ;;  %3021 = vmatpush2.msra.mxu1 %v939_v46  ;;  %v884_v37 = vld [vmem:[%s8946_s1 + $0x1a38] sm:$0xff]  ;;  %v883_v39 = vld [vmem:[%s8946_s1 + $0x1a30] sm:$0xff] }
 0x277   :  { %3076 = vmatpush1.msra.mxu0 %v971_v47  ;;  %3022 = vmatprep.subr.mxu1 %v936_v48  ;;  %v1044_v38 = vld [vmem:[%s8946_s1 + $0x1f38] sm:$0xff]  ;;  %v1043_v40 = vld [vmem:[%s8946_s1 + $0x1f30] sm:$0xff]  ;;  %v3792_v47 = vld [vmem:[%s8947_s0 + $0x68] sm:$0xff] }
 0x278   :  { %3077 = vmatprep.subr.mxu0 %v968_v49  ;;  %3023 = vmatpush2.msra.mxu1 %v935_v50  ;;  %v880_v41 = vld [vmem:[%s8946_s1 + $0x1a18] sm:$0xff]  ;;  %v879_v43 = vld [vmem:[%s8946_s1 + $0x1a10] sm:$0xff]  ;;  %v3793_v50 = vld [vmem:[%s8947_s0 + $0x60] sm:$0xff] }
 0x279   :  { %3078 = vmatpush1.msra.mxu0 %v967_v51  ;;  %3024 = vmatprep.subr.mxu1 %v932_v52  ;;  %v1040_v42 = vld [vmem:[%s8946_s1 + $0x1f18] sm:$0xff]  ;;  %v1039_v44 = vld [vmem:[%s8946_s1 + $0x1f10] sm:$0xff] }
 0x27a   :  { %3079 = vmatprep.subr.mxu0 %v964_v53  ;;  %3025 = vmatpush2.msra.mxu1 %v931_v54  ;;  %v1036_v45 = vld [vmem:[%s8946_s1 + $0x1ef8] sm:$0xff]  ;;  %v1035_v48 = vld [vmem:[%s8946_s1 + $0x1ef0] sm:$0xff] }
 0x27b   :  { %3080 = vmatpush1.msra.mxu0 %v963_v55  ;;  %3026 = vmatprep.subr.mxu1 %v928_v56  ;;  %v1132_v46 = vld [vmem:[%s8946_s1 + $0x21f8] sm:$0xff]  ;;  %v1131_v49 = vld [vmem:[%s8946_s1 + $0x21f0] sm:$0xff] }
 0x27c   :  { %3081 = vmatprep.subr.mxu0 %v960_v57  ;;  %3027 = vmatpush2.msra.mxu1 %v927_v58  ;;  %v1032_v51 = vld [vmem:[%s8946_s1 + $0x1ed8] sm:$0xff]  ;;  %v1031_v53 = vld [vmem:[%s8946_s1 + $0x1ed0] sm:$0xff] }
 0x27d   :  { %3082 = vmatpush1.msra.mxu0 %v959_v60  ;;  %3028 = vmatprep.subr.mxu1 %v924_v61  ;;  %v1128_v52 = vld [vmem:[%s8946_s1 + $0x21d8] sm:$0xff]  ;;  %v1127_v54 = vld [vmem:[%s8946_s1 + $0x21d0] sm:$0xff] }
 0x27e   :  { %3083 = vmatprep.subr.mxu0 %v956_v62  ;;  %3029 = vmatpush2.msra.mxu1 %v923_v63  ;;  %v1028_v55 = vld [vmem:[%s8946_s1 + $0x1eb8] sm:$0xff]  ;;  %v1027_v57 = vld [vmem:[%s8946_s1 + $0x1eb0] sm:$0xff] }
 0x27f   :  { %3084 = vmatpush1.msra.mxu0 %v955_v0  ;;  %3030 = vmatprep.subr.mxu1 %v920_v1  ;;  %v1124_v56 = vld [vmem:[%s8946_s1 + $0x21b8] sm:$0xff]  ;;  %v1123_v58 = vld [vmem:[%s8946_s1 + $0x21b0] sm:$0xff] }
 0x280   :  { %3085 = vmatprep.subr.mxu0 %v952_v2  ;;  %3031 = vmatpush2.msra.mxu1 %v919_v3  ;;  %v1024_v60 = vld [vmem:[%s8946_s1 + $0x1e98] sm:$0xff]  ;;  %v1023_v62 = vld [vmem:[%s8946_s1 + $0x1e90] sm:$0xff] }
 0x281   :  { %3086 = vmatpush1.msra.mxu0 %v951_v4  ;;  %3032 = vmatprep.subr.mxu1 %v916_v5  ;;  %v1120_v61 = vld [vmem:[%s8946_s1 + $0x2198] sm:$0xff]  ;;  %v1119_v63 = vld [vmem:[%s8946_s1 + $0x2190] sm:$0xff] }
 0x282   :  { %3087 = vmatprep.subr.mxu0 %v948_v6  ;;  %3033 = vmatpush2.msra.mxu1 %v915_v7  ;;  %v1020_v0 = vld [vmem:[%s8946_s1 + $0x1e78] sm:$0xff]  ;;  %v1019_v2 = vld [vmem:[%s8946_s1 + $0x1e70] sm:$0xff] }
 0x283   :  { %3088 = vmatpush1.msra.mxu0 %v947_v8  ;;  %3034 = vmatprep.subr.mxu1 %v912_v9  ;;  %v1116_v1 = vld [vmem:[%s8946_s1 + $0x2178] sm:$0xff]  ;;  %v1115_v3 = vld [vmem:[%s8946_s1 + $0x2170] sm:$0xff] }
 0x284   :  { %3089 = vmatprep.subr.mxu0 %v944_v10  ;;  %3035 = vmatpush2.msra.mxu1 %v911_v11  ;;  %v1016_v4 = vld [vmem:[%s8946_s1 + $0x1e58] sm:$0xff]  ;;  %v1015_v6 = vld [vmem:[%s8946_s1 + $0x1e50] sm:$0xff] }
 0x285   :  { %3090 = vmatpush1.msra.mxu0 %v943_v12  ;;  %3036 = vmatprep.subr.mxu1 %v908_v13  ;;  %v1112_v5 = vld [vmem:[%s8946_s1 + $0x2158] sm:$0xff]  ;;  %v1111_v7 = vld [vmem:[%s8946_s1 + $0x2150] sm:$0xff] }
 0x286   :  { %3091 = vmatprep.subr.mxu0 %v1068_v14  ;;  %3037 = vmatpush2.msra.mxu1 %v907_v15  ;;  %v1012_v8 = vld [vmem:[%s8946_s1 + $0x1e38] sm:$0xff]  ;;  %v1011_v10 = vld [vmem:[%s8946_s1 + $0x1e30] sm:$0xff] }
 0x287   :  { %3092 = vmatpush2.msra.mxu0 %v1067_v16  ;;  %3038 = vmatprep.subr.mxu1 %v904_v17  ;;  %v1108_v9 = vld [vmem:[%s8946_s1 + $0x2138] sm:$0xff]  ;;  %v1107_v11 = vld [vmem:[%s8946_s1 + $0x2130] sm:$0xff] }
 0x288   :  { %3093 = vmatprep.subr.mxu0 %v1064_v18  ;;  %3039 = vmatpush2.msra.mxu1 %v903_v19  ;;  %v1008_v12 = vld [vmem:[%s8946_s1 + $0x1e18] sm:$0xff]  ;;  %v1007_v14 = vld [vmem:[%s8946_s1 + $0x1e10] sm:$0xff] }
 0x289   :  { %3094 = vmatpush2.msra.mxu0 %v1063_v20  ;;  %3040 = vmatprep.subr.mxu1 %v900_v21  ;;  %v1104_v13 = vld [vmem:[%s8946_s1 + $0x2118] sm:$0xff]  ;;  %v1103_v15 = vld [vmem:[%s8946_s1 + $0x2110] sm:$0xff] }
 0x28a   :  { %3095 = vmatprep.subr.mxu0 %v1060_v22  ;;  %3041 = vmatpush2.msra.mxu1 %v899_v23  ;;  %v1100_v16 = vld [vmem:[%s8946_s1 + $0x20f8] sm:$0xff]  ;;  %v1099_v19 = vld [vmem:[%s8946_s1 + $0x20f0] sm:$0xff] }
 0x28b   :  { %3096 = vmatpush2.msra.mxu0 %v1059_v24  ;;  %3042 = vmatprep.subr.mxu1 %v896_v25  ;;  %v1260_v17 = vld [vmem:[%s8946_s1 + $0x25f8] sm:$0xff]  ;;  %v1259_v20 = vld [vmem:[%s8946_s1 + $0x25f0] sm:$0xff] }
 0x28c   :  { %3097 = vmatprep.subr.mxu0 %v1056_v26  ;;  %3043 = vmatpush2.msra.mxu1 %v895_v27  ;;  %v3794_v18 = vld [vmem:[%s8947_s0 + $0x78] sm:$0xff]  ;;  %v3795_v21 = vld [vmem:[%s8947_s0 + $0x70] sm:$0xff] }
 0x28d   :  { %3098 = vmatpush2.msra.mxu0 %v1055_v28  ;;  %3044 = vmatprep.subr.mxu1 %v892_v29  ;;  %v1096_v22 = vld [vmem:[%s8946_s1 + $0x20d8] sm:$0xff]  ;;  %v1095_v24 = vld [vmem:[%s8946_s1 + $0x20d0] sm:$0xff] }
 0x28e   :  { %3099 = vmatprep.subr.mxu0 %v1052_v30  ;;  %3045 = vmatpush2.msra.mxu1 %v891_v31  ;;  %v1256_v23 = vld [vmem:[%s8946_s1 + $0x25d8] sm:$0xff]  ;;  %v1255_v25 = vld [vmem:[%s8946_s1 + $0x25d0] sm:$0xff] }
 0x28f   :  { %3100 = vmatpush2.msra.mxu0 %v1051_v32  ;;  %3046 = vmatprep.subr.mxu1 %v888_v33  ;;  %v1092_v26 = vld [vmem:[%s8946_s1 + $0x20b8] sm:$0xff]  ;;  %v1091_v28 = vld [vmem:[%s8946_s1 + $0x20b0] sm:$0xff] }
 0x290   :  { %3101 = vmatprep.subr.mxu0 %v1048_v34  ;;  %3047 = vmatpush2.msra.mxu1 %v887_v35  ;;  %v1252_v27 = vld [vmem:[%s8946_s1 + $0x25b8] sm:$0xff]  ;;  %v1251_v29 = vld [vmem:[%s8946_s1 + $0x25b0] sm:$0xff] }
 0x291   :  { %3102 = vmatpush2.msra.mxu0 %v1047_v36  ;;  %3048 = vmatprep.subr.mxu1 %v884_v37  ;;  %v1088_v30 = vld [vmem:[%s8946_s1 + $0x2098] sm:$0xff]  ;;  %v1087_v32 = vld [vmem:[%s8946_s1 + $0x2090] sm:$0xff] }
 0x292   :  { %3103 = vmatprep.subr.mxu0 %v1044_v38  ;;  %3049 = vmatpush2.msra.mxu1 %v883_v39  ;;  %v1248_v31 = vld [vmem:[%s8946_s1 + $0x2598] sm:$0xff]  ;;  %v1247_v33 = vld [vmem:[%s8946_s1 + $0x2590] sm:$0xff] }
 0x293   :  { %3104 = vmatpush2.msra.mxu0 %v1043_v40  ;;  %3050 = vmatprep.subr.mxu1 %v880_v41  ;;  %v1084_v34 = vld [vmem:[%s8946_s1 + $0x2078] sm:$0xff]  ;;  %v1083_v36 = vld [vmem:[%s8946_s1 + $0x2070] sm:$0xff] }
 0x294   :  { %3105 = vmatprep.subr.mxu0 %v1040_v42  ;;  %3051 = vmatpush2.msra.mxu1 %v879_v43  ;;  %v1244_v35 = vld [vmem:[%s8946_s1 + $0x2578] sm:$0xff]  ;;  %v1243_v37 = vld [vmem:[%s8946_s1 + $0x2570] sm:$0xff] }
 0x295   :  { %3052 = vmatprep.mubr.f32.mxu1 %v3792_v47  ;;  %3106 = vmatpush2.msra.mxu0 %v1039_v44  ;;  %v1080_v38 = vld [vmem:[%s8946_s1 + $0x2058] sm:$0xff]  ;;  %v1079_v40 = vld [vmem:[%s8946_s1 + $0x2050] sm:$0xff] }
 0x296   :  { %3053 = vmatmul.mubr.f32.vlgmr.msra.gmra.mxu1 %v3793_v50  ;;  %3107 = vmatprep.subr.mxu0 %v1036_v45  ;;  %v1240_v39 = vld [vmem:[%s8946_s1 + $0x2558] sm:$0xff]  ;;  %v1239_v41 = vld [vmem:[%s8946_s1 + $0x2550] sm:$0xff] }
 0x297   :  { %3130 = vmatprep.subr.mxu1 %v1132_v46  ;;  %3108 = vmatpush2.msra.mxu0 %v1035_v48  ;;  %v1076_v42 = vld [vmem:[%s8946_s1 + $0x2038] sm:$0xff]  ;;  %v1075_v44 = vld [vmem:[%s8946_s1 + $0x2030] sm:$0xff] }
 0x298   :  { %3131 = vmatpush1.msra.mxu1 %v1131_v49  ;;  %3109 = vmatprep.subr.mxu0 %v1032_v51  ;;  %v1236_v43 = vld [vmem:[%s8946_s1 + $0x2538] sm:$0xff]  ;;  %v1235_v45 = vld [vmem:[%s8946_s1 + $0x2530] sm:$0xff] }
 0x299   :  { %3132 = vmatprep.subr.mxu1 %v1128_v52  ;;  %3110 = vmatpush2.msra.mxu0 %v1031_v53  ;;  %v1072_v46 = vld [vmem:[%s8946_s1 + $0x2018] sm:$0xff]  ;;  %v1071_v48 = vld [vmem:[%s8946_s1 + $0x2010] sm:$0xff] }
 0x29a   :  { %3133 = vmatpush1.msra.mxu1 %v1127_v54  ;;  %3111 = vmatprep.subr.mxu0 %v1028_v55  ;;  %v1232_v47 = vld [vmem:[%s8946_s1 + $0x2518] sm:$0xff]  ;;  %v1231_v49 = vld [vmem:[%s8946_s1 + $0x2510] sm:$0xff] }
 0x29b   :  { %3134 = vmatprep.subr.mxu1 %v1124_v56  ;;  %3112 = vmatpush2.msra.mxu0 %v1027_v57  ;;  %v1196_v50 = vld [vmem:[%s8946_s1 + $0x23f8] sm:$0xff]  ;;  %v1195_v52 = vld [vmem:[%s8946_s1 + $0x23f0] sm:$0xff] }
 0x29c   :  { %3135 = vmatpush1.msra.mxu1 %v1123_v58  ;;  %3113 = vmatprep.subr.mxu0 %v1024_v60  ;;  %v1228_v51 = vld [vmem:[%s8946_s1 + $0x24f8] sm:$0xff]  ;;  %v1227_v53 = vld [vmem:[%s8946_s1 + $0x24f0] sm:$0xff] }
 0x29d   :  { %3136 = vmatprep.subr.mxu1 %v1120_v61  ;;  %3114 = vmatpush2.msra.mxu0 %v1023_v62  ;;  %v1192_v54 = vld [vmem:[%s8946_s1 + $0x23d8] sm:$0xff]  ;;  %v1191_v56 = vld [vmem:[%s8946_s1 + $0x23d0] sm:$0xff] }
 0x29e   :  { %3137 = vmatpush1.msra.mxu1 %v1119_v63  ;;  %3115 = vmatprep.subr.mxu0 %v1020_v0  ;;  %v1224_v55 = vld [vmem:[%s8946_s1 + $0x24d8] sm:$0xff]  ;;  %v1223_v57 = vld [vmem:[%s8946_s1 + $0x24d0] sm:$0xff] }
 0x29f   :  { %3138 = vmatprep.subr.mxu1 %v1116_v1  ;;  %3116 = vmatpush2.msra.mxu0 %v1019_v2  ;;  %v1188_v58 = vld [vmem:[%s8946_s1 + $0x23b8] sm:$0xff]  ;;  %v1187_v61 = vld [vmem:[%s8946_s1 + $0x23b0] sm:$0xff] }
 0x2a0   :  { %3139 = vmatpush1.msra.mxu1 %v1115_v3  ;;  %3117 = vmatprep.subr.mxu0 %v1016_v4  ;;  %v1220_v60 = vld [vmem:[%s8946_s1 + $0x24b8] sm:$0xff]  ;;  %v1219_v62 = vld [vmem:[%s8946_s1 + $0x24b0] sm:$0xff] }
 0x2a1   :  { %3140 = vmatprep.subr.mxu1 %v1112_v5  ;;  %3118 = vmatpush2.msra.mxu0 %v1015_v6  ;;  %v1184_v63 = vld [vmem:[%s8946_s1 + $0x2398] sm:$0xff]  ;;  %v1183_v1 = vld [vmem:[%s8946_s1 + $0x2390] sm:$0xff] }
 0x2a2   :  { %3141 = vmatpush1.msra.mxu1 %v1111_v7  ;;  %3119 = vmatprep.subr.mxu0 %v1012_v8  ;;  %v1216_v0 = vld [vmem:[%s8946_s1 + $0x2498] sm:$0xff]  ;;  %v1215_v2 = vld [vmem:[%s8946_s1 + $0x2490] sm:$0xff] }
 0x2a3   :  { %3142 = vmatprep.subr.mxu1 %v1108_v9  ;;  %3120 = vmatpush2.msra.mxu0 %v1011_v10  ;;  %v1180_v3 = vld [vmem:[%s8946_s1 + $0x2378] sm:$0xff]  ;;  %v1179_v5 = vld [vmem:[%s8946_s1 + $0x2370] sm:$0xff] }
 0x2a4   :  { %3143 = vmatpush1.msra.mxu1 %v1107_v11  ;;  %3121 = vmatprep.subr.mxu0 %v1008_v12  ;;  %v1212_v4 = vld [vmem:[%s8946_s1 + $0x2478] sm:$0xff]  ;;  %v1211_v6 = vld [vmem:[%s8946_s1 + $0x2470] sm:$0xff] }
 0x2a5   :  { %3144 = vmatprep.subr.mxu1 %v1104_v13  ;;  %3122 = vmatpush2.msra.mxu0 %v1007_v14  ;;  %v1176_v7 = vld [vmem:[%s8946_s1 + $0x2358] sm:$0xff]  ;;  %v1175_v9 = vld [vmem:[%s8946_s1 + $0x2350] sm:$0xff] }
 0x2a6   :  { %3123 = vmatprep.mubr.f32.mxu0 %v3794_v18  ;;  %3145 = vmatpush1.msra.mxu1 %v1103_v15  ;;  %v1208_v8 = vld [vmem:[%s8946_s1 + $0x2458] sm:$0xff]  ;;  %v1207_v10 = vld [vmem:[%s8946_s1 + $0x2450] sm:$0xff] }
 0x2a7   :  { %3124 = vmatmul.mubr.f32.vlgmr.msra.gmra.mxu0 %v3795_v21  ;;  %3146 = vmatprep.subr.mxu1 %v1100_v16  ;;  %v1172_v11 = vld [vmem:[%s8946_s1 + $0x2338] sm:$0xff]  ;;  %v1171_v13 = vld [vmem:[%s8946_s1 + $0x2330] sm:$0xff] }
 0x2a8   :  { %3201 = vmatprep.subr.mxu0 %v1260_v17  ;;  %3147 = vmatpush1.msra.mxu1 %v1099_v19  ;;  %v1204_v12 = vld [vmem:[%s8946_s1 + $0x2438] sm:$0xff]  ;;  %v1203_v14 = vld [vmem:[%s8946_s1 + $0x2430] sm:$0xff] }
 0x2a9   :  { %3202 = vmatpush1.msra.mxu0 %v1259_v20  ;;  %3148 = vmatprep.subr.mxu1 %v1096_v22  ;;  %v1168_v15 = vld [vmem:[%s8946_s1 + $0x2318] sm:$0xff]  ;;  %v1167_v17 = vld [vmem:[%s8946_s1 + $0x2310] sm:$0xff] }
 0x2aa   :  { %3203 = vmatprep.subr.mxu0 %v1256_v23  ;;  %3149 = vmatpush1.msra.mxu1 %v1095_v24  ;;  %v1200_v16 = vld [vmem:[%s8946_s1 + $0x2418] sm:$0xff]  ;;  %v1199_v18 = vld [vmem:[%s8946_s1 + $0x2410] sm:$0xff] }
 0x2ab   :  { %3204 = vmatpush1.msra.mxu0 %v1255_v25  ;;  %3150 = vmatprep.subr.mxu1 %v1092_v26  ;;  %v1164_v19 = vld [vmem:[%s8946_s1 + $0x22f8] sm:$0xff]  ;;  %v1163_v21 = vld [vmem:[%s8946_s1 + $0x22f0] sm:$0xff] }
 0x2ac   :  { %3205 = vmatprep.subr.mxu0 %v1252_v27  ;;  %3151 = vmatpush1.msra.mxu1 %v1091_v28  ;;  %v1324_v20 = vld [vmem:[%s8946_s1 + $0x27f8] sm:$0xff]  ;;  %v1323_v22 = vld [vmem:[%s8946_s1 + $0x27f0] sm:$0xff] }
 0x2ad   :  { %3206 = vmatpush1.msra.mxu0 %v1251_v29  ;;  %3152 = vmatprep.subr.mxu1 %v1088_v30  ;;  %v1160_v23 = vld [vmem:[%s8946_s1 + $0x22d8] sm:$0xff]  ;;  %v1159_v25 = vld [vmem:[%s8946_s1 + $0x22d0] sm:$0xff] }
 0x2ae   :  { %3207 = vmatprep.subr.mxu0 %v1248_v31  ;;  %3153 = vmatpush1.msra.mxu1 %v1087_v32  ;;  %v1320_v24 = vld [vmem:[%s8946_s1 + $0x27d8] sm:$0xff]  ;;  %v1319_v26 = vld [vmem:[%s8946_s1 + $0x27d0] sm:$0xff] }
 0x2af   :  { %3208 = vmatpush1.msra.mxu0 %v1247_v33  ;;  %3154 = vmatprep.subr.mxu1 %v1084_v34  ;;  %v1156_v27 = vld [vmem:[%s8946_s1 + $0x22b8] sm:$0xff]  ;;  %v1155_v29 = vld [vmem:[%s8946_s1 + $0x22b0] sm:$0xff] }
 0x2b0   :  { %3209 = vmatprep.subr.mxu0 %v1244_v35  ;;  %3155 = vmatpush1.msra.mxu1 %v1083_v36  ;;  %v1316_v28 = vld [vmem:[%s8946_s1 + $0x27b8] sm:$0xff]  ;;  %v1315_v30 = vld [vmem:[%s8946_s1 + $0x27b0] sm:$0xff] }
 0x2b1   :  { %3210 = vmatpush1.msra.mxu0 %v1243_v37  ;;  %3156 = vmatprep.subr.mxu1 %v1080_v38  ;;  %v1152_v31 = vld [vmem:[%s8946_s1 + $0x2298] sm:$0xff]  ;;  %v1151_v33 = vld [vmem:[%s8946_s1 + $0x2290] sm:$0xff] }
 0x2b2   :  { %3211 = vmatprep.subr.mxu0 %v1240_v39  ;;  %3157 = vmatpush1.msra.mxu1 %v1079_v40  ;;  %v1312_v32 = vld [vmem:[%s8946_s1 + $0x2798] sm:$0xff]  ;;  %v1311_v34 = vld [vmem:[%s8946_s1 + $0x2790] sm:$0xff] }
 0x2b3   :  { %3212 = vmatpush1.msra.mxu0 %v1239_v41  ;;  %3158 = vmatprep.subr.mxu1 %v1076_v42  ;;  %v1148_v35 = vld [vmem:[%s8946_s1 + $0x2278] sm:$0xff]  ;;  %v1147_v37 = vld [vmem:[%s8946_s1 + $0x2270] sm:$0xff] }
 0x2b4   :  { %3213 = vmatprep.subr.mxu0 %v1236_v43  ;;  %3159 = vmatpush1.msra.mxu1 %v1075_v44  ;;  %v1308_v36 = vld [vmem:[%s8946_s1 + $0x2778] sm:$0xff]  ;;  %v1307_v38 = vld [vmem:[%s8946_s1 + $0x2770] sm:$0xff] }
 0x2b5   :  { %3214 = vmatpush1.msra.mxu0 %v1235_v45  ;;  %3160 = vmatprep.subr.mxu1 %v1072_v46  ;;  %v1144_v39 = vld [vmem:[%s8946_s1 + $0x2258] sm:$0xff]  ;;  %v1143_v41 = vld [vmem:[%s8946_s1 + $0x2250] sm:$0xff] }
 0x2b6   :  { %3215 = vmatprep.subr.mxu0 %v1232_v47  ;;  %3161 = vmatpush1.msra.mxu1 %v1071_v48  ;;  %v1304_v40 = vld [vmem:[%s8946_s1 + $0x2758] sm:$0xff]  ;;  %v1303_v42 = vld [vmem:[%s8946_s1 + $0x2750] sm:$0xff] }
 0x2b7   :  { %3216 = vmatpush1.msra.mxu0 %v1231_v49  ;;  %3162 = vmatprep.subr.mxu1 %v1196_v50  ;;  %v1140_v43 = vld [vmem:[%s8946_s1 + $0x2238] sm:$0xff]  ;;  %v1139_v45 = vld [vmem:[%s8946_s1 + $0x2230] sm:$0xff] }
 0x2b8   :  { %3217 = vmatprep.subr.mxu0 %v1228_v51  ;;  %3163 = vmatpush2.msra.mxu1 %v1195_v52  ;;  %v1300_v44 = vld [vmem:[%s8946_s1 + $0x2738] sm:$0xff]  ;;  %v1299_v46 = vld [vmem:[%s8946_s1 + $0x2730] sm:$0xff] }
 0x2b9   :  { %3218 = vmatpush1.msra.mxu0 %v1227_v53  ;;  %3164 = vmatprep.subr.mxu1 %v1192_v54  ;;  %v1136_v47 = vld [vmem:[%s8946_s1 + $0x2218] sm:$0xff]  ;;  %v1135_v49 = vld [vmem:[%s8946_s1 + $0x2210] sm:$0xff]  ;;  %v3796_v53 = vld [vmem:[%s8947_s0 + $0x88] sm:$0xff] }
 0x2ba   :  { %3219 = vmatprep.subr.mxu0 %v1224_v55  ;;  %3165 = vmatpush2.msra.mxu1 %v1191_v56  ;;  %v1296_v48 = vld [vmem:[%s8946_s1 + $0x2718] sm:$0xff]  ;;  %v1295_v50 = vld [vmem:[%s8946_s1 + $0x2710] sm:$0xff]  ;;  %v3797_v56 = vld [vmem:[%s8947_s0 + $0x80] sm:$0xff] }
 0x2bb   :  { %3220 = vmatpush1.msra.mxu0 %v1223_v57  ;;  %3166 = vmatprep.subr.mxu1 %v1188_v58  ;;  %v1292_v51 = vld [vmem:[%s8946_s1 + $0x26f8] sm:$0xff]  ;;  %v1291_v54 = vld [vmem:[%s8946_s1 + $0x26f0] sm:$0xff] }
 0x2bc   :  { %3221 = vmatprep.subr.mxu0 %v1220_v60  ;;  %3167 = vmatpush2.msra.mxu1 %v1187_v61  ;;  %v1388_v52 = vld [vmem:[%s8946_s1 + $0x29f8] sm:$0xff]  ;;  %v1387_v55 = vld [vmem:[%s8946_s1 + $0x29f0] sm:$0xff] }
 0x2bd   :  { %3222 = vmatpush1.msra.mxu0 %v1219_v62  ;;  %3168 = vmatprep.subr.mxu1 %v1184_v63  ;;  %v1288_v57 = vld [vmem:[%s8946_s1 + $0x26d8] sm:$0xff]  ;;  %v1287_v60 = vld [vmem:[%s8946_s1 + $0x26d0] sm:$0xff] }
 0x2be   :  { %3223 = vmatprep.subr.mxu0 %v1216_v0  ;;  %3169 = vmatpush2.msra.mxu1 %v1183_v1  ;;  %v1384_v58 = vld [vmem:[%s8946_s1 + $0x29d8] sm:$0xff]  ;;  %v1383_v61 = vld [vmem:[%s8946_s1 + $0x29d0] sm:$0xff] }
 0x2bf   :  { %3224 = vmatpush1.msra.mxu0 %v1215_v2  ;;  %3170 = vmatprep.subr.mxu1 %v1180_v3  ;;  %v1284_v62 = vld [vmem:[%s8946_s1 + $0x26b8] sm:$0xff]  ;;  %v1283_v0 = vld [vmem:[%s8946_s1 + $0x26b0] sm:$0xff] }
 0x2c0   :  { %3225 = vmatprep.subr.mxu0 %v1212_v4  ;;  %3171 = vmatpush2.msra.mxu1 %v1179_v5  ;;  %v1380_v63 = vld [vmem:[%s8946_s1 + $0x29b8] sm:$0xff]  ;;  %v1379_v1 = vld [vmem:[%s8946_s1 + $0x29b0] sm:$0xff] }
 0x2c1   :  { %3226 = vmatpush1.msra.mxu0 %v1211_v6  ;;  %3172 = vmatprep.subr.mxu1 %v1176_v7  ;;  %v1280_v2 = vld [vmem:[%s8946_s1 + $0x2698] sm:$0xff]  ;;  %v1279_v4 = vld [vmem:[%s8946_s1 + $0x2690] sm:$0xff] }
 0x2c2   :  { %3227 = vmatprep.subr.mxu0 %v1208_v8  ;;  %3173 = vmatpush2.msra.mxu1 %v1175_v9  ;;  %v1376_v3 = vld [vmem:[%s8946_s1 + $0x2998] sm:$0xff]  ;;  %v1375_v5 = vld [vmem:[%s8946_s1 + $0x2990] sm:$0xff] }
 0x2c3   :  { %3228 = vmatpush1.msra.mxu0 %v1207_v10  ;;  %3174 = vmatprep.subr.mxu1 %v1172_v11  ;;  %v1276_v6 = vld [vmem:[%s8946_s1 + $0x2678] sm:$0xff]  ;;  %v1275_v8 = vld [vmem:[%s8946_s1 + $0x2670] sm:$0xff] }
 0x2c4   :  { %3229 = vmatprep.subr.mxu0 %v1204_v12  ;;  %3175 = vmatpush2.msra.mxu1 %v1171_v13  ;;  %v1372_v7 = vld [vmem:[%s8946_s1 + $0x2978] sm:$0xff]  ;;  %v1371_v9 = vld [vmem:[%s8946_s1 + $0x2970] sm:$0xff] }
 0x2c5   :  { %3230 = vmatpush1.msra.mxu0 %v1203_v14  ;;  %3176 = vmatprep.subr.mxu1 %v1168_v15  ;;  %v1272_v10 = vld [vmem:[%s8946_s1 + $0x2658] sm:$0xff]  ;;  %v1271_v12 = vld [vmem:[%s8946_s1 + $0x2650] sm:$0xff] }
 0x2c6   :  { %3231 = vmatprep.subr.mxu0 %v1200_v16  ;;  %3177 = vmatpush2.msra.mxu1 %v1167_v17  ;;  %v1368_v11 = vld [vmem:[%s8946_s1 + $0x2958] sm:$0xff]  ;;  %v1367_v13 = vld [vmem:[%s8946_s1 + $0x2950] sm:$0xff] }
 0x2c7   :  { %3232 = vmatpush1.msra.mxu0 %v1199_v18  ;;  %3178 = vmatprep.subr.mxu1 %v1164_v19  ;;  %v1268_v14 = vld [vmem:[%s8946_s1 + $0x2638] sm:$0xff]  ;;  %v1267_v16 = vld [vmem:[%s8946_s1 + $0x2630] sm:$0xff] }
 0x2c8   :  { %3233 = vmatprep.subr.mxu0 %v1324_v20  ;;  %3179 = vmatpush2.msra.mxu1 %v1163_v21  ;;  %v1364_v15 = vld [vmem:[%s8946_s1 + $0x2938] sm:$0xff]  ;;  %v1363_v17 = vld [vmem:[%s8946_s1 + $0x2930] sm:$0xff] }
 0x2c9   :  { %3234 = vmatpush2.msra.mxu0 %v1323_v22  ;;  %3180 = vmatprep.subr.mxu1 %v1160_v23  ;;  %v1264_v18 = vld [vmem:[%s8946_s1 + $0x2618] sm:$0xff]  ;;  %v1263_v20 = vld [vmem:[%s8946_s1 + $0x2610] sm:$0xff] }
 0x2ca   :  { %3235 = vmatprep.subr.mxu0 %v1320_v24  ;;  %3181 = vmatpush2.msra.mxu1 %v1159_v25  ;;  %v1360_v19 = vld [vmem:[%s8946_s1 + $0x2918] sm:$0xff]  ;;  %v1359_v21 = vld [vmem:[%s8946_s1 + $0x2910] sm:$0xff] }
 0x2cb   :  { %3236 = vmatpush2.msra.mxu0 %v1319_v26  ;;  %3182 = vmatprep.subr.mxu1 %v1156_v27  ;;  %v1356_v22 = vld [vmem:[%s8946_s1 + $0x28f8] sm:$0xff]  ;;  %v1355_v25 = vld [vmem:[%s8946_s1 + $0x28f0] sm:$0xff] }
 0x2cc   :  { %3237 = vmatprep.subr.mxu0 %v1316_v28  ;;  %3183 = vmatpush2.msra.mxu1 %v1155_v29  ;;  %v1516_v23 = vld [vmem:[%s8946_s1 + $0x2df8] sm:$0xff]  ;;  %v1515_v26 = vld [vmem:[%s8946_s1 + $0x2df0] sm:$0xff] }
 0x2cd   :  { %3238 = vmatpush2.msra.mxu0 %v1315_v30  ;;  %3184 = vmatprep.subr.mxu1 %v1152_v31  ;;  %v3798_v24 = vld [vmem:[%s8947_s0 + $0x98] sm:$0xff]  ;;  %v3799_v27 = vld [vmem:[%s8947_s0 + $0x90] sm:$0xff] }
 0x2ce   :  { %3239 = vmatprep.subr.mxu0 %v1312_v32  ;;  %3185 = vmatpush2.msra.mxu1 %v1151_v33  ;;  %v1352_v28 = vld [vmem:[%s8946_s1 + $0x28d8] sm:$0xff]  ;;  %v1351_v30 = vld [vmem:[%s8946_s1 + $0x28d0] sm:$0xff] }
 0x2cf   :  { %3240 = vmatpush2.msra.mxu0 %v1311_v34  ;;  %3186 = vmatprep.subr.mxu1 %v1148_v35  ;;  %v1512_v29 = vld [vmem:[%s8946_s1 + $0x2dd8] sm:$0xff]  ;;  %v1511_v31 = vld [vmem:[%s8946_s1 + $0x2dd0] sm:$0xff] }
 0x2d0   :  { %3241 = vmatprep.subr.mxu0 %v1308_v36  ;;  %3187 = vmatpush2.msra.mxu1 %v1147_v37  ;;  %v1348_v32 = vld [vmem:[%s8946_s1 + $0x28b8] sm:$0xff]  ;;  %v1347_v34 = vld [vmem:[%s8946_s1 + $0x28b0] sm:$0xff] }
 0x2d1   :  { %3242 = vmatpush2.msra.mxu0 %v1307_v38  ;;  %3188 = vmatprep.subr.mxu1 %v1144_v39  ;;  %v1508_v33 = vld [vmem:[%s8946_s1 + $0x2db8] sm:$0xff]  ;;  %v1507_v35 = vld [vmem:[%s8946_s1 + $0x2db0] sm:$0xff] }
 0x2d2   :  { %3243 = vmatprep.subr.mxu0 %v1304_v40  ;;  %3189 = vmatpush2.msra.mxu1 %v1143_v41  ;;  %v1344_v36 = vld [vmem:[%s8946_s1 + $0x2898] sm:$0xff]  ;;  %v1343_v38 = vld [vmem:[%s8946_s1 + $0x2890] sm:$0xff] }
 0x2d3   :  { %3244 = vmatpush2.msra.mxu0 %v1303_v42  ;;  %3190 = vmatprep.subr.mxu1 %v1140_v43  ;;  %v1504_v37 = vld [vmem:[%s8946_s1 + $0x2d98] sm:$0xff]  ;;  %v1503_v39 = vld [vmem:[%s8946_s1 + $0x2d90] sm:$0xff] }
 0x2d4   :  { %3245 = vmatprep.subr.mxu0 %v1300_v44  ;;  %3191 = vmatpush2.msra.mxu1 %v1139_v45  ;;  %v1340_v40 = vld [vmem:[%s8946_s1 + $0x2878] sm:$0xff]  ;;  %v1339_v42 = vld [vmem:[%s8946_s1 + $0x2870] sm:$0xff] }
 0x2d5   :  { %3246 = vmatpush2.msra.mxu0 %v1299_v46  ;;  %3192 = vmatprep.subr.mxu1 %v1136_v47  ;;  %v1500_v41 = vld [vmem:[%s8946_s1 + $0x2d78] sm:$0xff]  ;;  %v1499_v43 = vld [vmem:[%s8946_s1 + $0x2d70] sm:$0xff] }
 0x2d6   :  { %3247 = vmatprep.subr.mxu0 %v1296_v48  ;;  %3193 = vmatpush2.msra.mxu1 %v1135_v49  ;;  %v1336_v44 = vld [vmem:[%s8946_s1 + $0x2858] sm:$0xff]  ;;  %v1335_v46 = vld [vmem:[%s8946_s1 + $0x2850] sm:$0xff]  ;;  %v1615_v48 = vlaneseq }
 0x2d7   :  { %3194 = vmatprep.mubr.f32.mxu1 %v3796_v53  ;;  %3248 = vmatpush2.msra.mxu0 %v1295_v50  ;;  %v1496_v45 = vld [vmem:[%s8946_s1 + $0x2d58] sm:$0xff]  ;;  %v1495_v47 = vld [vmem:[%s8946_s1 + $0x2d50] sm:$0xff] }
 0x2d8   :  { %3195 = vmatmul.mubr.f32.vlgmr.msra.gmra.mxu1 %v3797_v56  ;;  %3249 = vmatprep.subr.mxu0 %v1292_v51  ;;  %v1332_v49 = vld [vmem:[%s8946_s1 + $0x2838] sm:$0xff]  ;;  %v1331_v51 = vld [vmem:[%s8946_s1 + $0x2830] sm:$0xff] }
 0x2d9   :  { %3272 = vmatprep.subr.mxu1 %v1388_v52  ;;  %3250 = vmatpush2.msra.mxu0 %v1291_v54  ;;  %v1492_v50 = vld [vmem:[%s8946_s1 + $0x2d38] sm:$0xff]  ;;  %v1491_v52 = vld [vmem:[%s8946_s1 + $0x2d30] sm:$0xff] }
 0x2da   :  { %3273 = vmatpush1.msra.mxu1 %v1387_v55  ;;  %3251 = vmatprep.subr.mxu0 %v1288_v57  ;;  %v1328_v53 = vld [vmem:[%s8946_s1 + $0x2818] sm:$0xff]  ;;  %v1327_v55 = vld [vmem:[%s8946_s1 + $0x2810] sm:$0xff]  ;;  %v8389_v57 = vshrl.u32 %v1615_v48, 7 }
 0x2db   :  { %3274 = vmatprep.subr.mxu1 %v1384_v58  ;;  %3252 = vmatpush2.msra.mxu0 %v1287_v60  ;;  %v1488_v54 = vld [vmem:[%s8946_s1 + $0x2d18] sm:$0xff]  ;;  %v1487_v56 = vld [vmem:[%s8946_s1 + $0x2d10] sm:$0xff] }
 0x2dc   :  { %3275 = vmatpush1.msra.mxu1 %v1383_v61  ;;  %3253 = vmatprep.subr.mxu0 %v1284_v62  ;;  %v1452_v58 = vld [vmem:[%s8946_s1 + $0x2bf8] sm:$0xff]  ;;  %v1451_v61 = vld [vmem:[%s8946_s1 + $0x2bf0] sm:$0xff] }
 0x2dd   :  { %3276 = vmatprep.subr.mxu1 %v1380_v63  ;;  %3254 = vmatpush2.msra.mxu0 %v1283_v0  ;;  %v1484_v60 = vld [vmem:[%s8946_s1 + $0x2cf8] sm:$0xff]  ;;  %v1483_v62 = vld [vmem:[%s8946_s1 + $0x2cf0] sm:$0xff] }
 0x2de   :  { %3277 = vmatpush1.msra.mxu1 %v1379_v1  ;;  %3255 = vmatprep.subr.mxu0 %v1280_v2  ;;  %v1448_v63 = vld [vmem:[%s8946_s1 + $0x2bd8] sm:$0xff]  ;;  %v1447_v1 = vld [vmem:[%s8946_s1 + $0x2bd0] sm:$0xff] }
 0x2df   :  { %3278 = vmatprep.subr.mxu1 %v1376_v3  ;;  %3256 = vmatpush2.msra.mxu0 %v1279_v4  ;;  %v1480_v0 = vld [vmem:[%s8946_s1 + $0x2cd8] sm:$0xff]  ;;  %v1479_v2 = vld [vmem:[%s8946_s1 + $0x2cd0] sm:$0xff]  ;;  %v1621_v3 = vsub.s32 1, %v8389_v57 }
 0x2e0   :  { %3279 = vmatpush1.msra.mxu1 %v1375_v5  ;;  %3257 = vmatprep.subr.mxu0 %v1276_v6  ;;  %v1444_v4 = vld [vmem:[%s8946_s1 + $0x2bb8] sm:$0xff]  ;;  %v8425_v6 = vld [vmem:[%s8948_s2] sm:$0xf]  ;;  %v1415_v48 = vld [vmem:[%s8946_s1 + $0x2ad0] sm:$0xff] }
 0x2e1   :  { %3280 = vmatprep.subr.mxu1 %v1372_v7  ;;  %3258 = vmatpush2.msra.mxu0 %v1275_v8  ;;  %v1476_v5 = vld [vmem:[%s8946_s1 + $0x2cb8] sm:$0xff]  ;;  %v8427_v7 = vpop.f32.mrf.mxu0  ;;  %v1443_v8 = vld [vmem:[%s8946_s1 + $0x2bb0] sm:$0xff] }
 0x2e2   :  { %3281 = vmatpush1.msra.mxu1 %v1371_v9  ;;  %3259 = vmatprep.subr.mxu0 %v1272_v10  ;;  %v1475_v9 = vld [vmem:[%s8946_s1 + $0x2cb0] sm:$0xff]  ;;  %v1440_v10 = vld [vmem:[%s8946_s1 + $0x2b98] sm:$0xff] }
 0x2e3   :  { %3282 = vmatprep.subr.mxu1 %v1368_v11  ;;  %3260 = vmatpush2.msra.mxu0 %v1271_v12  ;;  %v1472_v11 = vld [vmem:[%s8946_s1 + $0x2c98] sm:$0xff]  ;;  %v1439_v12 = vld [vmem:[%s8946_s1 + $0x2b90] sm:$0xff] }
 0x2e4   :  { %3283 = vmatpush1.msra.mxu1 %v1367_v13  ;;  %3261 = vmatprep.subr.mxu0 %v1268_v14  ;;  %v1471_v13 = vld [vmem:[%s8946_s1 + $0x2c90] sm:$0xff]  ;;  %v1622_v14 = vrot.slane %v8425_v6, %v1621_v3 }
 0x2e5   :  { %3284 = vmatprep.subr.mxu1 %v1364_v15  ;;  %3262 = vmatpush2.msra.mxu0 %v1267_v16  ;;  %v1436_v15 = vld [vmem:[%s8946_s1 + $0x2b78] sm:$0xff] }
 0x2e6   :  { %3285 = vmatpush1.msra.mxu1 %v1363_v17  ;;  %3263 = vmatprep.subr.mxu0 %v1264_v18  ;;  %v1468_v16 = vld [vmem:[%s8946_s1 + $0x2c78] sm:$0xff]  ;;  %v8454_v17 = vpop.f32.mrf.mxu1  ;;  %v1707_v18 = vpop.f32.mrf.mxu0 }
 0x2e7   :  { %3286 = vmatprep.subr.mxu1 %v1360_v19  ;;  %3264 = vmatpush2.msra.mxu0 %v1263_v20  ;;  %v1435_v19 = vld [vmem:[%s8946_s1 + $0x2b70] sm:$0xff] }
 0x2e8   :  { %3265 = vmatprep.mubr.f32.mxu0 %v3798_v24  ;;  %3287 = vmatpush1.msra.mxu1 %v1359_v21  ;;  %v1467_v20 = vld [vmem:[%s8946_s1 + $0x2c70] sm:$0xff]  ;;  %v1432_v21 = vld [vmem:[%s8946_s1 + $0x2b58] sm:$0xff] }
 0x2e9   :  { %3266 = vmatmul.mubr.f32.vlgmr.msra.gmra.mxu0 %v3799_v27  ;;  %3288 = vmatprep.subr.mxu1 %v1356_v22  ;;  %v1464_v22 = vld [vmem:[%s8946_s1 + $0x2c58] sm:$0xff]  ;;  %v1431_v24 = vld [vmem:[%s8946_s1 + $0x2b50] sm:$0xff] }
 0x2ea   :  { %3343 = vmatprep.subr.mxu0 %v1516_v23  ;;  %3289 = vmatpush1.msra.mxu1 %v1355_v25  ;;  %v8468_v23 = vpop.f32.mrf.mxu0  ;;  %v1463_v25 = vld [vmem:[%s8946_s1 + $0x2c50] sm:$0xff]  ;;  %v1428_v27 = vld [vmem:[%s8946_s1 + $0x2b38] sm:$0xff] }
 0x2eb   :  { %3344 = vmatpush1.msra.mxu0 %v1515_v26  ;;  %3290 = vmatprep.subr.mxu1 %v1352_v28  ;;  %v1708_v26 = vadd.f32 %v1707_v18, %v1622_v14  ;;  %v1460_v28 = vld [vmem:[%s8946_s1 + $0x2c38] sm:$0xff] }
 0x2ec   :  { %3345 = vmatprep.subr.mxu0 %v1512_v29  ;;  %3291 = vmatpush1.msra.mxu1 %v1351_v30  ;;  %v1778_v29 = vpop.f32.mrf.mxu1  ;;  %v1427_v30 = vld [vmem:[%s8946_s1 + $0x2b30] sm:$0xff] }
 0x2ed   :  { %3346 = vmatpush1.msra.mxu0 %v1511_v31  ;;  %3292 = vmatprep.subr.mxu1 %v1348_v32  ;;  %v1459_v31 = vld [vmem:[%s8946_s1 + $0x2c30] sm:$0xff]  ;;  %v1424_v32 = vld [vmem:[%s8946_s1 + $0x2b18] sm:$0xff] }
 0x2ee   :  { %3347 = vmatprep.subr.mxu0 %v1508_v33  ;;  %3293 = vmatpush1.msra.mxu1 %v1347_v34  ;;  %v1456_v33 = vld [vmem:[%s8946_s1 + $0x2c18] sm:$0xff]  ;;  %v8494_v34 = vpop.f32.mrf.mxu1 }
 0x2ef   :  { %3348 = vmatpush1.msra.mxu0 %v1507_v35  ;;  %3294 = vmatprep.subr.mxu1 %v1344_v36  ;;  %v1849_v35 = vpop.f32.mrf.mxu0  ;;  %v1423_v36 = vld [vmem:[%s8946_s1 + $0x2b10] sm:$0xff] }
 0x2f0   :  { %3349 = vmatprep.subr.mxu0 %v1504_v37  ;;  %3295 = vmatpush1.msra.mxu1 %v1343_v38  ;;  %v1455_v37 = vld [vmem:[%s8946_s1 + $0x2c10] sm:$0xff]  ;;  %v1779_v38 = vadd.f32 %v1778_v29, %v1708_v26 }
 0x2f1   :  { %3350 = vmatpush1.msra.mxu0 %v1503_v39  ;;  %3296 = vmatprep.subr.mxu1 %v1340_v40  ;;  %v1420_v39 = vld [vmem:[%s8946_s1 + $0x2af8] sm:$0xff]  ;;  %v1391_v26 = vld [vmem:[%s8946_s1 + $0x2a10] sm:$0xff] }
 0x2f2   :  { %3351 = vmatprep.subr.mxu0 %v1500_v41  ;;  %3297 = vmatpush1.msra.mxu1 %v1339_v42  ;;  %v1580_v40 = vld [vmem:[%s8946_s1 + $0x2ff8] sm:$0xff]  ;;  %v8508_v41 = vpop.f32.mrf.mxu0  ;;  %v1419_v42 = vld [vmem:[%s8946_s1 + $0x2af0] sm:$0xff] }
 0x2f3   :  { %3352 = vmatpush1.msra.mxu0 %v1499_v43  ;;  %3298 = vmatprep.subr.mxu1 %v1336_v44  ;;  %v1579_v43 = vld [vmem:[%s8946_s1 + $0x2ff0] sm:$0xff]  ;;  %v1850_v44 = vadd.f32 %v1849_v35, %v1779_v38  ;;  %v3801_v38 = vld [vmem:[%s8947_s0 + $0xa0] sm:$0xff] }
 0x2f4   :  { %3353 = vmatprep.subr.mxu0 %v1496_v45  ;;  %3299 = vmatpush1.msra.mxu1 %v1335_v46  ;;  %v1416_v45 = vld [vmem:[%s8946_s1 + $0x2ad8] sm:$0xff]  ;;  %v1547_v35 = vld [vmem:[%s8946_s1 + $0x2ef0] sm:$0xff] }
 0x2f5   :  { %3354 = vmatpush1.msra.mxu0 %v1495_v47  ;;  %3300 = vmatprep.subr.mxu1 %v1332_v49  ;;  %v1576_v46 = vld [vmem:[%s8946_s1 + $0x2fd8] sm:$0xff]  ;;  %v1920_v47 = vpop.f32.mrf.mxu1  ;;  %v1575_v49 = vld [vmem:[%s8946_s1 + $0x2fd0] sm:$0xff] }
 0x2f6   :  { %3355 = vmatprep.subr.mxu0 %v1492_v50  ;;  %3301 = vmatpush1.msra.mxu1 %v1331_v51  ;;  %v1412_v50 = vld [vmem:[%s8946_s1 + $0x2ab8] sm:$0xff] }
 0x2f7   :  { %3356 = vmatpush1.msra.mxu0 %v1491_v52  ;;  %3302 = vmatprep.subr.mxu1 %v1328_v53  ;;  %v1572_v51 = vld [vmem:[%s8946_s1 + $0x2fb8] sm:$0xff]  ;;  %v8534_v52 = vpop.f32.mrf.mxu1  ;;  %v1991_v53 = vpop.f32.mrf.mxu0 }
 0x2f8   :  { %3357 = vmatprep.subr.mxu0 %v1488_v54  ;;  %3303 = vmatpush1.msra.mxu1 %v1327_v55  ;;  %v1411_v54 = vld [vmem:[%s8946_s1 + $0x2ab0] sm:$0xff] }
 0x2f9   :  { %3358 = vmatpush1.msra.mxu0 %v1487_v56  ;;  %3304 = vmatprep.subr.mxu1 %v1452_v58  ;;  %v1571_v55 = vld [vmem:[%s8946_s1 + $0x2fb0] sm:$0xff]  ;;  %v1921_v56 = vadd.f32 %v1920_v47, %v1850_v44  ;;  %v1408_v58 = vld [vmem:[%s8946_s1 + $0x2a98] sm:$0xff]  ;;  %v2062_v3 = vpop.f32.mrf.mxu1 }
 0x2fa   :  { %3359 = vmatprep.subr.mxu0 %v1484_v60  ;;  %3305 = vmatpush2.msra.mxu1 %v1451_v61  ;;  %v1568_v60 = vld [vmem:[%s8946_s1 + $0x2f98] sm:$0xff]  ;;  %v8548_v61 = vpop.f32.mrf.mxu0  ;;  %v1543_v44 = vld [vmem:[%s8946_s1 + $0x2ed0] sm:$0xff] }
 0x2fb   :  { %3360 = vmatpush1.msra.mxu0 %v1483_v62  ;;  %3306 = vmatprep.subr.mxu1 %v1448_v63  ;;  %v1407_v62 = vld [vmem:[%s8946_s1 + $0x2a90] sm:$0xff]  ;;  %v1540_v47 = vld [vmem:[%s8946_s1 + $0x2eb8] sm:$0xff] }
 0x2fc   :  { %3361 = vmatprep.subr.mxu0 %v1480_v0  ;;  %3307 = vmatpush2.msra.mxu1 %v1447_v1  ;;  %v1567_v63 = vld [vmem:[%s8946_s1 + $0x2f90] sm:$0xff]  ;;  %v1992_v0 = vadd.f32 %v1991_v53, %v1921_v56  ;;  %v1404_v1 = vld [vmem:[%s8946_s1 + $0x2a78] sm:$0xff] }
 0x2fd   :  { %3362 = vmatpush1.msra.mxu0 %v1479_v2  ;;  %3308 = vmatprep.subr.mxu1 %v1444_v4  ;;  %v1564_v2 = vld [vmem:[%s8946_s1 + $0x2f78] sm:$0xff]  ;;  %v1403_v4 = vld [vmem:[%s8946_s1 + $0x2a70] sm:$0xff] }
 0x2fe   :  { %3363 = vmatprep.subr.mxu0 %v1476_v5  ;;  %3309 = vmatpush2.msra.mxu1 %v1443_v8  ;;  %v1563_v5 = vld [vmem:[%s8946_s1 + $0x2f70] sm:$0xff]  ;;  %v1400_v8 = vld [vmem:[%s8946_s1 + $0x2a58] sm:$0xff]  ;;  %v2063_v14 = vadd.f32 %v2062_v3, %v1992_v0 }
 0x2ff   :  { %3364 = vmatpush1.msra.mxu0 %v1475_v9  ;;  %3310 = vmatprep.subr.mxu1 %v1440_v10  ;;  %v1560_v9 = vld [vmem:[%s8946_s1 + $0x2f58] sm:$0xff]  ;;  %v8574_v10 = vpop.f32.mrf.mxu1  ;;  %v1531_v3 = vld [vmem:[%s8946_s1 + $0x2e70] sm:$0xff] }
 0x300   :  { %3365 = vmatprep.subr.mxu0 %v1472_v11  ;;  %3311 = vmatpush2.msra.mxu1 %v1439_v12  ;;  %v2133_v11 = vpop.f32.mrf.mxu0  ;;  %v1399_v12 = vld [vmem:[%s8946_s1 + $0x2a50] sm:$0xff]  ;;  %v1532_v0 = vld [vmem:[%s8946_s1 + $0x2e78] sm:$0xff] }
 0x301   :  { %3366 = vmatpush1.msra.mxu0 %v1471_v13  ;;  %3312 = vmatprep.subr.mxu1 %v1436_v15  ;;  %v1559_v13 = vld [vmem:[%s8946_s1 + $0x2f50] sm:$0xff]  ;;  %v1396_v15 = vld [vmem:[%s8946_s1 + $0x2a38] sm:$0xff] }
 0x302   :  { %3367 = vmatprep.subr.mxu0 %v1468_v16  ;;  %3313 = vmatpush2.msra.mxu1 %v1435_v19  ;;  %v1556_v16 = vld [vmem:[%s8946_s1 + $0x2f38] sm:$0xff]  ;;  %v8588_v18 = vpop.f32.mrf.mxu0  ;;  %v1395_v19 = vld [vmem:[%s8946_s1 + $0x2a30] sm:$0xff] }
 0x303   :  { %3368 = vmatpush1.msra.mxu0 %v1467_v20  ;;  %3314 = vmatprep.subr.mxu1 %v1432_v21  ;;  %v1555_v20 = vld [vmem:[%s8946_s1 + $0x2f30] sm:$0xff]  ;;  %v2134_v21 = vadd.f32 %v2133_v11, %v2063_v14 }
 0x304   :  { %3369 = vmatprep.subr.mxu0 %v1464_v22  ;;  %3315 = vmatpush2.msra.mxu1 %v1431_v24  ;;  %v1392_v22 = vld [vmem:[%s8946_s1 + $0x2a18] sm:$0xff]  ;;  %v2275_v29 = vpop.f32.mrf.mxu0 }
 0x305   :  { %3370 = vmatpush1.msra.mxu0 %v1463_v25  ;;  %3316 = vmatprep.subr.mxu1 %v1428_v27  ;;  %v1552_v24 = vld [vmem:[%s8946_s1 + $0x2f18] sm:$0xff]  ;;  %v2204_v25 = vpop.f32.mrf.mxu1  ;;  %v1551_v27 = vld [vmem:[%s8946_s1 + $0x2f10] sm:$0xff] }
 0x306   :  { %3371 = vmatprep.subr.mxu0 %v1460_v28  ;;  %3317 = vmatpush2.msra.mxu1 %v1427_v30  ;;  %v1548_v30 = vld [vmem:[%s8946_s1 + $0x2ef8] sm:$0xff] }
 0x307   :  { %3372 = vmatpush1.msra.mxu0 %v1459_v31  ;;  %3318 = vmatprep.subr.mxu1 %v1424_v32  ;;  %v8608_v28 = vpop.f32.mrf.mxu1  ;;  %v1612_v31 = vld [vmem:[%s8946_s1 + $0x30f8] sm:$0xff]  ;;  %v2205_v32 = vadd.f32 %v2204_v25, %v2134_v21 }
 0x308   :  { %3373 = vmatprep.subr.mxu0 %v1456_v33  ;;  %3319 = vmatpush2.msra.mxu1 %v1423_v36  ;;  %v3800_v33 = vld [vmem:[%s8947_s0 + $0xa8] sm:$0xff]  ;;  %v1611_v36 = vld [vmem:[%s8946_s1 + $0x30f0] sm:$0xff]  ;;  %v1520_v21 = vld [vmem:[%s8946_s1 + $0x2e18] sm:$0xff] }
 0x309   :  { %3374 = vmatpush1.msra.mxu0 %v1455_v37  ;;  %3320 = vmatprep.subr.mxu1 %v1420_v39  ;;  %v8625_v37 = vpop.f32.mrf.mxu0  ;;  %v1544_v39 = vld [vmem:[%s8946_s1 + $0x2ed8] sm:$0xff] }
 0x30a   :  { %3375 = vmatprep.subr.mxu0 %v1580_v40  ;;  %3321 = vmatpush2.msra.mxu1 %v1419_v42  ;;  %v1608_v40 = vld [vmem:[%s8946_s1 + $0x30d8] sm:$0xff]  ;;  %v1617_v42 = vsub.s32 0, %v8389_v57 }
 0x30b   :  { %3376 = vmatpush2.msra.mxu0 %v1579_v43  ;;  %3322 = vmatprep.subr.mxu1 %v1416_v45  ;;  %v2276_v43 = vadd.f32 %v2275_v29, %v2205_v32  ;;  %v1607_v45 = vld [vmem:[%s8946_s1 + $0x30d0] sm:$0xff]  ;;  %v2417_v53 = vpop.f32.mrf.mxu0 }
 0x30c   :  { %3377 = vmatprep.subr.mxu0 %v1576_v46  ;;  %3323 = vmatpush2.msra.mxu1 %v1415_v48  ;;  %v2346_v46 = vpop.f32.mrf.mxu1  ;;  %v1604_v48 = vld [vmem:[%s8946_s1 + $0x30b8] sm:$0xff]  ;;  %v1618_v56 = vrot.slane %v8425_v6, %v1617_v42  ;;  %v3803_v32 = vld [vmem:[%s8947_s0 + $0xb0] sm:$0xff]  ;;  %v3518_v42 = vld [vmem:[%s8949_s3 + $0xe8] sm:$0xff] }
 0x30d   :  { %3378 = vmatpush2.msra.mxu0 %v1575_v49  ;;  %3324 = vmatprep.subr.mxu1 %v1412_v50  ;;  %v1539_v49 = vld [vmem:[%s8946_s1 + $0x2eb0] sm:$0xff] }
 0x30e   :  { %3379 = vmatprep.subr.mxu0 %v1572_v51  ;;  %3325 = vmatpush2.msra.mxu1 %v1411_v54  ;;  %v1603_v50 = vld [vmem:[%s8946_s1 + $0x30b0] sm:$0xff]  ;;  %v8655_v51 = vpop.f32.mrf.mxu1  ;;  %v1536_v54 = vld [vmem:[%s8946_s1 + $0x2e98] sm:$0xff]  ;;  %v1706_v11 = vadd.f32 %v8427_v7, %v1618_v56  ;;  %v3498_v56 = vld [vmem:[%s8949_s3 + $0x48] sm:$0xff] }
 0x30f   :  { %3380 = vmatpush2.msra.mxu0 %v1571_v55  ;;  %3326 = vmatprep.subr.mxu1 %v1408_v58  ;;  %v1600_v55 = vld [vmem:[%s8946_s1 + $0x3098] sm:$0xff]  ;;  %v2347_v58 = vadd.f32 %v2346_v46, %v2276_v43  ;;  %v3517_v46 = vld [vmem:[%s8949_s3 + $0xe0] sm:$0xff] }
 0x310   :  { %3381 = vmatprep.subr.mxu0 %v1568_v60  ;;  %3327 = vmatpush2.msra.mxu1 %v1407_v62  ;;  %v1535_v60 = vld [vmem:[%s8946_s1 + $0x2e90] sm:$0xff]  ;;  %v1588_v7 = vld [vmem:[%s8946_s1 + $0x3038] sm:$0xff] }
 0x311   :  { %3382 = vmatpush2.msra.mxu0 %v1567_v63  ;;  %3328 = vmatprep.subr.mxu1 %v1404_v1  ;;  %v1599_v62 = vld [vmem:[%s8946_s1 + $0x3090] sm:$0xff]  ;;  %v8670_v63 = vpop.f32.mrf.mxu0  ;;  %v1596_v1 = vld [vmem:[%s8946_s1 + $0x3078] sm:$0xff] }
 0x312   :  { %3383 = vmatprep.subr.mxu0 %v1564_v2  ;;  %3329 = vmatpush2.msra.mxu1 %v1403_v4  ;;  %v2418_v2 = vadd.f32 %v2417_v53, %v2347_v58  ;;  %v1595_v4 = vld [vmem:[%s8946_s1 + $0x3070] sm:$0xff] }
 0x313   :  { %3384 = vmatpush2.msra.mxu0 %v1563_v5  ;;  %3330 = vmatprep.subr.mxu1 %v1400_v8  ;;  %v2488_v5 = vpop.f32.mrf.mxu1  ;;  %v1528_v8 = vld [vmem:[%s8946_s1 + $0x2e58] sm:$0xff]  ;;  %v2559_v14 = vpop.f32.mrf.mxu0  ;;  %v3515_v53 = vld [vmem:[%s8949_s3 + $0xd0] sm:$0xff] }
 0x314   :  { %3385 = vmatprep.subr.mxu0 %v1560_v9  ;;  %3331 = vmatpush2.msra.mxu1 %v1399_v12  ;;  %v1592_v9 = vld [vmem:[%s8946_s1 + $0x3058] sm:$0xff]  ;;  %v1527_v12 = vld [vmem:[%s8946_s1 + $0x2e50] sm:$0xff] }
 0x315   :  { %3386 = vmatpush2.msra.mxu0 %v1559_v13  ;;  %3332 = vmatprep.subr.mxu1 %v1396_v15  ;;  %v1591_v13 = vld [vmem:[%s8946_s1 + $0x3050] sm:$0xff]  ;;  %v1524_v15 = vld [vmem:[%s8946_s1 + $0x2e38] sm:$0xff] }
 0x316   :  { %3387 = vmatprep.subr.mxu0 %v1556_v16  ;;  %3333 = vmatpush2.msra.mxu1 %v1395_v19  ;;  %v2489_v16 = vadd.f32 %v2488_v5, %v2418_v2  ;;  %v1523_v19 = vld [vmem:[%s8946_s1 + $0x2e30] sm:$0xff]  ;;  %v3509_v5 = vld [vmem:[%s8949_s3 + $0xa0] sm:$0xff] }
 0x317   :  { %3388 = vmatpush2.msra.mxu0 %v1555_v20  ;;  %3334 = vmatprep.subr.mxu1 %v1392_v22  ;;  %v1587_v20 = vld [vmem:[%s8946_s1 + $0x3030] sm:$0xff]  ;;  %v1584_v22 = vld [vmem:[%s8946_s1 + $0x3018] sm:$0xff] }
 0x318   :  { %3389 = vmatprep.subr.mxu0 %v1552_v24  ;;  %3335 = vmatpush2.msra.mxu1 %v1391_v26  ;;  %v1777_v24 = vadd.f32 %v8454_v17, %v1706_v11  ;;  %v2560_v25 = vadd.f32 %v2559_v14, %v2489_v16  ;;  %v1519_v26 = vld [vmem:[%s8946_s1 + $0x2e10] sm:$0xff]  ;;  %v3802_v17 = vld [vmem:[%s8947_s0 + $0xb8] sm:$0xff]  ;;  %v3506_v14 = vld [vmem:[%s8949_s3 + $0x88] sm:$0xff] }
 0x319   :  { %3336 = vmatprep.mubr.f32.mxu1 %v3800_v33  ;;  %3390 = vmatpush2.msra.mxu0 %v1551_v27  ;;  %v1583_v27 = vld [vmem:[%s8946_s1 + $0x3010] sm:$0xff]  ;;  %v3804_v33 = vld [vmem:[%s8947_s0 + $0xc0] sm:$0xff]  ;;  %v3492_v11 = vld [vmem:[%s8949_s3 + $0x18] sm:$0xff] }
 0x31a   :  { %3337 = vmatmul.mubr.f32.vlgmr.msra.gmra.mxu1 %v3801_v38  ;;  %3391 = vmatprep.subr.mxu0 %v1548_v30  ;;  %v1848_v29 = vadd.f32 %v8468_v23, %v1777_v24  ;;  %v3520_v30 = vld [vmem:[%s8949_s3 + $0xf8] sm:$0xff]  ;;  %v3495_v2 = vld [vmem:[%s8949_s3 + $0x30] sm:$0xff]  ;;  %v3489_v16 = vld [vmem:[%s8949_s3] sm:$0xff] }
 0x31b   :  { %3430 = vmatprep.subr.mxu1 %v1612_v31  ;;  %3392 = vmatpush2.msra.mxu0 %v1547_v35  ;;  %v3486_v31 = vmax.f32 %v2560_v25, 0.0  ;;  %v3504_v23 = vld [vmem:[%s8949_s3 + $0x78] sm:$0xff]  ;;  %v3519_v35 = vld [vmem:[%s8949_s3 + $0xf0] sm:$0xff] }
 0x31c   :  { %3431 = vmatpush1.msra.mxu1 %v1611_v36  ;;  %3393 = vmatprep.subr.mxu0 %v1544_v39  ;;  %v3536_v36 = vld [vmem:[%s8949_s3 + $0x178] sm:$0xff]  ;;  %v1919_v38 = vadd.f32 %v8494_v34, %v1848_v29  ;;  %v3503_v39 = vld [vmem:[%s8949_s3 + $0x70] sm:$0xff]  ;;  %v3545_v29 = vld [vmem:[%s8949_s3 + $0x1c0] sm:$0xff] }
 0x31d   :  { %3432 = vmatprep.subr.mxu1 %v1608_v40  ;;  %3394 = vmatpush2.msra.mxu0 %v1543_v44  ;;  %v3551_v40 = vld [vmem:[%s8949_s3 + $0x1f0] sm:$0xff]  ;;  %v3502_v44 = vld [vmem:[%s8949_s3 + $0x68] sm:$0xff] }
 0x31e   :  { %3433 = vmatpush1.msra.mxu1 %v1607_v45  ;;  %3395 = vmatprep.subr.mxu0 %v1540_v47  ;;  %v3535_v34 = vld [vmem:[%s8949_s3 + $0x170] sm:$0xff]  ;;  %v1990_v43 = vadd.f32 %v8508_v41, %v1919_v38  ;;  %v3550_v45 = vld [vmem:[%s8949_s3 + $0x1e8] sm:$0xff]  ;;  %v3501_v47 = vld [vmem:[%s8949_s3 + $0x60] sm:$0xff] }
 0x31f   :  { %3434 = vmatprep.subr.mxu1 %v1604_v48  ;;  %3396 = vmatpush2.msra.mxu0 %v1539_v49  ;;  %v3534_v41 = vld [vmem:[%s8949_s3 + $0x168] sm:$0xff]  ;;  %v3516_v48 = vld [vmem:[%s8949_s3 + $0xd8] sm:$0xff]  ;;  %v3547_v24 = vld [vmem:[%s8949_s3 + $0x1d0] sm:$0xff] }
 0x320   :  { %3435 = vmatpush1.msra.mxu1 %v1603_v50  ;;  %3397 = vmatprep.subr.mxu0 %v1536_v54  ;;  %v2061_v49 = vadd.f32 %v8534_v52, %v1990_v43  ;;  %v3500_v50 = vld [vmem:[%s8949_s3 + $0x58] sm:$0xff]  ;;  %v3514_v52 = vld [vmem:[%s8949_s3 + $0xc8] sm:$0xff]  ;;  %v3531_v25 = vld [vmem:[%s8949_s3 + $0x150] sm:$0xff] }
 0x321   :  { %3436 = vmatprep.subr.mxu1 %v1600_v55  ;;  %3398 = vmatpush2.msra.mxu0 %v1535_v60  ;;  %v3499_v55 = vld [vmem:[%s8949_s3 + $0x50] sm:$0xff]  ;;  %v3497_v60 = vld [vmem:[%s8949_s3 + $0x40] sm:$0xff]  ;;  %v3540_v38 = vld [vmem:[%s8949_s3 + $0x198] sm:$0xff] }
 0x322   :  { %3437 = vmatpush1.msra.mxu1 %v1599_v62  ;;  %3399 = vmatprep.subr.mxu0 %v1532_v0  ;;  %v2132_v54 = vadd.f32 %v8548_v61, %v2061_v49  ;;  %v3513_v61 = vld [vmem:[%s8949_s3 + $0xc0] sm:$0xff]  ;;  %v3512_v62 = vld [vmem:[%s8949_s3 + $0xb8] sm:$0xff]  ;;  %v3522_v43 = vld [vmem:[%s8949_s3 + $0x108] sm:$0xff]  ;;  %v1625_v49 = vsub.s32 2, %v8389_v57 }
 0x323   :  { %3438 = vmatprep.subr.mxu1 %v1596_v1  ;;  %3400 = vmatpush2.msra.mxu0 %v1531_v3  ;;  %v3496_v1 = vld [vmem:[%s8949_s3 + $0x38] sm:$0xff] }
 0x324   :  { %3439 = vmatpush1.msra.mxu1 %v1595_v4  ;;  %3401 = vmatprep.subr.mxu0 %v1528_v8  ;;  %v2203_v58 = vadd.f32 %v8574_v10, %v2132_v54  ;;  %v3511_v10 = vld [vmem:[%s8949_s3 + $0xb0] sm:$0xff]  ;;  %v3494_v4 = vld [vmem:[%s8949_s3 + $0x28] sm:$0xff] }
 0x325   :  { %3440 = vmatprep.subr.mxu1 %v1592_v9  ;;  %3402 = vmatpush2.msra.mxu0 %v1527_v12  ;;  %v3493_v9 = vld [vmem:[%s8949_s3 + $0x20] sm:$0xff] }
 0x326   :  { %3441 = vmatpush1.msra.mxu1 %v1591_v13  ;;  %3403 = vmatprep.subr.mxu0 %v1524_v15  ;;  %v2274_v0 = vadd.f32 %v8588_v18, %v2203_v58  ;;  %v3510_v18 = vld [vmem:[%s8949_s3 + $0xa8] sm:$0xff]  ;;  %v3491_v13 = vld [vmem:[%s8949_s3 + $0x10] sm:$0xff] }
 0x327   :  { %3442 = vmatprep.subr.mxu1 %v1588_v7  ;;  %3404 = vmatpush2.msra.mxu0 %v1523_v19  ;;  %v3490_v7 = vld [vmem:[%s8949_s3 + $0x8] sm:$0xff] }
 0x328   :  { %3443 = vmatpush1.msra.mxu1 %v1587_v20  ;;  %3405 = vmatprep.subr.mxu0 %v1520_v21  ;;  %v2345_v3 = vadd.f32 %v8608_v28, %v2274_v0  ;;  %v3508_v28 = vld [vmem:[%s8949_s3 + $0x98] sm:$0xff]  ;;  %v3533_v20 = vld [vmem:[%s8949_s3 + $0x160] sm:$0xff] }
 0x329   :  { %3444 = vmatprep.subr.mxu1 %v1584_v22  ;;  %3406 = vmatpush2.msra.mxu0 %v1519_v26  ;;  %v3548_v21 = vld [vmem:[%s8949_s3 + $0x1d8] sm:$0xff]  ;;  %v3546_v26 = vld [vmem:[%s8949_s3 + $0x1c8] sm:$0xff] }
 0x32a   :  { %3407 = vmatprep.mubr.f32.mxu0 %v3802_v17  ;;  %3445 = vmatpush1.msra.mxu1 %v1583_v27  ;;  %v2416_v8 = vadd.f32 %v8625_v37, %v2345_v3  ;;  %v3507_v37 = vld [vmem:[%s8949_s3 + $0x90] sm:$0xff]  ;;  %v3532_v22 = vld [vmem:[%s8949_s3 + $0x158] sm:$0xff]  ;;  %v3530_v27 = vld [vmem:[%s8949_s3 + $0x148] sm:$0xff] }
 0x32b   :  { %3478 = vmatprep.mubr.f32.mxu1 %v3805_v59  ;;  %3408 = vmatmul.mubr.f32.vlgmr.msra.gmra.mxu0 %v3803_v32  ;;  %v3552_v59 = vld [vmem:[%s8949_s3 + $0x1f8] sm:$0xff]  ;;  %v3529_v17 = vld [vmem:[%s8949_s3 + $0x140] sm:$0xff]  ;;  %v3527_v32 = vld [vmem:[%s8949_s3 + $0x130] sm:$0xff] }
 0x32c   :  { %3707 = vmatmul.mubr.msk.f32.vlgmr.msra.gmra.mxu1 %vm1635_vm0, %v3804_v33  ;;  %3709 = vmatprep.subr.mxu0 %v3520_v30  ;;  %v2487_v12 = vadd.f32 %v8655_v51, %v2416_v8  ;;  %v3505_v51 = vld [vmem:[%s8949_s3 + $0x80] sm:$0xff]  ;;  %v3544_v30 = vld [vmem:[%s8949_s3 + $0x1b8] sm:$0xff]  ;;  %v3542_v33 = vld [vmem:[%s8949_s3 + $0x1a8] sm:$0xff] }
 0x32d   :  { %3624 = vmatprep.mubr.f32.mxu0 %v3486_v31  ;;  %3710 = vmatpush3.msra.mxu0 %v3504_v23  ;;  %v3528_v31 = vld [vmem:[%s8949_s3 + $0x138] sm:$0xff]  ;;  %v3543_v23 = vld [vmem:[%s8949_s3 + $0x1b0] sm:$0xff] }
 0x32e   :  { %3744 = vmatprep.subr.mxu1 %v3552_v59  ;;  %3711 = vmatprep.subr.mxu0 %v3519_v35  ;;  %v2558_v15 = vadd.f32 %v8670_v63, %v2487_v12  ;;  %v3549_v63 = vld [vmem:[%s8949_s3 + $0x1e0] sm:$0xff]  ;;  %v3526_v35 = vld [vmem:[%s8949_s3 + $0x128] sm:$0xff] }
 0x32f   :  { %3745 = vmatpush3.msra.mxu1 %v3536_v36  ;;  %3712 = vmatpush3.msra.mxu0 %v3503_v39  ;;  %v3541_v59 = vld [vmem:[%s8949_s3 + $0x1a0] sm:$0xff]  ;;  %v3524_v39 = vld [vmem:[%s8949_s3 + $0x118] sm:$0xff] }
 0x330   :  { %3746 = vmatprep.subr.mxu1 %v3551_v40  ;;  %3713 = vmatprep.subr.mxu0 %v3518_v42  ;;  %v3485_v19 = vmax.f32 %v2558_v15, 0.0  ;;  %v3525_v36 = vld [vmem:[%s8949_s3 + $0x120] sm:$0xff]  ;;  %v3539_v40 = vld [vmem:[%s8949_s3 + $0x190] sm:$0xff] }
 0x331   :  { %3747 = vmatpush3.msra.mxu1 %v3535_v34  ;;  %3714 = vmatpush3.msra.mxu0 %v3502_v44  ;;  %v3523_v42 = vld [vmem:[%s8949_s3 + $0x110] sm:$0xff]  ;;  %v3538_v34 = vld [vmem:[%s8949_s3 + $0x188] sm:$0xff]  ;;  %v3537_v44 = vld [vmem:[%s8949_s3 + $0x180] sm:$0xff] }
 0x332   :  { %3748 = vmatprep.subr.mxu1 %v3550_v45  ;;  %3715 = vmatprep.subr.mxu0 %v3517_v46  ;;  %v3521_v45 = vld [vmem:[%s8949_s3 + $0x100] sm:$0xff]  ;;  %v2628_v46 = vpop.f32.mrf.mxu1 }
 0x333   :  { %3749 = vmatpush3.msra.mxu1 %v3534_v41  ;;  %3716 = vmatpush3.msra.mxu0 %v3501_v47  ;;  %v2699_v47 = vpop.f32.mrf.mxu0 }
 0x334   :  { %3717 = vmatprep.subr.mxu0 %v3516_v48  ;;  %3750 = vmatprep.subr.mxu1 %v3549_v63  ;;  %v2630_v41 = vpop.f32.mrf.mxu1 }
 0x335   :  { %3718 = vmatpush3.msra.mxu0 %v3500_v50  ;;  %3751 = vmatpush3.msra.mxu1 %v3533_v20  ;;  %v2701_v50 = vpop.f32.mrf.mxu0 }
 0x336   :  { %3719 = vmatprep.subr.mxu0 %v3515_v53  ;;  %3752 = vmatprep.subr.mxu1 %v3548_v21  ;;  %v2770_v48 = vpop.f32.mrf.mxu1  ;;  %v1629_v53 = vsub.s32 3, %v8389_v57 }
 0x337   :  { %3720 = vmatpush3.msra.mxu0 %v3499_v55  ;;  %3753 = vmatpush3.msra.mxu1 %v3532_v22  ;;  %v2841_v55 = vpop.f32.mrf.mxu0 }
 0x338   :  { %3721 = vmatprep.subr.mxu0 %v3514_v52  ;;  %3754 = vmatprep.subr.mxu1 %v3547_v24  ;;  %v2772_v54 = vpop.f32.mrf.mxu1  ;;  %v1626_v52 = vrot.slane %v8425_v6, %v1625_v49 }
 0x339   :  { %3722 = vmatpush3.msra.mxu0 %v3498_v56  ;;  %3755 = vmatpush3.msra.mxu1 %v3531_v25  ;;  %v2843_v58 = vpop.f32.mrf.mxu0 }
 0x33a   :  { %3723 = vmatprep.subr.mxu0 %v3513_v61  ;;  %3756 = vmatprep.subr.mxu1 %v3546_v26  ;;  %v2912_v56 = vpop.f32.mrf.mxu1  ;;  %v1630_v61 = vrot.slane %v8425_v6, %v1629_v53 }
 0x33b   :  { %3724 = vmatpush3.msra.mxu0 %v3497_v60  ;;  %3757 = vmatpush3.msra.mxu1 %v3530_v27  ;;  %v2629_v60 = vadd.f32 %v2628_v46, %v1626_v52  ;;  %v2983_v0 = vpop.f32.mrf.mxu0 }
 0x33c   :  { %3725 = vmatprep.subr.mxu0 %v3512_v62  ;;  %3758 = vmatprep.subr.mxu1 %v3545_v29  ;;  %v2914_v62 = vpop.f32.mrf.mxu1 }
 0x33d   :  { %3726 = vmatpush3.msra.mxu0 %v3496_v1  ;;  %3759 = vmatpush3.msra.mxu1 %v3529_v17  ;;  %v2631_v1 = vadd.f32 %v2630_v41, %v1630_v61 }
 0x33e   :  { %3727 = vmatprep.subr.mxu0 %v3511_v10  ;;  %3760 = vmatprep.subr.mxu1 %v3544_v30  ;;  %v2700_v10 = vadd.f32 %v2699_v47, %v2629_v60 }
 0x33f   :  { %3728 = vmatpush3.msra.mxu0 %v3495_v2  ;;  %3761 = vmatpush3.msra.mxu1 %v3528_v31 }
 0x340   :  { %3729 = vmatprep.subr.mxu0 %v3510_v18  ;;  %3762 = vmatprep.subr.mxu1 %v3543_v23  ;;  %v2702_v18 = vadd.f32 %v2701_v50, %v2631_v1  ;;  %v2771_v3 = vadd.f32 %v2770_v48, %v2700_v10 }
 0x341   :  { %3730 = vmatpush3.msra.mxu0 %v3494_v4  ;;  %3763 = vmatpush3.msra.mxu1 %v3527_v32  ;;  %v2985_v4 = vpop.f32.mrf.mxu0 }
 0x342   :  { %3731 = vmatprep.subr.mxu0 %v3509_v5  ;;  %3764 = vmatprep.subr.mxu1 %v3542_v33  ;;  %v2773_v5 = vadd.f32 %v2772_v54, %v2702_v18  ;;  %v2842_v8 = vadd.f32 %v2841_v55, %v2771_v3 }
 0x343   :  { %3732 = vmatpush3.msra.mxu0 %v3493_v9  ;;  %3765 = vmatpush3.msra.mxu1 %v3526_v35 }
 0x344   :  { %3733 = vmatprep.subr.mxu0 %v3508_v28  ;;  %3766 = vmatprep.subr.mxu1 %v3541_v59  ;;  %v2844_v28 = vadd.f32 %v2843_v58, %v2773_v5 }
 0x345   :  { %3734 = vmatpush3.msra.mxu0 %v3492_v11  ;;  %3767 = vmatpush3.msra.mxu1 %v3525_v36  ;;  %v2913_v11 = vadd.f32 %v2912_v56, %v2842_v8 }
 0x346   :  { %3735 = vmatprep.subr.mxu0 %v3507_v37  ;;  %3768 = vmatprep.subr.mxu1 %v3540_v38  ;;  %v2915_v12 = vadd.f32 %v2914_v62, %v2844_v28 }
 0x347   :  { %3736 = vmatpush3.msra.mxu0 %v3491_v13  ;;  %3769 = vmatpush3.msra.mxu1 %v3524_v39  ;;  %v2984_v13 = vadd.f32 %v2983_v0, %v2913_v11 }
 0x348   :  { %3737 = vmatprep.subr.mxu0 %v3506_v14  ;;  %3770 = vmatprep.subr.mxu1 %v3539_v40  ;;  %v2986_v14 = vadd.f32 %v2985_v4, %v2915_v12 }
 0x349   :  { %3738 = vmatpush3.msra.mxu0 %v3490_v7  ;;  %3771 = vmatpush3.msra.mxu1 %v3523_v42 }
 0x34a   :  { %3739 = vmatprep.subr.mxu0 %v3505_v51  ;;  %3772 = vmatprep.subr.mxu1 %v3538_v34 }
 0x34b   :  { %3740 = vmatpush3.msra.mxu0 %v3489_v16  ;;  %3773 = vmatpush3.msra.mxu1 %v3522_v43  ;;  %v3708_v43 = vld [vmem:[%s8950_s4] ss:$0 sm:$0xff] }
 0x34c   :  { %3625 = vmatmul.mubr.f32.vlgmr.msra.gmra.mxu0 %v3485_v19  ;;  %3774 = vmatprep.subr.mxu1 %v3537_v44 }
 0x34d   :  { %3775 = vmatpush3.msra.mxu1 %v3521_v45 }
 0x356   :  { %v3054_v2 = vpop.f32.mrf.mxu1 }
 0x357   :  { %v3055_v15 = vadd.f32 %v3054_v2, %v2984_v13 }
 0x358   :  { %v3056_v57 = vpop.f32.mrf.mxu1 }
 0x359   :  { %v3057_v16 = vadd.f32 %v3056_v57, %v2986_v14 }
 0x367   :  { %v3125_v9 = vpop.f32.mrf.mxu0 }
 0x368   :  { %v3126_v19 = vadd.f32 %v3125_v9, %v3055_v15 }
 0x369   :  { %v3127_v6 = vpop.f32.mrf.mxu0 }
 0x36a   :  { %v3128_v20 = vadd.f32 %v3127_v6, %v3057_v16 }
 0x398   :  { %v3196_v37 = vpop.f32.mrf.mxu1 }
 0x399   :  { %v3197_v21 = vadd.f32 %v3196_v37, %v3126_v19 }
 0x39a   :  { %v3198_v7 = vpop.f32.mrf.mxu1 }
 0x39b   :  { %v3199_v24 = vadd.f32 %v3198_v7, %v3128_v20 }
 0x3a9   :  { %v3267_v51 = vpop.f32.mrf.mxu0 }
 0x3aa   :  { %v3268_v25 = vadd.f32 %v3267_v51, %v3197_v21 }
 0x3ab   :  { %v3269_v22 = vpop.f32.mrf.mxu0 }
 0x3ac   :  { %v3270_v27 = vadd.f32 %v3269_v22, %v3199_v24 }
 0x3da   :  { %v3338_v63 = vpop.f32.mrf.mxu1 }
 0x3db   :  { %v3339_v29 = vadd.f32 %v3338_v63, %v3268_v25 }
 0x3dc   :  { %v3340_v26 = vpop.f32.mrf.mxu1 }
 0x3dd   :  { %v3341_v31 = vadd.f32 %v3340_v26, %v3270_v27 }
 0x3eb   :  { %v3409_v17 = vpop.f32.mrf.mxu0 }
 0x3ec   :  { %v3480_v30 = vpop.f32.mrf.mxu1  ;;  %v3410_v23 = vadd.f32 %v3409_v17, %v3339_v29 }
 0x3ed   :  { %v3411_v32 = vpop.f32.mrf.mxu0 }
 0x3ee   :  { %v3412_v33 = vadd.f32 %v3411_v32, %v3341_v31  ;;  %v3481_v35 = vadd.f32 %v3480_v30, %v3410_v23  ;;  %v3482_v59 = vpop.f32.mrf.mxu1 }
 0x3f0   :  { %v3483_v36 = vadd.f32 %v3482_v59, %v3412_v33  ;;  %v3487_v39 = vmax.f32 %v3481_v35, 0.0 }
 0x3f2   :  { %v3488_v38 = vmax.f32 %v3483_v36, 0.0 }
 0x3f4   :  { %3694 = vmatprep.mubr.f32.mxu1 %v3488_v38 }
 0x3f5   :  { %3695 = vmatmul.mubr.f32.vlgmr.msra.gmra.mxu1 %v3487_v39 }
 0x40c   :  { %v3741_v40 = vpop.f32.mrf.mxu0 }
 0x40e   :  { %v3742_v42 = vpop.f32.mrf.mxu0 }
 0x40f   :  { %v3743_v34 = vadd.f32 %v3742_v42, %v3741_v40 }
 0x411   :  { %v3627_v46 = vadd.f32 %v3743_v34, %v3708_v43 }
 0x4b5   :  { %v3776_v44 = vpop.f32.mrf.mxu1 }
 0x4b7   :  { %v3777_v45 = vpop.f32.mrf.mxu1 }
 0x4b8   :  { %v3778_v41 = vadd.f32 %v3777_v45, %v3776_v44 }
 0x4ba   :  { %v3697_v47 = vadd.f32 %v3778_v41, %v3627_v46 }
 0x4bc   :  { %3701 = vst.msk [vmem:[%s8951_s5] sm:$0xff] %vm3700_vm1, %v3697_v47 }

</bundles_post_ra>
